<compile_context>
chip_gen: v7x
topology: tpu7x:2x2x1
jax: 0.10.0
libtpu: 0.0.40
codegen_flags: <defaults>
</compile_context>

<pallas_src>
import jax
import jax.numpy as jnp
from jax.experimental import pallas as pl
from jax.experimental.pallas import tpu as pltpu

# Per-generation guidance: 64 is v7x-safe; 128-256 works on v5e/v6e (raise
# vmem_limit_bytes accordingly).
BATCH_TILE_TARGET = 64


def _pick_batch_tile(batch):
    # Keep >=2 grid steps when possible so the "parallel" batch axis can be
    # sharded across v7x's two TensorCores; keep the tile a multiple of 8.
    half = ((max(batch, 2) + 1) // 2 + 7) // 8 * 8
    return max(8, min(BATCH_TILE_TARGET, half))


def net_kernel(x_ref, wb_ref, b1_ref, w2b_ref, b2_ref,
               fw1_ref, fb1_ref, fw2_ref, fb2_ref, out_ref):
    f32 = jnp.float32
    bf16 = jnp.bfloat16
    bt = x_ref.shape[1]

    # ---- conv1 (+bias+ReLU): one bf16 MXU matmul, M = 2*BT*12 = BT*24 ------
    # LHS rows are ordered (height-parity, batch, pooled-row); banded weight
    # columns are ordered (width-parity, pooled-col, channel).
    lhs1 = x_ref[...].reshape(2 * bt * 12, 140)                      # bf16
    y1 = jnp.dot(lhs1, wb_ref[...], preferred_element_type=f32)      # (BT*24,768)
    y1 = jnp.maximum(y1 + b1_ref[...], 0.0)

    # ---- maxpool1: width = lane-half max, height = contiguous sublane halves
    wp = jnp.maximum(y1[:, :384], y1[:, 384:])                       # (BT*24,384)
    p1 = jnp.maximum(wp[: bt * 12], wp[bt * 12:])                    # (BT*12,384)
    p1 = p1.astype(bf16).reshape(bt, 12, 384)                        # rows=(b,i2)

    # ---- conv2 (+bias+ReLU): one bf16 MXU matmul, K = 5*384 = 1920 ---------
    # Lane-concat of the 5 height-tap windows at 384-aligned boundaries.
    lhs2 = jnp.concatenate(
        [p1[:, kh:kh + 8, :].reshape(bt * 8, 384) for kh in range(5)], axis=1)
    y2 = jnp.dot(lhs2, w2b_ref[...], preferred_element_type=f32)     # (BT*8,512)
    y2 = jnp.maximum(y2 + b2_ref[...], 0.0)

    # ---- maxpool2: width = lane-half max; height = fold row pair into lanes
    y2w = jnp.maximum(y2[:, :256], y2[:, 256:])                      # (BT*8,256)
    pair = y2w.reshape(bt * 4, 512)                                  # rows=(b,oi2)
    v = jnp.maximum(pair[:, :256], pair[:, 256:]).reshape(bt, 1024)

    # ---- fc1 (+bias+ReLU): single K=1024 bf16 dot ---------------------------
    h1 = jnp.dot(v.astype(bf16), fw1_ref[...], preferred_element_type=f32)
    h1 = jnp.maximum(h1 + fb1_ref[...], 0.0)                         # (BT,512)

    # ---- fc2: lane-dense store (padded to 128 output lanes) -----------------
    out_ref[...] = (jnp.dot(h1.astype(bf16), fw2_ref[...],
                            preferred_element_type=f32) + fb2_ref[...])


def _prep_params(params):
    """Convert PyTorch-layout weights into kernel-friendly banded bf16 layouts."""
    f32, bf16 = jnp.float32, jnp.bfloat16

    # conv1 banded weight WB[(kh,p), (dj,j2,c)] = w1[c,0,kh,p-j], j = 2*j2+dj,
    # for 0 <= p-j <= 4 (else 0).
    w1t = jnp.transpose(params["conv1_w"][:, 0].astype(f32), (1, 2, 0))   # (5,5,32)
    p_i = jnp.arange(28)[:, None]
    j_i = jnp.arange(24)[None, :]
    d1 = p_i - j_i
    wb = jnp.where(((d1 >= 0) & (d1 <= 4))[None, :, :, None],
                   w1t[:, jnp.clip(d1, 0, 4), :], 0.0)                    # (5,28,24,32)
    wb = wb.reshape(5, 28, 12, 2, 32).transpose(0, 1, 3, 2, 4)            # (5,28,2,12,32)
    wb = wb.reshape(140, 768).astype(bf16)
    b1t = jnp.tile(params["conv1_b"].astype(f32), 24).reshape(1, 768)

    # conv2 banded weight W2B[(kh,jin,ci), (dj2,oj2,co)] = w2[co,ci,kh,jin-oj],
    # oj = 2*oj2+dj2, for 0 <= jin-oj <= 4 (else 0).
    w2t = jnp.transpose(params["conv2_w"].astype(f32), (2, 3, 1, 0))      # (5,5,32,64)
    jin = jnp.arange(12)[:, None]
    oj = jnp.arange(8)[None, :]
    d2 = jin - oj
    w2b = jnp.where(((d2 >= 0) & (d2 <= 4))[None, :, :, None, None],
                    w2t[:, jnp.clip(d2, 0, 4), :, :], 0.0)                # (5,12,8,32,64)
    w2b = w2b.transpose(0, 1, 3, 2, 4)                                    # (5,12,32,8,64)
    w2b = w2b.reshape(5, 384, 4, 2, 64).transpose(0, 1, 3, 2, 4)          # (5,384,2,4,64)
    w2b = w2b.reshape(1920, 512).astype(bf16)
    b2t = jnp.tile(params["conv2_b"].astype(f32), 8).reshape(1, 512)

    # fc1 over the CHW flatten, input columns reordered to (oi2, oj2, co).
    fw1 = params["fc1_w"].astype(f32).reshape(512, 64, 4, 4)              # [out,co,oi2,oj2]
    fw1 = fw1.transpose(2, 3, 1, 0).reshape(1024, 512).astype(bf16)
    fb1 = params["fc1_b"].astype(f32).reshape(1, 512)

    # fc2 padded to 128 output lanes for a dense final store.
    fw2 = jnp.zeros((512, 128), f32).at[:, :10].set(params["fc2_w"].astype(f32).T)
    fw2 = fw2.astype(bf16)
    fb2 = jnp.zeros((1, 128), f32).at[:, :10].set(
        params["fc2_b"].astype(f32).reshape(1, 10))
    return wb, b1t, w2b, b2t, fw1, fb1, fw2, fb2


@jax.jit
def net_forward(x_nchw, params):
    f32, bf16 = jnp.float32, jnp.bfloat16
    x = x_nchw[:, 0, :, :].astype(f32)                    # (B, 28, 28)
    b = x.shape[0]
    bt = _pick_batch_tile(b)
    bp = ((b + bt - 1) // bt) * bt
    if bp != b:                                           # pad batch to tile multiple
        x = jnp.pad(x, ((0, bp - b), (0, 0), (0, 0)))

    # conv1 height-window im2col (wrapper-side):
    #   xh[parity, b, i2, kh*28 + p] = x[b, 2*i2 + parity + kh, p]
    # so conv1 matmul rows come out ordered (height-parity, batch, pooled-row).
    win = jnp.stack([x[:, kh:kh + 24, :] for kh in range(5)], axis=2)  # (B,24,5,28)
    xh = win.reshape(bp, 12, 2, 140).transpose(2, 0, 1, 3).astype(bf16)  # (2,B,12,140)

    wb, b1t, w2b, b2t, fw1, fb1, fw2, fb2 = _prep_params(params)

    out = pl.pallas_call(
        net_kernel,
        out_shape=jax.ShapeDtypeStruct((bp, 128), f32),
        grid=(bp // bt,),
        in_specs=[
            pl.BlockSpec((2, bt, 12, 140), lambda i: (0, i, 0, 0)),  # x im2col tile
            pl.BlockSpec((140, 768), lambda i: (0, 0)),              # conv1 banded w
            pl.BlockSpec((1, 768), lambda i: (0, 0)),                # conv1 bias (tiled)
            pl.BlockSpec((1920, 512), lambda i: (0, 0)),             # conv2 banded w
            pl.BlockSpec((1, 512), lambda i: (0, 0)),                # conv2 bias (tiled)
            pl.BlockSpec((1024, 512), lambda i: (0, 0)),             # fc1 w (regrouped)
            pl.BlockSpec((1, 512), lambda i: (0, 0)),                # fc1 bias
            pl.BlockSpec((512, 128), lambda i: (0, 0)),              # fc2 w (padded)
            pl.BlockSpec((1, 128), lambda i: (0, 0)),                # fc2 bias (padded)
        ],
        out_specs=pl.BlockSpec((bt, 128), lambda i: (i, 0)),
        compiler_params=pltpu.CompilerParams(
            dimension_semantics=("parallel",),
            vmem_limit_bytes=48 * 1024 * 1024),
    )(xh, wb, b1t, w2b, b2t, fw1, fb1, fw2, fb2)
    return out[:b, :10]


def torch_reference_forward(x_nchw, params):
    """Pure-JAX re-statement of the PyTorch forward (NCHW), for verification."""
    dn = ("NCHW", "OIHW", "NCHW")
    y = jax.lax.conv_general_dilated(x_nchw, params["conv1_w"], (1, 1), "VALID",
                                     dimension_numbers=dn)
    y = jax.nn.relu(y + params["conv1_b"][None, :, None, None])
    y = jax.lax.reduce_window(y, -jnp.inf, jax.lax.max,
                              (1, 1, 2, 2), (1, 1, 2, 2), "VALID")
    y = jax.lax.conv_general_dilated(y, params["conv2_w"], (1, 1), "VALID",
                                     dimension_numbers=dn)
    y = jax.nn.relu(y + params["conv2_b"][None, :, None, None])
    y = jax.lax.reduce_window(y, -jnp.inf, jax.lax.max,
                              (1, 1, 2, 2), (1, 1, 2, 2), "VALID")
    y = y.reshape(y.shape[0], -1)                    # CHW flatten, like .view
    y = jax.nn.relu(y @ params["fc1_w"].T + params["fc1_b"])
    return y @ params["fc2_w"].T + params["fc2_b"]


if __name__ == "__main__":
    key = jax.random.PRNGKey(0)
    ks = jax.random.split(key, 9)

    def nrm(k, shape, scale):
        return (scale * jax.random.normal(k, shape)).astype(jnp.float32)

    params = {
        "conv1_w": nrm(ks[0], (32, 1, 5, 5), (5 * 5 * 1) ** -0.5),
        "conv1_b": nrm(ks[1], (32,), 0.05),
        "conv2_w": nrm(ks[2], (64, 32, 5, 5), (5 * 5 * 32) ** -0.5),
        "conv2_b": nrm(ks[3], (64,), 0.05),
        "fc1_w":   nrm(ks[4], (512, 1024), 1024 ** -0.5),
        "fc1_b":   nrm(ks[5], (512,), 0.05),
        "fc2_w":   nrm(ks[6], (10, 512), 512 ** -0.5),
        "fc2_b":   nrm(ks[7], (10,), 0.05),
    }
    x = jax.random.normal(ks[8], (16, 1, 28, 28), dtype=jnp.float32)

    out = jax.block_until_ready(net_forward(x, params))
    assert out.shape == (16, 10), out.shape

    ref = torch_reference_forward(x, params)
    err = float(jnp.max(jnp.abs(out - ref)))
    # bf16 MXU inputs with f32 accumulation vs. a pure-f32 reference.
    assert err < 5e-2, f"kernel vs reference mismatch, max abs err = {err}"

    print("KERNEL_OK")
</pallas_src>

<mosaic_0001>
module attributes {stable_mosaic.version = 11 : i64} {
  func.func @net_kernel(%arg0: i32, %arg1: memref<2x8x12x140xbf16, #tpu.memory_space<vmem>>, %arg2: memref<140x768xbf16, #tpu.memory_space<vmem>>, %arg3: memref<1x768xf32, #tpu.memory_space<vmem>>, %arg4: memref<1920x512xbf16, #tpu.memory_space<vmem>>, %arg5: memref<1x512xf32, #tpu.memory_space<vmem>>, %arg6: memref<1024x512xbf16, #tpu.memory_space<vmem>>, %arg7: memref<1x512xf32, #tpu.memory_space<vmem>>, %arg8: memref<512x128xbf16, #tpu.memory_space<vmem>>, %arg9: memref<1x128xf32, #tpu.memory_space<vmem>>, %arg10: memref<8x128xf32, #tpu.memory_space<vmem>>) attributes {dimension_semantics = [#tpu.dimension_semantics<parallel>], iteration_bounds = array<i64: 2>, scalar_prefetch = 0 : i64, scratch_operands = 0 : i64, tpu.core_type = #tpu.core_type<tc>, window_params = [{transform_indices = @transform_0, window_bounds = array<i64: 2, 8, 12, 140>}, {pipeline_mode = #tpu.pipeline_mode<synchronous>, transform_indices = @transform_1, window_bounds = array<i64: 140, 768>}, {pipeline_mode = #tpu.pipeline_mode<synchronous>, transform_indices = @transform_2, window_bounds = array<i64: 1, 768>}, {pipeline_mode = #tpu.pipeline_mode<synchronous>, transform_indices = @transform_3, window_bounds = array<i64: 1920, 512>}, {pipeline_mode = #tpu.pipeline_mode<synchronous>, transform_indices = @transform_4, window_bounds = array<i64: 1, 512>}, {pipeline_mode = #tpu.pipeline_mode<synchronous>, transform_indices = @transform_5, window_bounds = array<i64: 1024, 512>}, {pipeline_mode = #tpu.pipeline_mode<synchronous>, transform_indices = @transform_6, window_bounds = array<i64: 1, 512>}, {pipeline_mode = #tpu.pipeline_mode<synchronous>, transform_indices = @transform_7, window_bounds = array<i64: 512, 128>}, {pipeline_mode = #tpu.pipeline_mode<synchronous>, transform_indices = @transform_8, window_bounds = array<i64: 1, 128>}, {transform_indices = @transform_9, window_bounds = array<i64: 8, 128>}]} {
    %c0 = arith.constant 0 : index
    %c0_0 = arith.constant 0 : index
    %c0_1 = arith.constant 0 : index
    %c0_2 = arith.constant 0 : index
    %0 = vector.load %arg1[%c0, %c0_0, %c0_1, %c0_2] : memref<2x8x12x140xbf16, #tpu.memory_space<vmem>>, vector<2x8x12x140xbf16>
    %1 = vector.shape_cast %0 : vector<2x8x12x140xbf16> to vector<192x140xbf16>
    %c0_3 = arith.constant 0 : index
    %c0_4 = arith.constant 0 : index
    %2 = vector.load %arg2[%c0_3, %c0_4] : memref<140x768xbf16, #tpu.memory_space<vmem>>, vector<140x768xbf16>
    %cst = arith.constant dense<0.000000e+00> : vector<192x768xf32>
    %3 = tpu.matmul %1, %2, %cst {dimension_numbers = #tpu.dot_dimension_numbers<[1], [0], [0], [1], [0, 0, 1, 1], [], []>} : vector<192x140xbf16>, vector<140x768xbf16>, vector<192x768xf32> -> vector<192x768xf32>
    %c0_5 = arith.constant 0 : index
    %c0_6 = arith.constant 0 : index
    %4 = vector.load %arg3[%c0_5, %c0_6] : memref<1x768xf32, #tpu.memory_space<vmem>>, vector<1x768xf32>
    %5 = vector.broadcast %4 : vector<1x768xf32> to vector<192x768xf32>
    %6 = arith.addf %3, %5 : vector<192x768xf32>
    %cst_7 = arith.constant 0.000000e+00 : f32
    %7 = vector.broadcast %cst_7 : f32 to vector<192x768xf32>
    %8 = arith.maximumf %6, %7 : vector<192x768xf32>
    %9 = vector.extract_strided_slice %8 {offsets = [0, 0], sizes = [192, 384], strides = [1, 1]} : vector<192x768xf32> to vector<192x384xf32>
    %10 = vector.extract_strided_slice %8 {offsets = [0, 384], sizes = [192, 384], strides = [1, 1]} : vector<192x768xf32> to vector<192x384xf32>
    %11 = arith.maximumf %9, %10 : vector<192x384xf32>
    %12 = vector.extract_strided_slice %11 {offsets = [0, 0], sizes = [96, 384], strides = [1, 1]} : vector<192x384xf32> to vector<96x384xf32>
    %13 = vector.extract_strided_slice %11 {offsets = [96, 0], sizes = [96, 384], strides = [1, 1]} : vector<192x384xf32> to vector<96x384xf32>
    %14 = arith.maximumf %12, %13 : vector<96x384xf32>
    %15 = arith.truncf %14 : vector<96x384xf32> to vector<96x384xbf16>
    %16 = vector.shape_cast %15 : vector<96x384xbf16> to vector<8x12x384xbf16>
    %17 = vector.extract_strided_slice %16 {offsets = [0, 0, 0], sizes = [8, 8, 384], strides = [1, 1, 1]} : vector<8x12x384xbf16> to vector<8x8x384xbf16>
    %18 = vector.shape_cast %17 : vector<8x8x384xbf16> to vector<64x384xbf16>
    %19 = vector.extract_strided_slice %16 {offsets = [0, 1, 0], sizes = [8, 8, 384], strides = [1, 1, 1]} : vector<8x12x384xbf16> to vector<8x8x384xbf16>
    %20 = vector.shape_cast %19 : vector<8x8x384xbf16> to vector<64x384xbf16>
    %21 = vector.extract_strided_slice %16 {offsets = [0, 2, 0], sizes = [8, 8, 384], strides = [1, 1, 1]} : vector<8x12x384xbf16> to vector<8x8x384xbf16>
    %22 = vector.shape_cast %21 : vector<8x8x384xbf16> to vector<64x384xbf16>
    %23 = vector.extract_strided_slice %16 {offsets = [0, 3, 0], sizes = [8, 8, 384], strides = [1, 1, 1]} : vector<8x12x384xbf16> to vector<8x8x384xbf16>
    %24 = vector.shape_cast %23 : vector<8x8x384xbf16> to vector<64x384xbf16>
    %25 = vector.extract_strided_slice %16 {offsets = [0, 4, 0], sizes = [8, 8, 384], strides = [1, 1, 1]} : vector<8x12x384xbf16> to vector<8x8x384xbf16>
    %26 = vector.shape_cast %25 : vector<8x8x384xbf16> to vector<64x384xbf16>
    %27 = tpu.concatenate %18, %20, %22, %24, %26 in 1 : vector<64x384xbf16>, vector<64x384xbf16>, vector<64x384xbf16>, vector<64x384xbf16>, vector<64x384xbf16> -> vector<64x1920xbf16>
    %c0_8 = arith.constant 0 : index
    %c0_9 = arith.constant 0 : index
    %28 = vector.load %arg4[%c0_8, %c0_9] : memref<1920x512xbf16, #tpu.memory_space<vmem>>, vector<1920x512xbf16>
    %cst_10 = arith.constant dense<0.000000e+00> : vector<64x512xf32>
    %29 = tpu.matmul %27, %28, %cst_10 {dimension_numbers = #tpu.dot_dimension_numbers<[1], [0], [0], [1], [0, 0, 1, 1], [], []>} : vector<64x1920xbf16>, vector<1920x512xbf16>, vector<64x512xf32> -> vector<64x512xf32>
    %c0_11 = arith.constant 0 : index
    %c0_12 = arith.constant 0 : index
    %30 = vector.load %arg5[%c0_11, %c0_12] : memref<1x512xf32, #tpu.memory_space<vmem>>, vector<1x512xf32>
    %31 = vector.broadcast %30 : vector<1x512xf32> to vector<64x512xf32>
    %32 = arith.addf %29, %31 : vector<64x512xf32>
    %cst_13 = arith.constant 0.000000e+00 : f32
    %33 = vector.broadcast %cst_13 : f32 to vector<64x512xf32>
    %34 = arith.maximumf %32, %33 : vector<64x512xf32>
    %35 = vector.extract_strided_slice %34 {offsets = [0, 0], sizes = [64, 256], strides = [1, 1]} : vector<64x512xf32> to vector<64x256xf32>
    %36 = vector.extract_strided_slice %34 {offsets = [0, 256], sizes = [64, 256], strides = [1, 1]} : vector<64x512xf32> to vector<64x256xf32>
    %37 = arith.maximumf %35, %36 : vector<64x256xf32>
    %38 = vector.shape_cast %37 : vector<64x256xf32> to vector<32x512xf32>
    %39 = vector.extract_strided_slice %38 {offsets = [0, 0], sizes = [32, 256], strides = [1, 1]} : vector<32x512xf32> to vector<32x256xf32>
    %40 = vector.extract_strided_slice %38 {offsets = [0, 256], sizes = [32, 256], strides = [1, 1]} : vector<32x512xf32> to vector<32x256xf32>
    %41 = arith.maximumf %39, %40 : vector<32x256xf32>
    %42 = vector.shape_cast %41 : vector<32x256xf32> to vector<8x1024xf32>
    %43 = arith.truncf %42 : vector<8x1024xf32> to vector<8x1024xbf16>
    %c0_14 = arith.constant 0 : index
    %c0_15 = arith.constant 0 : index
    %44 = vector.load %arg6[%c0_14, %c0_15] : memref<1024x512xbf16, #tpu.memory_space<vmem>>, vector<1024x512xbf16>
    %cst_16 = arith.constant dense<0.000000e+00> : vector<8x512xf32>
    %45 = tpu.matmul %43, %44, %cst_16 {dimension_numbers = #tpu.dot_dimension_numbers<[1], [0], [0], [1], [0, 0, 1, 1], [], []>} : vector<8x1024xbf16>, vector<1024x512xbf16>, vector<8x512xf32> -> vector<8x512xf32>
    %c0_17 = arith.constant 0 : index
    %c0_18 = arith.constant 0 : index
    %46 = vector.load %arg7[%c0_17, %c0_18] : memref<1x512xf32, #tpu.memory_space<vmem>>, vector<1x512xf32>
    %47 = vector.broadcast %46 : vector<1x512xf32> to vector<8x512xf32>
    %48 = arith.addf %45, %47 : vector<8x512xf32>
    %cst_19 = arith.constant 0.000000e+00 : f32
    %49 = vector.broadcast %cst_19 : f32 to vector<8x512xf32>
    %50 = arith.maximumf %48, %49 : vector<8x512xf32>
    %51 = arith.truncf %50 : vector<8x512xf32> to vector<8x512xbf16>
    %c0_20 = arith.constant 0 : index
    %c0_21 = arith.constant 0 : index
    %52 = vector.load %arg8[%c0_20, %c0_21] : memref<512x128xbf16, #tpu.memory_space<vmem>>, vector<512x128xbf16>
    %cst_22 = arith.constant dense<0.000000e+00> : vector<8x128xf32>
    %53 = tpu.matmul %51, %52, %cst_22 {dimension_numbers = #tpu.dot_dimension_numbers<[1], [0], [0], [1], [0, 0, 1, 1], [], []>} : vector<8x512xbf16>, vector<512x128xbf16>, vector<8x128xf32> -> vector<8x128xf32>
    %c0_23 = arith.constant 0 : index
    %c0_24 = arith.constant 0 : index
    %54 = vector.load %arg9[%c0_23, %c0_24] : memref<1x128xf32, #tpu.memory_space<vmem>>, vector<1x128xf32>
    %55 = vector.broadcast %54 : vector<1x128xf32> to vector<8x128xf32>
    %56 = arith.addf %53, %55 : vector<8x128xf32>
    %c0_25 = arith.constant 0 : index
    %c0_26 = arith.constant 0 : index
    %57 = vector.load %arg10[%c0_25, %c0_26] : memref<8x128xf32, #tpu.memory_space<vmem>>, vector<8x128xf32>
    tpu.vector_store %arg10[%c0_25, %c0_26], %56 {strides = array<i32>} : memref<8x128xf32, #tpu.memory_space<vmem>>, vector<8x128xf32>,
    return
  }
  func.func @transform_0(%arg0: i32) -> (i32, i32, i32, i32) {
    %c0_i32 = arith.constant 0 : i32
    %c0_i32_0 = arith.constant 0 : i32
    %c0_i32_1 = arith.constant 0 : i32
    %c0_i32_2 = arith.constant 0 : i32
    return %c0_i32, %arg0, %c0_i32_0, %c0_i32_1 : i32, i32, i32, i32
  }
  func.func @transform_1(%arg0: i32) -> (i32, i32) {
    %c0_i32 = arith.constant 0 : i32
    %c0_i32_0 = arith.constant 0 : i32
    %c0_i32_1 = arith.constant 0 : i32
    return %c0_i32, %c0_i32_0 : i32, i32
  }
  func.func @transform_2(%arg0: i32) -> (i32, i32) {
    %c0_i32 = arith.constant 0 : i32
    %c0_i32_0 = arith.constant 0 : i32
    %c0_i32_1 = arith.constant 0 : i32
    return %c0_i32, %c0_i32_0 : i32, i32
  }
  func.func @transform_3(%arg0: i32) -> (i32, i32) {
    %c0_i32 = arith.constant 0 : i32
    %c0_i32_0 = arith.constant 0 : i32
    %c0_i32_1 = arith.constant 0 : i32
    return %c0_i32, %c0_i32_0 : i32, i32
  }
  func.func @transform_4(%arg0: i32) -> (i32, i32) {
    %c0_i32 = arith.constant 0 : i32
    %c0_i32_0 = arith.constant 0 : i32
    %c0_i32_1 = arith.constant 0 : i32
    return %c0_i32, %c0_i32_0 : i32, i32
  }
  func.func @transform_5(%arg0: i32) -> (i32, i32) {
    %c0_i32 = arith.constant 0 : i32
    %c0_i32_0 = arith.constant 0 : i32
    %c0_i32_1 = arith.constant 0 : i32
    return %c0_i32, %c0_i32_0 : i32, i32
  }
  func.func @transform_6(%arg0: i32) -> (i32, i32) {
    %c0_i32 = arith.constant 0 : i32
    %c0_i32_0 = arith.constant 0 : i32
    %c0_i32_1 = arith.constant 0 : i32
    return %c0_i32, %c0_i32_0 : i32, i32
  }
  func.func @transform_7(%arg0: i32) -> (i32, i32) {
    %c0_i32 = arith.constant 0 : i32
    %c0_i32_0 = arith.constant 0 : i32
    %c0_i32_1 = arith.constant 0 : i32
    return %c0_i32, %c0_i32_0 : i32, i32
  }
  func.func @transform_8(%arg0: i32) -> (i32, i32) {
    %c0_i32 = arith.constant 0 : i32
    %c0_i32_0 = arith.constant 0 : i32
    %c0_i32_1 = arith.constant 0 : i32
    return %c0_i32, %c0_i32_0 : i32, i32
  }
  func.func @transform_9(%arg0: i32) -> (i32, i32) {
    %c0_i32 = arith.constant 0 : i32
    %c0_i32_0 = arith.constant 0 : i32
    return %arg0, %c0_i32 : i32, i32
  }
}

</mosaic_0001>

<bundles_post_ra>
// kernel: tile.13
= control target key start
LH: loop header
LB: loop body
LE: loop exit
PB: predicated region body
PF: predicated region fallthrough
CT: control target
= control target key end

     0   :  { %s34_s0 = inlined_call_operand.vmem [shape: f32[32], index: 0, kind: input, shape index: {}]   ;;  %s35_s1 = inlined_call_operand.vmem [shape: f32[24,32], index: 1, kind: output, shape index: {}]  }
   0x1   :  { %v4_v0 = vld [vmem:[%s34_s0] ss:$0 sm:$0xff] }
   0x2   :  { %5 = vst [vmem:[%s35_s1] sm:$0xff] %v4_v0  ;;  %10 = vst [vmem:[%s35_s1 + $0x8] sm:$0xff] %v4_v0 }
   0x3   :  { %11 = vst [vmem:[%s35_s1 + $0x10] sm:$0xff] %v4_v0 }

// kernel: tile.14
= control target key start
LH: loop header
LB: loop body
LE: loop exit
PB: predicated region body
PF: predicated region fallthrough
CT: control target
= control target key end

     0   :  { %s77_s8 = smov 96   ;;  %vm3_vm0 = vcmask 261120   ;;  %s79_s15 = smov 64   ;;  %vm10_vm1 = vcmask 1048320   ;;  %vm17_vm2 = vcmask 785920   ;;  %vm24_vm3 = vcmask 523520   ;;  %s120_s0 = inlined_call_operand.vmem [shape: f32[24,32], index: 0, kind: input, shape index: {}]   ;;  %s121_s1 = inlined_call_operand.vmem [shape: f32[1,768], index: 1, kind: output, shape index: {}]  }
   0x1   :  { %v66_v0 = vld [vmem:[%s120_s0 + $0x3] ss:$4 sm:$0x3f]   ;;  %v67_v1 = vld [vmem:[%s120_s0 + $0x2] ss:$4 sm:$0x3f]  }
   0x2   :  { %8 = vrot.lane.b32.xlu0 %v66_v0, %s77_s8  ;;  %v68_v2 = vld [vmem:[%s120_s0 + $0x1] ss:$4 sm:$0x3f]   ;;  %v2_v3 = vld [vmem:[%s120_s0] ss:$4 sm:$0x3f]  }
   0x3   :  { %s78_s0 = smov 32   ;;  %4 = vst.msk [vmem:[#allocation0] ss:$8 sm:$0xf] %vm3_vm0, %v2_v3  }
   0x4   :  { %22 = vrot.lane.b32.xlu1 %v68_v2, %s78_s0  ;;  %5 = vst.msk [vmem:[#allocation0] ss:$8 sm:$0x30] %vm3_vm0, %v2_v3  }
   0x6   :  { %15 = vrot.lane.b32.xlu0 %v67_v1, %s79_s15 }
  0x74   :  { %v9_v4 = vpop.permute.xlu0 %8  }
  0x75   :  { %11 = vst.msk [vmem:[#allocation0] ss:$8 sm:$0xf] %vm10_vm1, %v9_v4   ;;  %12 = vst.msk [vmem:[#allocation0] ss:$8 sm:$0x30] %vm10_vm1, %v9_v4  }
  0x76   :  { %v23_v5 = vpop.permute.xlu1 %22  }
  0x78   :  { %v16_v6 = vpop.permute.xlu0 %15  }
  0x79   :  { %18 = vst.msk [vmem:[#allocation0] ss:$8 sm:$0xf] %vm17_vm2, %v16_v6   ;;  %19 = vst.msk [vmem:[#allocation0] ss:$8 sm:$0x30] %vm17_vm2, %v16_v6  }
  0x7a   :  { %25 = vst.msk [vmem:[#allocation0] ss:$8 sm:$0xf] %vm24_vm3, %v23_v5   ;;  %26 = vst.msk [vmem:[#allocation0] ss:$8 sm:$0x30] %vm24_vm3, %v23_v5  }
  0x81   :  { %v30_v7 = vld [vmem:[#allocation0] sm:$0x1]  ;;  %v34_v8 = vld [vmem:[#allocation0 + $0x8] sm:$0x1]  ;;  %v39_v9 = vld [vmem:[#allocation0 + $0x10] sm:$0x1] }
  0x82   :  { %32 = vst [vmem:[%s121_s1] sm:$0x1] %v30_v7  ;;  %69 = vst [vmem:[%s121_s1 + $0x1] sm:$0x1] %v34_v8  ;;  %v45_v10 = vld [vmem:[#allocation0 + $0x18] sm:$0x1] }
  0x83   :  { %70 = vst [vmem:[%s121_s1 + $0x2] sm:$0x1] %v39_v9  ;;  %v51_v11 = vld [vmem:[#allocation0 + $0x20] sm:$0x1]  ;;  %v57_v12 = vld [vmem:[#allocation0 + $0x28] sm:$0x1] }
  0x84   :  { %71 = vst [vmem:[%s121_s1 + $0x3] sm:$0x1] %v45_v10  ;;  %72 = vst [vmem:[%s121_s1 + $0x4] sm:$0x1] %v51_v11 }
  0x85   :  { %73 = vst [vmem:[%s121_s1 + $0x5] sm:$0x1] %v57_v12 }

// kernel: tile.18
= control target key start
LH: loop header
LB: loop body
LE: loop exit
PB: predicated region body
PF: predicated region fallthrough
CT: control target
= control target key end

     0   :  { %s22_s0 = inlined_call_operand.vmem [shape: f32[64], index: 0, kind: input, shape index: {}]   ;;  %s23_s1 = inlined_call_operand.vmem [shape: f32[8,64], index: 1, kind: output, shape index: {}]  }
   0x1   :  { %v4_v0 = vld [vmem:[%s22_s0] ss:$0 sm:$0xff] }
   0x2   :  { %5 = vst [vmem:[%s23_s1] sm:$0xff] %v4_v0 }

// kernel: tile.19
= control target key start
LH: loop header
LB: loop body
LE: loop exit
PB: predicated region body
PF: predicated region fallthrough
CT: control target
= control target key end

     0   :  { %vm3_vm0 = vcmask 523264   ;;  %s41_s8 = smov 64   ;;  %vm9_vm1 = vcmask 1048064   ;;  %s70_s0 = inlined_call_operand.vmem [shape: f32[8,64], index: 0, kind: input, shape index: {}]   ;;  %s71_s1 = inlined_call_operand.vmem [shape: f32[1,512], index: 1, kind: output, shape index: {}]  }
   0x1   :  { %v36_v0 = vld [vmem:[%s70_s0 + $0x1] ss:$2 sm:$0xf]   ;;  %v2_v1 = vld [vmem:[%s70_s0] ss:$2 sm:$0xf]  }
   0x2   :  { %7 = vrot.lane.b32.xlu0 %v36_v0, %s41_s8  ;;  %4 = vst.msk [vmem:[#allocation0] ss:$8 sm:$0xf] %vm3_vm0, %v2_v1  }
  0x74   :  { %v8_v2 = vpop.permute.xlu0 %7  }
  0x75   :  { %10 = vst.msk [vmem:[#allocation0] ss:$8 sm:$0xf] %vm9_vm1, %v8_v2  }
  0x7c   :  { %v14_v3 = vld [vmem:[#allocation0] sm:$0x1]  ;;  %v18_v4 = vld [vmem:[#allocation0 + $0x8] sm:$0x1]  ;;  %v23_v5 = vld [vmem:[#allocation0 + $0x10] sm:$0x1] }
  0x7d   :  { %16 = vst [vmem:[%s71_s1] sm:$0x1] %v14_v3  ;;  %37 = vst [vmem:[%s71_s1 + $0x1] sm:$0x1] %v18_v4  ;;  %v29_v6 = vld [vmem:[#allocation0 + $0x18] sm:$0x1] }
  0x7e   :  { %38 = vst [vmem:[%s71_s1 + $0x2] sm:$0x1] %v23_v5  ;;  %39 = vst [vmem:[%s71_s1 + $0x3] sm:$0x1] %v29_v6 }

// kernel: net_forward.1
= control target key start
LH: loop header
LB: loop body
LE: loop exit
PB: predicated region body
PF: predicated region fallthrough
CT: control target
= control target key end

     0   :  { %14 = vsyncpa [#allocation4], 0  ;;  %s17745_s0 = inlined_call_operand.vmem [shape: bf16[2,16,12,140], index: 0, kind: input, shape index: {}]   ;;  %s17746_s1 = inlined_call_operand.vmem [shape: bf16[140,768], index: 1, kind: input, shape index: {}]   ;;  %s17747_s2 = inlined_call_operand.vmem [shape: f32[1,768], index: 2, kind: input, shape index: {}]   ;;  %s17748_s3 = inlined_call_operand.vmem [shape: bf16[1920,512], index: 3, kind: input, shape index: {}]   ;;  %s17749_s4 = inlined_call_operand.vmem [shape: f32[1,512], index: 4, kind: input, shape index: {}]   ;;  %s17750_s5 = inlined_call_operand.vmem [shape: bf16[1024,512], index: 5, kind: input, shape index: {}]   ;;  %s17751_s6 = inlined_call_operand.vmem [shape: f32[1,512], index: 6, kind: input, shape index: {}]   ;;  %s17752_s7 = inlined_call_operand.vmem [shape: bf16[512,128], index: 7, kind: input, shape index: {}]   ;;  %s17753_s8 = inlined_call_operand.vmem [shape: f32[1,128], index: 8, kind: input, shape index: {}]   ;;  %s17754_s9 = inlined_call_operand.hbm [shape: f32[16,128], index: 9, kind: output, shape index: {}]  }
   0x1   :  { %16 = vsyncpa [#allocation4 + $0x1], 0  ;;  %s13135_s30 = smov 0   ;;  %s13137_s10 = smov 0  }
   0x2   :  { %s13139_s11 = smov 0   ;;  %s13141_s12 = smov 0  }
   0x3 LB: > { %s10467_s13 = sadd.s32 4294967295, %s13078_s12   ;;  %s10468_s14 = sadd.s32 4294967294, %s13078_s12   ;;  %s13078_s12 = sphi %s13141_s12, %s18100_s12   ;;  %s13074_s11 = sphi %s13139_s11, %s18099_s11   ;;  %s13070_s10 = sphi %s13137_s10, %s18098_s10   ;;  %s13066_s30 = sphi %s13135_s30, %s18097_s30  }
   0x4   : > { %s13158_s15 = sadd.s32 1, %s13078_s12   ;;  %s29_s16 = sadd.s32 1, %s13074_s11 }
   0x5   : > { %s26_s17 = ssub.s32 %s13078_s12, %s13158_s15  ;;  %p36_p0 = scmp.ne.s32.totalorder %s13074_s11, %s13070_s10 }
   0x6   : > { %p27_p1 = scmp.eq.s32.totalorder %s26_s17, 0  ;;  %p37_p2 = scmp.eq.s32.totalorder %s13078_s12, 0 }
   0x7   : > { %p234_p3 = scmp.eq.s32.totalorder %s10467_s13, 1  ;;  %p239_p4 = scmp.ne.s32.totalorder %s13070_s10, %s13066_s30 }
   0x8   : > { %s13171_s18 = scalar_select %p27_p1, %s13074_s11, %s29_s16  }
   0x9   : > { %p38_p5 = por %p37_p2, %p36_p0  ;;  %p13173_p6 = por %p234_p3, %p36_p0 }
   0xa   : > { %p240_p7 = scmp.eq.s32.totalorder %s10468_s14, 1  ;;  %p10470_p9 = scmp.ge.s32.totalorder %s13078_s12, 2 }
   0xc   : > { %p13177_p8 = por %p240_p7, %p239_p4  ;;  %280 = sbr.rel (%p10470_p9) target bundleno = 39 (0x27), region = 48 }
  0x13   : > { %283 = sbr.rel (!%p38_p5) target bundleno = 39 (0x27), region = 52  ;;  %s285_s21 = sand.u32 (%p38_p5), 1, %s13074_s11  }
  0x14   : > { %s11427_s22 = sshll.u32 (%p38_p5), %s13078_s12, 7  ;;  %s10471_s23 = sshll.u32 (%p38_p5), %s285_s21, 8 }
  0x15   : > { %s13189_s26 = scalar_lea.vmem (%p38_p5), %s17745_s0, %s11427_s22  ;;  %s13194_s27 = scalar_lea.vmem (%p38_p5), [#allocation2], %s10471_s23 }
  0x16   : > { %v381_v0 = vld [vmem:[%s13189_s26] sm:$0xff] (%p38_p5)  ;;  %v383_v1 = vld [vmem:[%s13189_s26 + $0x8] sm:$0xff] (%p38_p5)  ;;  %v385_v2 = vld [vmem:[%s13189_s26 + $0x10] sm:$0xff] (%p38_p5) }
  0x17   : > { %382 = vst [vmem:[%s13194_s27] sm:$0xff] (%p38_p5), %v381_v0  ;;  %384 = vst [vmem:[%s13194_s27 + $0x8] sm:$0xff] (%p38_p5), %v383_v1  ;;  %v387_v3 = vld [vmem:[%s13189_s26 + $0x18] sm:$0xff] (%p38_p5)  ;;  %v389_v4 = vld [vmem:[%s13189_s26 + $0x20] sm:$0xff] (%p38_p5) }
  0x18   : > { %386 = vst [vmem:[%s13194_s27 + $0x10] sm:$0xff] (%p38_p5), %v385_v2  ;;  %v391_v5 = vld [vmem:[%s13189_s26 + $0x28] sm:$0xff] (%p38_p5)  ;;  %388 = vst [vmem:[%s13194_s27 + $0x18] sm:$0xff] (%p38_p5), %v387_v3  ;;  %v393_v6 = vld [vmem:[%s13189_s26 + $0x30] sm:$0xff] (%p38_p5) }
  0x19   : > { %390 = vst [vmem:[%s13194_s27 + $0x20] sm:$0xff] (%p38_p5), %v389_v4  ;;  %392 = vst [vmem:[%s13194_s27 + $0x28] sm:$0xff] (%p38_p5), %v391_v5  ;;  %v395_v7 = vld [vmem:[%s13189_s26 + $0x38] sm:$0xff] (%p38_p5)  ;;  %v397_v8 = vld [vmem:[%s13189_s26 + $0x40] sm:$0xff] (%p38_p5) }
  0x1a   : > { %394 = vst [vmem:[%s13194_s27 + $0x30] sm:$0xff] %v393_v6  ;;  %396 = vst [vmem:[%s13194_s27 + $0x38] sm:$0xff] %v395_v7  ;;  %v399_v9 = vld [vmem:[%s13189_s26 + $0x48] sm:$0xff]  ;;  %v401_v10 = vld [vmem:[%s13189_s26 + $0x50] sm:$0xff] }
  0x1b   : > { %398 = vst [vmem:[%s13194_s27 + $0x40] sm:$0xff] %v397_v8  ;;  %v403_v11 = vld [vmem:[%s13189_s26 + $0x58] sm:$0xff]  ;;  %400 = vst [vmem:[%s13194_s27 + $0x48] sm:$0xff] %v399_v9  ;;  %v405_v12 = vld [vmem:[%s13189_s26 + $0x60] sm:$0xff] }
  0x1c   : > { %402 = vst [vmem:[%s13194_s27 + $0x50] sm:$0xff] %v401_v10  ;;  %404 = vst [vmem:[%s13194_s27 + $0x58] sm:$0xff] %v403_v11  ;;  %v407_v13 = vld [vmem:[%s13189_s26 + $0x68] sm:$0xff]  ;;  %v409_v14 = vld [vmem:[%s13189_s26 + $0x70] sm:$0xff] }
  0x1d   : > { %406 = vst [vmem:[%s13194_s27 + $0x60] sm:$0xff] %v405_v12  ;;  %408 = vst [vmem:[%s13194_s27 + $0x68] sm:$0xff] %v407_v13  ;;  %v411_v15 = vld [vmem:[%s13189_s26 + $0x78] sm:$0xff]  ;;  %v413_v16 = vld [vmem:[%s13189_s26 + $0x100] sm:$0xff] }
  0x1e   : > { %410 = vst [vmem:[%s13194_s27 + $0x70] sm:$0xff] %v409_v14  ;;  %v415_v17 = vld [vmem:[%s13189_s26 + $0x108] sm:$0xff]  ;;  %412 = vst [vmem:[%s13194_s27 + $0x78] sm:$0xff] %v411_v15  ;;  %v417_v18 = vld [vmem:[%s13189_s26 + $0x110] sm:$0xff] }
  0x1f   : > { %414 = vst [vmem:[%s13194_s27 + $0x80] sm:$0xff] %v413_v16  ;;  %416 = vst [vmem:[%s13194_s27 + $0x88] sm:$0xff] %v415_v17  ;;  %v419_v19 = vld [vmem:[%s13189_s26 + $0x118] sm:$0xff]  ;;  %v421_v20 = vld [vmem:[%s13189_s26 + $0x120] sm:$0xff] }
  0x20   : > { %418 = vst [vmem:[%s13194_s27 + $0x90] sm:$0xff] %v417_v18  ;;  %420 = vst [vmem:[%s13194_s27 + $0x98] sm:$0xff] %v419_v19  ;;  %v423_v21 = vld [vmem:[%s13189_s26 + $0x128] sm:$0xff]  ;;  %v425_v22 = vld [vmem:[%s13189_s26 + $0x130] sm:$0xff] }
  0x21   : > { %422 = vst [vmem:[%s13194_s27 + $0xa0] sm:$0xff] %v421_v20  ;;  %v427_v23 = vld [vmem:[%s13189_s26 + $0x138] sm:$0xff]  ;;  %424 = vst [vmem:[%s13194_s27 + $0xa8] sm:$0xff] %v423_v21  ;;  %v429_v24 = vld [vmem:[%s13189_s26 + $0x140] sm:$0xff] }
  0x22   : > { %426 = vst [vmem:[%s13194_s27 + $0xb0] sm:$0xff] %v425_v22  ;;  %428 = vst [vmem:[%s13194_s27 + $0xb8] sm:$0xff] %v427_v23  ;;  %v431_v25 = vld [vmem:[%s13189_s26 + $0x148] sm:$0xff]  ;;  %v433_v26 = vld [vmem:[%s13189_s26 + $0x150] sm:$0xff] }
  0x23   : > { %430 = vst [vmem:[%s13194_s27 + $0xc0] sm:$0xff] %v429_v24  ;;  %432 = vst [vmem:[%s13194_s27 + $0xc8] sm:$0xff] %v431_v25  ;;  %v435_v27 = vld [vmem:[%s13189_s26 + $0x158] sm:$0xff]  ;;  %v437_v28 = vld [vmem:[%s13189_s26 + $0x160] sm:$0xff] }
  0x24   : > { %434 = vst [vmem:[%s13194_s27 + $0xd0] sm:$0xff] %v433_v26  ;;  %v439_v29 = vld [vmem:[%s13189_s26 + $0x168] sm:$0xff]  ;;  %436 = vst [vmem:[%s13194_s27 + $0xd8] sm:$0xff] %v435_v27  ;;  %v441_v30 = vld [vmem:[%s13189_s26 + $0x170] sm:$0xff] }
  0x25   : > { %438 = vst [vmem:[%s13194_s27 + $0xe0] sm:$0xff] %v437_v28  ;;  %440 = vst [vmem:[%s13194_s27 + $0xe8] sm:$0xff] %v439_v29  ;;  %v443_v31 = vld [vmem:[%s13189_s26 + $0x178] sm:$0xff] }
  0x26   : > { %442 = vst [vmem:[%s13194_s27 + $0xf0] sm:$0xff] %v441_v30  ;;  %444 = vst [vmem:[%s13194_s27 + $0xf8] sm:$0xff] %v443_v31 }
  0x27 PF: > { %p10475_p10 = scmp.ge.s32.totalorder %s13078_s12, 1  ;;  %p449_p11 = scmp.lt.s32.totalorder %s13078_s12, 3 }
  0x29   : > { %p450_p12 = pnand %p10475_p10, %p449_p11 }
  0x2b   : > { %453 = sbr.rel (%p450_p12) target bundleno = 1857 (0x741), region = 90 }
  0x32   : > { %v11799_v32 = vld [vmem:[%s17746_s1 + $0x4] ss:$24 sps:$4 sm:$0xff]   ;;  %v11803_v34 = vld [vmem:[%s17746_s1] ss:$24 sps:$4 sm:$0xff]   ;;  %v11805_v36 = vld [vmem:[%s17746_s1 + $0x34] ss:$24 sps:$4 sm:$0xff]   ;;  %v853_v54 = vlaneseq }
  0x33   : > { %v11801_v33 = vld [vmem:[%s17746_s1 + $0xc] ss:$24 sps:$4 sm:$0xff]   ;;  %1431 = vmatprep.subr.bf16.mxu0 %v11799_v32  ;;  %v11804_v35 = vld [vmem:[%s17746_s1 + $0x8] ss:$24 sps:$4 sm:$0xff]   ;;  %v11807_v37 = vld [vmem:[%s17746_s1 + $0x3c] ss:$24 sps:$4 sm:$0xff]  }
  0x34   : > { %1584 = vmatprep.subr.bf16.mxu1 %v11801_v33  ;;  %1432 = vmatpush1.bf16.msra.mxu0 %v11803_v34  ;;  %v11809_v38 = vld [vmem:[%s17746_s1 + $0x30] ss:$24 sps:$4 sm:$0xff]   ;;  %v11811_v40 = vld [vmem:[%s17746_s1 + $0x64] ss:$24 sps:$4 sm:$0xff]   ;;  %v11815_v42 = vld [vmem:[%s17746_s1 + $0x60] ss:$24 sps:$4 sm:$0xff]  }
  0x35   : > { %1585 = vmatpush1.bf16.msra.mxu1 %v11804_v35  ;;  %1433 = vmatprep.subr.bf16.mxu0 %v11805_v36  ;;  %v11810_v39 = vld [vmem:[%s17746_s1 + $0x38] ss:$24 sps:$4 sm:$0xff]   ;;  %v11813_v41 = vld [vmem:[%s17746_s1 + $0x6c] ss:$24 sps:$4 sm:$0xff]   ;;  %v11816_v43 = vld [vmem:[%s17746_s1 + $0x68] ss:$24 sps:$4 sm:$0xff]  }
  0x36   : > { %1586 = vmatprep.subr.bf16.mxu1 %v11807_v37  ;;  %v11817_v44 = vld [vmem:[%s17746_s1 + $0x94] ss:$24 sps:$4 sm:$0xff]   ;;  %v11821_v46 = vld [vmem:[%s17746_s1 + $0x90] ss:$24 sps:$4 sm:$0xff]   ;;  %v11823_v48 = vld [vmem:[%s17746_s1 + $0xc4] ss:$24 sps:$4 sm:$0xff]  }
  0x37   : > { %v11819_v45 = vld [vmem:[%s17746_s1 + $0x9c] ss:$24 sps:$4 sm:$0xff]   ;;  %v11822_v47 = vld [vmem:[%s17746_s1 + $0x98] ss:$24 sps:$4 sm:$0xff]   ;;  %v11825_v49 = vld [vmem:[%s17746_s1 + $0xcc] ss:$24 sps:$4 sm:$0xff]  }
  0x38   : > { %1434 = vmatpush1.bf16.msra.mxu0 %v11809_v38  ;;  %s13314_s28 = sand.u32 1, %s13070_s10   ;;  %v11827_v50 = vld [vmem:[%s17746_s1 + $0xc0] ss:$24 sps:$4 sm:$0xff]   ;;  %v11829_v52 = vld [vmem:[%s17746_s1 + $0xf4] ss:$24 sps:$4 sm:$0xff]   ;;  %v13341_v61 = vshrl.u32 %v853_v54, 7 }
  0x39   : > { %1587 = vmatpush1.bf16.msra.mxu1 %v11810_v39  ;;  %1435 = vmatprep.subr.bf16.mxu0 %v11811_v40  ;;  %v11828_v51 = vld [vmem:[%s17746_s1 + $0xc8] ss:$24 sps:$4 sm:$0xff]   ;;  %v11831_v53 = vld [vmem:[%s17746_s1 + $0xfc] ss:$24 sps:$4 sm:$0xff]   ;;  %s10476_s25 = sshll.u32 %s13314_s28, 8  ;;  %vm1412_vm0 = vcmask 1045504  }
  0x3a   : > { %1588 = vmatprep.subr.bf16.mxu1 %v11813_v41  ;;  %v13080_v55 = vmov 1983009808   ;;  %v11833_v57 = vld [vmem:[%s17746_s1 + $0xf0] ss:$24 sps:$4 sm:$0xff]   ;;  %v11835_v59 = vld [vmem:[%s17746_s1 + $0x124] ss:$24 sps:$4 sm:$0xff]  }
  0x3b   : > { %v886_v56 = vunpack.c.l.s4 %v13080_v55  ;;  %v11834_v58 = vld [vmem:[%s17746_s1 + $0xf8] ss:$24 sps:$4 sm:$0xff]   ;;  %v11837_v60 = vld [vmem:[%s17746_s1 + $0x12c] ss:$24 sps:$4 sm:$0xff]   ;;  %17856 = vst [vmem:[#allocation6_spill] sm:$0xff] %v13341_v61  ;;  %s13355_s21 = scalar_lea.vmem [#allocation2], %s10476_s25 }
  0x3c   : > { %1436 = vmatpush1.bf16.msra.mxu0 %v11815_v42  ;;  %v11839_v63 = vld [vmem:[%s17746_s1 + $0x120] ss:$24 sps:$4 sm:$0xff]   ;;  %v11841_v1 = vld [vmem:[%s17746_s1 + $0x154] ss:$24 sps:$4 sm:$0xff]   ;;  %v11845_v9 = vld [vmem:[%s17746_s1 + $0x150] ss:$24 sps:$4 sm:$0xff]  }
  0x3d   : > { %1589 = vmatpush1.bf16.msra.mxu1 %v11816_v43  ;;  %1437 = vmatprep.subr.bf16.mxu0 %v11817_v44  ;;  %v887_v62 = vunpack.c.0.s8 %v886_v56  ;;  %v11840_v0 = vld [vmem:[%s17746_s1 + $0x128] ss:$24 sps:$4 sm:$0xff]   ;;  %v11843_v2 = vld [vmem:[%s17746_s1 + $0x15c] ss:$24 sps:$4 sm:$0xff]   ;;  %v11846_v16 = vld [vmem:[%s17746_s1 + $0x158] ss:$24 sps:$4 sm:$0xff]  }
  0x3e   : > { %1590 = vmatprep.subr.bf16.mxu1 %v11819_v45  ;;  %v10478_v3 = vld.sshfl [vmem:[%s13355_s21] sm:$0xff pattern:$0x76325410]  ;;  %v10480_v8 = vld.sshfl [vmem:[%s13355_s21 + $0x10] sm:$0xff pattern:$0x76325410] }
  0x3f   : > { %v11851_v4 = vld [vmem:[%s17746_s1 + $0x180] ss:$24 sps:$4 sm:$0x3f]   ;;  %v564_v6 = vcombine.high %v10478_v3, %v10478_v3  ;;  %v13363_v7 = vsub.s32 %v887_v62, %v13341_v61  ;;  %v11847_v10 = vld [vmem:[%s17746_s1 + $0x184] ss:$24 sps:$4 sm:$0x3f]   ;;  %v579_v13 = vcombine.high %v10480_v8, %v10480_v8 }
  0x40   : > { %1438 = vmatpush1.bf16.msra.mxu0 %v11821_v46  ;;  %v10479_v5 = vld.sshfl [vmem:[%s13355_s21 + $0x8] sm:$0xf pattern:$0x76325410]  ;;  %v1414_v23 = vsel %vm1412_vm0, %v11851_v4, 0  ;;  %vm1375_vm1 = vcmask 97280  }
  0x41   : > { %1591 = vmatpush1.bf16.msra.mxu1 %v11822_v47  ;;  %1439 = vmatprep.subr.bf16.mxu0 %v11823_v48  ;;  %17857 = vst [vmem:[#allocation7_spill] sm:$0xff] %v13363_v7  ;;  %v11849_v11 = vld [vmem:[%s17746_s1 + $0x18c] ss:$24 sps:$4 sm:$0x3f]   ;;  %v883_v14 = vcombine.low %v10478_v3, %v564_v6  ;;  %v884_v15 = vcombine.low %v10479_v5, %v10480_v8  ;;  %v11853_v35 = vld [vmem:[%s17746_s1 + $0x10] ss:$24 sps:$4 sm:$0xff]  }
  0x42   : > { %1592 = vmatprep.subr.bf16.mxu1 %v11825_v49  ;;  %v11852_v12 = vld [vmem:[%s17746_s1 + $0x188] ss:$24 sps:$4 sm:$0x3f]   ;;  %v10484_v25 = vld.sshfl [vmem:[%s13355_s21 + $0x30] sm:$0xff pattern:$0x76325410] }
  0x43   : > { %v10481_v17 = vld.sshfl [vmem:[%s13355_s21 + $0x18] sm:$0xf pattern:$0x76325410]  ;;  %v891_v18 = vrot.slane %v883_v14, %v13363_v7  ;;  %v898_v19 = vrot.slane %v884_v15, %v13363_v7  ;;  %v1420_v26 = vsel %vm1412_vm0, %v11852_v12, 0  ;;  %v609_v30 = vcombine.high %v10484_v25, %v10484_v25  ;;  %s10477_s17 = sshll.u32 %s13314_s28, 3 }
  0x44   : > { %1440 = vmatpush1.bf16.msra.mxu0 %v11827_v50  ;;  %v10482_v20 = vld.sshfl [vmem:[%s13355_s21 + $0x20] sm:$0xff pattern:$0x76325410]  ;;  %v901_v21 = vcombine.low %v579_v13, %v10481_v17  ;;  %v11855_v31 = vld [vmem:[%s17746_s1 + $0x14] ss:$24 sps:$4 sm:$0xff]   ;;  %vm2587_vm9 = vcmask 1040384  }
  0x45   : > { %1593 = vmatpush1.bf16.msra.mxu1 %v11828_v51  ;;  %1441 = vmatprep.subr.bf16.mxu0 %v11829_v52  ;;  %v594_v22 = vcombine.high %v10482_v20, %v10482_v20  ;;  %v13386_v24 = vcombine.high %v891_v18, %v898_v19  ;;  %v10483_v29 = vld.sshfl [vmem:[%s13355_s21 + $0x28] sm:$0xf pattern:$0x76325410]  ;;  %v13403_v34 = vcombine.low %v891_v18, %v898_v19  ;;  %v11858_v37 = vld [vmem:[%s17746_s1 + $0x44] ss:$24 sps:$4 sm:$0xff]  }
  0x46   : > { %1594 = vmatprep.subr.bf16.mxu1 %v11831_v53  ;;  %v909_v28 = vrot.slane %v901_v21, %v13363_v7  ;;  %v10485_v32 = vld.sshfl [vmem:[%s13355_s21 + $0x38] sm:$0xf pattern:$0x76325410]  ;;  %v919_v38 = vcombine.low %v10483_v29, %v10484_v25  ;;  %v11861_v42 = vld [vmem:[%s17746_s1 + $0x74] ss:$24 sps:$4 sm:$0xff]  }
  0x47   : > { %v902_v27 = vcombine.low %v10482_v20, %v594_v22  ;;  %10565 = vmatprep.mubr.msk.bf16.mxu0 %vm1375_vm1, %v13386_v24  ;;  %10578 = vmatprep.mubr.msk.bf16.mxu1 %vm1375_vm1, %v13386_v24  ;;  %v920_v39 = vcombine.low %v609_v30, %v10485_v32  ;;  %v10486_v40 = vld.sshfl [vmem:[%s13355_s21 + $0x40] sm:$0xff pattern:$0x76325410]  ;;  %v10488_v45 = vld.sshfl [vmem:[%s13355_s21 + $0x50] sm:$0xff pattern:$0x76325410] }
  0x48   : > { %1442 = vmatpush1.bf16.msra.mxu0 %v11833_v57  ;;  %v11856_v41 = vld [vmem:[%s17746_s1 + $0x40] ss:$24 sps:$4 sm:$0xff]   ;;  %v927_v43 = vrot.slane %v919_v38, %v13363_v7  ;;  %v624_v46 = vcombine.high %v10486_v40, %v10486_v40  ;;  %v10487_v47 = vld.sshfl [vmem:[%s13355_s21 + $0x48] sm:$0xf pattern:$0x76325410]  ;;  %v639_v55 = vcombine.high %v10488_v45, %v10488_v45 }
  0x49   : > { %1595 = vmatpush1.bf16.msra.mxu1 %v11834_v58  ;;  %1443 = vmatprep.subr.bf16.mxu0 %v11835_v59  ;;  %v916_v33 = vrot.slane %v902_v27, %v13363_v7  ;;  %v934_v44 = vrot.slane %v920_v39, %v13363_v7  ;;  %v938_v51 = vcombine.low %v10487_v47, %v10488_v45  ;;  %v11859_v52 = vld [vmem:[%s17746_s1 + $0x70] ss:$24 sps:$4 sm:$0xff]   ;;  %v10490_v53 = vld.sshfl [vmem:[%s13355_s21 + $0x60] sm:$0xff pattern:$0x76325410]  ;;  %vm2588_vm10 = vcmask 1042434  }
  0x4a   : > { %1596 = vmatprep.subr.bf16.mxu1 %v11837_v60  ;;  %v937_v50 = vcombine.low %v10486_v40, %v624_v46  ;;  %v11864_v54 = vld [vmem:[%s17746_s1 + $0xa4] ss:$24 sps:$4 sm:$0xff]   ;;  %v654_v58 = vcombine.high %v10490_v53, %v10490_v53  ;;  %v11862_v59 = vld [vmem:[%s17746_s1 + $0xa0] ss:$24 sps:$4 sm:$0xff]   ;;  %v11867_v62 = vld [vmem:[%s17746_s1 + $0xd4] ss:$24 sps:$4 sm:$0xff]  }
  0x4b   : > { %v13408_v36 = vcombine.high %v909_v28, %v916_v33  ;;  %v13430_v48 = vcombine.low %v909_v28, %v916_v33  ;;  %v13432_v49 = vcombine.high %v927_v43, %v934_v44  ;;  %v952_v57 = vrot.slane %v938_v51, %v13363_v7  ;;  %v10489_v60 = vld.sshfl [vmem:[%s13355_s21 + $0x58] sm:$0xf pattern:$0x76325410]  ;;  %v11865_v4 = vld [vmem:[%s17746_s1 + $0xd0] ss:$24 sps:$4 sm:$0xff]   ;;  %vm15055_vm13 = vmor %vm2587_vm9, %vm2588_vm10 }
  0x4c   : > { %1444 = vmatpush1.bf16.msra.mxu0 %v11839_v63  ;;  %v945_v56 = vrot.slane %v937_v50, %v13363_v7  ;;  %v13456_v63 = vcombine.low %v927_v43, %v934_v44  ;;  %v10492_v3 = vld.sshfl [vmem:[%s13355_s21 + $0x70] sm:$0xff pattern:$0x76325410]  ;;  %v11870_v5 = vld [vmem:[%s17746_s1 + $0x104] ss:$24 sps:$4 sm:$0xff]   ;;  %vm2590_vm11 = vcmask 1044484  }
  0x4d   : > { %1597 = vmatpush1.bf16.msra.mxu1 %v11840_v0  ;;  %1445 = vmatprep.subr.bf16.mxu0 %v11841_v1  ;;  %v955_v1 = vcombine.low %v639_v55, %v10489_v60  ;;  %v10491_v6 = vld.sshfl [vmem:[%s13355_s21 + $0x68] sm:$0xf pattern:$0x76325410]  ;;  %v669_v12 = vcombine.high %v10492_v3, %v10492_v3  ;;  %v11876_v20 = vld [vmem:[%s17746_s1 + $0x164] ss:$24 sps:$4 sm:$0xff]   ;;  %vm15084_vm14 = vmor %vm15055_vm13, %vm2590_vm11 }
  0x4e   : > { %1598 = vmatprep.subr.bf16.mxu1 %v11843_v2  ;;  %v13458_v0 = vcombine.high %v945_v56, %v952_v57  ;;  %v956_v2 = vcombine.low %v10490_v53, %v654_v58  ;;  %v10493_v8 = vld.sshfl [vmem:[%s13355_s21 + $0x78] sm:$0xf pattern:$0x76325410]  ;;  %v11873_v13 = vld [vmem:[%s17746_s1 + $0x134] ss:$24 sps:$4 sm:$0xff]   ;;  %v13483_v14 = vcombine.low %v945_v56, %v952_v57  ;;  %v973_v18 = vcombine.low %v10491_v6, %v10492_v3 }
  0x4f   : > { %v10494_v15 = vld.sshfl [vmem:[%s13355_s21 + $0x80] sm:$0xff pattern:$0x76325410]  ;;  %v974_v19 = vcombine.low %v669_v12, %v10493_v8  ;;  %v10496_v22 = vld.sshfl [vmem:[%s13355_s21 + $0x90] sm:$0xff pattern:$0x76325410] }
  0x50   : > { %1446 = vmatpush1.bf16.msra.mxu0 %v11845_v9  ;;  %v11868_v9 = vld [vmem:[%s17746_s1 + $0x100] ss:$24 sps:$4 sm:$0xff]   ;;  %v10495_v21 = vld.sshfl [vmem:[%s13355_s21 + $0x88] sm:$0xf pattern:$0x76325410]  ;;  %v981_v25 = vrot.slane %v973_v18, %v13363_v7  ;;  %v684_v27 = vcombine.high %v10494_v15, %v10494_v15  ;;  %v699_v39 = vcombine.high %v10496_v22, %v10496_v22 }
  0x51   : > { %1599 = vmatpush1.bf16.msra.mxu1 %v11846_v16  ;;  %10564 = vmatprep.subr.msk.bf16.mxu0 %vm1412_vm0, %v11847_v10  ;;  %v963_v10 = vrot.slane %v955_v1, %v13363_v7  ;;  %v11871_v16 = vld [vmem:[%s17746_s1 + $0x130] ss:$24 sps:$4 sm:$0xff]   ;;  %v11877_v28 = vld [vmem:[%s17746_s1 + $0x194] ss:$24 sps:$4 sm:$0x3f]   ;;  %vm2592_vm12 = vcmask 1046534  }
  0x52   : > { %10577 = vmatprep.subr.msk.bf16.mxu1 %vm1412_vm0, %v11849_v11  ;;  %v970_v11 = vrot.slane %v956_v2, %v13363_v7  ;;  %v11879_v29 = vld [vmem:[%s17746_s1 + $0x190] ss:$24 sps:$4 sm:$0x3f]   ;;  %v991_v33 = vcombine.low %v10494_v15, %v684_v27  ;;  %v10502_v56 = vld.sshfl [vmem:[%s13355_s21 + $0xc0] sm:$0xff pattern:$0x76325410]  ;;  %vm15120_vm15 = vmor %vm15084_vm14, %vm2592_vm12 }
  0x53   : > { %v10497_v38 = vld.sshfl [vmem:[%s13355_s21 + $0x98] sm:$0xf pattern:$0x76325410]  ;;  %v744_v3 = vcombine.high %v10502_v56, %v10502_v56  ;;  %vm2388_vm2 = vsmask.f32 1280 }
  0x54   : > { %1448 = vmatpush1.bf16.msra.mxu0 %v1414_v23  ;;  %v13489_v17 = vcombine.high %v963_v10, %v970_v11  ;;  %v11874_v23 = vld [vmem:[%s17746_s1 + $0x160] ss:$24 sps:$4 sm:$0xff]   ;;  %v13513_v30 = vcombine.low %v963_v10, %v970_v11  ;;  %v999_v40 = vrot.slane %v991_v33, %v13363_v7  ;;  %v10500_v44 = vld.sshfl [vmem:[%s13355_s21 + $0xb0] sm:$0xff pattern:$0x76325410]  ;;  %v1009_v46 = vcombine.low %v699_v39, %v10497_v38  ;;  %s11423_s25 = sshll.u32 %s10467_s13, 7 }
  0x55   : > { %1601 = vmatpush1.bf16.msra.mxu1 %v1420_v26  ;;  %1737 = vmatprep.subr.bf16.mxu0 %v11855_v31  ;;  %v988_v26 = vrot.slane %v974_v19, %v13363_v7  ;;  %v10498_v31 = vld.sshfl [vmem:[%s13355_s21 + $0xa0] sm:$0xff pattern:$0x76325410]  ;;  %v1045_v8 = vcombine.low %v10502_v56, %v744_v3  ;;  %v10508_v18 = vld.sshfl [vmem:[%s13355_s21 + $0xf0] sm:$0xff pattern:$0x76325410]  ;;  %s17701_s14 = scalar_lea.hbm %s17754_s9, %s11423_s25 }
  0x56   : > { %v10499_v50 = vld.sshfl [vmem:[%s13355_s21 + $0xa8] sm:$0xf pattern:$0x76325410]  ;;  %v789_v27 = vcombine.high %v10508_v18, %v10508_v18  ;;  %v11916_v56 = vld [vmem:[%s17748_s3 + $0xc0] ss:$16 sps:$4 sm:$0xff]  }
  0x57   : > { %1464 = vmatmul.mubr.bf16.vlgmr.msra.gmra.mrb[0].mxu0 %v13403_v34  ;;  %v13516_v32 = vcombine.high %v981_v25, %v988_v26  ;;  %v13529_v43 = vcombine.low %v981_v25, %v988_v26  ;;  %v10501_v51 = vld.sshfl [vmem:[%s13355_s21 + $0xb8] sm:$0xf pattern:$0x76325410]  ;;  %v1027_v58 = vcombine.low %v10499_v50, %v10500_v44  ;;  %v1053_v12 = vrot.slane %v1045_v8, %v13363_v7  ;;  %s490_s24 = scalar_lea.vmem [#allocation3], %s10477_s17  ;;  %s13084_s16 = smov [#allocation3]  }
  0x58   : > { %1617 = vmatmul.mubr.bf16.vlgmr.msra.gmra.mrb[0].mxu1 %v13403_v34  ;;  %1738 = vmatpush1.bf16.msra.mxu0 %v11853_v35  ;;  %v992_v35 = vcombine.low %v10495_v21, %v10496_v22  ;;  %v10503_v60 = vld.sshfl [vmem:[%s13355_s21 + $0xc8] sm:$0xf pattern:$0x76325410]  ;;  %v13704_v3 = vsub.s32 0, %v13341_v61  ;;  %s10403_s26 = sshll.u32 %s490_s24, 4  ;;  %s17703_s26 = int_to_ptr.vmem [resolvable:$true] %s10403_s26 }
  0x59   : > { %10566 = vmatprep.mubr.msk.bf16.mxu0 %vm1375_vm1, %v13408_v36  ;;  %10579 = vmatprep.mubr.msk.bf16.mxu1 %vm1375_vm1, %v13408_v36  ;;  %v1035_v1 = vrot.slane %v1027_v58, %v13363_v7  ;;  %v10505_v10 = vld.sshfl [vmem:[%s13355_s21 + $0xd8] sm:$0xf pattern:$0x76325410]  ;;  %vm2389_vm3 = vsmask.f32 3336 }
  0x5a   : > { %1739 = vmatprep.subr.bf16.mxu0 %v11858_v37  ;;  %v1426_v37 = vsel %vm1412_vm0, %v11879_v29, 0  ;;  %v10507_v22 = vld.sshfl [vmem:[%s13355_s21 + $0xe8] sm:$0xf pattern:$0x76325410]  ;;  %17858 = vst [vmem:[#allocation8_spill] sm:$0xff] %v13704_v3  ;;  %vm14608_vm6 = vmor %vm2388_vm2, %vm2389_vm3 }
  0x5b   : > { %v11907_v50 = vld [vmem:[%s17748_s3 + $0x88] ss:$16 sps:$4 sm:$0xff]   ;;  %vm2391_vm4 = vsmask.f32 5392  ;;  %vm2393_vm5 = vsmask.f32 7448 }
  0x5c   : > { %1740 = vmatpush1.bf16.msra.mxu0 %v11856_v41  ;;  %v1006_v41 = vrot.slane %v992_v35, %v13363_v7  ;;  %v11919_v58 = vld [vmem:[%s17748_s3 + $0xc8] ss:$16 sps:$4 sm:$0xff]   ;;  %vm14651_vm7 = vmor %vm14608_vm6, %vm2391_vm4  ;;  %vm2653_vm2 = vsmask.f32 4368  ;;  %vm2655_vm3 = vsmask.f32 6424 }
  0x5d   : > { %1741 = vmatprep.subr.bf16.mxu0 %v11861_v42  ;;  %v714_v42 = vcombine.high %v10498_v31, %v10498_v31  ;;  %vm14683_vm8 = vmor %vm14651_vm7, %vm2393_vm5  ;;  %s13016_s13 = scalar_lea.vmem %s17703_s26, 128  ;;  %s13020_s17 = sshll.u32 %s13084_s16, 4  ;;  %s13021_s17 = int_to_ptr.vmem [resolvable:$false] %s13020_s17 }
  0x5e   : > { %v13532_v45 = vcombine.high %v999_v40, %v1006_v41  ;;  %v13544_v55 = vcombine.low %v999_v40, %v1006_v41  ;;  %v11897_v41 = vld [vmem:[%s17748_s3 + $0x4c] ss:$16 sps:$4 sm:$0xff]   ;;  %p13017_p13 = scmp.ne.s32.totalorder %s17703_s26, %s13016_s13  ;;  %s13022_s22 = scalar_lea.vmem %s13021_s17, 256 }
  0x5f   : > { %1474 = vmatmul.mubr.bf16.gmra.mrb[4].mxu0 %v13430_v48  ;;  %v1010_v47 = vcombine.low %v10498_v31, %v714_v42  ;;  %v1081_v31 = vcombine.low %v10507_v22, %v10508_v18  ;;  %v11898_v42 = vld [vmem:[%s17748_s3 + $0x60] ss:$16 sps:$4 sm:$0xff]   ;;  %v11931_v18 = vld [vmem:[%s17748_s3 + $0x108] ss:$16 sps:$4 sm:$0xff]   ;;  %p13023_p2 = scmp.lt.s32.totalorder %s17703_s26, %s13021_s17  ;;  %p13024_p3 = scmp.lt.s32.totalorder %s13022_s22, %s13016_s13 }
  0x60   : > { %1627 = vmatmul.mubr.bf16.gmra.mrb[4].mxu1 %v13430_v48  ;;  %10567 = vmatprep.mubr.msk.bf16.mxu0 %vm1375_vm1, %v13432_v49  ;;  %p13018_p0 = pnand %p13017_p13, %p13173_p6 }
  0x61   : > { %10580 = vmatprep.mubr.msk.bf16.mxu1 %vm1375_vm1, %v13432_v49  ;;  %1742 = vmatpush1.bf16.msra.mxu0 %v11859_v52  ;;  %v1017_v52 = vrot.slane %v1009_v46, %v13363_v7  ;;  %v1024_v53 = vrot.slane %v1010_v47, %v13363_v7  ;;  %v1089_v35 = vrot.slane %v1081_v31, %v13363_v7  ;;  %v11904_v46 = vld [vmem:[%s17748_s3 + $0x80] ss:$16 sps:$4 sm:$0xff]   ;;  %v11906_v47 = vld [vmem:[%s17748_s3 + $0x84] ss:$16 sps:$4 sm:$0xff]   ;;  %p13025_p4 = por %p13024_p3, %p13023_p2 }
  0x62   : > { %1743 = vmatprep.subr.bf16.mxu0 %v11864_v54  ;;  %v729_v54 = vcombine.high %v10500_v44, %v10500_v44  ;;  %v11901_v44 = vld [vmem:[%s17748_s3 + $0x68] ss:$16 sps:$4 sm:$0xff]   ;;  %p13019_p1 = pneg %p13018_p0 }
  0x63   : > { %v13547_v57 = vcombine.high %v1017_v52, %v1024_v53 }
  0x64   : > { %p13026_p5 = pnand %p13025_p4, %p13019_p1 }
  0x65   : > { %1744 = vmatpush1.bf16.msra.mxu0 %v11862_v59  ;;  %v1028_v59 = vcombine.low %v729_v54, %v10501_v51  ;;  %v11909_v51 = vld [vmem:[%s17748_s3 + $0x8c] ss:$16 sps:$4 sm:$0xff]   ;;  %v11913_v54 = vld [vmem:[%s17748_s3 + $0xa8] ss:$16 sps:$4 sm:$0xff]  }
  0x66   : > { %1745 = vmatprep.subr.bf16.mxu0 %v11867_v62  ;;  %v10504_v62 = vld.sshfl [vmem:[%s13355_s21 + $0xd0] sm:$0xff pattern:$0x76325410] }
  0x67   : > { %1484 = vmatmul.mubr.bf16.gmra.mrb[8].mxu0 %v13456_v63  ;;  %v1042_v2 = vrot.slane %v1028_v59, %v13363_v7  ;;  %v759_v11 = vcombine.high %v10504_v62, %v10504_v62  ;;  %v11921_v59 = vld [vmem:[%s17748_s3 + $0xcc] ss:$16 sps:$4 sm:$0xff]  }
  0x68   : > { %1637 = vmatmul.mubr.bf16.gmra.mrb[8].mxu1 %v13456_v63  ;;  %10568 = vmatprep.mubr.msk.bf16.mxu0 %vm1375_vm1, %v13458_v0 }
  0x69   : > { %10581 = vmatprep.mubr.msk.bf16.mxu1 %vm1375_vm1, %v13458_v0  ;;  %1746 = vmatpush1.bf16.msra.mxu0 %v11865_v4  ;;  %v1025_v4 = vcombine.low %v1017_v52, %v1024_v53  ;;  %v1044_v6 = vcombine.high %v1035_v1, %v1042_v2  ;;  %v11910_v52 = vld [vmem:[%s17748_s3 + $0xa0] ss:$16 sps:$4 sm:$0xff]   ;;  %v11912_v53 = vld [vmem:[%s17748_s3 + $0xa4] ss:$16 sps:$4 sm:$0xff]  }
  0x6a   : > { %1747 = vmatprep.subr.bf16.mxu0 %v11870_v5  ;;  %v10506_v5 = vld.sshfl [vmem:[%s13355_s21 + $0xe0] sm:$0xff pattern:$0x76325410] }
  0x6b   : > { %v774_v15 = vcombine.high %v10506_v5, %v10506_v5 }
  0x6d   : > { %1748 = vmatpush1.bf16.msra.mxu0 %v11868_v9  ;;  %v1046_v9 = vcombine.low %v10503_v60, %v10504_v62  ;;  %v1064_v21 = vcombine.low %v10506_v5, %v774_v15  ;;  %v13692_v60 = vld [vmem:[%s17747_s2] sm:$0x3f]  ;;  %v13710_v5 = vsub.s32 3, %v13341_v61 }
  0x6e   : > { %1749 = vmatprep.subr.bf16.mxu0 %v11873_v13  ;;  %v11922_v62 = vld [vmem:[%s17748_s3 + $0xe0] ss:$16 sps:$4 sm:$0xff]  }
  0x6f   : > { %1494 = vmatmul.mubr.bf16.gmra.mrb[12].mxu0 %v13483_v14  ;;  %v1060_v13 = vrot.slane %v1046_v9, %v13363_v7  ;;  %v1078_v26 = vrot.slane %v1064_v21, %v13363_v7  ;;  %17859 = vst [vmem:[#allocation9_spill] sm:$0xff] %v13710_v5  ;;  %v13718_v8 = vrot.slane %v13692_v60, %v13710_v5 }
  0x70   : > { %1647 = vmatmul.mubr.bf16.gmra.mrb[12].mxu1 %v13483_v14  ;;  %10569 = vmatprep.mubr.msk.bf16.mxu0 %vm1375_vm1, %v13489_v17 }
  0x71   : > { %10582 = vmatprep.mubr.msk.bf16.mxu1 %vm1375_vm1, %v13489_v17  ;;  %1750 = vmatpush1.bf16.msra.mxu0 %v11871_v16  ;;  %v1043_v16 = vcombine.low %v1035_v1, %v1042_v2  ;;  %v1062_v19 = vcombine.high %v1053_v12, %v1060_v13  ;;  %v11924_v1 = vld [vmem:[%s17748_s3 + $0xe4] ss:$16 sps:$4 sm:$0xff]   ;;  %v11925_v2 = vld [vmem:[%s17748_s3 + $0xe8] ss:$16 sps:$4 sm:$0xff]  }
  0x72   : > { %1751 = vmatprep.subr.bf16.mxu0 %v11876_v20  ;;  %v1063_v20 = vcombine.low %v759_v11, %v10505_v10  ;;  %v11928_v11 = vld [vmem:[%s17748_s3 + $0x100] ss:$16 sps:$4 sm:$0xff]  }
  0x74   : > { %v1071_v25 = vrot.slane %v1063_v20, %v13363_v7 }
  0x75   : > { %1752 = vmatpush1.bf16.msra.mxu0 %v11874_v23  ;;  %v10509_v23 = vld.sshfl [vmem:[%s13355_s21 + $0xf8] sm:$0xf pattern:$0x76325410]  ;;  %s10390_s21 = scalar_lea.sflag [#allocation4], %s13314_s28 }
  0x76   : > { %10590 = vmatprep.subr.msk.bf16.mxu0 %vm1412_vm0, %v11877_v28  ;;  %v1061_v28 = vcombine.low %v1053_v12, %v1060_v13  ;;  %v1080_v29 = vcombine.high %v1071_v25, %v1078_v26  ;;  %v1082_v33 = vcombine.low %v789_v27, %v10509_v23  ;;  %v1079_v38 = vcombine.low %v1071_v25, %v1078_v26  ;;  %v11930_v12 = vld [vmem:[%s17748_s3 + $0x104] ss:$16 sps:$4 sm:$0xff]  }
  0x77   : > { %1504 = vmatmul.mubr.bf16.gmra.mrb[16].mxu0 %v13513_v30  ;;  %vm2650_vm0 = vsmask.f32 256 }
  0x78   : > { %1657 = vmatmul.mubr.bf16.gmra.mrb[16].mxu1 %v13513_v30  ;;  %10570 = vmatprep.mubr.msk.bf16.mxu0 %vm1375_vm1, %v13516_v32 }
  0x79   : > { %10583 = vmatprep.mubr.msk.bf16.mxu1 %vm1375_vm1, %v13516_v32  ;;  %1754 = vmatpush1.bf16.msra.mxu0 %v1426_v37  ;;  %v1096_v37 = vrot.slane %v1082_v33, %v13363_v7 }
  0x7b   : > { %v1098_v39 = vcombine.high %v1089_v35, %v1096_v37  ;;  %v1097_v40 = vcombine.low %v1089_v35, %v1096_v37  ;;  %v11934_v37 = vld [vmem:[%s17748_s3 + $0x120] ss:$16 sps:$4 sm:$0xff]  }
  0x7f   : > { %1514 = vmatmul.mubr.bf16.gmra.mrb[20].mxu0 %v13529_v43 }
  0x80   : > { %1667 = vmatmul.mubr.bf16.gmra.mrb[20].mxu1 %v13529_v43  ;;  %10571 = vmatprep.mubr.msk.bf16.mxu0 %vm1375_vm1, %v13532_v45 }
  0x81   : > { %10584 = vmatprep.mubr.msk.bf16.mxu1 %vm1375_vm1, %v13532_v45 }
  0x87   : > { %1524 = vmatmul.mubr.bf16.gmra.mrb[24].mxu0 %v13544_v55 }
  0x88   : > { %1677 = vmatmul.mubr.bf16.gmra.mrb[24].mxu1 %v13544_v55  ;;  %10572 = vmatprep.mubr.msk.bf16.mxu0 %vm1375_vm1, %v13547_v57 }
  0x89   : > { %10585 = vmatprep.mubr.msk.bf16.mxu1 %vm1375_vm1, %v13547_v57 }
  0x8f   : > { %1534 = vmatmul.mubr.bf16.gmra.mrb[28].mxu0 %v1025_v4 }
  0x90   : > { %1687 = vmatmul.mubr.bf16.gmra.mrb[28].mxu1 %v1025_v4  ;;  %10573 = vmatprep.mubr.msk.bf16.mxu0 %vm1375_vm1, %v1044_v6 }
  0x91   : > { %10586 = vmatprep.mubr.msk.bf16.mxu1 %vm1375_vm1, %v1044_v6 }
  0x97   : > { %1544 = vmatmul.mubr.bf16.gmra.mrb[32].mxu0 %v1043_v16 }
  0x98   : > { %1697 = vmatmul.mubr.bf16.gmra.mrb[32].mxu1 %v1043_v16  ;;  %10574 = vmatprep.mubr.msk.bf16.mxu0 %vm1375_vm1, %v1062_v19 }
  0x99   : > { %10587 = vmatprep.mubr.msk.bf16.mxu1 %vm1375_vm1, %v1062_v19 }
  0x9f   : > { %1554 = vmatmul.mubr.bf16.gmra.mrb[36].mxu0 %v1061_v28 }
  0xa0   : > { %1707 = vmatmul.mubr.bf16.gmra.mrb[36].mxu1 %v1061_v28  ;;  %10575 = vmatprep.mubr.msk.bf16.mxu0 %vm1375_vm1, %v1080_v29 }
  0xa1   : > { %10588 = vmatprep.mubr.msk.bf16.mxu1 %vm1375_vm1, %v1080_v29 }
  0xa7   : > { %1564 = vmatmul.mubr.bf16.gmra.mrb[40].mxu0 %v1079_v38 }
  0xa8   : > { %1717 = vmatmul.mubr.bf16.gmra.mrb[40].mxu1 %v1079_v38  ;;  %10576 = vmatprep.mubr.msk.bf16.mxu0 %vm1375_vm1, %v1098_v39 }
  0xa9   : > { %10589 = vmatprep.mubr.msk.bf16.mxu1 %vm1375_vm1, %v1098_v39 }
  0xaf   : > { %1574 = vmatmul.mubr.bf16.gmra.mrb[44].mxu0 %v1097_v40 }
  0xb0   : > { %1727 = vmatmul.mubr.bf16.gmra.mrb[44].mxu1 %v1097_v40  ;;  %10591 = vmatprep.mubr.msk.bf16.mxu0 %vm1375_vm1, %v13386_v24  ;;  %v11880_v24 = vld [vmem:[%s17748_s3] ss:$16 sps:$4 sm:$0xff]  }
  0xb7   : > { %1770 = vmatmul.mubr.bf16.vlgmr.msra.gmra.mrb[48].mxu0 %v13403_v34  ;;  %v11882_v34 = vld [vmem:[%s17748_s3 + $0x4] ss:$16 sps:$4 sm:$0xff]  }
  0xb8   : > { %10592 = vmatprep.mubr.msk.bf16.mxu0 %vm1375_vm1, %v13408_v36  ;;  %v11883_v36 = vld [vmem:[%s17748_s3 + $0x8] ss:$16 sps:$4 sm:$0xff]   ;;  %6407 = vmatprep.subr.bf16.mxu1 %v11882_v34 }
  0xb9   : > { %6408 = vmatpush1.bf16.msra.mxu1 %v11880_v24 }
  0xbf   : > { %1780 = vmatmul.mubr.bf16.gmra.mrb[52].mxu0 %v13430_v48  ;;  %v11885_v48 = vld [vmem:[%s17748_s3 + $0xc] ss:$16 sps:$4 sm:$0xff]  }
  0xc0   : > { %10593 = vmatprep.mubr.msk.bf16.mxu0 %vm1375_vm1, %v13432_v49  ;;  %6991 = vmatprep.subr.bf16.mxu0 %v11885_v48  ;;  %v11886_v49 = vld [vmem:[%s17748_s3 + $0x20] ss:$16 sps:$4 sm:$0xff]  }
  0xc1   : > { %6992 = vmatpush1.bf16.msra.mxu0 %v11883_v36  ;;  %v11939_v36 = vld [vmem:[%s17748_s3 + $0x12c] ss:$16 sps:$4 sm:$0xff]  }
  0xc7   : > { %1790 = vmatmul.mubr.bf16.gmra.mrb[56].mxu0 %v13456_v63  ;;  %v11888_v63 = vld [vmem:[%s17748_s3 + $0x24] ss:$16 sps:$4 sm:$0xff]  }
  0xc8   : > { %10594 = vmatprep.mubr.msk.bf16.mxu0 %vm1375_vm1, %v13458_v0  ;;  %v11889_v0 = vld [vmem:[%s17748_s3 + $0x28] ss:$16 sps:$4 sm:$0xff]   ;;  %6409 = vmatprep.subr.bf16.mxu1 %v11888_v63 }
  0xc9   : > { %6410 = vmatpush1.bf16.msra.mxu1 %v11886_v49 }
  0xcf   : > { %1800 = vmatmul.mubr.bf16.gmra.mrb[60].mxu0 %v13483_v14  ;;  %v11891_v14 = vld [vmem:[%s17748_s3 + $0x2c] ss:$16 sps:$4 sm:$0xff]  }
  0xd0   : > { %10595 = vmatprep.mubr.msk.bf16.mxu0 %vm1375_vm1, %v13489_v17  ;;  %6993 = vmatprep.subr.bf16.mxu0 %v11891_v14  ;;  %v11892_v17 = vld [vmem:[%s17748_s3 + $0x40] ss:$16 sps:$4 sm:$0xff]  }
  0xd1   : > { %6994 = vmatpush1.bf16.msra.mxu0 %v11889_v0 }
  0xd2   : > { %6995 = vmatprep.subr.bf16.mxu0 %v11897_v41 }
  0xd7   : > { %1810 = vmatmul.mubr.bf16.gmra.mrb[64].mxu0 %v13513_v30  ;;  %v11894_v30 = vld [vmem:[%s17748_s3 + $0x44] ss:$16 sps:$4 sm:$0xff]  }
  0xd8   : > { %10596 = vmatprep.mubr.msk.bf16.mxu0 %vm1375_vm1, %v13516_v32  ;;  %v11895_v32 = vld [vmem:[%s17748_s3 + $0x48] ss:$16 sps:$4 sm:$0xff]   ;;  %6411 = vmatprep.subr.bf16.mxu1 %v11894_v30 }
  0xd9   : > { %6412 = vmatpush1.bf16.msra.mxu1 %v11892_v17  ;;  %6996 = vmatpush1.bf16.msra.mxu0 %v11895_v32 }
  0xdf   : > { %1820 = vmatmul.mubr.bf16.gmra.mrb[68].mxu0 %v13529_v43  ;;  %v11900_v43 = vld [vmem:[%s17748_s3 + $0x64] ss:$16 sps:$4 sm:$0xff]  }
  0xe0   : > { %10597 = vmatprep.mubr.msk.bf16.mxu0 %vm1375_vm1, %v13532_v45  ;;  %v11903_v45 = vld [vmem:[%s17748_s3 + $0x6c] ss:$16 sps:$4 sm:$0xff]   ;;  %6413 = vmatprep.subr.bf16.mxu1 %v11900_v43 }
  0xe1   : > { %6997 = vmatprep.subr.bf16.mxu0 %v11903_v45  ;;  %6414 = vmatpush1.bf16.msra.mxu1 %v11898_v42 }
  0xe2   : > { %6998 = vmatpush1.bf16.msra.mxu0 %v11901_v44  ;;  %6415 = vmatprep.subr.bf16.mxu1 %v11906_v47  ;;  %v11942_v47 = vld [vmem:[%s17748_s3 + $0x144] ss:$16 sps:$4 sm:$0xff]  }
  0xe3   : > { %6999 = vmatprep.subr.bf16.mxu0 %v11909_v51 }
  0xe5   : > { %6416 = vmatpush1.bf16.msra.mxu1 %v11904_v46  ;;  %v11940_v46 = vld [vmem:[%s17748_s3 + $0x140] ss:$16 sps:$4 sm:$0xff]  }
  0xe6   : > { %7000 = vmatpush1.bf16.msra.mxu0 %v11907_v50  ;;  %6417 = vmatprep.subr.bf16.mxu1 %v11912_v53  ;;  %v11945_v53 = vld [vmem:[%s17748_s3 + $0x14c] ss:$16 sps:$4 sm:$0xff]  }
  0xe7   : > { %1830 = vmatmul.mubr.bf16.gmra.mrb[72].mxu0 %v13544_v55  ;;  %v11915_v55 = vld [vmem:[%s17748_s3 + $0xac] ss:$16 sps:$4 sm:$0xff]  }
  0xe8   : > { %10598 = vmatprep.mubr.msk.bf16.mxu0 %vm1375_vm1, %v13547_v57  ;;  %7001 = vmatprep.subr.bf16.mxu0 %v11915_v55  ;;  %v11918_v57 = vld [vmem:[%s17748_s3 + $0xc4] ss:$16 sps:$4 sm:$0xff]  }
  0xe9   : > { %6418 = vmatpush1.bf16.msra.mxu1 %v11910_v52  ;;  %v11943_v52 = vld [vmem:[%s17748_s3 + $0x148] ss:$16 sps:$4 sm:$0xff]  }
  0xea   : > { %7002 = vmatpush1.bf16.msra.mxu0 %v11913_v54  ;;  %6419 = vmatprep.subr.bf16.mxu1 %v11918_v57  ;;  %v11946_v57 = vld [vmem:[%s17748_s3 + $0x160] ss:$16 sps:$4 sm:$0xff]  }
  0xeb   : > { %7003 = vmatprep.subr.bf16.mxu0 %v11921_v59 }
  0xed   : > { %6420 = vmatpush1.bf16.msra.mxu1 %v11916_v56 }
  0xee   : > { %7004 = vmatpush1.bf16.msra.mxu0 %v11919_v58  ;;  %6421 = vmatprep.subr.bf16.mxu1 %v11924_v1  ;;  %v11948_v58 = vld [vmem:[%s17748_s3 + $0x164] ss:$16 sps:$4 sm:$0xff]  }
  0xef   : > { %1840 = vmatmul.mubr.bf16.gmra.mrb[76].mxu0 %v1025_v4  ;;  %v11927_v4 = vld [vmem:[%s17748_s3 + $0xec] ss:$16 sps:$4 sm:$0xff]  }
  0xf0   : > { %10599 = vmatprep.mubr.msk.bf16.mxu0 %vm1375_vm1, %v1044_v6  ;;  %7005 = vmatprep.subr.bf16.mxu0 %v11927_v4  ;;  %v13714_v6 = vrot.slane %v13692_v60, %v13704_v3  ;;  %v11951_v4 = vld [vmem:[%s17748_s3 + $0x16c] ss:$16 sps:$4 sm:$0xff]  }
  0xf1   : > { %6422 = vmatpush1.bf16.msra.mxu1 %v11922_v62 }
  0xf2   : > { %7006 = vmatpush1.bf16.msra.mxu0 %v11925_v2  ;;  %6423 = vmatprep.subr.bf16.mxu1 %v11930_v12  ;;  %v11949_v2 = vld [vmem:[%s17748_s3 + $0x168] ss:$16 sps:$4 sm:$0xff]  }
  0xf5   : > { %6424 = vmatpush1.bf16.msra.mxu1 %v11928_v11 }
  0xf7   : > { %1850 = vmatmul.mubr.bf16.gmra.mrb[80].mxu0 %v1043_v16 }
  0xf8   : > { %10600 = vmatprep.mubr.msk.bf16.mxu0 %vm1375_vm1, %v1062_v19  ;;  %v11933_v19 = vld [vmem:[%s17748_s3 + $0x10c] ss:$16 sps:$4 sm:$0xff]  }
  0xf9   : > { %7007 = vmatprep.subr.bf16.mxu0 %v11933_v19 }
  0xfa   : > { %7008 = vmatpush1.bf16.msra.mxu0 %v11931_v18 }
  0xfb   : > { %7009 = vmatprep.subr.bf16.mxu0 %v11939_v36 }
  0xff   : > { %1860 = vmatmul.mubr.bf16.gmra.mrb[84].mxu0 %v1061_v28 }
 0x100   : > { %10601 = vmatprep.mubr.msk.bf16.mxu0 %vm1375_vm1, %v1080_v29 }
 0x107   : > { %1870 = vmatmul.mubr.bf16.gmra.mrb[88].mxu0 %v1079_v38  ;;  %v11936_v38 = vld [vmem:[%s17748_s3 + $0x124] ss:$16 sps:$4 sm:$0xff]  }
 0x108   : > { %10602 = vmatprep.mubr.msk.bf16.mxu0 %vm1375_vm1, %v1098_v39  ;;  %v11937_v39 = vld [vmem:[%s17748_s3 + $0x128] ss:$16 sps:$4 sm:$0xff]   ;;  %6425 = vmatprep.subr.bf16.mxu1 %v11936_v38  ;;  %vm2651_vm1 = vsmask.f32 2312 }
 0x109   : > { %6426 = vmatpush1.bf16.msra.mxu1 %v11934_v37  ;;  %7010 = vmatpush1.bf16.msra.mxu0 %v11937_v39  ;;  %v11954_v39 = vld [vmem:[%s17748_s3 + $0x184] ss:$16 sps:$4 sm:$0xff]   ;;  %vm15266_vm4 = vmor %vm2650_vm0, %vm2651_vm1 }
 0x10a   : > { %6427 = vmatprep.subr.bf16.mxu1 %v11942_v47  ;;  %7011 = vmatprep.subr.bf16.mxu0 %v11945_v53  ;;  %v11963_v53 = vld [vmem:[%s17748_s3 + $0x1ac] ss:$16 sps:$4 sm:$0xff]   ;;  %vm15305_vm5 = vmor %vm15266_vm4, %vm2653_vm2 }
 0x10b   : > { %vm15352_vm6 = vmor %vm15305_vm5, %vm2655_vm3 }
 0x10d   : > { %6428 = vmatpush1.bf16.msra.mxu1 %v11940_v46  ;;  %7012 = vmatpush1.bf16.msra.mxu0 %v11943_v52  ;;  %v11960_v52 = vld [vmem:[%s17748_s3 + $0x1a4] ss:$16 sps:$4 sm:$0xff]  }
 0x10e   : > { %6429 = vmatprep.subr.bf16.mxu1 %v11948_v58  ;;  %7013 = vmatprep.subr.bf16.mxu0 %v11951_v4 }
 0x10f   : > { %1880 = vmatmul.mubr.bf16.gmra.mrb[92].mxu0 %v1097_v40 }
 0x111   : > { %6430 = vmatpush1.bf16.msra.mxu1 %v11946_v57  ;;  %7014 = vmatpush1.bf16.msra.mxu0 %v11949_v2  ;;  %v11961_v57 = vld [vmem:[%s17748_s3 + $0x1a8] ss:$16 sps:$4 sm:$0xff]  }
 0x112   : > { %6431 = vmatprep.subr.bf16.mxu1 %v11954_v39  ;;  %v11967_v39 = vld [vmem:[%s17748_s3 + $0x1c8] ss:$16 sps:$4 sm:$0xff]  }
 0x12a   : > { %v1465_v9 = vpop.f32.mrb[0].mxu0 }
 0x12b   : > { %v13720_v10 = vpop.f32.mrb[0].mxu1  ;;  %v1466_v13 = vadd.f32 %v1465_v9, %v13714_v6  ;;  %v13729_v15 = vpop.f32.mrb[1].mxu0 }
 0x12c   : > { %v1620_v16 = vpop.f32.mrb[1].mxu1  ;;  %v1469_v21 = vpop.f32.mrb[2].mxu0 }
 0x12d   : > { %v1621_v20 = vadd.f32 %v1620_v16, %v13718_v8  ;;  %v13738_v22 = vpop.f32.mrb[2].mxu1  ;;  %v1890_v23 = vmax.f32 %v1466_v13, 0.0  ;;  %v1470_v25 = vadd.f32 %v1469_v21, %v13714_v6  ;;  %v13741_v26 = vpop.f32.mrb[3].mxu0 }
 0x12e   : > { %v1624_v27 = vpop.f32.mrb[3].mxu1 }
 0x12f   : > { %v1893_v28 = vmax.f32 %v1621_v20, 0.0  ;;  %v1625_v29 = vadd.f32 %v1624_v27, %v13718_v8  ;;  %v1896_v31 = vmax.f32 %v1470_v25, 0.0 }
 0x131   : > { %v13744_v33 = vmax.f32 %v1890_v23, %v1893_v28  ;;  %v1899_v35 = vmax.f32 %v1625_v29, 0.0 }
 0x132   : > { %v1475_v24 = vpop.f32.mrb[4].mxu0 }
 0x133   : > { %17860 = vst [vmem:[#allocation10_spill] sm:$0xff] %v13744_v33  ;;  %v13755_v40 = vmax.f32 %v1896_v31, %v1899_v35  ;;  %v13757_v34 = vpop.f32.mrb[4].mxu1  ;;  %v1476_v48 = vadd.f32 %v1475_v24, %v13714_v6  ;;  %v13763_v49 = vpop.f32.mrb[5].mxu0  ;;  %v11957_v24 = vld [vmem:[%s17748_s3 + $0x18c] ss:$16 sps:$4 sm:$0xff]  }
 0x134   : > { %v1630_v63 = vpop.f32.mrb[5].mxu1  ;;  %v1479_v14 = vpop.f32.mrb[6].mxu0  ;;  %7015 = vmatprep.subr.bf16.mxu0 %v11957_v24 }
 0x135   : > { %17861 = vst [vmem:[#allocation11_spill] sm:$0xff] %v13755_v40  ;;  %v1631_v0 = vadd.f32 %v1630_v63, %v13718_v8  ;;  %v13766_v17 = vpop.f32.mrb[6].mxu1  ;;  %v1902_v30 = vmax.f32 %v1476_v48, 0.0  ;;  %v1480_v32 = vadd.f32 %v1479_v14, %v13714_v6  ;;  %v13769_v41 = vpop.f32.mrb[7].mxu0  ;;  %v11955_v14 = vld [vmem:[%s17748_s3 + $0x188] ss:$16 sps:$4 sm:$0xff]  }
 0x136   : > { %v1634_v42 = vpop.f32.mrb[7].mxu1  ;;  %7016 = vmatpush1.bf16.msra.mxu0 %v11955_v14  ;;  %v11972_v14 = vld [vmem:[%s17748_s3 + $0x1e4] ss:$16 sps:$4 sm:$0xff]  }
 0x137   : > { %v1905_v43 = vmax.f32 %v1631_v0, 0.0  ;;  %v1635_v44 = vadd.f32 %v1634_v42, %v13718_v8  ;;  %v1908_v45 = vmax.f32 %v1480_v32, 0.0  ;;  %v11952_v0 = vld [vmem:[%s17748_s3 + $0x180] ss:$16 sps:$4 sm:$0xff]   ;;  %7017 = vmatprep.subr.bf16.mxu0 %v11963_v53 }
 0x138   : > { %6432 = vmatpush1.bf16.msra.mxu1 %v11952_v0 }
 0x139   : > { %v13778_v50 = vmax.f32 %v1902_v30, %v1905_v43  ;;  %v1911_v51 = vmax.f32 %v1635_v44, 0.0  ;;  %6433 = vmatprep.subr.bf16.mxu1 %v11960_v52 }
 0x13a   : > { %v1485_v55 = vpop.f32.mrb[8].mxu0  ;;  %7018 = vmatpush1.bf16.msra.mxu0 %v11961_v57 }
 0x13b   : > { %17862 = vst [vmem:[#allocation12_spill] sm:$0xff] %v13778_v50  ;;  %v13786_v54 = vmax.f32 %v1908_v45, %v1911_v51  ;;  %v13788_v56 = vpop.f32.mrb[8].mxu1  ;;  %v1486_v59 = vadd.f32 %v1485_v55, %v13714_v6  ;;  %v13797_v62 = vpop.f32.mrb[9].mxu0  ;;  %v11958_v55 = vld [vmem:[%s17748_s3 + $0x1a0] ss:$16 sps:$4 sm:$0xff]  }
 0x13c   : > { %v1640_v1 = vpop.f32.mrb[9].mxu1  ;;  %v1489_v11 = vpop.f32.mrb[10].mxu0  ;;  %6434 = vmatpush1.bf16.msra.mxu1 %v11958_v55 }
 0x13d   : > { %17863 = vst [vmem:[#allocation13_spill] sm:$0xff] %v13786_v54  ;;  %v1641_v9 = vadd.f32 %v1640_v1, %v13718_v8  ;;  %v13806_v12 = vpop.f32.mrb[10].mxu1  ;;  %v1914_v13 = vmax.f32 %v1486_v59, 0.0  ;;  %v1490_v16 = vadd.f32 %v1489_v11, %v13714_v6  ;;  %v13809_v18 = vpop.f32.mrb[11].mxu0 }
 0x13e   : > { %v1644_v19 = vpop.f32.mrb[11].mxu1 }
 0x13f   : > { %v1917_v20 = vmax.f32 %v1641_v9, 0.0  ;;  %v1645_v21 = vadd.f32 %v1644_v19, %v13718_v8  ;;  %v1920_v23 = vmax.f32 %v1490_v16, 0.0 }
 0x141   : > { %v13812_v25 = vmax.f32 %v1914_v13, %v1917_v20  ;;  %v1923_v27 = vmax.f32 %v1645_v21, 0.0 }
 0x142   : > { %v1495_v29 = vpop.f32.mrb[12].mxu0 }
 0x143   : > { %17864 = vst [vmem:[#allocation14_spill] sm:$0xff] %v13812_v25  ;;  %v13814_v28 = vmax.f32 %v1920_v23, %v1923_v27  ;;  %v13816_v31 = vpop.f32.mrb[12].mxu1  ;;  %v1496_v35 = vadd.f32 %v1495_v29, %v13714_v6  ;;  %v13819_v37 = vpop.f32.mrb[13].mxu0  ;;  %v11966_v27 = vld [vmem:[%s17748_s3 + $0x1c4] ss:$16 sps:$4 sm:$0xff]  }
 0x144   : > { %v1650_v38 = vpop.f32.mrb[13].mxu1  ;;  %v1499_v48 = vpop.f32.mrb[14].mxu0  ;;  %6435 = vmatprep.subr.bf16.mxu1 %v11966_v27 }
 0x145   : > { %17865 = vst [vmem:[#allocation15_spill] sm:$0xff] %v13814_v28  ;;  %v1651_v36 = vadd.f32 %v1650_v38, %v13718_v8  ;;  %v13828_v63 = vpop.f32.mrb[14].mxu1  ;;  %v1926_v30 = vmax.f32 %v1496_v35, 0.0  ;;  %v1500_v32 = vadd.f32 %v1499_v48, %v13714_v6  ;;  %v13837_v42 = vpop.f32.mrb[15].mxu0  ;;  %v11964_v38 = vld [vmem:[%s17748_s3 + $0x1c0] ss:$16 sps:$4 sm:$0xff]  }
 0x146   : > { %v1654_v43 = vpop.f32.mrb[15].mxu1  ;;  %6436 = vmatpush1.bf16.msra.mxu1 %v11964_v38  ;;  %v11981_v38 = vld [vmem:[%s17748_s3 + $0x20c] ss:$16 sps:$4 sm:$0xff]  }
 0x147   : > { %v1929_v44 = vmax.f32 %v1651_v36, 0.0  ;;  %v1655_v45 = vadd.f32 %v1654_v43, %v13718_v8  ;;  %v1932_v46 = vmax.f32 %v1500_v32, 0.0  ;;  %v11969_v36 = vld [vmem:[%s17748_s3 + $0x1cc] ss:$16 sps:$4 sm:$0xff]   ;;  %6437 = vmatprep.subr.bf16.mxu1 %v11972_v14 }
 0x148   : > { %7019 = vmatprep.subr.bf16.mxu0 %v11969_v36 }
 0x149   : > { %v13840_v47 = vmax.f32 %v1926_v30, %v1929_v44  ;;  %v1935_v51 = vmax.f32 %v1655_v45, 0.0  ;;  %v11975_v30 = vld [vmem:[%s17748_s3 + $0x1ec] ss:$16 sps:$4 sm:$0xff]   ;;  %7020 = vmatpush1.bf16.msra.mxu0 %v11967_v39  ;;  %v11970_v45 = vld [vmem:[%s17748_s3 + $0x1e0] ss:$16 sps:$4 sm:$0xff]  }
 0x14a   : > { %v1505_v59 = vpop.f32.mrb[16].mxu0  ;;  %7021 = vmatprep.subr.bf16.mxu0 %v11975_v30  ;;  %6438 = vmatpush1.bf16.msra.mxu1 %v11970_v45 }
 0x14b   : > { %17866 = vst [vmem:[#allocation16_spill] sm:$0xff] %v13840_v47  ;;  %v13854_v58 = vmax.f32 %v1932_v46, %v1935_v51  ;;  %v13856_v1 = vpop.f32.mrb[16].mxu1  ;;  %v1506_v2 = vadd.f32 %v1505_v59, %v13714_v6  ;;  %v13859_v4 = vpop.f32.mrb[17].mxu0  ;;  %v11973_v46 = vld [vmem:[%s17748_s3 + $0x1e8] ss:$16 sps:$4 sm:$0xff]  }
 0x14c   : > { %v1660_v9 = vpop.f32.mrb[17].mxu1  ;;  %v1509_v13 = vpop.f32.mrb[18].mxu0 }
 0x14d   : > { %17867 = vst [vmem:[#allocation17_spill] sm:$0xff] %v13854_v58  ;;  %v1661_v11 = vadd.f32 %v1660_v9, %v13718_v8  ;;  %v13862_v16 = vpop.f32.mrb[18].mxu1  ;;  %v1938_v19 = vmax.f32 %v1506_v2, 0.0  ;;  %v1510_v20 = vadd.f32 %v1509_v13, %v13714_v6  ;;  %v13865_v21 = vpop.f32.mrb[19].mxu0  ;;  %7022 = vmatpush1.bf16.msra.mxu0 %v11973_v46 }
 0x14e   : > { %v1664_v23 = vpop.f32.mrb[19].mxu1  ;;  %7064 = vmatprep.subr.bf16.mxu0 %v11981_v38 }
 0x14f   : > { %v1941_v29 = vmax.f32 %v1661_v11, 0.0  ;;  %v1665_v35 = vadd.f32 %v1664_v23, %v13718_v8  ;;  %v1944_v24 = vmax.f32 %v1510_v20, 0.0 }
 0x151   : > { %v13880_v48 = vmax.f32 %v1938_v19, %v1941_v29  ;;  %v1947_v0 = vmax.f32 %v1665_v35, 0.0  ;;  %v11978_v35 = vld [vmem:[%s17748_s3 + $0x204] ss:$16 sps:$4 sm:$0xff]  }
 0x152   : > { %v1515_v43 = vpop.f32.mrb[20].mxu0  ;;  %6480 = vmatprep.subr.bf16.mxu1 %v11978_v35 }
 0x153   : > { %17868 = vst [vmem:[#allocation18_spill] sm:$0xff] %v13880_v48  ;;  %v13888_v32 = vmax.f32 %v1944_v24, %v1947_v0  ;;  %v13890_v44 = vpop.f32.mrb[20].mxu1  ;;  %v1516_v51 = vadd.f32 %v1515_v43, %v13714_v6  ;;  %v13899_v52 = vpop.f32.mrb[21].mxu0 }
 0x154   : > { %v1670_v53 = vpop.f32.mrb[21].mxu1  ;;  %v1519_v57 = vpop.f32.mrb[22].mxu0 }
 0x155   : > { %17869 = vst [vmem:[#allocation19_spill] sm:$0xff] %v13888_v32  ;;  %v1671_v55 = vadd.f32 %v1670_v53, %v13718_v8  ;;  %v13902_v59 = vpop.f32.mrb[22].mxu1  ;;  %v1950_v2 = vmax.f32 %v1516_v51, 0.0  ;;  %v1520_v9 = vadd.f32 %v1519_v57, %v13714_v6  ;;  %v13905_v11 = vpop.f32.mrb[23].mxu0 }
 0x156   : > { %v1674_v13 = vpop.f32.mrb[23].mxu1 }
 0x157   : > { %v1953_v19 = vmax.f32 %v1671_v55, 0.0  ;;  %v1675_v20 = vadd.f32 %v1674_v13, %v13718_v8  ;;  %v1956_v23 = vmax.f32 %v1520_v9, 0.0 }
 0x159   : > { %v13908_v27 = vmax.f32 %v1950_v2, %v1953_v19  ;;  %v1959_v29 = vmax.f32 %v1675_v20, 0.0 }
 0x15a   : > { %v1525_v24 = vpop.f32.mrb[24].mxu0 }
 0x15b   : > { %17870 = vst [vmem:[#allocation20_spill] sm:$0xff] %v13908_v27  ;;  %v13916_v39 = vmax.f32 %v1956_v23, %v1959_v29  ;;  %v13918_v36 = vpop.f32.mrb[24].mxu1  ;;  %v1526_v0 = vadd.f32 %v1525_v24, %v13714_v6  ;;  %v13921_v14 = vpop.f32.mrb[25].mxu0 }
 0x15c   : > { %v1680_v30 = vpop.f32.mrb[25].mxu1  ;;  %v1529_v45 = vpop.f32.mrb[26].mxu0 }
 0x15d   : > { %17871 = vst [vmem:[#allocation21_spill] sm:$0xff] %v13916_v39  ;;  %v1681_v43 = vadd.f32 %v1680_v30, %v13718_v8  ;;  %v13924_v46 = vpop.f32.mrb[26].mxu1  ;;  %v1962_v51 = vmax.f32 %v1526_v0, 0.0  ;;  %v1530_v53 = vadd.f32 %v1529_v45, %v13714_v6  ;;  %v13927_v55 = vpop.f32.mrb[27].mxu0 }
 0x15e   : > { %v1684_v57 = vpop.f32.mrb[27].mxu1 }
 0x15f   : > { %v1965_v2 = vmax.f32 %v1681_v43, 0.0  ;;  %v1685_v9 = vadd.f32 %v1684_v57, %v13718_v8  ;;  %v1968_v13 = vmax.f32 %v1530_v53, 0.0 }
 0x161   : > { %v13930_v19 = vmax.f32 %v1962_v51, %v1965_v2  ;;  %v1971_v20 = vmax.f32 %v1685_v9, 0.0 }
 0x162   : > { %v1535_v35 = vpop.f32.mrb[28].mxu0 }
 0x163   : > { %17872 = vst [vmem:[#allocation22_spill] sm:$0xff] %v13930_v19  ;;  %v13934_v29 = vmax.f32 %v1968_v13, %v1971_v20  ;;  %v13936_v38 = vpop.f32.mrb[28].mxu1  ;;  %v1536_v24 = vadd.f32 %v1535_v35, %v13714_v6  ;;  %v13939_v0 = vpop.f32.mrb[29].mxu0 }
 0x164   : > { %v1690_v30 = vpop.f32.mrb[29].mxu1  ;;  %v1539_v51 = vpop.f32.mrb[30].mxu0 }
 0x165   : > { %17873 = vst [vmem:[#allocation23_spill] sm:$0xff] %v13934_v29  ;;  %v1691_v45 = vadd.f32 %v1690_v30, %v13718_v8  ;;  %v13944_v53 = vpop.f32.mrb[30].mxu1  ;;  %v1974_v57 = vmax.f32 %v1536_v24, 0.0  ;;  %v1540_v2 = vadd.f32 %v1539_v51, %v13714_v6  ;;  %v13947_v9 = vpop.f32.mrb[31].mxu0 }
 0x166   : > { %v1694_v13 = vpop.f32.mrb[31].mxu1 }
 0x167   : > { %v1977_v20 = vmax.f32 %v1691_v45, 0.0  ;;  %v1695_v35 = vadd.f32 %v1694_v13, %v13718_v8  ;;  %v1980_v23 = vmax.f32 %v1540_v2, 0.0 }
 0x169   : > { %v13950_v5 = vmax.f32 %v1974_v57, %v1977_v20  ;;  %v1983_v3 = vmax.f32 %v1695_v35, 0.0 }
 0x16a   : > { %v1545_v29 = vpop.f32.mrb[32].mxu0 }
 0x16b   : > { %17874 = vst [vmem:[#allocation24_spill] sm:$0xff] %v13950_v5  ;;  %v13954_v30 = vmax.f32 %v1980_v23, %v1983_v3  ;;  %v13956_v40 = vpop.f32.mrb[32].mxu1  ;;  %v1546_v24 = vadd.f32 %v1545_v29, %v13714_v6  ;;  %v13959_v51 = vpop.f32.mrb[33].mxu0 }
 0x16c   : > { %v1700_v7 = vpop.f32.mrb[33].mxu1  ;;  %v1549_v2 = vpop.f32.mrb[34].mxu0 }
 0x16d   : > { %17875 = vst [vmem:[#allocation25_spill] sm:$0xff] %v13954_v30  ;;  %v1701_v57 = vadd.f32 %v1700_v7, %v13718_v8  ;;  %v13964_v13 = vpop.f32.mrb[34].mxu1  ;;  %v1986_v20 = vmax.f32 %v1546_v24, 0.0  ;;  %v1550_v3 = vadd.f32 %v1549_v2, %v13714_v6  ;;  %v13967_v23 = vpop.f32.mrb[35].mxu0 }
 0x16e   : > { %v1704_v35 = vpop.f32.mrb[35].mxu1 }
 0x16f   : > { %v1989_v43 = vmax.f32 %v1701_v57, 0.0  ;;  %v1705_v29 = vadd.f32 %v1704_v35, %v13718_v8  ;;  %v1992_v5 = vmax.f32 %v1550_v3, 0.0 }
 0x171   : > { %v13970_v50 = vmax.f32 %v1986_v20, %v1989_v43  ;;  %v1995_v19 = vmax.f32 %v1705_v29, 0.0 }
 0x172   : > { %v1555_v30 = vpop.f32.mrb[36].mxu0 }
 0x173   : > { %17876 = vst [vmem:[#allocation26_spill] sm:$0xff] %v13970_v50  ;;  %v13974_v7 = vmax.f32 %v1992_v5, %v1995_v19  ;;  %v13976_v54 = vpop.f32.mrb[36].mxu1  ;;  %v1556_v24 = vadd.f32 %v1555_v30, %v13714_v6  ;;  %v13979_v2 = vpop.f32.mrb[37].mxu0 }
 0x174   : > { %17878 = vst [vmem:[#allocation28_spill] sm:$0xff] %v13979_v2  ;;  %v1710_v33 = vpop.f32.mrb[37].mxu1  ;;  %v1559_v20 = vpop.f32.mrb[38].mxu0 }
 0x175   : > { %17877 = vst [vmem:[#allocation27_spill] sm:$0xff] %v13974_v7  ;;  %v1711_v43 = vadd.f32 %v1710_v33, %v13718_v8  ;;  %v13984_v3 = vpop.f32.mrb[38].mxu1  ;;  %v1998_v35 = vmax.f32 %v1556_v24, 0.0  ;;  %v1560_v5 = vadd.f32 %v1559_v20, %v13714_v6  ;;  %v13987_v19 = vpop.f32.mrb[39].mxu0 }
 0x176   : > { %17879 = vst [vmem:[#allocation29_spill] sm:$0xff] %v13987_v19  ;;  %v1714_v29 = vpop.f32.mrb[39].mxu1 }
 0x177   : > { %v2001_v45 = vmax.f32 %v1711_v43, 0.0  ;;  %v1715_v30 = vadd.f32 %v1714_v29, %v13718_v8  ;;  %v2004_v50 = vmax.f32 %v1560_v5, 0.0  ;;  %v14013_v43 = vsub.s32 1, %v13341_v61 }
 0x179   : > { %v13990_v25 = vmax.f32 %v1998_v35, %v2001_v45  ;;  %v2007_v2 = vmax.f32 %v1715_v30, 0.0  ;;  %17886 = vst [vmem:[#allocation36_spill] sm:$0xff] %v14013_v43 }
 0x17a   : > { %v1565_v7 = vpop.f32.mrb[40].mxu0 }
 0x17b   : > { %17880 = vst [vmem:[#allocation30_spill] sm:$0xff] %v13990_v25  ;;  %v13994_v33 = vmax.f32 %v2004_v50, %v2007_v2  ;;  %v13996_v28 = vpop.f32.mrb[40].mxu1  ;;  %v1566_v24 = vadd.f32 %v1565_v7, %v13714_v6  ;;  %v13999_v20 = vpop.f32.mrb[41].mxu0 }
 0x17c   : > { %17882 = vst [vmem:[#allocation32_spill] sm:$0xff] %v13999_v20  ;;  %v1720_v19 = vpop.f32.mrb[41].mxu1  ;;  %v1569_v35 = vpop.f32.mrb[42].mxu0 }
 0x17d   : > { %17881 = vst [vmem:[#allocation31_spill] sm:$0xff] %v13994_v33  ;;  %v1721_v45 = vadd.f32 %v1720_v19, %v13718_v8  ;;  %v14004_v5 = vpop.f32.mrb[42].mxu1  ;;  %v2010_v29 = vmax.f32 %v1566_v24, 0.0  ;;  %v1570_v50 = vadd.f32 %v1569_v35, %v13714_v6  ;;  %v14007_v2 = vpop.f32.mrb[43].mxu0  ;;  %v14016_v19 = vsub.s32 2, %v13341_v61 }
 0x17e   : > { %17883 = vst [vmem:[#allocation33_spill] sm:$0xff] %v14004_v5  ;;  %17884 = vst [vmem:[#allocation34_spill] sm:$0xff] %v14007_v2  ;;  %v1724_v30 = vpop.f32.mrb[43].mxu1 }
 0x17f   : > { %v2013_v57 = vmax.f32 %v1721_v45, 0.0  ;;  %v1725_v7 = vadd.f32 %v1724_v30, %v13718_v8  ;;  %v2016_v25 = vmax.f32 %v1570_v50, 0.0  ;;  %17887 = vst [vmem:[#allocation37_spill] sm:$0xff] %v14016_v19  ;;  %v14043_v30 = vrot.slane %v13692_v60, %v14016_v19 }
 0x181   : > { %v14010_v47 = vmax.f32 %v2010_v29, %v2013_v57  ;;  %v2019_v20 = vmax.f32 %v1725_v7, 0.0  ;;  %v871_v29 = vsub.s32 4, %v13341_v61 }
 0x182   : > { %v1575_v33 = vpop.f32.mrb[44].mxu0 }
 0x183   : > { %17885 = vst [vmem:[#allocation35_spill] sm:$0xff] %v14010_v47  ;;  %v14020_v35 = vmax.f32 %v2016_v25, %v2019_v20  ;;  %v14022_v58 = vpop.f32.mrb[44].mxu1  ;;  %v1576_v45 = vadd.f32 %v1575_v33, %v13714_v6  ;;  %v14025_v50 = vpop.f32.mrb[45].mxu0  ;;  %v875_v25 = vsub.s32 5, %v13341_v61  ;;  %v14036_v20 = vrot.slane %v13692_v60, %v14013_v43 }
 0x184   : > { %v1730_v57 = vpop.f32.mrb[45].mxu1  ;;  %v1579_v2 = vpop.f32.mrb[46].mxu0  ;;  %v14047_v61 = vrot.slane %v13692_v60, %v871_v29 }
 0x185   : > { %17888 = vst [vmem:[#allocation38_spill] sm:$0xff] %v14020_v35  ;;  %v1731_v7 = vadd.f32 %v1730_v57, %v13718_v8  ;;  %v14031_v5 = vpop.f32.mrb[46].mxu1  ;;  %v2022_v33 = vmax.f32 %v1576_v45, 0.0  ;;  %v1580_v24 = vadd.f32 %v1579_v2, %v13714_v6  ;;  %v14039_v47 = vpop.f32.mrb[47].mxu0  ;;  %v14052_v45 = vrot.slane %v13692_v60, %v875_v25 }
 0x186   : > { %17889 = vst [vmem:[#allocation39_spill] sm:$0xff] %v14031_v5  ;;  %17890 = vst [vmem:[#allocation40_spill] sm:$0xff] %v14039_v47  ;;  %v1734_v48 = vpop.f32.mrb[47].mxu1  ;;  %v1468_v6 = vadd.f32 %v13729_v15, %v14036_v20  ;;  %v1619_v2 = vadd.f32 %v13720_v10, %v14043_v30  ;;  %v1623_v60 = vadd.f32 %v13738_v22, %v14043_v30 }
 0x187   : > { %v2025_v57 = vmax.f32 %v1731_v7, 0.0  ;;  %v1735_v35 = vadd.f32 %v1734_v48, %v13718_v8  ;;  %v2028_v32 = vmax.f32 %v1580_v24, 0.0  ;;  %v1472_v24 = vadd.f32 %v13741_v26, %v14036_v20 }
 0x188   : > { %v1892_v7 = vmax.f32 %v1619_v2, 0.0  ;;  %v1898_v22 = vmax.f32 %v1623_v60, 0.0 }
 0x189   : > { %v14049_v5 = vmax.f32 %v2022_v33, %v2025_v57  ;;  %v2031_v43 = vmax.f32 %v1735_v35, 0.0  ;;  %v1891_v33 = vmax.f32 %v1468_v6, 0.0 }
 0x18a   : > { %v1771_v48 = vpop.f32.mrb[48].mxu0 }
 0x18b   : > { %17891 = vst [vmem:[#allocation41_spill] sm:$0xff] %v14049_v5  ;;  %v14060_v8 = vmax.f32 %v2028_v32, %v2031_v43  ;;  %v1772_v35 = vadd.f32 %v1771_v48, %v14047_v61  ;;  %v1773_v29 = vpop.f32.mrb[49].mxu0  ;;  %v1897_v48 = vmax.f32 %v1472_v24, 0.0  ;;  %v1482_v24 = vadd.f32 %v13769_v41, %v14036_v20 }
 0x18c   : > { %v1774_v10 = vadd.f32 %v1773_v29, %v14052_v45  ;;  %v1775_v25 = vpop.f32.mrb[50].mxu0  ;;  %v1478_v29 = vadd.f32 %v13763_v49, %v14036_v20 }
 0x18d   : > { %17892 = vst [vmem:[#allocation42_spill] sm:$0xff] %v14060_v8  ;;  %v1894_v57 = vmax.f32 %v1772_v35, 0.0  ;;  %v1776_v32 = vadd.f32 %v1775_v25, %v14047_v61  ;;  %v1777_v43 = vpop.f32.mrb[51].mxu0  ;;  %v1629_v35 = vadd.f32 %v13757_v34, %v14043_v30 }
 0x18e   : > { %v1895_v19 = vmax.f32 %v1774_v10, 0.0  ;;  %v1778_v26 = vadd.f32 %v1777_v43, %v14052_v45 }
 0x18f   : > { %v14072_v5 = vmax.f32 %v1891_v33, %v1894_v57  ;;  %v1900_v27 = vmax.f32 %v1776_v32, 0.0 }
 0x190   : > { %v14074_v47 = vmax.f32 %v1892_v7, %v1895_v19  ;;  %v1901_v15 = vmax.f32 %v1778_v26, 0.0  ;;  %v1633_v19 = vadd.f32 %v13766_v17, %v14043_v30  ;;  %v1909_v26 = vmax.f32 %v1482_v24, 0.0 }
 0x191   : > { %v14078_v6 = vmax.f32 %v1897_v48, %v1900_v27  ;;  %v1903_v27 = vmax.f32 %v1478_v29, 0.0  ;;  %v1643_v24 = vadd.f32 %v13806_v12, %v14043_v30 }
 0x192   : > { %v14082_v2 = vmax.f32 %v1898_v22, %v1901_v15  ;;  %v1781_v10 = vpop.f32.mrb[52].mxu0  ;;  %v1904_v15 = vmax.f32 %v1629_v35, 0.0  ;;  %v1910_v22 = vmax.f32 %v1633_v19, 0.0  ;;  %v1492_v19 = vadd.f32 %v13809_v18, %v14036_v20 }
 0x193   : > { %v1782_v25 = vadd.f32 %v1781_v10, %v14047_v61  ;;  %v1783_v60 = vpop.f32.mrb[53].mxu0 }
 0x194   : > { %v1784_v7 = vadd.f32 %v1783_v60, %v14052_v45  ;;  %v1785_v49 = vpop.f32.mrb[54].mxu0  ;;  %v1488_v60 = vadd.f32 %v13797_v62, %v14036_v20  ;;  %v1921_v12 = vmax.f32 %v1492_v19, 0.0  ;;  %v1659_v19 = vadd.f32 %v13856_v1, %v14043_v30 }
 0x195   : > { %v1906_v33 = vmax.f32 %v1782_v25, 0.0  ;;  %v1786_v57 = vadd.f32 %v1785_v49, %v14047_v61  ;;  %v1787_v34 = vpop.f32.mrb[55].mxu0  ;;  %v1639_v25 = vadd.f32 %v13788_v56, %v14043_v30  ;;  %v1508_v1 = vadd.f32 %v13859_v4, %v14036_v20 }
 0x196   : > { %v1907_v32 = vmax.f32 %v1784_v7, 0.0  ;;  %v1788_v43 = vadd.f32 %v1787_v34, %v14052_v45 }
 0x197   : > { %v14092_v41 = vmax.f32 %v1903_v27, %v1906_v33  ;;  %v1912_v48 = vmax.f32 %v1786_v57, 0.0  ;;  %v1915_v57 = vmax.f32 %v1488_v60, 0.0 }
 0x198   : > { %v14094_v10 = vmax.f32 %v1904_v15, %v1907_v32  ;;  %v1913_v17 = vmax.f32 %v1788_v43, 0.0  ;;  %v1916_v32 = vmax.f32 %v1639_v25, 0.0  ;;  %v1653_v25 = vadd.f32 %v13828_v63, %v14043_v30 }
 0x199   : > { %v14098_v29 = vmax.f32 %v1909_v26, %v1912_v48  ;;  %v1922_v48 = vmax.f32 %v1643_v24, 0.0 }
 0x19a   : > { %v14102_v35 = vmax.f32 %v1910_v22, %v1913_v17  ;;  %v1791_v7 = vpop.f32.mrb[56].mxu0  ;;  %v1649_v17 = vadd.f32 %v13816_v31, %v14043_v30  ;;  %v1934_v63 = vmax.f32 %v1653_v25, 0.0 }
 0x19b   : > { %v1792_v49 = vadd.f32 %v1791_v7, %v14047_v61  ;;  %v1793_v27 = vpop.f32.mrb[57].mxu0  ;;  %v1498_v7 = vadd.f32 %v13819_v37, %v14036_v20 }
 0x19c   : > { %v1794_v33 = vadd.f32 %v1793_v27, %v14052_v45  ;;  %v1795_v62 = vpop.f32.mrb[58].mxu0  ;;  %v1502_v27 = vadd.f32 %v13837_v42, %v14036_v20 }
 0x19d   : > { %v1918_v34 = vmax.f32 %v1792_v49, 0.0  ;;  %v1796_v15 = vadd.f32 %v1795_v62, %v14047_v61  ;;  %v1797_v56 = vpop.f32.mrb[59].mxu0 }
 0x19e   : > { %v1919_v43 = vmax.f32 %v1794_v33, 0.0  ;;  %v1798_v26 = vadd.f32 %v1797_v56, %v14052_v45 }
 0x19f   : > { %v14112_v22 = vmax.f32 %v1915_v57, %v1918_v34  ;;  %v1924_v18 = vmax.f32 %v1796_v15, 0.0  ;;  %v1928_v57 = vmax.f32 %v1649_v17, 0.0  ;;  %v1927_v34 = vmax.f32 %v1498_v7, 0.0 }
 0x1a0   : > { %v14118_v60 = vmax.f32 %v1916_v32, %v1919_v43  ;;  %v1925_v49 = vmax.f32 %v1798_v26, 0.0  ;;  %v1933_v32 = vmax.f32 %v1502_v27, 0.0  ;;  %v1663_v17 = vadd.f32 %v13862_v16, %v14043_v30 }
 0x1a1   : > { %v14124_v24 = vmax.f32 %v1921_v12, %v1924_v18  ;;  %v1940_v12 = vmax.f32 %v1659_v19, 0.0  ;;  %v1512_v7 = vadd.f32 %v13865_v21, %v14036_v20  ;;  %v14144_v27 = vadd.f32 %v13890_v44, %v14043_v30 }
 0x1a2   : > { %v14128_v33 = vmax.f32 %v1922_v48, %v1925_v49  ;;  %v1801_v31 = vpop.f32.mrb[60].mxu0  ;;  %v14148_v19 = vadd.f32 %v13899_v52, %v14036_v20  ;;  %v14154_v16 = vadd.f32 %v13902_v59, %v14043_v30  ;;  %v14158_v21 = vadd.f32 %v13905_v11, %v14036_v20 }
 0x1a3   : > { %v1802_v62 = vadd.f32 %v1801_v31, %v14047_v61  ;;  %v1803_v37 = vpop.f32.mrb[61].mxu0  ;;  %v14164_v44 = vadd.f32 %v13918_v36, %v14043_v30  ;;  %v1945_v11 = vmax.f32 %v1512_v7, 0.0 }
 0x1a4   : > { %v1804_v15 = vadd.f32 %v1803_v37, %v14052_v45  ;;  %v1805_v56 = vpop.f32.mrb[62].mxu0  ;;  %v1939_v37 = vmax.f32 %v1508_v1, 0.0 }
 0x1a5   : > { %v1930_v43 = vmax.f32 %v1802_v62, 0.0  ;;  %v1806_v42 = vadd.f32 %v1805_v56, %v14047_v61  ;;  %v1807_v26 = vpop.f32.mrb[63].mxu0 }
 0x1a6   : > { %v1931_v48 = vmax.f32 %v1804_v15, 0.0  ;;  %v1808_v18 = vadd.f32 %v1807_v26, %v14052_v45  ;;  %v14170_v15 = vadd.f32 %v13921_v14, %v14036_v20  ;;  %v1957_v26 = vmax.f32 %v14158_v21, 0.0 }
 0x1a7   : > { %v14140_v49 = vmax.f32 %v1927_v34, %v1930_v43  ;;  %v1936_v25 = vmax.f32 %v1806_v42, 0.0  ;;  %v1946_v34 = vmax.f32 %v1663_v17, 0.0  ;;  %v1951_v43 = vmax.f32 %v14148_v19, 0.0 }
 0x1a8   : > { %v14150_v4 = vmax.f32 %v1928_v57, %v1931_v48  ;;  %v1937_v31 = vmax.f32 %v1808_v18, 0.0  ;;  %v14182_v17 = vadd.f32 %v13924_v46, %v14043_v30  ;;  %v14188_v19 = vadd.f32 %v13927_v55, %v14036_v20  ;;  %v17900_v18 = vld [vmem:[#allocation34_spill] sm:$0xff] }
 0x1a9   : > { %v14160_v62 = vmax.f32 %v1933_v32, %v1936_v25  ;;  %v1952_v32 = vmax.f32 %v14144_v27, 0.0  ;;  %v14194_v21 = vadd.f32 %v13936_v38, %v14043_v30  ;;  %v14198_v46 = vadd.f32 %v13939_v0, %v14036_v20 }
 0x1aa   : > { %v14166_v52 = vmax.f32 %v1934_v63, %v1937_v31  ;;  %v1811_v57 = vpop.f32.mrb[64].mxu0  ;;  %v1958_v63 = vmax.f32 %v14154_v16, 0.0  ;;  %v14208_v55 = vadd.f32 %v13947_v9, %v14036_v20 }
 0x1ab   : > { %v1812_v59 = vadd.f32 %v1811_v57, %v14047_v61  ;;  %v1813_v56 = vpop.f32.mrb[65].mxu0 }
 0x1ac   : > { %v1814_v42 = vadd.f32 %v1813_v56, %v14052_v45  ;;  %v1815_v36 = vpop.f32.mrb[66].mxu0  ;;  %v14204_v56 = vadd.f32 %v13944_v53, %v14043_v30  ;;  %v14222_v53 = vadd.f32 %v13959_v51, %v14036_v20 }
 0x1ad   : > { %v1942_v1 = vmax.f32 %v1812_v59, 0.0  ;;  %v1816_v48 = vadd.f32 %v1815_v36, %v14047_v61  ;;  %v1817_v14 = vpop.f32.mrb[67].mxu0  ;;  %v1969_v36 = vmax.f32 %v14188_v19, 0.0 }
 0x1ae   : > { %v1943_v7 = vmax.f32 %v1814_v42, 0.0  ;;  %v1818_v25 = vadd.f32 %v1817_v14, %v14052_v45  ;;  %v14215_v42 = vadd.f32 %v13956_v40, %v14043_v30  ;;  %v14229_v40 = vadd.f32 %v13964_v13, %v14043_v30 }
 0x1af   : > { %v14190_v31 = vmax.f32 %v1939_v37, %v1942_v1  ;;  %v1948_v16 = vmax.f32 %v1816_v48, 0.0 }
 0x1b0   : > { %v14200_v57 = vmax.f32 %v1940_v12, %v1943_v7  ;;  %v1949_v59 = vmax.f32 %v1818_v25, 0.0  ;;  %v14244_v7 = vadd.f32 %v13976_v54, %v14043_v30  ;;  %v14260_v54 = vadd.f32 %v13984_v3, %v14043_v30  ;;  %v17898_v3 = vld [vmem:[#allocation32_spill] sm:$0xff] }
 0x1b1   : > { %v14210_v37 = vmax.f32 %v1945_v11, %v1948_v16 }
 0x1b2   : > { %v14217_v0 = vmax.f32 %v1946_v34, %v1949_v59  ;;  %v1821_v12 = vpop.f32.mrb[68].mxu0  ;;  %v17893_v59 = vld [vmem:[#allocation28_spill] sm:$0xff] }
 0x1b3   : > { %v1822_v9 = vadd.f32 %v1821_v12, %v14047_v61  ;;  %v1823_v1 = vpop.f32.mrb[69].mxu0  ;;  %v14238_v12 = vadd.f32 %v13967_v23, %v14036_v20  ;;  %v14251_v48 = vadd.f32 %v17893_v59, %v14036_v20 }
 0x1b4   : > { %v1824_v34 = vadd.f32 %v1823_v1, %v14052_v45  ;;  %v1825_v14 = vpop.f32.mrb[70].mxu0 }
 0x1b5   : > { %v1954_v51 = vmax.f32 %v1822_v9, 0.0  ;;  %v1826_v19 = vadd.f32 %v1825_v14, %v14047_v61  ;;  %v1827_v16 = vpop.f32.mrb[71].mxu0  ;;  %v17897_v14 = vld [vmem:[#allocation29_spill] sm:$0xff] }
 0x1b6   : > { %v1955_v11 = vmax.f32 %v1824_v34, 0.0  ;;  %v1828_v13 = vadd.f32 %v1827_v16, %v14052_v45  ;;  %v14267_v59 = vadd.f32 %v17897_v14, %v14036_v20 }
 0x1b7   : > { %v14246_v25 = vmax.f32 %v1951_v43, %v1954_v51  ;;  %v1960_v9 = vmax.f32 %v1826_v19, 0.0 }
 0x1b8   : > { %v14253_v23 = vmax.f32 %v1952_v32, %v1955_v11  ;;  %v1961_v34 = vmax.f32 %v1828_v13, 0.0  ;;  %v14271_v32 = vadd.f32 %v13996_v28, %v14043_v30  ;;  %v14288_v13 = vadd.f32 %v17900_v18, %v14036_v20 }
 0x1b9   : > { %v14255_v38 = vmax.f32 %v1957_v26, %v1960_v9  ;;  %v17899_v9 = vld [vmem:[#allocation33_spill] sm:$0xff] }
 0x1ba   : > { %17894 = vst [vmem:[#allocation28_spill] sm:$0xff] %v14253_v23  ;;  %v14262_v43 = vmax.f32 %v1958_v63, %v1961_v34  ;;  %v1831_v51 = vpop.f32.mrb[72].mxu0  ;;  %v14277_v63 = vadd.f32 %v17898_v3, %v14036_v20  ;;  %v14281_v34 = vadd.f32 %v17899_v9, %v14043_v30  ;;  %v14303_v9 = vadd.f32 %v14022_v58, %v14043_v30 }
 0x1bb   : > { %17895 = vst [vmem:[#allocation43_spill] sm:$0xff] %v14255_v38  ;;  %v1832_v26 = vadd.f32 %v1831_v51, %v14047_v61  ;;  %v1833_v11 = vpop.f32.mrb[73].mxu0  ;;  %v17902_v51 = vmax.f32 %v14164_v44, 0.0  ;;  %v14310_v44 = vadd.f32 %v14025_v50, %v14036_v20 }
 0x1bc   : > { %17896 = vst [vmem:[#allocation44_spill] sm:$0xff] %v14262_v43  ;;  %v1834_v14 = vadd.f32 %v1833_v11, %v14052_v45  ;;  %v1835_v19 = vpop.f32.mrb[74].mxu0  ;;  %v17901_v11 = vmax.f32 %v14170_v15, 0.0 }
 0x1bd   : > { %v1966_v16 = vmax.f32 %v1832_v26, 0.0  ;;  %v1836_v28 = vadd.f32 %v1835_v19, %v14047_v61  ;;  %v1837_v1 = vpop.f32.mrb[75].mxu0 }
 0x1be   : > { %v1967_v27 = vmax.f32 %v1834_v14, 0.0  ;;  %v1838_v3 = vadd.f32 %v1837_v1, %v14052_v45 }
 0x1bf   : > { %v2071_v39 = vmax.f32 %v17901_v11, %v1966_v16  ;;  %v1972_v26 = vmax.f32 %v1836_v28, 0.0  ;;  %v17903_v16 = vmax.f32 %v14182_v17, 0.0  ;;  %v17908_v17 = vld [vmem:[#allocation40_spill] sm:$0xff] }
 0x1c0   : > { %v2072_v38 = vmax.f32 %v17902_v51, %v1967_v27  ;;  %v1973_v18 = vmax.f32 %v1838_v3, 0.0  ;;  %v17904_v27 = vld [vmem:[#allocation10_spill] sm:$0xff] }
 0x1c1   : > { %v2107_v14 = vmax.f32 %v14072_v5, %v2071_v39  ;;  %v2074_v23 = vmax.f32 %v1969_v36, %v1972_v26  ;;  %v17905_v51 = vld [vmem:[#allocation22_spill] sm:$0xff]  ;;  %v17907_v26 = vld [vmem:[#allocation39_spill] sm:$0xff] }
 0x1c2   : > { %v2108_v15 = vmax.f32 %v14074_v47, %v2072_v38  ;;  %v2075_v28 = vmax.f32 %v17903_v16, %v1973_v18  ;;  %v1841_v11 = vpop.f32.mrb[76].mxu0  ;;  %v17906_v39 = vmax.f32 %v17904_v27, %v17905_v51  ;;  %v14319_v47 = vadd.f32 %v17907_v26, %v14043_v30  ;;  %v17909_v27 = vld [vmem:[#allocation7_spill] sm:$0xff] }
 0x1c3   : > { %v2110_v36 = vmax.f32 %v14078_v6, %v2074_v23  ;;  %v1842_v3 = vadd.f32 %v1841_v11, %v14047_v61  ;;  %v1843_v58 = vpop.f32.mrb[77].mxu0  ;;  %v14323_v38 = vadd.f32 %v17908_v17, %v14036_v20  ;;  %v17910_v51 = vld [vmem:[#allocation11_spill] sm:$0xff] }
 0x1c4   : > { %v10603_v5 = vpack.c.bf16 %v2107_v14, %v17906_v39  ;;  %v2111_v50 = vmax.f32 %v14082_v2, %v2075_v28  ;;  %v1844_v18 = vadd.f32 %v1843_v58, %v14052_v45  ;;  %v1845_v16 = vpop.f32.mrb[78].mxu0  ;;  %v17911_v6 = vld [vmem:[#allocation23_spill] sm:$0xff]  ;;  %v17913_v58 = vmax.f32 %v14198_v46, 0.0 }
 0x1c5   : > { %v17912_v23 = vmax.f32 %v17910_v51, %v17911_v6  ;;  %v1978_v39 = vmax.f32 %v1842_v3, 0.0  ;;  %v1846_v43 = vadd.f32 %v1845_v16, %v14047_v61  ;;  %v1847_v30 = vpop.f32.mrb[79].mxu0  ;;  %v17915_v3 = vmax.f32 %v14194_v21, 0.0  ;;  %v17918_v21 = vld [vmem:[#allocation12_spill] sm:$0xff]  ;;  %v17938_v28 = vld [vmem:[#allocation15_spill] sm:$0xff] }
 0x1c6   : > { %v2187_v14 = vrot.slane %v10603_v5, %v17909_v27  ;;  %v2144_v26 = vpack.c.bf16 %v2111_v50, %v2108_v15  ;;  %v10605_v1 = vpack.c.bf16 %v2111_v50, %v2111_v50  ;;  %v1979_v19 = vmax.f32 %v1844_v18, 0.0 }
 0x1c7   : > { %v10604_v11 = vpack.c.bf16 %v2110_v36, %v17912_v23  ;;  %v1848_v20 = vadd.f32 %v1847_v30, %v14052_v45  ;;  %v2077_v5 = vmax.f32 %v17913_v58, %v1978_v39  ;;  %v1984_v17 = vmax.f32 %v1846_v43, 0.0 }
 0x1c8   : > { %v14339_v36 = vrot.slane %v2144_v26, %v17909_v27  ;;  %v2078_v15 = vmax.f32 %v17915_v3, %v1979_v19  ;;  %v17916_v16 = vmax.f32 %v14208_v55, 0.0  ;;  %v14351_v43 = vrot.slane %v10605_v1, %v17909_v27  ;;  %v17919_v19 = vld [vmem:[#allocation24_spill] sm:$0xff] }
 0x1c9   : > { %v1985_v50 = vmax.f32 %v1848_v20, 0.0  ;;  %v2113_v18 = vmax.f32 %v14092_v41, %v2077_v5  ;;  %v14348_v46 = vrot.slane %v10604_v11, %v17909_v27  ;;  %v14354_v30 = vrot.slane %v2187_v14, %v17909_v27 }
 0x1ca   : > { %17914 = vst [vmem:[#allocation29_spill] sm:$0xff] %v14339_v36  ;;  %v2080_v6 = vmax.f32 %v17916_v16, %v1984_v17  ;;  %v1851_v39 = vpop.f32.mrb[80].mxu0  ;;  %v17920_v26 = vmax.f32 %v17918_v21, %v17919_v19  ;;  %v2114_v41 = vmax.f32 %v14094_v10, %v2078_v15  ;;  %v17921_v58 = vmax.f32 %v14204_v56, 0.0  ;;  %v17924_v10 = vld [vmem:[#allocation13_spill] sm:$0xff] }
 0x1cb   : > { %17917 = vst [vmem:[#allocation32_spill] sm:$0xff] %v14348_v46  ;;  %v1853_v11 = vpop.f32.mrb[81].mxu0  ;;  %v14364_v17 = vcombine.low %v2187_v14, %v14339_v36  ;;  %v14367_v1 = vcombine.high %v2187_v14, %v14339_v36  ;;  %v1852_v3 = vadd.f32 %v1851_v39, %v14047_v61  ;;  %v14381_v14 = vcombine.high %v14348_v46, %v14351_v43 }
 0x1cc   : > { %v10606_v20 = vpack.c.bf16 %v2113_v18, %v17920_v26  ;;  %v2116_v55 = vmax.f32 %v14098_v29, %v2080_v6  ;;  %v2081_v5 = vmax.f32 %v17921_v58, %v1985_v50  ;;  %v1854_v16 = vadd.f32 %v1853_v11, %v14052_v45  ;;  %v1855_v21 = vpop.f32.mrb[82].mxu0  ;;  %v17925_v29 = vld [vmem:[#allocation25_spill] sm:$0xff] }
 0x1cd   : > { %17922 = vst [vmem:[#allocation33_spill] sm:$0xff] %v14367_v1  ;;  %v17926_v15 = vmax.f32 %v17924_v10, %v17925_v29  ;;  %v1856_v6 = vadd.f32 %v1855_v21, %v14047_v61  ;;  %v1857_v19 = vpop.f32.mrb[83].mxu0  ;;  %v1990_v39 = vmax.f32 %v1852_v3, 0.0  ;;  %v14393_v3 = vcombine.low %v14348_v46, %v14351_v43 }
 0x1ce   : > { %v14372_v18 = vrot.slane %v10606_v20, %v17909_v27  ;;  %v2117_v50 = vmax.f32 %v14102_v35, %v2081_v5  ;;  %v1991_v26 = vmax.f32 %v1854_v16, 0.0  ;;  %v1858_v58 = vadd.f32 %v1857_v19, %v14052_v45 }
 0x1cf   : > { %v10607_v56 = vpack.c.bf16 %v2116_v55, %v17926_v15  ;;  %v1996_v23 = vmax.f32 %v1856_v6, 0.0  ;;  %v17927_v55 = vmax.f32 %v14222_v53, 0.0  ;;  %v17928_v35 = vmax.f32 %v14215_v42, 0.0  ;;  %17929 = vst [vmem:[#allocation10_spill] sm:$0xff] %v14393_v3 }
 0x1d0   : > { %17923 = vst [vmem:[#allocation34_spill] sm:$0xff] %v14372_v18  ;;  %v2147_v11 = vpack.c.bf16 %v2117_v50, %v2114_v41  ;;  %v10608_v51 = vpack.c.bf16 %v2117_v50, %v2117_v50  ;;  %v1997_v21 = vmax.f32 %v1858_v58, 0.0  ;;  %v10637_v29 = vcombine.low %v14381_v14, %v14372_v18  ;;  %v17935_v58 = vld [vmem:[#allocation26_spill] sm:$0xff] }
 0x1d1   : > { %v2229_v20 = vrot.slane %v10607_v56, %v17909_v27  ;;  %v2083_v10 = vmax.f32 %v17927_v55, %v1990_v39  ;;  %v2084_v5 = vmax.f32 %v17928_v35, %v1991_v26  ;;  %v17932_v53 = vmax.f32 %v14238_v12, 0.0 }
 0x1d2   : > { %v14396_v16 = vrot.slane %v2147_v11, %v17909_v27  ;;  %v14399_v41 = vrot.slane %v10608_v51, %v17909_v27  ;;  %v17933_v50 = vmax.f32 %v14229_v40, 0.0  ;;  %v1861_v19 = vpop.f32.mrb[84].mxu0  ;;  %v2769_v39 = vrot.slane %v10637_v29, %v17909_v27 }
 0x1d3   : > { %v2086_v15 = vmax.f32 %v17932_v53, %v1996_v23  ;;  %v2119_v42 = vmax.f32 %v14112_v22, %v2083_v10  ;;  %v2120_v56 = vmax.f32 %v14118_v60, %v2084_v5  ;;  %v1863_v22 = vpop.f32.mrb[85].mxu0  ;;  %v14420_v60 = vrot.slane %v2229_v20, %v17909_v27  ;;  %v17934_v23 = vld [vmem:[#allocation14_spill] sm:$0xff] }
 0x1d4   : > { %17930 = vst [vmem:[#allocation22_spill] sm:$0xff] %v14396_v16  ;;  %17931 = vst [vmem:[#allocation39_spill] sm:$0xff] %v14399_v41  ;;  %v2087_v6 = vmax.f32 %v17933_v50, %v1997_v21  ;;  %v14410_v26 = vcombine.low %v14372_v18, %v14396_v16  ;;  %v14414_v51 = vcombine.high %v14372_v18, %v14396_v16  ;;  %v1865_v5 = vpop.f32.mrb[86].mxu0 }
 0x1d5   : > { %v14417_v12 = vcombine.low %v2229_v20, %v14399_v41  ;;  %v14423_v40 = vcombine.high %v2229_v20, %v14399_v41  ;;  %v17936_v11 = vmax.f32 %v17934_v23, %v17935_v58  ;;  %v2122_v10 = vmax.f32 %v14124_v24, %v2086_v15  ;;  %v1867_v50 = vpop.f32.mrb[87].mxu0  ;;  %v17939_v23 = vld [vmem:[#allocation27_spill] sm:$0xff] }
 0x1d6   : > { %v2123_v35 = vmax.f32 %v14128_v33, %v2087_v6  ;;  %v1862_v21 = vadd.f32 %v1861_v19, %v14047_v61  ;;  %v1864_v29 = vadd.f32 %v1863_v22, %v14052_v45  ;;  %v1866_v53 = vadd.f32 %v1865_v5, %v14047_v61 }
 0x1d7   : > { %v10609_v55 = vpack.c.bf16 %v2119_v42, %v17936_v11  ;;  %v2777_v2 = vcombine.low %v14354_v30, %v2769_v39  ;;  %v17940_v42 = vmax.f32 %v17938_v28, %v17939_v23  ;;  %v1868_v19 = vadd.f32 %v1867_v50, %v14052_v45  ;;  %v11976_v50 = vld [vmem:[%s17748_s3 + $0x200] ss:$16 sps:$4 sm:$0xff]   ;;  %v11979_v23 = vld [vmem:[%s17748_s3 + $0x208] ss:$16 sps:$4 sm:$0xff]  }
 0x1d8   : > { %v2150_v24 = vpack.c.bf16 %v2123_v35, %v2120_v56  ;;  %v10611_v15 = vpack.c.bf16 %v2123_v35, %v2123_v35  ;;  %v2002_v33 = vmax.f32 %v1862_v21, 0.0  ;;  %v2003_v6 = vmax.f32 %v1864_v29, 0.0 }
 0x1d9   : > { %v14435_v20 = vrot.slane %v10609_v55, %v17909_v27  ;;  %v10610_v58 = vpack.c.bf16 %v2122_v10, %v17940_v42  ;;  %v2008_v11 = vmax.f32 %v1866_v53, 0.0  ;;  %v2778_v8 = vcombine.high %v14354_v30, %v2769_v39  ;;  %v11984_v39 = vld [vmem:[%s17748_s3 + $0x224] ss:$16 sps:$4 sm:$0xff]   ;;  %v11987_v42 = vld [vmem:[%s17748_s3 + $0x22c] ss:$16 sps:$4 sm:$0xff]  }
 0x1da   : > { %v14445_v5 = vrot.slane %v2150_v24, %v17909_v27  ;;  %v14448_v55 = vrot.slane %v10611_v15, %v17909_v27  ;;  %v17943_v28 = vmax.f32 %v14251_v48, 0.0  ;;  %v17944_v10 = vmax.f32 %v14244_v7, 0.0 }
 0x1db   : > { %17937 = vst [vmem:[#allocation40_spill] sm:$0xff] %v14435_v20  ;;  %v14442_v22 = vrot.slane %v10610_v58, %v17909_v27  ;;  %v17945_v21 = vmax.f32 %v14267_v59, 0.0  ;;  %v2009_v53 = vmax.f32 %v1868_v19, 0.0  ;;  %6439 = vmatprep.mubr.bf16.mxu1 %v2778_v8  ;;  %v1871_v58 = vpop.f32.mrb[88].mxu0  ;;  %7023 = vmatprep.mubr.bf16.mxu0 %v2778_v8 }
 0x1dc   : > { %17942 = vst [vmem:[#allocation11_spill] sm:$0xff] %v14448_v55  ;;  %v2089_v56 = vmax.f32 %v17943_v28, %v2002_v33  ;;  %v2090_v35 = vmax.f32 %v17944_v10, %v2003_v6  ;;  %v14465_v30 = vcombine.low %v14435_v20, %v14445_v5  ;;  %v14469_v48 = vcombine.high %v14435_v20, %v14445_v5  ;;  %v1873_v19 = vpop.f32.mrb[89].mxu0 }
 0x1dd   : > { %17941 = vst [vmem:[#allocation7_spill] sm:$0xff] %v14442_v22  ;;  %v2092_v29 = vmax.f32 %v17945_v21, %v2008_v11  ;;  %v14473_v7 = vcombine.low %v14442_v22, %v14448_v55  ;;  %v14477_v59 = vcombine.high %v14442_v22, %v14448_v55  ;;  %v17946_v6 = vmax.f32 %v14260_v54, 0.0  ;;  %6440 = vmatmul.mubr.bf16.vlgmr.msra.gmra.mrb[48].mxu1 %v2777_v2  ;;  %v1875_v21 = vpop.f32.mrb[90].mxu0  ;;  %v17950_v54 = vld [vmem:[#allocation17_spill] sm:$0xff] }
 0x1de   : > { %v2125_v24 = vmax.f32 %v14140_v49, %v2089_v56  ;;  %v2126_v15 = vmax.f32 %v14150_v4, %v2090_v35  ;;  %7024 = vmatmul.mubr.bf16.vlgmr.msra.gmra.mrb[96].mxu0 %v2777_v2  ;;  %v1872_v28 = vadd.f32 %v1871_v58, %v14047_v61  ;;  %v1874_v10 = vadd.f32 %v1873_v19, %v14052_v45  ;;  %v17947_v4 = vld [vmem:[#allocation16_spill] sm:$0xff]  ;;  %v17948_v56 = vld [vmem:[#allocation30_spill] sm:$0xff]  ;;  %v1877_v19 = vpop.f32.mrb[91].mxu0 }
 0x1df   : > { %v2128_v33 = vmax.f32 %v14160_v62, %v2092_v29  ;;  %v2093_v11 = vmax.f32 %v17946_v6, %v2009_v53  ;;  %v10639_v55 = vcombine.low %v14469_v48, %v14442_v22  ;;  %v17792_v49 = vshrl.u32 %v14364_v17, 16  ;;  %v17951_v29 = vld [vmem:[#allocation31_spill] sm:$0xff]  ;;  %6481 = vmatpush1.bf16.msra.mxu1 %v11976_v50  ;;  %7065 = vmatpush1.bf16.msra.mxu0 %v11979_v23  ;;  %v11982_v58 = vld [vmem:[%s17748_s3 + $0x220] ss:$16 sps:$4 sm:$0xff]   ;;  %v11990_v23 = vld [vmem:[%s17748_s3 + $0x244] ss:$16 sps:$4 sm:$0xff]  }
 0x1e0   : > { %v17949_v62 = vmax.f32 %v17947_v4, %v17948_v56  ;;  %v17952_v8 = vmax.f32 %v17950_v54, %v17951_v29  ;;  %v11985_v6 = vld [vmem:[%s17748_s3 + $0x228] ss:$16 sps:$4 sm:$0xff]   ;;  %6482 = vmatprep.subr.bf16.mxu1 %v11984_v39  ;;  %7066 = vmatprep.subr.bf16.mxu0 %v11987_v42  ;;  %v2015_v4 = vmax.f32 %v1874_v10, 0.0  ;;  %v1878_v50 = vadd.f32 %v1877_v19, %v14052_v45  ;;  %v11993_v39 = vld [vmem:[%s17748_s3 + $0x24c] ss:$16 sps:$4 sm:$0xff]  }
 0x1e1   : > { %v2129_v2 = vmax.f32 %v14166_v52, %v2093_v11  ;;  %v1876_v52 = vadd.f32 %v1875_v21, %v14047_v61  ;;  %v17954_v42 = vmax.f32 %v14277_v63, 0.0  ;;  %v17955_v10 = vmax.f32 %v14271_v32, 0.0  ;;  %v11991_v32 = vld [vmem:[%s17748_s3 + $0x248] ss:$16 sps:$4 sm:$0xff]  }
 0x1e2   : > { %v10612_v35 = vpack.c.bf16 %v2125_v24, %v17949_v62  ;;  %v10613_v53 = vpack.c.bf16 %v2128_v33, %v17952_v8  ;;  %v2399_v24 = vshll.u32 %v14364_v17, 16  ;;  %v2014_v33 = vmax.f32 %v1872_v28, 0.0 }
 0x1e3   : > { %v2153_v62 = vpack.c.bf16 %v2129_v2, %v2126_v15  ;;  %v10614_v54 = vpack.c.bf16 %v2129_v2, %v2129_v2  ;;  %v2096_v21 = vmax.f32 %v17955_v10, %v2015_v4  ;;  %v2020_v29 = vmax.f32 %v1876_v52, 0.0  ;;  %6483 = vmatpush1.bf16.msra.mxu1 %v11982_v58  ;;  %7067 = vmatpush1.bf16.msra.mxu0 %v11985_v6  ;;  %v11988_v15 = vld [vmem:[%s17748_s3 + $0x240] ss:$16 sps:$4 sm:$0xff]  }
 0x1e4   : > { %v14515_v11 = vrot.slane %v10612_v35, %v17909_v27  ;;  %v14518_v56 = vrot.slane %v10613_v53, %v17909_v27  ;;  %v2095_v28 = vmax.f32 %v17954_v42, %v2014_v33  ;;  %v2021_v8 = vmax.f32 %v1878_v50, 0.0  ;;  %6484 = vmatprep.subr.bf16.mxu1 %v11990_v23  ;;  %v11996_v50 = vld [vmem:[%s17748_s3 + $0x264] ss:$16 sps:$4 sm:$0xff]   ;;  %7068 = vmatprep.subr.bf16.mxu0 %v11993_v39  ;;  %v17960_v42 = vld [vmem:[#allocation35_spill] sm:$0xff]  ;;  %v11994_v39 = vld [vmem:[%s17748_s3 + $0x260] ss:$16 sps:$4 sm:$0xff]  }
 0x1e5   : > { %v14528_v35 = vrot.slane %v2153_v62, %v17909_v27  ;;  %v14531_v53 = vrot.slane %v10614_v54, %v17909_v27  ;;  %v2804_v63 = vrot.slane %v10639_v55, %v17909_v27  ;;  %v14542_v2 = vrot.slane %v17792_v49, 6  ;;  %v1881_v55 = vpop.f32.mrb[92].mxu0  ;;  %v17959_v54 = vld [vmem:[#allocation18_spill] sm:$0xff] }
 0x1e6   : > { %17953 = vst [vmem:[#allocation23_spill] sm:$0xff] %v14518_v56  ;;  %v2131_v19 = vmax.f32 %v14190_v31, %v2095_v28  ;;  %v2132_v33 = vmax.f32 %v14200_v57, %v2096_v21  ;;  %v17957_v58 = vmax.f32 %v14288_v13, 0.0  ;;  %v17958_v4 = vmax.f32 %v14281_v34, 0.0  ;;  %v11999_v13 = vld [vmem:[%s17748_s3 + $0x26c] ss:$16 sps:$4 sm:$0xff]   ;;  %v1883_v34 = vpop.f32.mrb[93].mxu0 }
 0x1e7   : > { %17956 = vst [vmem:[#allocation12_spill] sm:$0xff] %v14528_v35  ;;  %v14555_v62 = vcombine.low %v14515_v11, %v14528_v35  ;;  %v14559_v31 = vcombine.high %v14515_v11, %v14528_v35  ;;  %v14563_v57 = vcombine.low %v14518_v56, %v14531_v53  ;;  %v17961_v28 = vmax.f32 %v17959_v54, %v17960_v42 }
 0x1e8   : > { %v2098_v6 = vmax.f32 %v17957_v58, %v2020_v29  ;;  %v2099_v52 = vmax.f32 %v17958_v4, %v2021_v8  ;;  %v1882_v8 = vadd.f32 %v1881_v55, %v14047_v61  ;;  %v1885_v58 = vpop.f32.mrb[94].mxu0  ;;  %6485 = vmatpush1.bf16.msra.mxu1 %v11988_v15  ;;  %7069 = vmatpush1.bf16.msra.mxu0 %v11991_v32  ;;  %v11997_v4 = vld [vmem:[%s17748_s3 + $0x268] ss:$16 sps:$4 sm:$0xff]   ;;  %v17963_v55 = vld [vmem:[#allocation38_spill] sm:$0xff]  ;;  %v17799_v49 = vshrl.u32 %v14367_v1, 16 }
 0x1e9   : > { %v10615_v10 = vpack.c.bf16 %v2131_v19, %v17961_v28  ;;  %v2813_v54 = vcombine.high %v14420_v60, %v2804_v63  ;;  %v1884_v19 = vadd.f32 %v1883_v34, %v14052_v45  ;;  %6486 = vmatprep.subr.bf16.mxu1 %v11996_v50  ;;  %7070 = vmatprep.subr.bf16.mxu0 %v11999_v13  ;;  %v17969_v50 = vshll.u32 %v14367_v1, 16 }
 0x1ea   : > { %v2134_v21 = vmax.f32 %v14210_v37, %v2098_v6  ;;  %v2135_v29 = vmax.f32 %v14217_v0, %v2099_v52  ;;  %v2812_v37 = vcombine.low %v14420_v60, %v2804_v63  ;;  %v1887_v0 = vpop.f32.mrb[95].mxu0  ;;  %v2401_v6 = vrot.slane %v2399_v24, 7  ;;  %v17962_v52 = vld [vmem:[#allocation19_spill] sm:$0xff]  ;;  %v12002_v60 = vld [vmem:[%s17748_s3 + $0x284] ss:$16 sps:$4 sm:$0xff]  }
 0x1eb   : > { %v17964_v15 = vmax.f32 %v17962_v52, %v17963_v55  ;;  %v2026_v23 = vmax.f32 %v1882_v8, 0.0  ;;  %6449 = vmatprep.mubr.bf16.mxu1 %v2813_v54  ;;  %v2027_v16 = vmax.f32 %v1884_v19, 0.0  ;;  %v1886_v22 = vadd.f32 %v1885_v58, %v14047_v61  ;;  %7033 = vmatprep.mubr.bf16.mxu0 %v2813_v54  ;;  %v12005_v61 = vld [vmem:[%s17748_s3 + $0x28c] ss:$16 sps:$4 sm:$0xff]   ;;  %v12000_v19 = vld [vmem:[%s17748_s3 + $0x280] ss:$16 sps:$4 sm:$0xff]  }
 0x1ec   : > { %v2156_v42 = vpack.c.bf16 %v2135_v29, %v2132_v33  ;;  %v10617_v28 = vpack.c.bf16 %v2135_v29, %v2135_v29  ;;  %v1888_v34 = vadd.f32 %v1887_v0, %v14052_v45  ;;  %v14595_v24 = vcombine.high %v14518_v56, %v14531_v53  ;;  %6450 = vmatmul.mubr.bf16.gmra.mrb[52].mxu1 %v2812_v37  ;;  %v12003_v0 = vld [vmem:[%s17748_s3 + $0x288] ss:$16 sps:$4 sm:$0xff]  }
 0x1ed   : > { %v10616_v32 = vpack.c.bf16 %v2134_v21, %v17964_v15  ;;  %v14598_v63 = vrot.slane %v10615_v10, %v17909_v27  ;;  %v2407_v13 = vrot.slane %v17969_v50, 7  ;;  %v17970_v10 = vmax.f32 %v14310_v44, 0.0  ;;  %6487 = vmatpush1.bf16.msra.mxu1 %v11994_v39  ;;  %7071 = vmatpush1.bf16.msra.mxu0 %v11997_v4  ;;  %v17974_v4 = vld [vmem:[#allocation28_spill] sm:$0xff]  ;;  %v17981_v50 = vld [vmem:[#allocation41_spill] sm:$0xff] }
 0x1ee   : > { %v14601_v33 = vrot.slane %v2156_v42, %v17909_v27  ;;  %v17971_v29 = vmax.f32 %v14303_v9, 0.0  ;;  %v2032_v58 = vmax.f32 %v1886_v22, 0.0  ;;  %v2033_v54 = vmax.f32 %v1888_v34, 0.0  ;;  %7034 = vmatmul.mubr.bf16.gmra.mrb[100].mxu0 %v2812_v37  ;;  %v12011_v22 = vld [vmem:[%s17748_s3 + $0x2ac] ss:$16 sps:$4 sm:$0xff]   ;;  %6488 = vmatprep.subr.bf16.mxu1 %v12002_v60  ;;  %v17980_v60 = vld [vmem:[#allocation20_spill] sm:$0xff] }
 0x1ef   : > { %17965 = vst [vmem:[#allocation24_spill] sm:$0xff] %v14598_v63  ;;  %v2101_v21 = vmax.f32 %v17970_v10, %v2026_v23  ;;  %v14625_v52 = vrot.slane %v10616_v32, %v17909_v27  ;;  %v14628_v44 = vrot.slane %v10617_v28, %v17909_v27  ;;  %v2411_v23 = vrot.slane %v17799_v49, 6  ;;  %7072 = vmatprep.subr.bf16.mxu0 %v12005_v61  ;;  %v12006_v61 = vld [vmem:[%s17748_s3 + $0x2a0] ss:$16 sps:$4 sm:$0xff]  }
 0x1f0   : > { %17966 = vst [vmem:[#allocation13_spill] sm:$0xff] %v14601_v33  ;;  %v2102_v8 = vmax.f32 %v17971_v29, %v2027_v16  ;;  %v14632_v9 = vcombine.low %v14598_v63, %v14601_v33  ;;  %v12008_v16 = vld [vmem:[%s17748_s3 + $0x2a4] ss:$16 sps:$4 sm:$0xff]   ;;  %v17975_v15 = vmax.f32 %v14323_v38, 0.0  ;;  %v17976_v37 = vmax.f32 %v14319_v47, 0.0 }
 0x1f1   : > { %17972 = vst [vmem:[#allocation25_spill] sm:$0xff] %v14628_v44  ;;  %v2137_v39 = vmax.f32 %v14246_v25, %v2101_v21  ;;  %v14657_v34 = vcombine.high %v14598_v63, %v14601_v33  ;;  %v10641_v25 = vcombine.low %v14595_v24, %v14598_v63  ;;  %v2825_v47 = vrot.slane %v14515_v11, %v17909_v27  ;;  %v17983_v21 = vld [vmem:[#allocation43_spill] sm:$0xff] }
 0x1f2   : > { %17973 = vst [vmem:[#allocation14_spill] sm:$0xff] %v14632_v9  ;;  %v2138_v55 = vmax.f32 %v17974_v4, %v2102_v8  ;;  %v2104_v32 = vmax.f32 %v17975_v15, %v2032_v58  ;;  %v2105_v42 = vmax.f32 %v17976_v37, %v2033_v54  ;;  %v2402_v38 = vor.u32 %v2401_v6, %v14542_v2  ;;  %v17984_v8 = vld [vmem:[#allocation44_spill] sm:$0xff]  ;;  %v12009_v11 = vld [vmem:[%s17748_s3 + $0x2a8] ss:$16 sps:$4 sm:$0xff]   ;;  %v17989_v15 = vld [vmem:[#allocation42_spill] sm:$0xff] }
 0x1f3   : > { %17979 = vst [vmem:[#allocation26_spill] sm:$0xff] %v14657_v34  ;;  %v17982_v45 = vmax.f32 %v17980_v60, %v17981_v50  ;;  %6489 = vmatpush1.bf16.msra.mxu1 %v12000_v19  ;;  %7073 = vmatpush1.bf16.msra.mxu0 %v12003_v0  ;;  %v17795_v2 = vshll.u32 %v14393_v3, 16  ;;  %v2839_v6 = vrot.slane %v10641_v25, %v17909_v27  ;;  %v12014_v54 = vld [vmem:[%s17748_s3 + $0x2c4] ss:$16 sps:$4 sm:$0xff]   ;;  %v17798_v4 = vshrl.u32 %v14381_v14, 16 }
 0x1f4   : > { %v2140_v29 = vmax.f32 %v17983_v21, %v2104_v32  ;;  %v2141_v58 = vmax.f32 %v17984_v8, %v2105_v42  ;;  %6490 = vmatprep.subr.bf16.mxu1 %v12008_v16  ;;  %7074 = vmatprep.subr.bf16.mxu0 %v12011_v22  ;;  %v2403_v0 = vrot.slane %v2402_v38, 2  ;;  %v14690_v16 = vcombine.low %v14625_v52, %v14628_v44  ;;  %v17988_v22 = vld [vmem:[#allocation21_spill] sm:$0xff]  ;;  %v12020_v8 = vld [vmem:[%s17748_s3 + $0x2e4] ss:$16 sps:$4 sm:$0xff]  }
 0x1f5   : > { %v10618_v10 = vpack.c.bf16 %v2137_v39, %v17982_v45  ;;  %v2412_v39 = vor.u32 %v2411_v23, %v2407_v13  ;;  %v17990_v32 = vmax.f32 %v17988_v22, %v17989_v15  ;;  %v14697_v28 = vcombine.high %v14625_v52, %v14628_v44  ;;  %v12017_v23 = vld [vmem:[%s17748_s3 + $0x2cc] ss:$16 sps:$4 sm:$0xff]  }
 0x1f6   : > { %17987 = vst [vmem:[#allocation15_spill] sm:$0xff] %v14690_v16  ;;  %v2159_v42 = vpack.c.bf16 %v2141_v58, %v2138_v55  ;;  %v10620_v25 = vpack.c.bf16 %v2141_v58, %v2141_v58  ;;  %v2848_v60 = vcombine.high %v2825_v47, %v2839_v6  ;;  %v2847_v38 = vcombine.low %v2825_v47, %v2839_v6  ;;  %v12012_v55 = vld [vmem:[%s17748_s3 + $0x2c0] ss:$16 sps:$4 sm:$0xff]  }
 0x1f7   : > { %v10619_v37 = vpack.c.bf16 %v2140_v29, %v17990_v32  ;;  %17991 = vst [vmem:[#allocation27_spill] sm:$0xff] %v14697_v28  ;;  %v2413_v50 = vrot.slane %v2412_v39, 2  ;;  %v14703_v45 = vrot.slane %v10618_v10, %v17909_v27  ;;  %6491 = vmatpush1.bf16.msra.mxu1 %v12006_v61  ;;  %7075 = vmatpush1.bf16.msra.mxu0 %v12009_v11  ;;  %v12015_v29 = vld [vmem:[%s17748_s3 + $0x2c8] ss:$16 sps:$4 sm:$0xff]   ;;  %v2417_v10 = vrot.slane %v17795_v2, 7 }
 0x1f8   : > { %v14706_v21 = vrot.slane %v2159_v42, %v17909_v27  ;;  %v14716_v47 = vsel %vm14683_vm8, %v2403_v0, %v2407_v13  ;;  %6459 = vmatprep.mubr.bf16.mxu1 %v2848_v60  ;;  %6492 = vmatprep.subr.bf16.mxu1 %v12014_v54  ;;  %v2422_v58 = vrot.slane %v17798_v4, 6  ;;  %v2423_v61 = vshll.u32 %v14381_v14, 16  ;;  %v12023_v39 = vld [vmem:[%s17748_s3 + $0x2ec] ss:$16 sps:$4 sm:$0xff]  }
 0x1f9   : > { %17992 = vst [vmem:[#allocation16_spill] sm:$0xff] %v14703_v45  ;;  %v17796_v11 = vshll.u32 %v14410_v26, 16  ;;  %v17797_v6 = vshrl.u32 %v14410_v26, 16  ;;  %v14729_v13 = vrot.slane %v10619_v37, %v17909_v27  ;;  %v14732_v0 = vrot.slane %v10620_v25, %v17909_v27  ;;  %7043 = vmatprep.mubr.bf16.mxu0 %v2848_v60  ;;  %7076 = vmatprep.subr.bf16.mxu0 %v12017_v23  ;;  %v12018_v25 = vld [vmem:[%s17748_s3 + $0x2e0] ss:$16 sps:$4 sm:$0xff]  }
 0x1fa   : > { %v14736_v54 = vcombine.high %v14703_v45, %v14706_v21  ;;  %v2860_v22 = vrot.slane %v14625_v52, %v17909_v27  ;;  %6460 = vmatmul.mubr.bf16.gmra.mrb[56].mxu1 %v2847_v38  ;;  %v14745_v15 = vsel %vm14683_vm8, %v2413_v50, %v2417_v10  ;;  %v2425_v32 = vrot.slane %v2423_v61, 7  ;;  %7044 = vmatmul.mubr.bf16.gmra.mrb[104].mxu0 %v2847_v38  ;;  %v12021_v38 = vld [vmem:[%s17748_s3 + $0x2e8] ss:$16 sps:$4 sm:$0xff]  }
 0x1fb   : > { %17993 = vst [vmem:[#allocation30_spill] sm:$0xff] %v14729_v13  ;;  %17994 = vst [vmem:[#allocation17_spill] sm:$0xff] %v14732_v0  ;;  %v2431_v37 = vrot.slane %v17796_v11, 7  ;;  %v2435_v42 = vrot.slane %v17797_v6, 6  ;;  %6493 = vmatpush1.bf16.msra.mxu1 %v12012_v55  ;;  %v17801_v60 = vshll.u32 %v14414_v51, 16  ;;  %v2897_v23 = vcombine.low %v14716_v47, %v14745_v15  ;;  %7077 = vmatpush1.bf16.msra.mxu0 %v12015_v29 }
 0x1fc   : > { %17995 = vst [vmem:[#allocation31_spill] sm:$0xff] %v14736_v54  ;;  %v10643_v52 = vcombine.low %v14736_v54, %v14729_v13  ;;  %v10638_v50 = vcombine.high %v14351_v43, %v14410_v26  ;;  %v14763_v10 = vcombine.low %v14703_v45, %v14706_v21  ;;  %6494 = vmatprep.subr.bf16.mxu1 %v12020_v8  ;;  %v12026_v55 = vld [vmem:[%s17748_s3 + $0x304] ss:$16 sps:$4 sm:$0xff]   ;;  %v17802_v11 = vshrl.u32 %v14417_v12, 16  ;;  %v12029_v43 = vld [vmem:[%s17748_s3 + $0x30c] ss:$16 sps:$4 sm:$0xff]  }
 0x1fd   : > { %v2426_v61 = vor.u32 %v2425_v32, %v2422_v58  ;;  %v2436_v2 = vor.u32 %v2435_v42, %v2431_v37  ;;  %7078 = vmatprep.subr.bf16.mxu0 %v12023_v39  ;;  %v2441_v8 = vrot.slane %v17801_v60, 7  ;;  %v2907_v6 = vrot.slane %v2897_v23, %v17909_v27  ;;  %v12024_v42 = vld [vmem:[%s17748_s3 + $0x300] ss:$16 sps:$4 sm:$0xff]  }
 0x1fe   : > { %v2874_v29 = vrot.slane %v10643_v52, %v17909_v27  ;;  %v2762_v4 = vrot.slane %v14339_v36, %v17909_v27  ;;  %v2446_v32 = vrot.slane %v17802_v11, 6  ;;  %v2447_v39 = vshll.u32 %v14417_v12, 16  ;;  %v12030_v36 = vld [vmem:[%s17748_s3 + $0x320] ss:$16 sps:$4 sm:$0xff]  }
 0x1ff   : > { %v2427_v49 = vrot.slane %v2426_v61, 2  ;;  %v2437_v58 = vrot.slane %v2436_v2, 2  ;;  %6495 = vmatpush1.bf16.msra.mxu1 %v12018_v25  ;;  %v2776_v60 = vrot.slane %v10638_v50, %v17909_v27  ;;  %v17804_v23 = vshll.u32 %v14423_v40, 16  ;;  %7079 = vmatpush1.bf16.msra.mxu0 %v12021_v38  ;;  %v12027_v2 = vld [vmem:[%s17748_s3 + $0x308] ss:$16 sps:$4 sm:$0xff]  }
 0x200   : > { %v2883_v52 = vcombine.high %v2860_v22, %v2874_v29  ;;  %v2882_v33 = vcombine.low %v2860_v22, %v2874_v29  ;;  %6496 = vmatprep.subr.bf16.mxu1 %v12026_v55  ;;  %v12032_v25 = vld [vmem:[%s17748_s3 + $0x324] ss:$16 sps:$4 sm:$0xff]   ;;  %v2449_v50 = vrot.slane %v2447_v39, 7  ;;  %v17805_v38 = vshrl.u32 %v14423_v40, 16  ;;  %7080 = vmatprep.subr.bf16.mxu0 %v12029_v43  ;;  %v12035_v55 = vld [vmem:[%s17748_s3 + $0x32c] ss:$16 sps:$4 sm:$0xff]  }
 0x201   : > { %v14797_v61 = vsel %vm14683_vm8, %v2427_v49, %v2431_v37  ;;  %v14801_v22 = vsel %vm14683_vm8, %v2437_v58, %v2441_v8  ;;  %v2455_v49 = vrot.slane %v17804_v23, 7  ;;  %v17808_v37 = vshll.u32 %v14465_v30, 16 }
 0x202   : > { %6469 = vmatprep.mubr.bf16.mxu1 %v2883_v52  ;;  %v2899_v29 = vcombine.low %v14797_v61, %v14801_v22  ;;  %v17809_v8 = vshrl.u32 %v14469_v48, 16  ;;  %7053 = vmatprep.mubr.bf16.mxu0 %v2883_v52  ;;  %v2450_v58 = vor.u32 %v2449_v50, %v2446_v32  ;;  %v2459_v43 = vrot.slane %v17805_v38, 6 }
 0x203   : > { %6470 = vmatmul.mubr.bf16.gmra.mrb[60].mxu1 %v2882_v33  ;;  %v2471_v39 = vshll.u32 %v14469_v48, 16  ;;  %7054 = vmatmul.mubr.bf16.gmra.mrb[108].mxu0 %v2882_v33  ;;  %v2465_v52 = vrot.slane %v17808_v37, 7  ;;  %v17810_v50 = vshrl.u32 %v14473_v7, 16  ;;  %v17996_v33 = vshll.u32 %v14473_v7, 16 }
 0x204   : > { %6497 = vmatpush1.bf16.msra.mxu1 %v12024_v42  ;;  %v2921_v23 = vrot.slane %v2899_v29, %v17909_v27  ;;  %v2470_v32 = vrot.slane %v17809_v8, 6  ;;  %7081 = vmatpush1.bf16.msra.mxu0 %v12027_v2  ;;  %v12033_v42 = vld [vmem:[%s17748_s3 + $0x328] ss:$16 sps:$4 sm:$0xff]   ;;  %v2451_v38 = vrot.slane %v2450_v58, 2  ;;  %v2460_v11 = vor.u32 %v2459_v43, %v2455_v49  ;;  %v12038_v8 = vld [vmem:[%s17748_s3 + $0x344] ss:$16 sps:$4 sm:$0xff]  }
 0x205   : > { %6498 = vmatprep.subr.bf16.mxu1 %v12032_v25  ;;  %v2473_v45 = vrot.slane %v2471_v39, 7  ;;  %v2479_v29 = vrot.slane %v17996_v33, 7  ;;  %7082 = vmatprep.subr.bf16.mxu0 %v12035_v55  ;;  %v12041_v2 = vld [vmem:[%s17748_s3 + $0x34c] ss:$16 sps:$4 sm:$0xff]   ;;  %v2483_v25 = vrot.slane %v17810_v50, 6  ;;  %v14844_v43 = vcombine.low %v14729_v13, %v14732_v0 }
 0x206   : > { %v2929_v63 = vcombine.low %v2907_v6, %v2921_v23  ;;  %v14831_v37 = vcombine.high %v2907_v6, %v2921_v23  ;;  %v2461_v55 = vrot.slane %v2460_v11, 2  ;;  %v10640_v23 = vcombine.high %v14445_v5, %v14473_v7  ;;  %v12036_v33 = vld [vmem:[%s17748_s3 + $0x340] ss:$16 sps:$4 sm:$0xff]   ;;  %v12039_v5 = vld [vmem:[%s17748_s3 + $0x348] ss:$16 sps:$4 sm:$0xff]  }
 0x207   : > { %17998 = vst [vmem:[#allocation35_spill] sm:$0xff] %v14844_v43  ;;  %v2474_v6 = vor.u32 %v2473_v45, %v2470_v32  ;;  %v14850_v39 = vcombine.high %v14729_v13, %v14732_v0  ;;  %v14855_v50 = vcombine.low %v2762_v4, %v2776_v60  ;;  %v2484_v58 = vor.u32 %v2483_v25, %v2479_v29  ;;  %v12053_v0 = vld [vmem:[%s17748_s3 + $0x38c] ss:$16 sps:$4 sm:$0xff]  }
 0x208   : > { %17997 = vst [vmem:[#allocation18_spill] sm:$0xff] %v14831_v37  ;;  %6499 = vmatpush1.bf16.msra.mxu1 %v12030_v36  ;;  %6512 = vmatprep.mubr.bf16.mxu1 %v2929_v63  ;;  %v17812_v56 = vshrl.u32 %v14555_v62, 16  ;;  %v12044_v36 = vld [vmem:[%s17748_s3 + $0x364] ss:$16 sps:$4 sm:$0xff]   ;;  %v14866_v45 = vsel %vm14683_vm8, %v2451_v38, %v2455_v49  ;;  %v14870_v4 = vsel %vm14683_vm8, %v2461_v55, %v2465_v52  ;;  %v2495_v60 = vshll.u32 %v14555_v62, 16 }
 0x209   : > { %7083 = vmatpush1.bf16.msra.mxu0 %v12033_v42  ;;  %7096 = vmatprep.mubr.bf16.mxu0 %v2929_v63  ;;  %v2475_v11 = vrot.slane %v2474_v6, 2  ;;  %v12047_v63 = vld [vmem:[%s17748_s3 + $0x36c] ss:$16 sps:$4 sm:$0xff]   ;;  %v2485_v32 = vrot.slane %v2484_v58, 2  ;;  %v17999_v42 = vshll.u32 %v14477_v59, 16  ;;  %v17814_v49 = vshll.u32 %v14559_v31, 16 }
 0x20a   : > { %6500 = vmatprep.subr.bf16.mxu1 %v12038_v8  ;;  %7084 = vmatprep.subr.bf16.mxu0 %v12041_v2  ;;  %v2494_v38 = vrot.slane %v17812_v56, 6  ;;  %v2811_v8 = vrot.slane %v10640_v23, %v17909_v27  ;;  %v2497_v2 = vrot.slane %v2495_v60, 7  ;;  %v17815_v55 = vshrl.u32 %v14559_v31, 16  ;;  %v12042_v58 = vld [vmem:[%s17748_s3 + $0x360] ss:$16 sps:$4 sm:$0xff]  }
 0x20b   : > { %v2489_v25 = vrot.slane %v17999_v42, 7  ;;  %v14883_v52 = vsel %vm14683_vm8, %v2475_v11, %v2479_v29  ;;  %v12045_v6 = vld [vmem:[%s17748_s3 + $0x368] ss:$16 sps:$4 sm:$0xff]   ;;  %v2932_v29 = vcombine.low %v14866_v45, %v14870_v4  ;;  %v2797_v23 = vrot.slane %v14399_v41, %v17909_v27  ;;  %v12050_v11 = vld [vmem:[%s17748_s3 + $0x384] ss:$16 sps:$4 sm:$0xff]  }
 0x20c   : > { %6501 = vmatpush1.bf16.msra.mxu1 %v12036_v33  ;;  %v2503_v33 = vrot.slane %v17814_v49, 7  ;;  %v2498_v60 = vor.u32 %v2497_v2, %v2494_v38  ;;  %v17822_v56 = vshrl.u32 %v14595_v24, 16  ;;  %v17820_v49 = vshll.u32 %v14632_v9, 16  ;;  %v12048_v41 = vld [vmem:[%s17748_s3 + $0x380] ss:$16 sps:$4 sm:$0xff]  }
 0x20d   : > { %v14895_v42 = vsel %vm14683_vm8, %v2485_v32, %v2489_v25  ;;  %7085 = vmatpush1.bf16.msra.mxu0 %v12039_v5  ;;  %6502 = vmatprep.subr.bf16.mxu1 %v12044_v36  ;;  %v2507_v32 = vrot.slane %v17815_v55, 6  ;;  %v2519_v36 = vshll.u32 %v14595_v24, 16  ;;  %v17821_v38 = vshrl.u32 %v14632_v9, 16 }
 0x20e   : > { %7086 = vmatprep.subr.bf16.mxu0 %v12047_v63  ;;  %v2934_v5 = vcombine.low %v14883_v52, %v14895_v42  ;;  %v14918_v2 = vcombine.low %v2797_v23, %v2811_v8  ;;  %v2499_v55 = vrot.slane %v2498_v60, 2  ;;  %v2518_v63 = vrot.slane %v17822_v56, 6  ;;  %v12051_v23 = vld [vmem:[%s17748_s3 + $0x388] ss:$16 sps:$4 sm:$0xff]  }
 0x20f   : > { %v2508_v25 = vor.u32 %v2507_v32, %v2503_v33  ;;  %v2521_v13 = vrot.slane %v2519_v36, 7  ;;  %v2527_v20 = vrot.slane %v17820_v49, 7  ;;  %v2531_v18 = vrot.slane %v17821_v38, 6 }
 0x210   : > { %6503 = vmatpush1.bf16.msra.mxu1 %v12042_v58  ;;  %v17823_v8 = vshll.u32 %v14657_v34, 16  ;;  %v12056_v58 = vld [vmem:[%s17748_s3 + $0x3a4] ss:$16 sps:$4 sm:$0xff]   ;;  %v14938_v60 = vsel %vm14683_vm8, %v2499_v55, %v2503_v33  ;;  %v18000_v36 = vshll.u32 %v14563_v57, 16  ;;  %v14948_v38 = vrot.slane %v2932_v29, %v17909_v27 }
 0x211   : > { %7087 = vmatpush1.bf16.msra.mxu0 %v12045_v6  ;;  %6504 = vmatprep.subr.bf16.mxu1 %v12050_v11  ;;  %v2509_v32 = vrot.slane %v2508_v25, 2  ;;  %v10642_v6 = vcombine.high %v14531_v53, %v14632_v9  ;;  %v12059_v11 = vld [vmem:[%s17748_s3 + $0x3ac] ss:$16 sps:$4 sm:$0xff]   ;;  %v14951_v56 = vrot.slane %v2934_v5, %v17909_v27  ;;  %v2522_v55 = vor.u32 %v2521_v13, %v2518_v63  ;;  %v12054_v25 = vld [vmem:[%s17748_s3 + $0x3a0] ss:$16 sps:$4 sm:$0xff]  }
 0x212   : > { %v2513_v49 = vrot.slane %v18000_v36, 7  ;;  %7088 = vmatprep.subr.bf16.mxu0 %v12053_v0  ;;  %v2532_v33 = vor.u32 %v2531_v18, %v2527_v20  ;;  %v2537_v0 = vrot.slane %v17823_v8, 7  ;;  %v17825_v36 = vshrl.u32 %v14690_v16, 16  ;;  %v12057_v18 = vld [vmem:[%s17748_s3 + $0x3a8] ss:$16 sps:$4 sm:$0xff]  }
 0x213   : > { %v2543_v29 = vshll.u32 %v14690_v16, 16  ;;  %v2523_v13 = vrot.slane %v2522_v55, 2  ;;  %v17827_v63 = vshll.u32 %v14697_v28, 16  ;;  %v2846_v8 = vrot.slane %v10642_v6, %v17909_v27 }
 0x214   : > { %v14958_v53 = vsel %vm14683_vm8, %v2509_v32, %v2513_v49  ;;  %6505 = vmatpush1.bf16.msra.mxu1 %v12048_v41  ;;  %v2533_v5 = vrot.slane %v2532_v33, 2  ;;  %v12062_v32 = vld [vmem:[%s17748_s3 + $0x3c4] ss:$16 sps:$4 sm:$0xff]   ;;  %v2542_v41 = vrot.slane %v17825_v36, 6  ;;  %v17828_v55 = vshrl.u32 %v14697_v28, 16 }
 0x215   : > { %v2967_v49 = vcombine.low %v14938_v60, %v14958_v53  ;;  %7089 = vmatpush1.bf16.msra.mxu0 %v12051_v23  ;;  %6506 = vmatprep.subr.bf16.mxu1 %v12056_v58  ;;  %v2545_v46 = vrot.slane %v2543_v29, 7  ;;  %v12065_v33 = vld [vmem:[%s17748_s3 + $0x3cc] ss:$16 sps:$4 sm:$0xff]   ;;  %v14982_v23 = vsel %vm14683_vm8, %v2523_v13, %v2527_v20  ;;  %v2551_v29 = vrot.slane %v17827_v63, 7 }
 0x216   : > { %7090 = vmatprep.subr.bf16.mxu0 %v12059_v11  ;;  %v14986_v58 = vsel %vm14683_vm8, %v2533_v5, %v2537_v0  ;;  %v2555_v37 = vrot.slane %v17828_v55, 6  ;;  %v17837_v20 = vshll.u32 %v14763_v10, 16  ;;  %v12060_v0 = vld [vmem:[%s17748_s3 + $0x3c0] ss:$16 sps:$4 sm:$0xff]   ;;  %v2567_v5 = vshll.u32 %v14736_v54, 16 }
 0x217   : > { %v14989_v6 = vrot.slane %v2967_v49, %v17909_v27  ;;  %v2969_v11 = vcombine.low %v14982_v23, %v14986_v58  ;;  %v2546_v36 = vor.u32 %v2545_v46, %v2542_v41  ;;  %v12063_v46 = vld [vmem:[%s17748_s3 + $0x3c8] ss:$16 sps:$4 sm:$0xff]   ;;  %v18002_v16 = vshll.u32 %v14844_v43, 16 }
 0x218   : > { %6507 = vmatpush1.bf16.msra.mxu1 %v12054_v25  ;;  %v12068_v25 = vld [vmem:[%s17748_s3 + $0x3e4] ss:$16 sps:$4 sm:$0xff]   ;;  %v2556_v13 = vor.u32 %v2555_v37, %v2551_v29  ;;  %v2561_v28 = vrot.slane %v17837_v20, 7  ;;  %v2569_v49 = vrot.slane %v2567_v5, 7  ;;  %v18003_v9 = vshrl.u32 %v14844_v43, 16 }
 0x219   : > { %7091 = vmatpush1.bf16.msra.mxu0 %v12057_v18  ;;  %6508 = vmatprep.subr.bf16.mxu1 %v12062_v32  ;;  %v2991_v41 = vrot.slane %v2969_v11, %v17909_v27  ;;  %v2547_v55 = vrot.slane %v2546_v36, 2  ;;  %v12071_v18 = vld [vmem:[%s17748_s3 + $0x3ec] ss:$16 sps:$4 sm:$0xff]   ;;  %v18001_v32 = vshrl.u32 %v14736_v54, 16  ;;  %v2575_v34 = vrot.slane %v18002_v16, 7 }
 0x21a   : > { %7092 = vmatprep.subr.bf16.mxu0 %v12065_v33  ;;  %v2579_v11 = vrot.slane %v18003_v9, 6  ;;  %v2832_v36 = vrot.slane %v14528_v35, %v17909_v27  ;;  %v2557_v33 = vrot.slane %v2556_v13, 2  ;;  %v12066_v5 = vld [vmem:[%s17748_s3 + $0x3e0] ss:$16 sps:$4 sm:$0xff]   ;;  %v2964_v16 = vcombine.low %v14948_v38, %v14951_v56  ;;  %v12069_v13 = vld [vmem:[%s17748_s3 + $0x3e8] ss:$16 sps:$4 sm:$0xff]  }
 0x21b   : > { %v2566_v63 = vrot.slane %v18001_v32, 6  ;;  %v15024_v37 = vcombine.low %v14989_v6, %v2991_v41  ;;  %v10644_v9 = vcombine.high %v14706_v21, %v14844_v43  ;;  %v2552_v35 = vsel %vm14683_vm8, %v2547_v55, %v2551_v29  ;;  %v12077_v21 = vld [vmem:[%s17748_s3 + $0x40c] ss:$16 sps:$4 sm:$0xff]  }
 0x21c   : > { %6509 = vmatpush1.bf16.msra.mxu1 %v12060_v0  ;;  %v2580_v54 = vor.u32 %v2579_v11, %v2575_v34  ;;  %v12074_v0 = vld [vmem:[%s17748_s3 + $0x404] ss:$16 sps:$4 sm:$0xff]   ;;  %v15042_v20 = vcombine.low %v2832_v36, %v2846_v8  ;;  %v2898_v55 = vcombine.high %v14716_v47, %v14745_v15  ;;  %v2933_v29 = vcombine.high %v14866_v45, %v14870_v4  ;;  %v12072_v47 = vld [vmem:[%s17748_s3 + $0x400] ss:$16 sps:$4 sm:$0xff]  }
 0x21d   : > { %v2570_v32 = vor.u32 %v2569_v49, %v2566_v63  ;;  %7093 = vmatpush1.bf16.msra.mxu0 %v12063_v46  ;;  %6510 = vmatprep.subr.bf16.mxu1 %v12068_v25  ;;  %v2562_v63 = vsel %vm14683_vm8, %v2557_v33, %v2561_v28  ;;  %v18004_v25 = vshll.u32 %v14850_v39, 16  ;;  %v2867_v28 = vrot.slane %v14628_v44, %v17909_v27 }
 0x21e   : > { %7094 = vmatprep.subr.bf16.mxu0 %v12071_v18  ;;  %v2581_v46 = vrot.slane %v2580_v54, 2  ;;  %v3002_v43 = vcombine.low %v2552_v35, %v2562_v63  ;;  %v2935_v54 = vcombine.high %v14883_v52, %v14895_v42  ;;  %v15072_v33 = vrot.slane %v10644_v9, %v17909_v27  ;;  %v12075_v52 = vld [vmem:[%s17748_s3 + $0x408] ss:$16 sps:$4 sm:$0xff]  }
 0x21f   : > { %v2571_v49 = vrot.slane %v2570_v32, 2  ;;  %v2585_v11 = vrot.slane %v18004_v25, 7  ;;  %v2900_v32 = vcombine.high %v14797_v61, %v14801_v22  ;;  %v10621_v4 = vrot.slane %v14364_v17, 9 }
 0x220   : > { %6511 = vmatpush1.bf16.msra.mxu1 %v12066_v5  ;;  %v3012_v45 = vrot.slane %v3002_v43, %v17909_v27  ;;  %v12080_v43 = vld [vmem:[%s17748_s3 + $0x424] ss:$16 sps:$4 sm:$0xff]   ;;  %v2963_v42 = vrot.slane %v2935_v54, %v17909_v27  ;;  %v15098_v5 = vcombine.high %v14948_v38, %v14951_v56  ;;  %v2968_v9 = vcombine.high %v14938_v60, %v14958_v53  ;;  %v12089_v54 = vld [vmem:[%s17748_s3 + $0x44c] ss:$16 sps:$4 sm:$0xff]  }
 0x221   : > { %v2576_v18 = vsel %vm14683_vm8, %v2571_v49, %v2575_v34  ;;  %v2586_v36 = vsel %vm14683_vm8, %v2581_v46, %v2585_v11  ;;  %7095 = vmatpush1.bf16.msra.mxu0 %v12069_v13  ;;  %6553 = vmatprep.subr.bf16.mxu1 %v12074_v0  ;;  %v2949_v34 = vrot.slane %v2933_v29, %v17909_v27  ;;  %v12083_v0 = vld [vmem:[%s17748_s3 + $0x42c] ss:$16 sps:$4 sm:$0xff]   ;;  %v2599_v29 = vrot.slane %v14393_v3, 7 }
 0x222   : > { %v3004_v15 = vcombine.low %v2576_v18, %v2586_v36  ;;  %7137 = vmatprep.subr.bf16.mxu0 %v12077_v21  ;;  %v2970_v13 = vcombine.high %v14982_v23, %v14986_v58  ;;  %v15110_v49 = vcombine.high %v14989_v6, %v2991_v41  ;;  %v3003_v46 = vcombine.high %v2552_v35, %v2562_v63  ;;  %v12078_v35 = vld [vmem:[%s17748_s3 + $0x420] ss:$16 sps:$4 sm:$0xff]   ;;  %v12081_v63 = vld [vmem:[%s17748_s3 + $0x428] ss:$16 sps:$4 sm:$0xff]  }
 0x223   : > { %6513 = vmatmul.mubr.bf16.vlgmr.msra.gmra.mrb[48].mxu1 %v14855_v50  ;;  %v3005_v56 = vcombine.high %v2576_v18, %v2586_v36  ;;  %v15113_v38 = vcombine.low %v2949_v34, %v2963_v42  ;;  %v2984_v60 = vrot.slane %v2968_v9, %v17909_v27  ;;  %v2596_v58 = vrot.slane %v14367_v1, 7 }
 0x224   : > { %v3026_v21 = vrot.slane %v3004_v15, %v17909_v27  ;;  %7097 = vmatmul.mubr.bf16.vlgmr.msra.gmra.mrb[96].mxu0 %v14855_v50  ;;  %6522 = vmatprep.mubr.bf16.mxu1 %v2964_v16  ;;  %v2998_v53 = vrot.slane %v2970_v13, %v17909_v27  ;;  %v3019_v6 = vrot.slane %v3003_v46, %v17909_v27  ;;  %v2603_v15 = vrot.slane %v14410_v26, 7 }
 0x225   : > { %6554 = vmatpush1.bf16.msra.mxu1 %v12072_v47  ;;  %7106 = vmatprep.mubr.bf16.mxu0 %v2964_v16  ;;  %v3033_v41 = vrot.slane %v3005_v56, %v17909_v27  ;;  %v12086_v16 = vld [vmem:[%s17748_s3 + $0x444] ss:$16 sps:$4 sm:$0xff]   ;;  %v2598_v8 = vrot.slane %v2596_v58, 2  ;;  %v15147_v18 = vrot.slane %v2898_v55, %v17909_v27  ;;  %v15153_v47 = vsel %vm15120_vm15, %v10621_v4, %v2596_v58  ;;  %v12087_v4 = vld [vmem:[%s17748_s3 + $0x448] ss:$16 sps:$4 sm:$0xff]  }
 0x226   : > { %v15128_v50 = vcombine.low %v3012_v45, %v3026_v21  ;;  %7138 = vmatpush1.bf16.msra.mxu0 %v12075_v52  ;;  %6555 = vmatprep.subr.bf16.mxu1 %v12080_v43  ;;  %v15138_v25 = vcombine.low %v2984_v60, %v2998_v53  ;;  %v15140_v11 = vcombine.high %v3012_v45, %v3026_v21  ;;  %v12084_v45 = vld [vmem:[%s17748_s3 + $0x440] ss:$16 sps:$4 sm:$0xff]   ;;  %v10623_v19 = vrot.slane %v14417_v12, 9  ;;  %v12095_v53 = vld [vmem:[%s17748_s3 + $0x46c] ss:$16 sps:$4 sm:$0xff]  }
 0x227   : > { %7139 = vmatprep.subr.bf16.mxu0 %v12083_v0  ;;  %v15149_v36 = vcombine.low %v3019_v6, %v3033_v41  ;;  %18012 = vst [vmem:[#allocation38_spill] sm:$0xff] %v15153_v47  ;;  %v15161_v34 = vsel %vm15120_vm15, %v2598_v8, %v2599_v29  ;;  %v2610_v55 = vrot.slane %v14423_v40, 7  ;;  %v2613_v52 = vrot.slane %v14465_v30, 7  ;;  %v12092_v0 = vld [vmem:[%s17748_s3 + $0x464] ss:$16 sps:$4 sm:$0xff]  }
 0x228   : > { %18011 = vst [vmem:[#allocation19_spill] sm:$0xff] %v15140_v11  ;;  %v10622_v43 = vrot.slane %v14381_v14, 9  ;;  %v2605_v42 = vrot.slane %v2603_v15, 2  ;;  %v2606_v9 = vrot.slane %v14414_v51, 7  ;;  %v3050_v13 = vcombine.high %v15153_v47, %v15161_v34 }
 0x229   : > { %6556 = vmatpush1.bf16.msra.mxu1 %v12078_v35  ;;  %v15180_v21 = vrot.slane %v2900_v32, %v17909_v27  ;;  %v2612_v46 = vrot.slane %v2610_v55, 2  ;;  %v10624_v56 = vrot.slane %v14469_v48, 9  ;;  %v2617_v60 = vrot.slane %v14473_v7, 7  ;;  %v18020_v35 = vld [vmem:[#allocation27_spill] sm:$0xff] }
 0x22a   : > { %7140 = vmatpush1.bf16.msra.mxu0 %v12081_v63  ;;  %6557 = vmatprep.subr.bf16.mxu1 %v12086_v16  ;;  %v15190_v58 = vsel %vm15120_vm15, %v10622_v43, %v2603_v15  ;;  %v15194_v61 = vsel %vm15120_vm15, %v2605_v42, %v2606_v9  ;;  %v15198_v22 = vsel %vm15120_vm15, %v10623_v19, %v2610_v55  ;;  %v2620_v32 = vrot.slane %v14477_v59, 7  ;;  %v12098_v15 = vld [vmem:[%s17748_s3 + $0x484] ss:$16 sps:$4 sm:$0xff]   ;;  %v12101_v19 = vld [vmem:[%s17748_s3 + $0x48c] ss:$16 sps:$4 sm:$0xff]  }
 0x22b   : > { %6523 = vmatmul.mubr.bf16.gmra.mrb[52].mxu1 %v14918_v2  ;;  %7141 = vmatprep.subr.bf16.mxu0 %v12089_v54  ;;  %18013 = vst [vmem:[#allocation28_spill] sm:$0xff] %v15190_v58  ;;  %18014 = vst [vmem:[#allocation20_spill] sm:$0xff] %v15194_v61  ;;  %v3052_v6 = vcombine.high %v15190_v58, %v15194_v61  ;;  %v15209_v41 = vsel %vm15120_vm15, %v2612_v46, %v2613_v52  ;;  %v2619_v63 = vrot.slane %v2617_v60, 2  ;;  %v18023_v61 = vld [vmem:[#allocation31_spill] sm:$0xff] }
 0x22c   : > { %7107 = vmatmul.mubr.bf16.gmra.mrb[100].mxu0 %v14918_v2  ;;  %6532 = vmatprep.mubr.bf16.mxu1 %v15024_v37  ;;  %v12090_v2 = vld [vmem:[%s17748_s3 + $0x460] ss:$16 sps:$4 sm:$0xff]   ;;  %v15219_v16 = vcombine.low %v2867_v28, %v15072_v33  ;;  %v3084_v8 = vcombine.low %v15198_v22, %v15209_v41  ;;  %v10625_v29 = vrot.slane %v14555_v62, 9  ;;  %v2624_v54 = vrot.slane %v14559_v31, 7 }
 0x22d   : > { %6558 = vmatpush1.bf16.msra.mxu1 %v12084_v45  ;;  %7116 = vmatprep.mubr.bf16.mxu0 %v15024_v37  ;;  %v12093_v37 = vld [vmem:[%s17748_s3 + $0x468] ss:$16 sps:$4 sm:$0xff]   ;;  %v3066_v28 = vrot.slane %v3050_v13, %v17909_v27  ;;  %v15234_v33 = vsel %vm15120_vm15, %v10624_v56, %v2617_v60  ;;  %v15238_v45 = vsel %vm15120_vm15, %v2619_v63, %v2620_v32  ;;  %v2627_v43 = vrot.slane %v14563_v57, 7  ;;  %v12096_v56 = vld [vmem:[%s17748_s3 + $0x480] ss:$16 sps:$4 sm:$0xff]  }
 0x22e   : > { %7142 = vmatpush1.bf16.msra.mxu0 %v12087_v4  ;;  %6559 = vmatprep.subr.bf16.mxu1 %v12092_v0  ;;  %v3080_v55 = vrot.slane %v3052_v6, %v17909_v27  ;;  %v3086_v52 = vcombine.low %v15234_v33, %v15238_v45  ;;  %v2626_v4 = vrot.slane %v2624_v54, 2  ;;  %v3094_v42 = vrot.slane %v3084_v8, %v17909_v27  ;;  %v18015_v0 = vld [vmem:[#allocation14_spill] sm:$0xff]  ;;  %v18017_v63 = vld [vmem:[#allocation15_spill] sm:$0xff] }
 0x22f   : > { %7143 = vmatprep.subr.bf16.mxu0 %v12095_v53  ;;  %v15250_v9 = vsel %vm15120_vm15, %v10625_v29, %v2624_v54  ;;  %v10626_v13 = vrot.slane %v14595_v24, 9  ;;  %v2631_v46 = vrot.slane %v18015_v0, 7  ;;  %v18016_v32 = vld [vmem:[#allocation26_spill] sm:$0xff]  ;;  %v10627_v8 = vrot.slane %v18017_v63, 9 }
 0x230   : > { %v3108_v60 = vrot.slane %v3086_v52, %v17909_v27  ;;  %v15260_v53 = vsel %vm15120_vm15, %v2626_v4, %v2627_v43  ;;  %v2634_v6 = vrot.slane %v18016_v32, 7  ;;  %v12104_v54 = vld [vmem:[%s17748_s3 + $0x4a4] ss:$16 sps:$4 sm:$0xff]   ;;  %v2638_v44 = vrot.slane %v18020_v35, 7 }
 0x231   : > { %6560 = vmatpush1.bf16.msra.mxu1 %v12090_v2  ;;  %v12099_v2 = vld [vmem:[%s17748_s3 + $0x488] ss:$16 sps:$4 sm:$0xff]   ;;  %v15278_v52 = vsel %vm15120_vm15, %v10626_v13, %v2631_v46  ;;  %v2633_v4 = vrot.slane %v2631_v46, 2  ;;  %v3119_v43 = vcombine.low %v15250_v9, %v15260_v53  ;;  %v2641_v13 = vrot.slane %v14763_v10, 7 }
 0x232   : > { %7144 = vmatpush1.bf16.msra.mxu0 %v12093_v37  ;;  %6561 = vmatprep.subr.bf16.mxu1 %v12098_v15  ;;  %v12107_v37 = vld [vmem:[%s17748_s3 + $0x4ac] ss:$16 sps:$4 sm:$0xff]   ;;  %v15287_v15 = vcombine.high %v3094_v42, %v3108_v60  ;;  %v15289_v11 = vcombine.low %v3094_v42, %v3108_v60  ;;  %v10628_v46 = vrot.slane %v18023_v61, 9  ;;  %v2931_v58 = vcombine.low %v15147_v18, %v15180_v21  ;;  %v12108_v42 = vld [vmem:[%s17748_s3 + $0x4c0] ss:$16 sps:$4 sm:$0xff]  }
 0x233   : > { %6533 = vmatmul.mubr.bf16.gmra.mrb[56].mxu1 %v15042_v20  ;;  %7145 = vmatprep.subr.bf16.mxu0 %v12101_v19  ;;  %v15299_v19 = vsel %vm15120_vm15, %v2633_v4, %v2634_v6  ;;  %v3129_v47 = vrot.slane %v3119_v43, %v17909_v27  ;;  %v15317_v21 = vsel %vm15120_vm15, %v10627_v8, %v2638_v44  ;;  %v18026_v60 = vld [vmem:[#allocation35_spill] sm:$0xff]  ;;  %v18028_v8 = vshrl.u32 %v14367_v1, 16 }
 0x234   : > { %18021 = vst [vmem:[#allocation41_spill] sm:$0xff] %v15287_v15  ;;  %18022 = vst [vmem:[#allocation43_spill] sm:$0xff] %v15289_v11  ;;  %7117 = vmatmul.mubr.bf16.gmra.mrb[104].mxu0 %v15042_v20  ;;  %6542 = vmatprep.mubr.bf16.mxu1 %v15128_v50  ;;  %v2640_v15 = vrot.slane %v2638_v44, 2  ;;  %v12102_v20 = vld [vmem:[%s17748_s3 + $0x4a0] ss:$16 sps:$4 sm:$0xff]   ;;  %v3121_v18 = vcombine.low %v15278_v52, %v15299_v19  ;;  %v2645_v6 = vrot.slane %v18026_v60, 7 }
 0x235   : > { %6562 = vmatpush1.bf16.msra.mxu1 %v12096_v56  ;;  %7126 = vmatprep.mubr.bf16.mxu0 %v15128_v50  ;;  %v15320_v29 = vcombine.low %v3066_v28, %v3080_v55  ;;  %v12105_v50 = vld [vmem:[%s17748_s3 + $0x4a8] ss:$16 sps:$4 sm:$0xff]   ;;  %v12110_v56 = vld [vmem:[%s17748_s3 + $0x4c4] ss:$16 sps:$4 sm:$0xff]   ;;  %v2648_v44 = vrot.slane %v14850_v39, 7  ;;  %v15335_v28 = vrot.slane %v18028_v8, 7  ;;  %v3085_v55 = vcombine.high %v15198_v22, %v15209_v41 }
 0x236   : > { %7146 = vmatpush1.bf16.msra.mxu0 %v12099_v2  ;;  %6563 = vmatprep.subr.bf16.mxu1 %v12104_v54  ;;  %v15330_v4 = vsel %vm15120_vm15, %v2640_v15, %v2641_v13  ;;  %v12113_v2 = vld [vmem:[%s17748_s3 + $0x4cc] ss:$16 sps:$4 sm:$0xff]   ;;  %v3143_v54 = vrot.slane %v3121_v18, %v17909_v27  ;;  %v15345_v43 = vsel %vm15120_vm15, %v10628_v46, %v2645_v6  ;;  %v2647_v15 = vrot.slane %v2645_v6, 2 }
 0x237   : > { %18027 = vst [vmem:[#allocation44_spill] sm:$0xff] %v15320_v29  ;;  %7147 = vmatprep.subr.bf16.mxu0 %v12107_v37  ;;  %v3154_v13 = vcombine.low %v15317_v21, %v15330_v4  ;;  %v18031_v41 = vshrl.u32 %v14364_v17, 16  ;;  %v18032_v18 = vshll.u32 %v14367_v1, 16  ;;  %v3087_v46 = vcombine.high %v15234_v33, %v15238_v45  ;;  %v12111_v33 = vld [vmem:[%s17748_s3 + $0x4c8] ss:$16 sps:$4 sm:$0xff]  }
 0x238   : > { %v15368_v29 = vcombine.high %v3129_v47, %v3143_v54  ;;  %v15370_v11 = vcombine.low %v3129_v47, %v3143_v54  ;;  %v15374_v17 = vsel %vm15120_vm15, %v2647_v15, %v2648_v44  ;;  %v12116_v45 = vld [vmem:[%s17748_s3 + $0x4e4] ss:$16 sps:$4 sm:$0xff]   ;;  %v2662_v44 = vrot.slane %v15335_v28, 2 }
 0x239   : > { %v10629_v37 = vrot.slane %v18031_v41, 9  ;;  %v2660_v8 = vor.u32 %v15335_v28, %v18032_v18  ;;  %6564 = vmatpush1.bf16.msra.mxu1 %v12102_v20  ;;  %v3101_v41 = vrot.slane %v3085_v55, %v17909_v27  ;;  %v3156_v47 = vcombine.low %v15345_v43, %v15374_v17 }
 0x23a   : > { %18033 = vst [vmem:[#allocation21_spill] sm:$0xff] %v15370_v11  ;;  %7148 = vmatpush1.bf16.msra.mxu0 %v12105_v50  ;;  %6565 = vmatprep.subr.bf16.mxu1 %v12110_v56  ;;  %v3164_v20 = vrot.slane %v3154_v13, %v17909_v27  ;;  %v2663_v50 = vshrl.u32 %v14393_v3, 16  ;;  %v12119_v56 = vld [vmem:[%s17748_s3 + $0x4ec] ss:$16 sps:$4 sm:$0xff]   ;;  %v18034_v55 = vshrl.u32 %v14381_v14, 16  ;;  %v18035_v15 = vshrl.u32 %v14410_v26, 16 }
 0x23b   : > { %v15388_v23 = vsel %vm15352_vm6, %v10629_v37, %v2660_v8  ;;  %6543 = vmatmul.mubr.bf16.gmra.mrb[60].mxu1 %v15219_v16  ;;  %7149 = vmatprep.subr.bf16.mxu0 %v12113_v2  ;;  %v2674_v37 = vshrl.u32 %v14414_v51, 16  ;;  %v3178_v18 = vrot.slane %v3156_v47, %v17909_v27  ;;  %v18036_v8 = vshrl.u32 %v14423_v40, 16  ;;  %v12114_v14 = vld [vmem:[%s17748_s3 + $0x4e0] ss:$16 sps:$4 sm:$0xff]   ;;  %v12117_v47 = vld [vmem:[%s17748_s3 + $0x4e8] ss:$16 sps:$4 sm:$0xff]  }
 0x23c   : > { %v10630_v54 = vrot.slane %v18034_v55, 9  ;;  %v2670_v13 = vrot.slane %v18035_v15, 7  ;;  %7127 = vmatmul.mubr.bf16.gmra.mrb[108].mxu0 %v15219_v16  ;;  %6585 = vmatprep.mubr.bf16.mxu1 %v2931_v58  ;;  %v2665_v2 = vrot.slane %v2663_v50, 7  ;;  %v2685_v1 = vshrl.u32 %v14465_v30, 16 }
 0x23d   : > { %v2681_v6 = vrot.slane %v18036_v8, 7  ;;  %6566 = vmatpush1.bf16.msra.mxu1 %v12108_v42  ;;  %7169 = vmatprep.mubr.bf16.mxu0 %v2931_v58  ;;  %v18037_v28 = vshll.u32 %v14410_v26, 16  ;;  %v2676_v16 = vrot.slane %v2674_v37, 7  ;;  %v3115_v11 = vrot.slane %v3087_v46, %v17909_v27  ;;  %v12122_v58 = vld [vmem:[%s17748_s3 + $0x504] ss:$16 sps:$4 sm:$0xff]  }
 0x23e   : > { %v2673_v15 = vrot.slane %v2670_v13, 2  ;;  %7150 = vmatpush1.bf16.msra.mxu0 %v12111_v33  ;;  %6567 = vmatprep.subr.bf16.mxu1 %v12116_v45  ;;  %v15418_v42 = vcombine.high %v3164_v20, %v3178_v18  ;;  %v15420_v50 = vcombine.low %v3164_v20, %v3178_v18  ;;  %v18038_v26 = vshll.u32 %v14393_v3, 16  ;;  %v12125_v33 = vld [vmem:[%s17748_s3 + $0x50c] ss:$16 sps:$4 sm:$0xff]  }
 0x23f   : > { %v2671_v55 = vor.u32 %v2670_v13, %v18037_v28  ;;  %v18039_v37 = vshrl.u32 %v14417_v12, 16  ;;  %7151 = vmatprep.subr.bf16.mxu0 %v12119_v56  ;;  %v18040_v8 = vshll.u32 %v14414_v51, 16  ;;  %v18041_v20 = vshll.u32 %v14423_v40, 16  ;;  %v12120_v51 = vld [vmem:[%s17748_s3 + $0x500] ss:$16 sps:$4 sm:$0xff]  }
 0x240   : > { %v2666_v13 = vor.u32 %v2665_v2, %v18038_v26  ;;  %v2687_v3 = vrot.slane %v2685_v1, 7  ;;  %v2684_v56 = vrot.slane %v2681_v6, 2  ;;  %v15441_v2 = vcombine.low %v3101_v41, %v3115_v11 }
 0x241   : > { %v10631_v46 = vrot.slane %v18039_v37, 9  ;;  %v15431_v45 = vsel %vm15352_vm6, %v10630_v54, %v2671_v55  ;;  %v2677_v28 = vor.u32 %v2676_v16, %v18040_v8  ;;  %v2682_v18 = vor.u32 %v2681_v6, %v18041_v20  ;;  %6568 = vmatpush1.bf16.msra.mxu1 %v12114_v14 }
 0x242   : > { %v15439_v12 = vsel %vm15352_vm6, %v2662_v44, %v2666_v13  ;;  %v3122_v26 = vcombine.high %v15278_v52, %v15299_v19  ;;  %v18042_v11 = vshll.u32 %v14465_v30, 16  ;;  %7152 = vmatpush1.bf16.msra.mxu0 %v12117_v47  ;;  %6569 = vmatprep.subr.bf16.mxu1 %v12122_v58  ;;  %v12123_v52 = vld [vmem:[%s17748_s3 + $0x508] ss:$16 sps:$4 sm:$0xff]   ;;  %v12128_v19 = vld [vmem:[%s17748_s3 + $0x524] ss:$16 sps:$4 sm:$0xff]   ;;  %v18043_v14 = vshrl.u32 %v14473_v7, 16 }
 0x243   : > { %v15450_v54 = vsel %vm15352_vm6, %v2673_v15, %v2677_v28  ;;  %v3201_v1 = vcombine.low %v15388_v23, %v15439_v12  ;;  %v15456_v6 = vsel %vm15352_vm6, %v10631_v46, %v2682_v18  ;;  %v2696_v15 = vshrl.u32 %v14477_v59, 16  ;;  %7153 = vmatprep.subr.bf16.mxu0 %v12125_v33  ;;  %v12131_v47 = vld [vmem:[%s17748_s3 + $0x52c] ss:$16 sps:$4 sm:$0xff]  }
 0x244   : > { %v2688_v41 = vor.u32 %v2687_v3, %v18042_v11  ;;  %v3203_v44 = vcombine.low %v15431_v45, %v15450_v54  ;;  %v2692_v55 = vrot.slane %v18043_v14, 7  ;;  %v18044_v3 = vcombine.high %v15250_v9, %v15260_v53 }
 0x245   : > { %v15479_v58 = vrot.slane %v3201_v1, %v17909_v27  ;;  %v18045_v37 = vshrl.u32 %v14469_v48, 16  ;;  %v18046_v8 = vshrl.u32 %v14559_v31, 16  ;;  %v18047_v53 = vshll.u32 %v14473_v7, 16  ;;  %6570 = vmatpush1.bf16.msra.mxu1 %v12120_v51  ;;  %v12126_v48 = vld [vmem:[%s17748_s3 + $0x520] ss:$16 sps:$4 sm:$0xff]  }
 0x246   : > { %v3136_v16 = vrot.slane %v18044_v3, %v17909_v27  ;;  %v15483_v13 = vsel %vm15352_vm6, %v2684_v56, %v2688_v41  ;;  %v15490_v9 = vrot.slane %v3203_v44, %v17909_v27  ;;  %v3150_v18 = vrot.slane %v3122_v26, %v17909_v27  ;;  %7154 = vmatpush1.bf16.msra.mxu0 %v12123_v52  ;;  %v12129_v7 = vld [vmem:[%s17748_s3 + $0x528] ss:$16 sps:$4 sm:$0xff]   ;;  %v12134_v26 = vld [vmem:[%s17748_s3 + $0x544] ss:$16 sps:$4 sm:$0xff]  }
 0x247   : > { %v10632_v46 = vrot.slane %v18045_v37, 9  ;;  %v2703_v28 = vrot.slane %v18046_v8, 7  ;;  %v2693_v33 = vor.u32 %v2692_v55, %v18047_v53  ;;  %v3236_v20 = vcombine.low %v15456_v6, %v15483_v13  ;;  %6571 = vmatprep.subr.bf16.mxu1 %v12128_v19  ;;  %7155 = vmatprep.subr.bf16.mxu0 %v12131_v47  ;;  %v12137_v19 = vld [vmem:[%s17748_s3 + $0x54c] ss:$16 sps:$4 sm:$0xff]   ;;  %v12132_v47 = vld [vmem:[%s17748_s3 + $0x540] ss:$16 sps:$4 sm:$0xff]  }
 0x248   : > { %v2695_v56 = vrot.slane %v2692_v55, 2  ;;  %v2698_v1 = vrot.slane %v2696_v15, 7  ;;  %v18048_v11 = vshrl.u32 %v14555_v62, 16  ;;  %v18049_v44 = vshll.u32 %v14559_v31, 16 }
 0x249   : > { %v15512_v51 = vcombine.high %v15479_v58, %v15490_v9  ;;  %v15516_v62 = vsel %vm15352_vm6, %v10632_v46, %v2693_v33  ;;  %v2706_v55 = vrot.slane %v2703_v28, 2  ;;  %v2707_v52 = vshrl.u32 %v14563_v57, 16  ;;  %6572 = vmatpush1.bf16.msra.mxu1 %v12126_v48 }
 0x24a   : > { %v10633_v41 = vrot.slane %v18048_v11, 9  ;;  %v2704_v14 = vor.u32 %v2703_v28, %v18049_v44  ;;  %v18050_v15 = vshll.u32 %v14477_v59, 16  ;;  %v15525_v37 = vrot.slane %v3236_v20, %v17909_v27  ;;  %7156 = vmatpush1.bf16.msra.mxu0 %v12129_v7  ;;  %6573 = vmatprep.subr.bf16.mxu1 %v12134_v26 }
 0x24b   : > { %v18051_v46 = vshrl.u32 %v14595_v24, 16  ;;  %v15536_v53 = vcombine.low %v3136_v16, %v3150_v18  ;;  %v3155_v59 = vcombine.high %v15317_v21, %v15330_v4  ;;  %v3157_v33 = vcombine.high %v15345_v43, %v15374_v17  ;;  %v12135_v24 = vld [vmem:[%s17748_s3 + $0x548] ss:$16 sps:$4 sm:$0xff]   ;;  %v12140_v4 = vld [vmem:[%s17748_s3 + $0x564] ss:$16 sps:$4 sm:$0xff]   ;;  %7157 = vmatprep.subr.bf16.mxu0 %v12137_v19 }
 0x24c   : > { %v2699_v3 = vor.u32 %v2698_v1, %v18050_v15  ;;  %v15529_v8 = vsel %vm15352_vm6, %v10633_v41, %v2704_v14  ;;  %v3202_v20 = vcombine.high %v15388_v23, %v15439_v12  ;;  %v2709_v16 = vrot.slane %v2707_v52, 7  ;;  %v12143_v41 = vld [vmem:[%s17748_s3 + $0x56c] ss:$16 sps:$4 sm:$0xff]  }
 0x24d   : > { %v10634_v28 = vrot.slane %v18051_v46, 9  ;;  %v18052_v18 = vshrl.u32 %v18015_v0, 16  ;;  %v2718_v21 = vshrl.u32 %v18016_v32, 16  ;;  %v18053_v17 = vshrl.u32 %v18017_v63, 16  ;;  %6574 = vmatpush1.bf16.msra.mxu1 %v12132_v47  ;;  %v12141_v47 = vld [vmem:[%s17748_s3 + $0x568] ss:$16 sps:$4 sm:$0xff]  }
 0x24e   : > { %v15549_v1 = vsel %vm15352_vm6, %v2695_v56, %v2699_v3  ;;  %v18054_v12 = vshrl.u32 %v18020_v35, 16  ;;  %v2729_v56 = vshrl.u32 %v14763_v10, 16  ;;  %v18055_v44 = vshll.u32 %v14563_v57, 16  ;;  %7158 = vmatpush1.bf16.msra.mxu0 %v12135_v24  ;;  %6575 = vmatprep.subr.bf16.mxu1 %v12140_v4  ;;  %v12149_v24 = vld [vmem:[%s17748_s3 + $0x58c] ss:$16 sps:$4 sm:$0xff]  }
 0x24f   : > { %v2714_v11 = vrot.slane %v18052_v18, 7  ;;  %v3238_v43 = vcombine.low %v15516_v62, %v15549_v1  ;;  %v10635_v23 = vrot.slane %v18053_v17, 9  ;;  %v18056_v7 = vshll.u32 %v18015_v0, 16  ;;  %v12138_v17 = vld [vmem:[%s17748_s3 + $0x560] ss:$16 sps:$4 sm:$0xff]   ;;  %7159 = vmatprep.subr.bf16.mxu0 %v12143_v41 }
 0x250   : > { %v2725_v48 = vrot.slane %v18054_v12, 7  ;;  %v2710_v14 = vor.u32 %v2709_v16, %v18055_v44  ;;  %v2720_v15 = vrot.slane %v2718_v21, 7  ;;  %v18057_v3 = vshll.u32 %v18020_v35, 16 }
 0x251   : > { %v2715_v26 = vor.u32 %v2714_v11, %v18056_v7  ;;  %v2717_v52 = vrot.slane %v2714_v11, 2  ;;  %v3260_v63 = vrot.slane %v3238_v43, %v17909_v27  ;;  %v3171_v18 = vrot.slane %v3155_v59, %v17909_v27  ;;  %v12146_v59 = vld [vmem:[%s17748_s3 + $0x584] ss:$16 sps:$4 sm:$0xff]   ;;  %6576 = vmatpush1.bf16.msra.mxu1 %v12138_v17 }
 0x252   : > { %v2726_v46 = vor.u32 %v2725_v48, %v18057_v3  ;;  %v3185_v19 = vrot.slane %v3157_v33, %v17909_v27  ;;  %v15581_v0 = vsel %vm15352_vm6, %v2706_v55, %v2710_v14  ;;  %v18058_v11 = vshll.u32 %v18016_v32, 16  ;;  %7160 = vmatpush1.bf16.msra.mxu0 %v12141_v47  ;;  %6577 = vmatprep.subr.bf16.mxu1 %v12146_v59 }
 0x253   : > { %v15585_v16 = vsel %vm15352_vm6, %v10634_v28, %v2715_v26  ;;  %v2728_v43 = vrot.slane %v2725_v48, 2  ;;  %v15596_v55 = vcombine.low %v15525_v37, %v3260_v63  ;;  %v3271_v28 = vcombine.low %v15529_v8, %v15581_v0  ;;  %7161 = vmatprep.subr.bf16.mxu0 %v12149_v24 }
 0x254   : > { %v2721_v21 = vor.u32 %v2720_v15, %v18058_v11  ;;  %v2727_v32 = vsel %vm15352_vm6, %v10635_v23, %v2726_v46  ;;  %v2731_v33 = vrot.slane %v2729_v56, 7  ;;  %v18059_v12 = vshrl.u32 %v18023_v61, 16  ;;  %v12144_v61 = vld [vmem:[%s17748_s3 + $0x580] ss:$16 sps:$4 sm:$0xff]  }
 0x255   : > { %v18060_v44 = vshrl.u32 %v18026_v60, 16  ;;  %v2740_v7 = vshrl.u32 %v14850_v39, 16  ;;  %v3281_v23 = vrot.slane %v3271_v28, %v17909_v27  ;;  %v18061_v56 = vshll.u32 %v14763_v10, 16  ;;  %6578 = vmatpush1.bf16.msra.mxu1 %v12144_v61 }
 0x256   : > { %v2722_v4 = vsel %vm15352_vm6, %v2717_v52, %v2721_v21  ;;  %v10636_v48 = vrot.slane %v18059_v12, 9  ;;  %v15616_v15 = vcombine.low %v3171_v18, %v3185_v19  ;;  %v18062_v52 = vshll.u32 %v18026_v60, 16  ;;  %v12147_v18 = vld [vmem:[%s17748_s3 + $0x588] ss:$16 sps:$4 sm:$0xff]   ;;  %v12152_v19 = vld [vmem:[%s17748_s3 + $0x5a4] ss:$16 sps:$4 sm:$0xff]  }
 0x257   : > { %v2736_v14 = vrot.slane %v18060_v44, 7  ;;  %v3273_v26 = vcombine.low %v15585_v16, %v2722_v4  ;;  %v2732_v41 = vor.u32 %v2731_v33, %v18061_v56  ;;  %v2742_v11 = vrot.slane %v2740_v7, 7  ;;  %7162 = vmatpush1.bf16.msra.mxu0 %v12147_v18  ;;  %6579 = vmatprep.subr.bf16.mxu1 %v12152_v19  ;;  %v12167_v18 = vld [vmem:[%s17748_s3 + $0x5ec] ss:$16 sps:$4 sm:$0xff]  }
 0x258   : > { %v3204_v21 = vcombine.high %v15431_v45, %v15450_v54  ;;  %v3218_v28 = vrot.slane %v3202_v20, %v17909_v27  ;;  %v12155_v45 = vld [vmem:[%s17748_s3 + $0x5ac] ss:$16 sps:$4 sm:$0xff]   ;;  %v18063_v47 = vshll.u32 %v14850_v39, 16  ;;  %v3239_v20 = vcombine.high %v15516_v62, %v15549_v1  ;;  %v12150_v39 = vld [vmem:[%s17748_s3 + $0x5a0] ss:$16 sps:$4 sm:$0xff]  }
 0x259   : > { %v2737_v3 = vor.u32 %v2736_v14, %v18062_v52  ;;  %v2739_v46 = vrot.slane %v2736_v14, 2  ;;  %v3295_v17 = vrot.slane %v3273_v26, %v17909_v27  ;;  %v2733_v60 = vsel %vm15352_vm6, %v2728_v43, %v2732_v41  ;;  %v12158_v62 = vld [vmem:[%s17748_s3 + $0x5c4] ss:$16 sps:$4 sm:$0xff]   ;;  %7163 = vmatprep.subr.bf16.mxu0 %v12155_v45  ;;  %6580 = vmatpush1.bf16.msra.mxu1 %v12150_v39  ;;  %v12156_v52 = vld [vmem:[%s17748_s3 + $0x5c0] ss:$16 sps:$4 sm:$0xff]  }
 0x25a   : > { %v2743_v59 = vor.u32 %v2742_v11, %v18063_v47  ;;  %v3306_v33 = vcombine.low %v2727_v32, %v2733_v60  ;;  %v3232_v12 = vrot.slane %v3204_v21, %v17909_v27  ;;  %v3237_v43 = vcombine.high %v15456_v6, %v15483_v13  ;;  %v12153_v13 = vld [vmem:[%s17748_s3 + $0x5a8] ss:$16 sps:$4 sm:$0xff]   ;;  %6581 = vmatprep.subr.bf16.mxu1 %v12158_v62  ;;  %v12170_v45 = vld [vmem:[%s17748_s3 + $0x604] ss:$16 sps:$4 sm:$0xff]   ;;  %v12168_v47 = vld [vmem:[%s17748_s3 + $0x600] ss:$16 sps:$4 sm:$0xff]  }
 0x25b   : > { %v2738_v54 = vsel %vm15352_vm6, %v10636_v48, %v2737_v3  ;;  %v15643_v44 = vcombine.low %v3281_v23, %v3295_v17  ;;  %v15650_v24 = vcombine.high %v15525_v37, %v3260_v63  ;;  %v3272_v6 = vcombine.high %v15529_v8, %v15581_v0  ;;  %v12161_v8 = vld [vmem:[%s17748_s3 + $0x5cc] ss:$16 sps:$4 sm:$0xff]   ;;  %7164 = vmatpush1.bf16.msra.mxu0 %v12153_v13  ;;  %v12177_v39 = vld [vmem:[%s17748_s3 + $0x628] ss:$16 sps:$4 sm:$0xff]   ;;  %v12188_v13 = vld [vmem:[%s17748_s3 + $0x664] ss:$16 sps:$4 sm:$0xff]  }
 0x25c   : > { %v2744_v48 = vsel %vm15352_vm6, %v2739_v46, %v2743_v59  ;;  %v3316_v14 = vrot.slane %v3306_v33, %v17909_v27  ;;  %v15658_v7 = vcombine.low %v3218_v28, %v3232_v12  ;;  %v3253_v22 = vrot.slane %v3237_v43, %v17909_v27  ;;  %7165 = vmatprep.subr.bf16.mxu0 %v12161_v8  ;;  %v12165_v28 = vld [vmem:[%s17748_s3 + $0x5e8] ss:$16 sps:$4 sm:$0xff]   ;;  %v12176_v33 = vld [vmem:[%s17748_s3 + $0x624] ss:$16 sps:$4 sm:$0xff]   ;;  %v12179_v43 = vld [vmem:[%s17748_s3 + $0x62c] ss:$16 sps:$4 sm:$0xff]  }
 0x25d   : > { %v3308_v37 = vcombine.low %v2738_v54, %v2744_v48  ;;  %v3267_v1 = vrot.slane %v3239_v20, %v17909_v27  ;;  %v3274_v63 = vcombine.high %v15585_v16, %v2722_v4  ;;  %v15674_v0 = vcombine.high %v3281_v23, %v3295_v17  ;;  %v12159_v16 = vld [vmem:[%s17748_s3 + $0x5c8] ss:$16 sps:$4 sm:$0xff]   ;;  %6582 = vmatpush1.bf16.msra.mxu1 %v12156_v52  ;;  %v18064_v12 = vld [vmem:[#allocation18_spill] sm:$0xff]  ;;  %v12191_v62 = vld [vmem:[%s17748_s3 + $0x66c] ss:$16 sps:$4 sm:$0xff]  }
 0x25e   : > { %v3307_v26 = vcombine.high %v2727_v32, %v2733_v60  ;;  %v3309_v61 = vcombine.high %v2738_v54, %v2744_v48  ;;  %v3288_v3 = vrot.slane %v3272_v6, %v17909_v27  ;;  %v12164_v32 = vld [vmem:[%s17748_s3 + $0x5e4] ss:$16 sps:$4 sm:$0xff]   ;;  %v12162_v60 = vld [vmem:[%s17748_s3 + $0x5e0] ss:$16 sps:$4 sm:$0xff]   ;;  %v12173_v54 = vld [vmem:[%s17748_s3 + $0x60c] ss:$16 sps:$4 sm:$0xff]  }
 0x25f   : > { %v3330_v56 = vrot.slane %v3308_v37, %v17909_v27  ;;  %v15677_v41 = vcombine.low %v3253_v22, %v3267_v1  ;;  %v3302_v46 = vrot.slane %v3274_v63, %v17909_v27  ;;  %7166 = vmatpush1.bf16.msra.mxu0 %v12159_v16  ;;  %6583 = vmatprep.subr.bf16.mxu1 %v12164_v32  ;;  %v12171_v59 = vld [vmem:[%s17748_s3 + $0x608] ss:$16 sps:$4 sm:$0xff]   ;;  %v12174_v20 = vld [vmem:[%s17748_s3 + $0x620] ss:$16 sps:$4 sm:$0xff]   ;;  %v12182_v48 = vld [vmem:[%s17748_s3 + $0x644] ss:$16 sps:$4 sm:$0xff]  }
 0x260   : > { %v3323_v11 = vrot.slane %v3307_v26, %v17909_v27  ;;  %v3337_v23 = vrot.slane %v3309_v61, %v17909_v27  ;;  %7167 = vmatprep.subr.bf16.mxu0 %v12167_v18  ;;  %v12183_v6 = vld [vmem:[%s17748_s3 + $0x648] ss:$16 sps:$4 sm:$0xff]   ;;  %v12186_v37 = vld [vmem:[%s17748_s3 + $0x660] ss:$16 sps:$4 sm:$0xff]   ;;  %v12194_v1 = vld [vmem:[%s17748_s3 + $0x684] ss:$16 sps:$4 sm:$0xff]  }
 0x261   : > { %v15691_v4 = vcombine.low %v3316_v14, %v3330_v56  ;;  %v15694_v21 = vcombine.high %v3316_v14, %v3330_v56  ;;  %v15699_v19 = vcombine.low %v3288_v3, %v3302_v46  ;;  %6584 = vmatpush1.bf16.msra.mxu1 %v12162_v60  ;;  %v12185_v14 = vld [vmem:[%s17748_s3 + $0x64c] ss:$16 sps:$4 sm:$0xff]   ;;  %v12189_v22 = vld [vmem:[%s17748_s3 + $0x668] ss:$16 sps:$4 sm:$0xff]   ;;  %v12200_v63 = vld [vmem:[%s17748_s3 + $0x6a4] ss:$16 sps:$4 sm:$0xff]  }
 0x262   : > { %v15701_v17 = vcombine.low %v3323_v11, %v3337_v23  ;;  %6626 = vmatprep.subr.bf16.mxu1 %v12170_v45  ;;  %v12195_v8 = vld [vmem:[%s17748_s3 + $0x688] ss:$16 sps:$4 sm:$0xff]   ;;  %v12203_v26 = vld [vmem:[%s17748_s3 + $0x6ac] ss:$16 sps:$4 sm:$0xff]   ;;  %v18065_v56 = vld [vmem:[#allocation38_spill] sm:$0xff] }
 0x263   : > { %7168 = vmatpush1.bf16.msra.mxu0 %v12165_v28  ;;  %v3049_v61 = vcombine.low %v18065_v56, %v15161_v34  ;;  %v12198_v52 = vld [vmem:[%s17748_s3 + $0x6a0] ss:$16 sps:$4 sm:$0xff]   ;;  %v12201_v3 = vld [vmem:[%s17748_s3 + $0x6a8] ss:$16 sps:$4 sm:$0xff]   ;;  %v12212_v28 = vld [vmem:[%s17748_s3 + $0x6e4] ss:$16 sps:$4 sm:$0xff]  }
 0x264   : > { %7210 = vmatprep.subr.bf16.mxu0 %v12173_v54  ;;  %6586 = vmatmul.mubr.bf16.vlgmr.msra.gmra.mrb[48].mxu1 %v18064_v12  ;;  %v18066_v46 = vld [vmem:[#allocation28_spill] sm:$0xff]  ;;  %v12207_v18 = vld [vmem:[%s17748_s3 + $0x6c8] ss:$16 sps:$4 sm:$0xff]   ;;  %v12215_v54 = vld [vmem:[%s17748_s3 + $0x6ec] ss:$16 sps:$4 sm:$0xff]  }
 0x265   : > { %6595 = vmatprep.mubr.bf16.mxu1 %v15113_v38  ;;  %6627 = vmatpush1.bf16.msra.mxu1 %v12168_v47  ;;  %v18067_v34 = vld [vmem:[#allocation20_spill] sm:$0xff]  ;;  %v15808_v32 = vrot.slane %v3049_v61, %v17909_v27  ;;  %v18069_v45 = vld [vmem:[#allocation19_spill] sm:$0xff] }
 0x266   : > { %7170 = vmatmul.mubr.bf16.vlgmr.msra.gmra.mrb[96].mxu0 %v18064_v12  ;;  %6628 = vmatprep.subr.bf16.mxu1 %v12176_v33  ;;  %v18068_v11 = vcombine.low %v18066_v46, %v18067_v34  ;;  %v12204_v23 = vld [vmem:[%s17748_s3 + $0x6c0] ss:$16 sps:$4 sm:$0xff]   ;;  %v12218_v33 = vld [vmem:[%s17748_s3 + $0x704] ss:$16 sps:$4 sm:$0xff]   ;;  %v12221_v12 = vld [vmem:[%s17748_s3 + $0x70c] ss:$16 sps:$4 sm:$0xff]  }
 0x267   : > { %7179 = vmatprep.mubr.bf16.mxu0 %v15113_v38  ;;  %7211 = vmatpush1.bf16.msra.mxu0 %v12171_v59  ;;  %v12180_v38 = vld [vmem:[%s17748_s3 + $0x640] ss:$16 sps:$4 sm:$0xff]   ;;  %v12213_v59 = vld [vmem:[%s17748_s3 + $0x6e8] ss:$16 sps:$4 sm:$0xff]   ;;  %v12248_v61 = vld [vmem:[%s17748_s3 + $0x7a4] ss:$16 sps:$4 sm:$0xff]  }
 0x268   : > { %7212 = vmatprep.subr.bf16.mxu0 %v12179_v43  ;;  %v15802_v16 = vrot.slane %v18068_v11, %v17909_v27  ;;  %v12210_v47 = vld [vmem:[%s17748_s3 + $0x6e0] ss:$16 sps:$4 sm:$0xff]   ;;  %v12243_v56 = vld [vmem:[%s17748_s3 + $0x788] ss:$16 sps:$4 sm:$0xff]   ;;  %v12254_v46 = vld [vmem:[%s17748_s3 + $0x7c4] ss:$16 sps:$4 sm:$0xff]  }
 0x269   : > { %6629 = vmatpush1.bf16.msra.mxu1 %v12174_v20  ;;  %v12216_v43 = vld [vmem:[%s17748_s3 + $0x700] ss:$16 sps:$4 sm:$0xff]   ;;  %v12219_v20 = vld [vmem:[%s17748_s3 + $0x708] ss:$16 sps:$4 sm:$0xff]   ;;  %v12257_v34 = vld [vmem:[%s17748_s3 + $0x7cc] ss:$16 sps:$4 sm:$0xff]  }
 0x26a   : > { %6630 = vmatprep.subr.bf16.mxu1 %v12182_v48  ;;  %v3082_v60 = vcombine.high %v15808_v32, %v15802_v16  ;;  %v12227_v48 = vld [vmem:[%s17748_s3 + $0x72c] ss:$16 sps:$4 sm:$0xff]   ;;  %v12252_v11 = vld [vmem:[%s17748_s3 + $0x7c0] ss:$16 sps:$4 sm:$0xff]  }
 0x26b   : > { %7213 = vmatpush1.bf16.msra.mxu0 %v12177_v39  ;;  %v12224_v39 = vld [vmem:[%s17748_s3 + $0x724] ss:$16 sps:$4 sm:$0xff]  }
 0x26c   : > { %6596 = vmatmul.mubr.bf16.gmra.mrb[52].mxu1 %v15098_v5  ;;  %7214 = vmatprep.subr.bf16.mxu0 %v12185_v14  ;;  %v12222_v14 = vld [vmem:[%s17748_s3 + $0x720] ss:$16 sps:$4 sm:$0xff]  }
 0x26d   : > { %6605 = vmatprep.mubr.bf16.mxu1 %v15138_v25  ;;  %6631 = vmatpush1.bf16.msra.mxu1 %v12180_v38  ;;  %v12225_v38 = vld [vmem:[%s17748_s3 + $0x728] ss:$16 sps:$4 sm:$0xff]  }
 0x26e   : > { %7180 = vmatmul.mubr.bf16.gmra.mrb[100].mxu0 %v15098_v5  ;;  %6632 = vmatprep.subr.bf16.mxu1 %v12188_v13  ;;  %v12197_v5 = vld [vmem:[%s17748_s3 + $0x68c] ss:$16 sps:$4 sm:$0xff]  }
 0x26f   : > { %7189 = vmatprep.mubr.bf16.mxu0 %v15138_v25  ;;  %7215 = vmatpush1.bf16.msra.mxu0 %v12183_v6  ;;  %v12192_v25 = vld [vmem:[%s17748_s3 + $0x680] ss:$16 sps:$4 sm:$0xff]   ;;  %v12230_v6 = vld [vmem:[%s17748_s3 + $0x744] ss:$16 sps:$4 sm:$0xff]   ;;  %v12233_v13 = vld [vmem:[%s17748_s3 + $0x74c] ss:$16 sps:$4 sm:$0xff]  }
 0x270   : > { %7216 = vmatprep.subr.bf16.mxu0 %v12191_v62  ;;  %v12228_v62 = vld [vmem:[%s17748_s3 + $0x740] ss:$16 sps:$4 sm:$0xff]  }
 0x271   : > { %6633 = vmatpush1.bf16.msra.mxu1 %v12186_v37  ;;  %v12231_v37 = vld [vmem:[%s17748_s3 + $0x748] ss:$16 sps:$4 sm:$0xff]  }
 0x272   : > { %6634 = vmatprep.subr.bf16.mxu1 %v12194_v1  ;;  %v12239_v1 = vld [vmem:[%s17748_s3 + $0x76c] ss:$16 sps:$4 sm:$0xff]  }
 0x273   : > { %7217 = vmatpush1.bf16.msra.mxu0 %v12189_v22  ;;  %v12236_v22 = vld [vmem:[%s17748_s3 + $0x764] ss:$16 sps:$4 sm:$0xff]  }
 0x274   : > { %6606 = vmatmul.mubr.bf16.gmra.mrb[56].mxu1 %v15110_v49  ;;  %7218 = vmatprep.subr.bf16.mxu0 %v12197_v5  ;;  %v12234_v5 = vld [vmem:[%s17748_s3 + $0x760] ss:$16 sps:$4 sm:$0xff]  }
 0x275   : > { %6615 = vmatprep.mubr.bf16.mxu1 %v15149_v36  ;;  %6635 = vmatpush1.bf16.msra.mxu1 %v12192_v25  ;;  %v12237_v25 = vld [vmem:[%s17748_s3 + $0x768] ss:$16 sps:$4 sm:$0xff]  }
 0x276   : > { %7190 = vmatmul.mubr.bf16.gmra.mrb[104].mxu0 %v15110_v49  ;;  %6636 = vmatprep.subr.bf16.mxu1 %v12200_v63  ;;  %v12206_v49 = vld [vmem:[%s17748_s3 + $0x6c4] ss:$16 sps:$4 sm:$0xff]   ;;  %v12245_v63 = vld [vmem:[%s17748_s3 + $0x78c] ss:$16 sps:$4 sm:$0xff]  }
 0x277   : > { %7199 = vmatprep.mubr.bf16.mxu0 %v15149_v36  ;;  %7219 = vmatpush1.bf16.msra.mxu0 %v12195_v8  ;;  %v12209_v36 = vld [vmem:[%s17748_s3 + $0x6cc] ss:$16 sps:$4 sm:$0xff]   ;;  %v12242_v8 = vld [vmem:[%s17748_s3 + $0x784] ss:$16 sps:$4 sm:$0xff]  }
 0x278   : > { %7220 = vmatprep.subr.bf16.mxu0 %v12203_v26  ;;  %v12240_v26 = vld [vmem:[%s17748_s3 + $0x780] ss:$16 sps:$4 sm:$0xff]  }
 0x279   : > { %6637 = vmatpush1.bf16.msra.mxu1 %v12198_v52  ;;  %v12251_v52 = vld [vmem:[%s17748_s3 + $0x7ac] ss:$16 sps:$4 sm:$0xff]  }
 0x27a   : > { %6638 = vmatprep.subr.bf16.mxu1 %v12206_v49  ;;  %v12249_v49 = vld [vmem:[%s17748_s3 + $0x7a8] ss:$16 sps:$4 sm:$0xff]  }
 0x27b   : > { %7221 = vmatpush1.bf16.msra.mxu0 %v12201_v3  ;;  %v12246_v3 = vld [vmem:[%s17748_s3 + $0x7a0] ss:$16 sps:$4 sm:$0xff]  }
 0x27c   : > { %6616 = vmatmul.mubr.bf16.gmra.mrb[60].mxu1 %v18069_v45  ;;  %7222 = vmatprep.subr.bf16.mxu0 %v12209_v36  ;;  %v12255_v36 = vld [vmem:[%s17748_s3 + $0x7c8] ss:$16 sps:$4 sm:$0xff]  }
 0x27d   : > { %6658 = vmatprep.mubr.bf16.mxu1 %v3082_v60  ;;  %6639 = vmatpush1.bf16.msra.mxu1 %v12204_v23  ;;  %v12260_v23 = vld [vmem:[%s17748_s3 + $0x7e4] ss:$16 sps:$4 sm:$0xff]  }
 0x27e   : > { %7200 = vmatmul.mubr.bf16.gmra.mrb[108].mxu0 %v18069_v45  ;;  %6640 = vmatprep.subr.bf16.mxu1 %v12212_v28  ;;  %v12261_v28 = vld [vmem:[%s17748_s3 + $0x7e8] ss:$16 sps:$4 sm:$0xff]   ;;  %v12266_v45 = vld [vmem:[%s17748_s3 + $0x804] ss:$16 sps:$4 sm:$0xff]  }
 0x27f   : > { %7242 = vmatprep.mubr.bf16.mxu0 %v3082_v60  ;;  %7223 = vmatpush1.bf16.msra.mxu0 %v12207_v18  ;;  %v12263_v18 = vld [vmem:[%s17748_s3 + $0x7ec] ss:$16 sps:$4 sm:$0xff]   ;;  %v12258_v60 = vld [vmem:[%s17748_s3 + $0x7e0] ss:$16 sps:$4 sm:$0xff]  }
 0x280   : > { %7224 = vmatprep.subr.bf16.mxu0 %v12215_v54  ;;  %v12269_v54 = vld [vmem:[%s17748_s3 + $0x80c] ss:$16 sps:$4 sm:$0xff]  }
 0x281   : > { %6641 = vmatpush1.bf16.msra.mxu1 %v12210_v47  ;;  %v3081_v47 = vcombine.low %v15808_v32, %v15802_v16  ;;  %v12275_v16 = vld [vmem:[%s17748_s3 + $0x82c] ss:$16 sps:$4 sm:$0xff]  }
 0x282   : > { %6642 = vmatprep.subr.bf16.mxu1 %v12218_v33  ;;  %v12267_v33 = vld [vmem:[%s17748_s3 + $0x808] ss:$16 sps:$4 sm:$0xff]  }
 0x283   : > { %7225 = vmatpush1.bf16.msra.mxu0 %v12213_v59  ;;  %v12264_v59 = vld [vmem:[%s17748_s3 + $0x800] ss:$16 sps:$4 sm:$0xff]   ;;  %v18070_v32 = vld [vmem:[#allocation41_spill] sm:$0xff] }
 0x284   : > { %7226 = vmatprep.subr.bf16.mxu0 %v12221_v12  ;;  %v12272_v12 = vld [vmem:[%s17748_s3 + $0x824] ss:$16 sps:$4 sm:$0xff]  }
 0x285   : > { %6643 = vmatpush1.bf16.msra.mxu1 %v12216_v43  ;;  %v12270_v43 = vld [vmem:[%s17748_s3 + $0x820] ss:$16 sps:$4 sm:$0xff]  }
 0x286   : > { %6644 = vmatprep.subr.bf16.mxu1 %v12224_v39  ;;  %v12278_v39 = vld [vmem:[%s17748_s3 + $0x844] ss:$16 sps:$4 sm:$0xff]  }
 0x287   : > { %7227 = vmatpush1.bf16.msra.mxu0 %v12219_v20  ;;  %v12273_v20 = vld [vmem:[%s17748_s3 + $0x828] ss:$16 sps:$4 sm:$0xff]  }
 0x288   : > { %7228 = vmatprep.subr.bf16.mxu0 %v12227_v48  ;;  %v12281_v48 = vld [vmem:[%s17748_s3 + $0x84c] ss:$16 sps:$4 sm:$0xff]  }
 0x289   : > { %6645 = vmatpush1.bf16.msra.mxu1 %v12222_v14  ;;  %v12276_v14 = vld [vmem:[%s17748_s3 + $0x840] ss:$16 sps:$4 sm:$0xff]  }
 0x28a   : > { %6646 = vmatprep.subr.bf16.mxu1 %v12230_v6  ;;  %v12284_v6 = vld [vmem:[%s17748_s3 + $0x864] ss:$16 sps:$4 sm:$0xff]  }
 0x28b   : > { %7229 = vmatpush1.bf16.msra.mxu0 %v12225_v38  ;;  %v12279_v38 = vld [vmem:[%s17748_s3 + $0x848] ss:$16 sps:$4 sm:$0xff]  }
 0x28c   : > { %7230 = vmatprep.subr.bf16.mxu0 %v12233_v13  ;;  %v18071_v13 = vld [vmem:[#allocation43_spill] sm:$0xff] }
 0x28d   : > { %6647 = vmatpush1.bf16.msra.mxu1 %v12228_v62  ;;  %v12287_v62 = vld [vmem:[%s17748_s3 + $0x86c] ss:$16 sps:$4 sm:$0xff]  }
 0x28e   : > { %6648 = vmatprep.subr.bf16.mxu1 %v12236_v22  ;;  %v12285_v22 = vld [vmem:[%s17748_s3 + $0x868] ss:$16 sps:$4 sm:$0xff]  }
 0x28f   : > { %7231 = vmatpush1.bf16.msra.mxu0 %v12231_v37  ;;  %v12282_v37 = vld [vmem:[%s17748_s3 + $0x860] ss:$16 sps:$4 sm:$0xff]  }
 0x290   : > { %7232 = vmatprep.subr.bf16.mxu0 %v12239_v1  ;;  %v12290_v1 = vld [vmem:[%s17748_s3 + $0x884] ss:$16 sps:$4 sm:$0xff]  }
 0x291   : > { %6649 = vmatpush1.bf16.msra.mxu1 %v12234_v5  ;;  %v12293_v5 = vld [vmem:[%s17748_s3 + $0x88c] ss:$16 sps:$4 sm:$0xff]  }
 0x292   : > { %6650 = vmatprep.subr.bf16.mxu1 %v12242_v8  ;;  %v12296_v8 = vld [vmem:[%s17748_s3 + $0x8a4] ss:$16 sps:$4 sm:$0xff]  }
 0x293   : > { %7233 = vmatpush1.bf16.msra.mxu0 %v12237_v25  ;;  %v12291_v25 = vld [vmem:[%s17748_s3 + $0x888] ss:$16 sps:$4 sm:$0xff]  }
 0x294   : > { %7234 = vmatprep.subr.bf16.mxu0 %v12245_v63  ;;  %v18072_v63 = vld [vmem:[#allocation21_spill] sm:$0xff] }
 0x295   : > { %6651 = vmatpush1.bf16.msra.mxu1 %v12240_v26  ;;  %v12299_v26 = vld [vmem:[%s17748_s3 + $0x8ac] ss:$16 sps:$4 sm:$0xff]  }
 0x296   : > { %6652 = vmatprep.subr.bf16.mxu1 %v12248_v61  ;;  %v12297_v61 = vld [vmem:[%s17748_s3 + $0x8a8] ss:$16 sps:$4 sm:$0xff]  }
 0x297   : > { %7235 = vmatpush1.bf16.msra.mxu0 %v12243_v56  ;;  %v12294_v56 = vld [vmem:[%s17748_s3 + $0x8a0] ss:$16 sps:$4 sm:$0xff]  }
 0x298   : > { %7236 = vmatprep.subr.bf16.mxu0 %v12251_v52  ;;  %v12302_v52 = vld [vmem:[%s17748_s3 + $0x8c4] ss:$16 sps:$4 sm:$0xff]  }
 0x299   : > { %6653 = vmatpush1.bf16.msra.mxu1 %v12246_v3  ;;  %v12305_v3 = vld [vmem:[%s17748_s3 + $0x8cc] ss:$16 sps:$4 sm:$0xff]  }
 0x29a   : > { %6654 = vmatprep.subr.bf16.mxu1 %v12254_v46  ;;  %v3233_v46 = vcombine.low %v15479_v58, %v15490_v9  ;;  %v12306_v58 = vld [vmem:[%s17748_s3 + $0x8e0] ss:$16 sps:$4 sm:$0xff]   ;;  %v12309_v9 = vld [vmem:[%s17748_s3 + $0x8e8] ss:$16 sps:$4 sm:$0xff]  }
 0x29b   : > { %7237 = vmatpush1.bf16.msra.mxu0 %v12249_v49  ;;  %v12303_v49 = vld [vmem:[%s17748_s3 + $0x8c8] ss:$16 sps:$4 sm:$0xff]  }
 0x29c   : > { %7238 = vmatprep.subr.bf16.mxu0 %v12257_v34  ;;  %v12308_v34 = vld [vmem:[%s17748_s3 + $0x8e4] ss:$16 sps:$4 sm:$0xff]  }
 0x29d   : > { %6655 = vmatpush1.bf16.msra.mxu1 %v12252_v11  ;;  %v12311_v11 = vld [vmem:[%s17748_s3 + $0x8ec] ss:$16 sps:$4 sm:$0xff]  }
 0x29e   : > { %6656 = vmatprep.subr.bf16.mxu1 %v12260_v23  ;;  %v12312_v23 = vld [vmem:[%s17748_s3 + $0x900] ss:$16 sps:$4 sm:$0xff]  }
 0x29f   : > { %7239 = vmatpush1.bf16.msra.mxu0 %v12255_v36  ;;  %v12314_v36 = vld [vmem:[%s17748_s3 + $0x904] ss:$16 sps:$4 sm:$0xff]  }
 0x2a0   : > { %7240 = vmatprep.subr.bf16.mxu0 %v12263_v18  ;;  %v12315_v18 = vld [vmem:[%s17748_s3 + $0x908] ss:$16 sps:$4 sm:$0xff]  }
 0x2a1   : > { %6657 = vmatpush1.bf16.msra.mxu1 %v12258_v60  ;;  %v12320_v60 = vld [vmem:[%s17748_s3 + $0x924] ss:$16 sps:$4 sm:$0xff]  }
 0x2a2   : > { %6699 = vmatprep.subr.bf16.mxu1 %v12266_v45  ;;  %v12318_v45 = vld [vmem:[%s17748_s3 + $0x920] ss:$16 sps:$4 sm:$0xff]  }
 0x2a3   : > { %7241 = vmatpush1.bf16.msra.mxu0 %v12261_v28  ;;  %v12323_v28 = vld [vmem:[%s17748_s3 + $0x92c] ss:$16 sps:$4 sm:$0xff]  }
 0x2a4   : > { %7283 = vmatprep.subr.bf16.mxu0 %v12269_v54  ;;  %6659 = vmatmul.mubr.bf16.vlgmr.msra.gmra.mrb[48].mxu1 %v3081_v47  ;;  %v12321_v54 = vld [vmem:[%s17748_s3 + $0x928] ss:$16 sps:$4 sm:$0xff]  }
 0x2a5   : > { %6668 = vmatprep.mubr.bf16.mxu1 %v18070_v32  ;;  %6700 = vmatpush1.bf16.msra.mxu1 %v12264_v59  ;;  %v12329_v59 = vld [vmem:[%s17748_s3 + $0x94c] ss:$16 sps:$4 sm:$0xff]  }
 0x2a6   : > { %7243 = vmatmul.mubr.bf16.vlgmr.msra.gmra.mrb[96].mxu0 %v3081_v47  ;;  %6701 = vmatprep.subr.bf16.mxu1 %v12272_v12  ;;  %v12326_v47 = vld [vmem:[%s17748_s3 + $0x944] ss:$16 sps:$4 sm:$0xff]   ;;  %v12327_v12 = vld [vmem:[%s17748_s3 + $0x948] ss:$16 sps:$4 sm:$0xff]  }
 0x2a7   : > { %7252 = vmatprep.mubr.bf16.mxu0 %v18070_v32  ;;  %7284 = vmatpush1.bf16.msra.mxu0 %v12267_v33  ;;  %v12324_v33 = vld [vmem:[%s17748_s3 + $0x940] ss:$16 sps:$4 sm:$0xff]   ;;  %v12335_v32 = vld [vmem:[%s17748_s3 + $0x96c] ss:$16 sps:$4 sm:$0xff]  }
 0x2a8   : > { %7285 = vmatprep.subr.bf16.mxu0 %v12275_v16  ;;  %v12332_v16 = vld [vmem:[%s17748_s3 + $0x964] ss:$16 sps:$4 sm:$0xff]  }
 0x2a9   : > { %6702 = vmatpush1.bf16.msra.mxu1 %v12270_v43  ;;  %v12330_v43 = vld [vmem:[%s17748_s3 + $0x960] ss:$16 sps:$4 sm:$0xff]  }
 0x2aa   : > { %6703 = vmatprep.subr.bf16.mxu1 %v12278_v39  ;;  %v12338_v39 = vld [vmem:[%s17748_s3 + $0x984] ss:$16 sps:$4 sm:$0xff]  }
 0x2ab   : > { %7286 = vmatpush1.bf16.msra.mxu0 %v12273_v20  ;;  %v12333_v20 = vld [vmem:[%s17748_s3 + $0x968] ss:$16 sps:$4 sm:$0xff]  }
 0x2ac   : > { %6669 = vmatmul.mubr.bf16.gmra.mrb[52].mxu1 %v18071_v13  ;;  %7287 = vmatprep.subr.bf16.mxu0 %v12281_v48  ;;  %v12341_v48 = vld [vmem:[%s17748_s3 + $0x98c] ss:$16 sps:$4 sm:$0xff]  }
 0x2ad   : > { %6678 = vmatprep.mubr.bf16.mxu1 %v15368_v29  ;;  %6704 = vmatpush1.bf16.msra.mxu1 %v12276_v14  ;;  %v12336_v14 = vld [vmem:[%s17748_s3 + $0x980] ss:$16 sps:$4 sm:$0xff]  }
 0x2ae   : > { %7253 = vmatmul.mubr.bf16.gmra.mrb[100].mxu0 %v18071_v13  ;;  %6705 = vmatprep.subr.bf16.mxu1 %v12284_v6  ;;  %v12344_v6 = vld [vmem:[%s17748_s3 + $0x9a4] ss:$16 sps:$4 sm:$0xff]   ;;  %v12347_v13 = vld [vmem:[%s17748_s3 + $0x9ac] ss:$16 sps:$4 sm:$0xff]  }
 0x2af   : > { %7262 = vmatprep.mubr.bf16.mxu0 %v15368_v29  ;;  %7288 = vmatpush1.bf16.msra.mxu0 %v12279_v38  ;;  %v12288_v29 = vld [vmem:[%s17748_s3 + $0x880] ss:$16 sps:$4 sm:$0xff]   ;;  %v12339_v38 = vld [vmem:[%s17748_s3 + $0x988] ss:$16 sps:$4 sm:$0xff]  }
 0x2b0   : > { %7289 = vmatprep.subr.bf16.mxu0 %v12287_v62  ;;  %v12342_v62 = vld [vmem:[%s17748_s3 + $0x9a0] ss:$16 sps:$4 sm:$0xff]  }
 0x2b1   : > { %6706 = vmatpush1.bf16.msra.mxu1 %v12282_v37  ;;  %v12345_v37 = vld [vmem:[%s17748_s3 + $0x9a8] ss:$16 sps:$4 sm:$0xff]  }
 0x2b2   : > { %6707 = vmatprep.subr.bf16.mxu1 %v12290_v1  ;;  %v12353_v1 = vld [vmem:[%s17748_s3 + $0x9cc] ss:$16 sps:$4 sm:$0xff]  }
 0x2b3   : > { %7290 = vmatpush1.bf16.msra.mxu0 %v12285_v22  ;;  %v12350_v22 = vld [vmem:[%s17748_s3 + $0x9c4] ss:$16 sps:$4 sm:$0xff]  }
 0x2b4   : > { %6679 = vmatmul.mubr.bf16.gmra.mrb[56].mxu1 %v18072_v63  ;;  %7291 = vmatprep.subr.bf16.mxu0 %v12293_v5  ;;  %v12348_v5 = vld [vmem:[%s17748_s3 + $0x9c0] ss:$16 sps:$4 sm:$0xff]  }
 0x2b5   : > { %6688 = vmatprep.mubr.bf16.mxu1 %v15418_v42  ;;  %6708 = vmatpush1.bf16.msra.mxu1 %v12288_v29  ;;  %v12351_v29 = vld [vmem:[%s17748_s3 + $0x9c8] ss:$16 sps:$4 sm:$0xff]  }
 0x2b6   : > { %7263 = vmatmul.mubr.bf16.gmra.mrb[104].mxu0 %v18072_v63  ;;  %6709 = vmatprep.subr.bf16.mxu1 %v12296_v8  ;;  %v12359_v8 = vld [vmem:[%s17748_s3 + $0x9ec] ss:$16 sps:$4 sm:$0xff]   ;;  %v12354_v63 = vld [vmem:[%s17748_s3 + $0x9e0] ss:$16 sps:$4 sm:$0xff]  }
 0x2b7   : > { %7272 = vmatprep.mubr.bf16.mxu0 %v15418_v42  ;;  %7292 = vmatpush1.bf16.msra.mxu0 %v12291_v25  ;;  %v12300_v42 = vld [vmem:[%s17748_s3 + $0x8c0] ss:$16 sps:$4 sm:$0xff]   ;;  %v12356_v25 = vld [vmem:[%s17748_s3 + $0x9e4] ss:$16 sps:$4 sm:$0xff]  }
 0x2b8   : > { %7293 = vmatprep.subr.bf16.mxu0 %v12299_v26  ;;  %v12357_v26 = vld [vmem:[%s17748_s3 + $0x9e8] ss:$16 sps:$4 sm:$0xff]  }
 0x2b9   : > { %6710 = vmatpush1.bf16.msra.mxu1 %v12294_v56  ;;  %v12362_v56 = vld [vmem:[%s17748_s3 + $0xa04] ss:$16 sps:$4 sm:$0xff]  }
 0x2ba   : > { %6711 = vmatprep.subr.bf16.mxu1 %v12302_v52  ;;  %v12360_v52 = vld [vmem:[%s17748_s3 + $0xa00] ss:$16 sps:$4 sm:$0xff]  }
 0x2bb   : > { %7294 = vmatpush1.bf16.msra.mxu0 %v12297_v61  ;;  %v12365_v61 = vld [vmem:[%s17748_s3 + $0xa0c] ss:$16 sps:$4 sm:$0xff]  }
 0x2bc   : > { %6689 = vmatmul.mubr.bf16.gmra.mrb[60].mxu1 %v15420_v50  ;;  %7295 = vmatprep.subr.bf16.mxu0 %v12305_v3  ;;  %v12363_v3 = vld [vmem:[%s17748_s3 + $0xa08] ss:$16 sps:$4 sm:$0xff]  }
 0x2bd   : > { %6731 = vmatprep.mubr.bf16.mxu1 %v3233_v46  ;;  %6712 = vmatpush1.bf16.msra.mxu1 %v12300_v42  ;;  %v12368_v42 = vld [vmem:[%s17748_s3 + $0xa24] ss:$16 sps:$4 sm:$0xff]  }
 0x2be   : > { %7273 = vmatmul.mubr.bf16.gmra.mrb[108].mxu0 %v15420_v50  ;;  %6713 = vmatprep.subr.bf16.mxu1 %v12308_v34  ;;  %v12317_v50 = vld [vmem:[%s17748_s3 + $0x90c] ss:$16 sps:$4 sm:$0xff]   ;;  %v12366_v34 = vld [vmem:[%s17748_s3 + $0xa20] ss:$16 sps:$4 sm:$0xff]  }
 0x2bf   : > { %7315 = vmatprep.mubr.bf16.mxu0 %v3233_v46  ;;  %7296 = vmatpush1.bf16.msra.mxu0 %v12303_v49  ;;  %v18073_v49 = vld [vmem:[#allocation44_spill] sm:$0xff]  ;;  %v12371_v46 = vld [vmem:[%s17748_s3 + $0xa2c] ss:$16 sps:$4 sm:$0xff]  }
 0x2c0   : > { %7297 = vmatprep.subr.bf16.mxu0 %v12311_v11  ;;  %v12369_v11 = vld [vmem:[%s17748_s3 + $0xa28] ss:$16 sps:$4 sm:$0xff]  }
 0x2c1   : > { %6714 = vmatpush1.bf16.msra.mxu1 %v12306_v58  ;;  %v12374_v58 = vld [vmem:[%s17748_s3 + $0xa44] ss:$16 sps:$4 sm:$0xff]  }
 0x2c2   : > { %6715 = vmatprep.subr.bf16.mxu1 %v12314_v36  ;;  %v12375_v36 = vld [vmem:[%s17748_s3 + $0xa48] ss:$16 sps:$4 sm:$0xff]  }
 0x2c3   : > { %7298 = vmatpush1.bf16.msra.mxu0 %v12309_v9  ;;  %v12377_v9 = vld [vmem:[%s17748_s3 + $0xa4c] ss:$16 sps:$4 sm:$0xff]  }
 0x2c4   : > { %7299 = vmatprep.subr.bf16.mxu0 %v12317_v50  ;;  %v12380_v50 = vld [vmem:[%s17748_s3 + $0xa64] ss:$16 sps:$4 sm:$0xff]  }
 0x2c5   : > { %6716 = vmatpush1.bf16.msra.mxu1 %v12312_v23  ;;  %v12383_v23 = vld [vmem:[%s17748_s3 + $0xa6c] ss:$16 sps:$4 sm:$0xff]  }
 0x2c6   : > { %6717 = vmatprep.subr.bf16.mxu1 %v12320_v60  ;;  %v12381_v60 = vld [vmem:[%s17748_s3 + $0xa68] ss:$16 sps:$4 sm:$0xff]  }
 0x2c7   : > { %7300 = vmatpush1.bf16.msra.mxu0 %v12315_v18  ;;  %v12378_v18 = vld [vmem:[%s17748_s3 + $0xa60] ss:$16 sps:$4 sm:$0xff]  }
 0x2c8   : > { %7301 = vmatprep.subr.bf16.mxu0 %v12323_v28  ;;  %v12386_v28 = vld [vmem:[%s17748_s3 + $0xa84] ss:$16 sps:$4 sm:$0xff]  }
 0x2c9   : > { %6718 = vmatpush1.bf16.msra.mxu1 %v12318_v45  ;;  %v12387_v45 = vld [vmem:[%s17748_s3 + $0xa88] ss:$16 sps:$4 sm:$0xff]  }
 0x2ca   : > { %6719 = vmatprep.subr.bf16.mxu1 %v12326_v47  ;;  %v12395_v47 = vld [vmem:[%s17748_s3 + $0xaac] ss:$16 sps:$4 sm:$0xff]  }
 0x2cb   : > { %7302 = vmatpush1.bf16.msra.mxu0 %v12321_v54  ;;  %v12392_v54 = vld [vmem:[%s17748_s3 + $0xaa4] ss:$16 sps:$4 sm:$0xff]  }
 0x2cc   : > { %7303 = vmatprep.subr.bf16.mxu0 %v12329_v59  ;;  %v12390_v59 = vld [vmem:[%s17748_s3 + $0xaa0] ss:$16 sps:$4 sm:$0xff]  }
 0x2cd   : > { %6720 = vmatpush1.bf16.msra.mxu1 %v12324_v33  ;;  %v12393_v33 = vld [vmem:[%s17748_s3 + $0xaa8] ss:$16 sps:$4 sm:$0xff]  }
 0x2ce   : > { %6721 = vmatprep.subr.bf16.mxu1 %v12332_v16  ;;  %v12399_v16 = vld [vmem:[%s17748_s3 + $0xac8] ss:$16 sps:$4 sm:$0xff]  }
 0x2cf   : > { %7304 = vmatpush1.bf16.msra.mxu0 %v12327_v12  ;;  %v12398_v12 = vld [vmem:[%s17748_s3 + $0xac4] ss:$16 sps:$4 sm:$0xff]  }
 0x2d0   : > { %7305 = vmatprep.subr.bf16.mxu0 %v12335_v32  ;;  %v12404_v32 = vld [vmem:[%s17748_s3 + $0xae4] ss:$16 sps:$4 sm:$0xff]  }
 0x2d1   : > { %6722 = vmatpush1.bf16.msra.mxu1 %v12330_v43  ;;  %v12407_v43 = vld [vmem:[%s17748_s3 + $0xaec] ss:$16 sps:$4 sm:$0xff]  }
 0x2d2   : > { %6723 = vmatprep.subr.bf16.mxu1 %v12338_v39  ;;  %v12405_v39 = vld [vmem:[%s17748_s3 + $0xae8] ss:$16 sps:$4 sm:$0xff]  }
 0x2d3   : > { %7306 = vmatpush1.bf16.msra.mxu0 %v12333_v20  ;;  %v12402_v20 = vld [vmem:[%s17748_s3 + $0xae0] ss:$16 sps:$4 sm:$0xff]  }
 0x2d4   : > { %7307 = vmatprep.subr.bf16.mxu0 %v12341_v48  ;;  %v12410_v48 = vld [vmem:[%s17748_s3 + $0xb04] ss:$16 sps:$4 sm:$0xff]  }
 0x2d5   : > { %6724 = vmatpush1.bf16.msra.mxu1 %v12336_v14  ;;  %v12411_v14 = vld [vmem:[%s17748_s3 + $0xb08] ss:$16 sps:$4 sm:$0xff]  }
 0x2d6   : > { %6725 = vmatprep.subr.bf16.mxu1 %v12344_v6  ;;  %v12419_v6 = vld [vmem:[%s17748_s3 + $0xb2c] ss:$16 sps:$4 sm:$0xff]  }
 0x2d7   : > { %7308 = vmatpush1.bf16.msra.mxu0 %v12339_v38  ;;  %v12416_v38 = vld [vmem:[%s17748_s3 + $0xb24] ss:$16 sps:$4 sm:$0xff]  }
 0x2d8   : > { %7309 = vmatprep.subr.bf16.mxu0 %v12347_v13  ;;  %v12414_v13 = vld [vmem:[%s17748_s3 + $0xb20] ss:$16 sps:$4 sm:$0xff]  }
 0x2d9   : > { %6726 = vmatpush1.bf16.msra.mxu1 %v12342_v62  ;;  %v12417_v62 = vld [vmem:[%s17748_s3 + $0xb28] ss:$16 sps:$4 sm:$0xff]  }
 0x2da   : > { %6727 = vmatprep.subr.bf16.mxu1 %v12350_v22  ;;  %v12425_v22 = vld [vmem:[%s17748_s3 + $0xb4c] ss:$16 sps:$4 sm:$0xff]  }
 0x2db   : > { %7310 = vmatpush1.bf16.msra.mxu0 %v12345_v37  ;;  %v12422_v37 = vld [vmem:[%s17748_s3 + $0xb44] ss:$16 sps:$4 sm:$0xff]  }
 0x2dc   : > { %7311 = vmatprep.subr.bf16.mxu0 %v12353_v1  ;;  %v12420_v1 = vld [vmem:[%s17748_s3 + $0xb40] ss:$16 sps:$4 sm:$0xff]  }
 0x2dd   : > { %6728 = vmatpush1.bf16.msra.mxu1 %v12348_v5  ;;  %v12423_v5 = vld [vmem:[%s17748_s3 + $0xb48] ss:$16 sps:$4 sm:$0xff]  }
 0x2de   : > { %6729 = vmatprep.subr.bf16.mxu1 %v12356_v25  ;;  %v12431_v25 = vld [vmem:[%s17748_s3 + $0xb6c] ss:$16 sps:$4 sm:$0xff]  }
 0x2df   : > { %7312 = vmatpush1.bf16.msra.mxu0 %v12351_v29  ;;  %v12428_v29 = vld [vmem:[%s17748_s3 + $0xb64] ss:$16 sps:$4 sm:$0xff]  }
 0x2e0   : > { %7313 = vmatprep.subr.bf16.mxu0 %v12359_v8  ;;  %v12426_v8 = vld [vmem:[%s17748_s3 + $0xb60] ss:$16 sps:$4 sm:$0xff]  }
 0x2e1   : > { %6730 = vmatpush1.bf16.msra.mxu1 %v12354_v63  ;;  %v12429_v63 = vld [vmem:[%s17748_s3 + $0xb68] ss:$16 sps:$4 sm:$0xff]  }
 0x2e2   : > { %6772 = vmatprep.subr.bf16.mxu1 %v12362_v56  ;;  %v12437_v56 = vld [vmem:[%s17748_s3 + $0xb8c] ss:$16 sps:$4 sm:$0xff]  }
 0x2e3   : > { %7314 = vmatpush1.bf16.msra.mxu0 %v12357_v26  ;;  %v12434_v26 = vld [vmem:[%s17748_s3 + $0xb84] ss:$16 sps:$4 sm:$0xff]  }
 0x2e4   : > { %7356 = vmatprep.subr.bf16.mxu0 %v12365_v61  ;;  %6732 = vmatmul.mubr.bf16.vlgmr.msra.gmra.mrb[48].mxu1 %v18073_v49  ;;  %v12432_v61 = vld [vmem:[%s17748_s3 + $0xb80] ss:$16 sps:$4 sm:$0xff]  }
 0x2e5   : > { %6741 = vmatprep.mubr.bf16.mxu1 %v15596_v55  ;;  %6773 = vmatpush1.bf16.msra.mxu1 %v12360_v52  ;;  %v12435_v52 = vld [vmem:[%s17748_s3 + $0xb88] ss:$16 sps:$4 sm:$0xff]  }
 0x2e6   : > { %7316 = vmatmul.mubr.bf16.vlgmr.msra.gmra.mrb[96].mxu0 %v18073_v49  ;;  %6774 = vmatprep.subr.bf16.mxu1 %v12368_v42  ;;  %v12443_v42 = vld [vmem:[%s17748_s3 + $0xbac] ss:$16 sps:$4 sm:$0xff]   ;;  %v12438_v49 = vld [vmem:[%s17748_s3 + $0xba0] ss:$16 sps:$4 sm:$0xff]  }
 0x2e7   : > { %7325 = vmatprep.mubr.bf16.mxu0 %v15596_v55  ;;  %7357 = vmatpush1.bf16.msra.mxu0 %v12363_v3  ;;  %v12372_v55 = vld [vmem:[%s17748_s3 + $0xa40] ss:$16 sps:$4 sm:$0xff]   ;;  %v12440_v3 = vld [vmem:[%s17748_s3 + $0xba4] ss:$16 sps:$4 sm:$0xff]  }
 0x2e8   : > { %7358 = vmatprep.subr.bf16.mxu0 %v12371_v46  ;;  %v12441_v46 = vld [vmem:[%s17748_s3 + $0xba8] ss:$16 sps:$4 sm:$0xff]  }
 0x2e9   : > { %6775 = vmatpush1.bf16.msra.mxu1 %v12366_v34  ;;  %v12446_v34 = vld [vmem:[%s17748_s3 + $0xbc4] ss:$16 sps:$4 sm:$0xff]  }
 0x2ea   : > { %6776 = vmatprep.subr.bf16.mxu1 %v12374_v58  ;;  %v12444_v58 = vld [vmem:[%s17748_s3 + $0xbc0] ss:$16 sps:$4 sm:$0xff]  }
 0x2eb   : > { %7359 = vmatpush1.bf16.msra.mxu0 %v12369_v11  ;;  %v12449_v11 = vld [vmem:[%s17748_s3 + $0xbcc] ss:$16 sps:$4 sm:$0xff]  }
 0x2ec   : > { %6742 = vmatmul.mubr.bf16.gmra.mrb[52].mxu1 %v15441_v2  ;;  %7360 = vmatprep.subr.bf16.mxu0 %v12377_v9  ;;  %v12447_v9 = vld [vmem:[%s17748_s3 + $0xbc8] ss:$16 sps:$4 sm:$0xff]  }
 0x2ed   : > { %6751 = vmatprep.mubr.bf16.mxu1 %v15643_v44  ;;  %6777 = vmatpush1.bf16.msra.mxu1 %v12372_v55  ;;  %v12452_v55 = vld [vmem:[%s17748_s3 + $0xbe4] ss:$16 sps:$4 sm:$0xff]  }
 0x2ee   : > { %7326 = vmatmul.mubr.bf16.gmra.mrb[100].mxu0 %v15441_v2  ;;  %6778 = vmatprep.subr.bf16.mxu1 %v12380_v50  ;;  %v12389_v2 = vld [vmem:[%s17748_s3 + $0xa8c] ss:$16 sps:$4 sm:$0xff]   ;;  %v12450_v50 = vld [vmem:[%s17748_s3 + $0xbe0] ss:$16 sps:$4 sm:$0xff]  }
 0x2ef   : > { %7335 = vmatprep.mubr.bf16.mxu0 %v15643_v44  ;;  %7361 = vmatpush1.bf16.msra.mxu0 %v12375_v36  ;;  %v12384_v44 = vld [vmem:[%s17748_s3 + $0xa80] ss:$16 sps:$4 sm:$0xff]   ;;  %v12455_v36 = vld [vmem:[%s17748_s3 + $0xbec] ss:$16 sps:$4 sm:$0xff]  }
 0x2f0   : > { %7362 = vmatprep.subr.bf16.mxu0 %v12383_v23  ;;  %v12453_v23 = vld [vmem:[%s17748_s3 + $0xbe8] ss:$16 sps:$4 sm:$0xff]  }
 0x2f1   : > { %6779 = vmatpush1.bf16.msra.mxu1 %v12378_v18  ;;  %v12458_v18 = vld [vmem:[%s17748_s3 + $0xc04] ss:$16 sps:$4 sm:$0xff]  }
 0x2f2   : > { %6780 = vmatprep.subr.bf16.mxu1 %v12386_v28  ;;  %v12456_v28 = vld [vmem:[%s17748_s3 + $0xc00] ss:$16 sps:$4 sm:$0xff]  }
 0x2f3   : > { %7363 = vmatpush1.bf16.msra.mxu0 %v12381_v60  ;;  %v12461_v60 = vld [vmem:[%s17748_s3 + $0xc0c] ss:$16 sps:$4 sm:$0xff]  }
 0x2f4   : > { %6752 = vmatmul.mubr.bf16.gmra.mrb[56].mxu1 %v15536_v53  ;;  %7364 = vmatprep.subr.bf16.mxu0 %v12389_v2  ;;  %v12459_v2 = vld [vmem:[%s17748_s3 + $0xc08] ss:$16 sps:$4 sm:$0xff]  }
 0x2f5   : > { %6761 = vmatprep.mubr.bf16.mxu1 %v15691_v4  ;;  %6781 = vmatpush1.bf16.msra.mxu1 %v12384_v44  ;;  %v12464_v44 = vld [vmem:[%s17748_s3 + $0xc24] ss:$16 sps:$4 sm:$0xff]  }
 0x2f6   : > { %7336 = vmatmul.mubr.bf16.gmra.mrb[104].mxu0 %v15536_v53  ;;  %6782 = vmatprep.subr.bf16.mxu1 %v12392_v54  ;;  %v12401_v53 = vld [vmem:[%s17748_s3 + $0xacc] ss:$16 sps:$4 sm:$0xff]   ;;  %v12462_v54 = vld [vmem:[%s17748_s3 + $0xc20] ss:$16 sps:$4 sm:$0xff]  }
 0x2f7   : > { %7345 = vmatprep.mubr.bf16.mxu0 %v15691_v4  ;;  %7365 = vmatpush1.bf16.msra.mxu0 %v12387_v45  ;;  %v12396_v4 = vld [vmem:[%s17748_s3 + $0xac0] ss:$16 sps:$4 sm:$0xff]   ;;  %v12467_v45 = vld [vmem:[%s17748_s3 + $0xc2c] ss:$16 sps:$4 sm:$0xff]  }
 0x2f8   : > { %7366 = vmatprep.subr.bf16.mxu0 %v12395_v47  ;;  %v12465_v47 = vld [vmem:[%s17748_s3 + $0xc28] ss:$16 sps:$4 sm:$0xff]  }
 0x2f9   : > { %6783 = vmatpush1.bf16.msra.mxu1 %v12390_v59  ;;  %v12470_v59 = vld [vmem:[%s17748_s3 + $0xc44] ss:$16 sps:$4 sm:$0xff]  }
 0x2fa   : > { %6784 = vmatprep.subr.bf16.mxu1 %v12398_v12  ;;  %v12476_v12 = vld [vmem:[%s17748_s3 + $0xc64] ss:$16 sps:$4 sm:$0xff]  }
 0x2fb   : > { %7367 = vmatpush1.bf16.msra.mxu0 %v12393_v33  ;;  %v12471_v33 = vld [vmem:[%s17748_s3 + $0xc48] ss:$16 sps:$4 sm:$0xff]  }
 0x2fc   : > { %6762 = vmatmul.mubr.bf16.gmra.mrb[60].mxu1 %v15616_v15  ;;  %7368 = vmatprep.subr.bf16.mxu0 %v12401_v53  ;;  %v12479_v53 = vld [vmem:[%s17748_s3 + $0xc6c] ss:$16 sps:$4 sm:$0xff]  }
 0x2fd   : > { %6804 = vmatprep.mubr.bf16.mxu1 %v15658_v7  ;;  %6785 = vmatpush1.bf16.msra.mxu1 %v12396_v4  ;;  %v12474_v4 = vld [vmem:[%s17748_s3 + $0xc60] ss:$16 sps:$4 sm:$0xff]  }
 0x2fe   : > { %7346 = vmatmul.mubr.bf16.gmra.mrb[108].mxu0 %v15616_v15  ;;  %6786 = vmatprep.subr.bf16.mxu1 %v12404_v32  ;;  %v12413_v15 = vld [vmem:[%s17748_s3 + $0xb0c] ss:$16 sps:$4 sm:$0xff]   ;;  %v12482_v32 = vld [vmem:[%s17748_s3 + $0xc84] ss:$16 sps:$4 sm:$0xff]  }
 0x2ff   : > { %7388 = vmatprep.mubr.bf16.mxu0 %v15658_v7  ;;  %7369 = vmatpush1.bf16.msra.mxu0 %v12399_v16  ;;  %v12408_v7 = vld [vmem:[%s17748_s3 + $0xb00] ss:$16 sps:$4 sm:$0xff]   ;;  %v12477_v16 = vld [vmem:[%s17748_s3 + $0xc68] ss:$16 sps:$4 sm:$0xff]  }
 0x300   : > { %7370 = vmatprep.subr.bf16.mxu0 %v12407_v43  ;;  %v12483_v43 = vld [vmem:[%s17748_s3 + $0xc88] ss:$16 sps:$4 sm:$0xff]  }
 0x301   : > { %6787 = vmatpush1.bf16.msra.mxu1 %v12402_v20  ;;  %v12488_v20 = vld [vmem:[%s17748_s3 + $0xca4] ss:$16 sps:$4 sm:$0xff]  }
 0x302   : > { %6788 = vmatprep.subr.bf16.mxu1 %v12410_v48  ;;  %v18075_v48 = vld [vmem:[#allocation33_spill] sm:$0xff] }
 0x303   : > { %7371 = vmatpush1.bf16.msra.mxu0 %v12405_v39  ;;  %v18074_v39 = vld [vmem:[#allocation32_spill] sm:$0xff] }
 0x304   : > { %7372 = vmatprep.subr.bf16.mxu0 %v12413_v15  ;;  %v10645_v15 = vcombine.low %v18075_v48, %v18074_v39  ;;  %v12552_v39 = vld [vmem:[%s17748_s3 + $0xe00] ss:$16 sps:$4 sm:$0xff]   ;;  %v12555_v48 = vld [vmem:[%s17748_s3 + $0xe08] ss:$16 sps:$4 sm:$0xff]  }
 0x305   : > { %6789 = vmatpush1.bf16.msra.mxu1 %v12408_v7  ;;  %v12491_v7 = vld [vmem:[%s17748_s3 + $0xcac] ss:$16 sps:$4 sm:$0xff]  }
 0x306   : > { %6790 = vmatprep.subr.bf16.mxu1 %v12416_v38  ;;  %v12489_v38 = vld [vmem:[%s17748_s3 + $0xca8] ss:$16 sps:$4 sm:$0xff]  }
 0x307   : > { %7373 = vmatpush1.bf16.msra.mxu0 %v12411_v14  ;;  %v12486_v14 = vld [vmem:[%s17748_s3 + $0xca0] ss:$16 sps:$4 sm:$0xff]  }
 0x308   : > { %7374 = vmatprep.subr.bf16.mxu0 %v12419_v6  ;;  %v12494_v6 = vld [vmem:[%s17748_s3 + $0xcc4] ss:$16 sps:$4 sm:$0xff]  }
 0x309   : > { %6791 = vmatpush1.bf16.msra.mxu1 %v12414_v13  ;;  %v18076_v13 = vld [vmem:[#allocation34_spill] sm:$0xff] }
 0x30a   : > { %6792 = vmatprep.subr.bf16.mxu1 %v12422_v37  ;;  %v12492_v37 = vld [vmem:[%s17748_s3 + $0xcc0] ss:$16 sps:$4 sm:$0xff]  }
 0x30b   : > { %7375 = vmatpush1.bf16.msra.mxu0 %v12417_v62  ;;  %v12497_v62 = vld [vmem:[%s17748_s3 + $0xccc] ss:$16 sps:$4 sm:$0xff]  }
 0x30c   : > { %7376 = vmatprep.subr.bf16.mxu0 %v12425_v22  ;;  %v12495_v22 = vld [vmem:[%s17748_s3 + $0xcc8] ss:$16 sps:$4 sm:$0xff]  }
 0x30d   : > { %6793 = vmatpush1.bf16.msra.mxu1 %v12420_v1 }
 0x30e   : > { %6794 = vmatprep.subr.bf16.mxu1 %v12428_v29  ;;  %v12503_v29 = vld [vmem:[%s17748_s3 + $0xcec] ss:$16 sps:$4 sm:$0xff]  }
 0x30f   : > { %7377 = vmatpush1.bf16.msra.mxu0 %v12423_v5  ;;  %v12500_v5 = vld [vmem:[%s17748_s3 + $0xce4] ss:$16 sps:$4 sm:$0xff]  }
 0x310   : > { %7378 = vmatprep.subr.bf16.mxu0 %v12431_v25  ;;  %v12498_v25 = vld [vmem:[%s17748_s3 + $0xce0] ss:$16 sps:$4 sm:$0xff]  }
 0x311   : > { %6795 = vmatpush1.bf16.msra.mxu1 %v12426_v8  ;;  %v12501_v8 = vld [vmem:[%s17748_s3 + $0xce8] ss:$16 sps:$4 sm:$0xff]  }
 0x312   : > { %6796 = vmatprep.subr.bf16.mxu1 %v12434_v26  ;;  %v12504_v26 = vld [vmem:[%s17748_s3 + $0xd00] ss:$16 sps:$4 sm:$0xff]  }
 0x313   : > { %7379 = vmatpush1.bf16.msra.mxu0 %v12429_v63  ;;  %v12506_v63 = vld [vmem:[%s17748_s3 + $0xd04] ss:$16 sps:$4 sm:$0xff]  }
 0x314   : > { %7380 = vmatprep.subr.bf16.mxu0 %v12437_v56  ;;  %v12507_v56 = vld [vmem:[%s17748_s3 + $0xd08] ss:$16 sps:$4 sm:$0xff]  }
 0x315   : > { %6797 = vmatpush1.bf16.msra.mxu1 %v12432_v61  ;;  %v12512_v61 = vld [vmem:[%s17748_s3 + $0xd24] ss:$16 sps:$4 sm:$0xff]  }
 0x316   : > { %6798 = vmatprep.subr.bf16.mxu1 %v12440_v3  ;;  %v12510_v3 = vld [vmem:[%s17748_s3 + $0xd20] ss:$16 sps:$4 sm:$0xff]  }
 0x317   : > { %7381 = vmatpush1.bf16.msra.mxu0 %v12435_v52  ;;  %v12515_v52 = vld [vmem:[%s17748_s3 + $0xd2c] ss:$16 sps:$4 sm:$0xff]  }
 0x318   : > { %7382 = vmatprep.subr.bf16.mxu0 %v12443_v42  ;;  %v12513_v42 = vld [vmem:[%s17748_s3 + $0xd28] ss:$16 sps:$4 sm:$0xff]  }
 0x319   : > { %6799 = vmatpush1.bf16.msra.mxu1 %v12438_v49  ;;  %v12518_v49 = vld [vmem:[%s17748_s3 + $0xd44] ss:$16 sps:$4 sm:$0xff]  }
 0x31a   : > { %6800 = vmatprep.subr.bf16.mxu1 %v12446_v34  ;;  %v12516_v34 = vld [vmem:[%s17748_s3 + $0xd40] ss:$16 sps:$4 sm:$0xff]  }
 0x31b   : > { %7383 = vmatpush1.bf16.msra.mxu0 %v12441_v46  ;;  %v12521_v46 = vld [vmem:[%s17748_s3 + $0xd4c] ss:$16 sps:$4 sm:$0xff]  }
 0x31c   : > { %7384 = vmatprep.subr.bf16.mxu0 %v12449_v11  ;;  %v12519_v11 = vld [vmem:[%s17748_s3 + $0xd48] ss:$16 sps:$4 sm:$0xff]  }
 0x31d   : > { %6801 = vmatpush1.bf16.msra.mxu1 %v12444_v58  ;;  %v12524_v58 = vld [vmem:[%s17748_s3 + $0xd64] ss:$16 sps:$4 sm:$0xff]  }
 0x31e   : > { %6802 = vmatprep.subr.bf16.mxu1 %v12452_v55  ;;  %v12522_v55 = vld [vmem:[%s17748_s3 + $0xd60] ss:$16 sps:$4 sm:$0xff]  }
 0x31f   : > { %7385 = vmatpush1.bf16.msra.mxu0 %v12447_v9  ;;  %v12527_v9 = vld [vmem:[%s17748_s3 + $0xd6c] ss:$16 sps:$4 sm:$0xff]  }
 0x320   : > { %7386 = vmatprep.subr.bf16.mxu0 %v12455_v36  ;;  %v12525_v36 = vld [vmem:[%s17748_s3 + $0xd68] ss:$16 sps:$4 sm:$0xff]  }
 0x321   : > { %6803 = vmatpush1.bf16.msra.mxu1 %v12450_v50  ;;  %v12530_v50 = vld [vmem:[%s17748_s3 + $0xd84] ss:$16 sps:$4 sm:$0xff]  }
 0x322   : > { %6845 = vmatprep.subr.bf16.mxu1 %v12458_v18  ;;  %v12528_v18 = vld [vmem:[%s17748_s3 + $0xd80] ss:$16 sps:$4 sm:$0xff]  }
 0x323   : > { %7387 = vmatpush1.bf16.msra.mxu0 %v12453_v23  ;;  %v12533_v23 = vld [vmem:[%s17748_s3 + $0xd8c] ss:$16 sps:$4 sm:$0xff]  }
 0x324   : > { %7429 = vmatprep.subr.bf16.mxu0 %v12461_v60  ;;  %6805 = vmatmul.mubr.bf16.vlgmr.msra.gmra.mrb[48].mxu1 %v15512_v51  ;;  %v12531_v60 = vld [vmem:[%s17748_s3 + $0xd88] ss:$16 sps:$4 sm:$0xff]  }
 0x325   : > { %6814 = vmatprep.mubr.bf16.mxu1 %v15677_v41  ;;  %6846 = vmatpush1.bf16.msra.mxu1 %v12456_v28  ;;  %v12536_v28 = vld [vmem:[%s17748_s3 + $0xda4] ss:$16 sps:$4 sm:$0xff]  }
 0x326   : > { %7389 = vmatmul.mubr.bf16.vlgmr.msra.gmra.mrb[96].mxu0 %v15512_v51  ;;  %6847 = vmatprep.subr.bf16.mxu1 %v12464_v44  ;;  %v12473_v51 = vld [vmem:[%s17748_s3 + $0xc4c] ss:$16 sps:$4 sm:$0xff]   ;;  %v12534_v44 = vld [vmem:[%s17748_s3 + $0xda0] ss:$16 sps:$4 sm:$0xff]  }
 0x327   : > { %7398 = vmatprep.mubr.bf16.mxu0 %v15677_v41  ;;  %7430 = vmatpush1.bf16.msra.mxu0 %v12459_v2  ;;  %v12468_v41 = vld [vmem:[%s17748_s3 + $0xc40] ss:$16 sps:$4 sm:$0xff]   ;;  %v12539_v2 = vld [vmem:[%s17748_s3 + $0xdac] ss:$16 sps:$4 sm:$0xff]  }
 0x328   : > { %7431 = vmatprep.subr.bf16.mxu0 %v12467_v45  ;;  %v12537_v45 = vld [vmem:[%s17748_s3 + $0xda8] ss:$16 sps:$4 sm:$0xff]  }
 0x329   : > { %6848 = vmatpush1.bf16.msra.mxu1 %v12462_v54  ;;  %v12542_v54 = vld [vmem:[%s17748_s3 + $0xdc4] ss:$16 sps:$4 sm:$0xff]  }
 0x32a   : > { %6849 = vmatprep.subr.bf16.mxu1 %v12470_v59  ;;  %v12540_v59 = vld [vmem:[%s17748_s3 + $0xdc0] ss:$16 sps:$4 sm:$0xff]  }
 0x32b   : > { %7432 = vmatpush1.bf16.msra.mxu0 %v12465_v47  ;;  %v12545_v47 = vld [vmem:[%s17748_s3 + $0xdcc] ss:$16 sps:$4 sm:$0xff]  }
 0x32c   : > { %6815 = vmatmul.mubr.bf16.gmra.mrb[52].mxu1 %v15650_v24  ;;  %7433 = vmatprep.subr.bf16.mxu0 %v12473_v51  ;;  %v12543_v51 = vld [vmem:[%s17748_s3 + $0xdc8] ss:$16 sps:$4 sm:$0xff]  }
 0x32d   : > { %6824 = vmatprep.mubr.bf16.mxu1 %v15699_v19  ;;  %6850 = vmatpush1.bf16.msra.mxu1 %v12468_v41  ;;  %v12548_v41 = vld [vmem:[%s17748_s3 + $0xde4] ss:$16 sps:$4 sm:$0xff]  }
 0x32e   : > { %7399 = vmatmul.mubr.bf16.gmra.mrb[100].mxu0 %v15650_v24  ;;  %6851 = vmatprep.subr.bf16.mxu1 %v12476_v12  ;;  %v12485_v24 = vld [vmem:[%s17748_s3 + $0xc8c] ss:$16 sps:$4 sm:$0xff]   ;;  %v18077_v12 = vld [vmem:[#allocation40_spill] sm:$0xff] }
 0x32f   : > { %7408 = vmatprep.mubr.bf16.mxu0 %v15699_v19  ;;  %7434 = vmatpush1.bf16.msra.mxu0 %v12471_v33  ;;  %v12480_v19 = vld [vmem:[%s17748_s3 + $0xc80] ss:$16 sps:$4 sm:$0xff]   ;;  %v12551_v33 = vld [vmem:[%s17748_s3 + $0xdec] ss:$16 sps:$4 sm:$0xff]  }
 0x330   : > { %7435 = vmatprep.subr.bf16.mxu0 %v12479_v53  ;;  %v10647_v53 = vcombine.low %v14423_v40, %v18077_v12  ;;  %v12557_v40 = vld [vmem:[%s17748_s3 + $0xe0c] ss:$16 sps:$4 sm:$0xff]  }
 0x331   : > { %6852 = vmatpush1.bf16.msra.mxu1 %v12474_v4  ;;  %v12546_v4 = vld [vmem:[%s17748_s3 + $0xde0] ss:$16 sps:$4 sm:$0xff]  }
 0x332   : > { %6853 = vmatprep.subr.bf16.mxu1 %v12482_v32  ;;  %v12554_v32 = vld [vmem:[%s17748_s3 + $0xe04] ss:$16 sps:$4 sm:$0xff]  }
 0x333   : > { %7436 = vmatpush1.bf16.msra.mxu0 %v12477_v16  ;;  %v12549_v16 = vld [vmem:[%s17748_s3 + $0xde8] ss:$16 sps:$4 sm:$0xff]  }
 0x334   : > { %6825 = vmatmul.mubr.bf16.gmra.mrb[56].mxu1 %v15674_v0  ;;  %7437 = vmatprep.subr.bf16.mxu0 %v12485_v24  ;;  %v3398_v24 = vrot.slane %v10647_v53, %v17909_v27  ;;  %v12597_v53 = vld [vmem:[%s17748_s3 + $0xee8] ss:$16 sps:$4 sm:$0xff]  }
 0x335   : > { %6834 = vmatprep.mubr.bf16.mxu1 %v15701_v17  ;;  %6854 = vmatpush1.bf16.msra.mxu1 %v12480_v19  ;;  %v18078_v19 = vld [vmem:[#allocation7_spill] sm:$0xff] }
 0x336   : > { %7409 = vmatmul.mubr.bf16.gmra.mrb[104].mxu0 %v15674_v0  ;;  %6855 = vmatprep.subr.bf16.mxu1 %v12488_v20  ;;  %v16434_v0 = vrot.slane %v10645_v15, %v17909_v27 }
 0x337   : > { %7418 = vmatprep.mubr.bf16.mxu0 %v15701_v17  ;;  %7438 = vmatpush1.bf16.msra.mxu0 %v12483_v43  ;;  %v16438_v17 = vrot.slane %v18076_v13, %v17909_v27  ;;  %v3412_v43 = vrot.slane %v18078_v19, %v17909_v27  ;;  %v12561_v13 = vld [vmem:[%s17748_s3 + $0xe28] ss:$16 sps:$4 sm:$0xff]  }
 0x338   : > { %7439 = vmatprep.subr.bf16.mxu0 %v12491_v7  ;;  %v12560_v7 = vld [vmem:[%s17748_s3 + $0xe24] ss:$16 sps:$4 sm:$0xff]  }
 0x339   : > { %6856 = vmatpush1.bf16.msra.mxu1 %v12486_v14  ;;  %v3386_v1 = vcombine.high %v16434_v0, %v16438_v17  ;;  %v3385_v20 = vcombine.low %v16434_v0, %v16438_v17  ;;  %v3421_v15 = vcombine.high %v3398_v24, %v3412_v43  ;;  %v18079_v14 = vld [vmem:[#allocation23_spill] sm:$0xff]  ;;  %v12558_v0 = vld [vmem:[%s17748_s3 + $0xe20] ss:$16 sps:$4 sm:$0xff]  }
 0x33a   : > { %6857 = vmatprep.subr.bf16.mxu1 %v12494_v6  ;;  %v12563_v6 = vld [vmem:[%s17748_s3 + $0xe2c] ss:$16 sps:$4 sm:$0xff]  }
 0x33b   : > { %7440 = vmatpush1.bf16.msra.mxu0 %v12489_v38  ;;  %v10649_v38 = vcombine.low %v14559_v31, %v18079_v14  ;;  %v12566_v31 = vld [vmem:[%s17748_s3 + $0xe44] ss:$16 sps:$4 sm:$0xff]  }
 0x33c   : > { %6835 = vmatmul.mubr.bf16.gmra.mrb[60].mxu1 %v15694_v21  ;;  %7441 = vmatprep.subr.bf16.mxu0 %v12497_v62  ;;  %v18080_v62 = vld [vmem:[#allocation24_spill] sm:$0xff] }
 0x33d   : > { %6877 = vmatprep.mubr.bf16.mxu1 %v3386_v1  ;;  %6858 = vmatpush1.bf16.msra.mxu1 %v12492_v37  ;;  %v3433_v17 = vrot.slane %v10649_v38, %v17909_v27  ;;  %v3447_v37 = vrot.slane %v18080_v62, %v17909_v27  ;;  %v18089_v38 = vld [vmem:[#allocation13_spill] sm:$0xff] }
 0x33e   : > { %7419 = vmatmul.mubr.bf16.gmra.mrb[108].mxu0 %v15694_v21  ;;  %6859 = vmatprep.subr.bf16.mxu1 %v12500_v5  ;;  %v12509_v21 = vld [vmem:[%s17748_s3 + $0xd0c] ss:$16 sps:$4 sm:$0xff]   ;;  %v12564_v5 = vld [vmem:[%s17748_s3 + $0xe40] ss:$16 sps:$4 sm:$0xff]  }
 0x33f   : > { %7461 = vmatprep.mubr.bf16.mxu0 %v3386_v1  ;;  %7442 = vmatpush1.bf16.msra.mxu0 %v12495_v22  ;;  %v12569_v22 = vld [vmem:[%s17748_s3 + $0xe4c] ss:$16 sps:$4 sm:$0xff]   ;;  %v3420_v1 = vcombine.low %v3398_v24, %v3412_v43  ;;  %v12600_v43 = vld [vmem:[%s17750_s5] ss:$16 sps:$4 sm:$0xff]  }
 0x340   : > { %7443 = vmatprep.subr.bf16.mxu0 %v12503_v29  ;;  %v12567_v29 = vld [vmem:[%s17748_s3 + $0xe48] ss:$16 sps:$4 sm:$0xff]  }
 0x341   : > { %6860 = vmatpush1.bf16.msra.mxu1 %v12498_v25  ;;  %v3456_v25 = vcombine.high %v3433_v17, %v3447_v37  ;;  %v18086_v24 = vld [vmem:[#allocation39_spill] sm:$0xff] }
 0x342   : > { %6861 = vmatprep.subr.bf16.mxu1 %v12506_v63  ;;  %v18081_v63 = vld [vmem:[#allocation16_spill] sm:$0xff]  ;;  %v10648_v19 = vcombine.high %v18086_v24, %v14465_v30  ;;  %v18087_v30 = vld [vmem:[#allocation11_spill] sm:$0xff] }
 0x343   : > { %7444 = vmatpush1.bf16.msra.mxu0 %v12501_v8  ;;  %v12572_v8 = vld [vmem:[%s17748_s3 + $0xe64] ss:$16 sps:$4 sm:$0xff]   ;;  %v12669_v24 = vld [vmem:[%s17750_s5 + $0x168] ss:$16 sps:$4 sm:$0xff]  }
 0x344   : > { %7445 = vmatprep.subr.bf16.mxu0 %v12509_v21  ;;  %v10651_v21 = vcombine.low %v18020_v35, %v18081_v63  ;;  %v12573_v35 = vld [vmem:[%s17748_s3 + $0xe68] ss:$16 sps:$4 sm:$0xff]  }
 0x345   : > { %6862 = vmatpush1.bf16.msra.mxu1 %v12504_v26  ;;  %v12575_v26 = vld [vmem:[%s17748_s3 + $0xe6c] ss:$16 sps:$4 sm:$0xff]   ;;  %v12615_v63 = vld [vmem:[%s17750_s5 + $0x48] ss:$16 sps:$4 sm:$0xff]  }
 0x346   : > { %6863 = vmatprep.subr.bf16.mxu1 %v12512_v61  ;;  %v12578_v61 = vld [vmem:[%s17748_s3 + $0xe84] ss:$16 sps:$4 sm:$0xff]  }
 0x347   : > { %7446 = vmatpush1.bf16.msra.mxu0 %v12507_v56  ;;  %v12570_v56 = vld [vmem:[%s17748_s3 + $0xe60] ss:$16 sps:$4 sm:$0xff]  }
 0x348   : > { %7447 = vmatprep.subr.bf16.mxu0 %v12515_v52  ;;  %v3468_v52 = vrot.slane %v10651_v21, %v17909_v27  ;;  %v12617_v21 = vld [vmem:[%s17750_s5 + $0x4c] ss:$16 sps:$4 sm:$0xff]  }
 0x349   : > { %6864 = vmatpush1.bf16.msra.mxu1 %v12510_v3  ;;  %v18082_v3 = vld [vmem:[#allocation30_spill] sm:$0xff] }
 0x34a   : > { %6865 = vmatprep.subr.bf16.mxu1 %v12518_v49  ;;  %v12581_v49 = vld [vmem:[%s17748_s3 + $0xe8c] ss:$16 sps:$4 sm:$0xff]  }
 0x34b   : > { %7448 = vmatpush1.bf16.msra.mxu0 %v12513_v42  ;;  %v3482_v42 = vrot.slane %v18082_v3, %v17909_v27  ;;  %v12626_v3 = vld [vmem:[%s17750_s5 + $0x84] ss:$16 sps:$4 sm:$0xff]  }
 0x34c   : > { %7449 = vmatprep.subr.bf16.mxu0 %v12521_v46  ;;  %v3455_v46 = vcombine.low %v3433_v17, %v3447_v37 }
 0x34d   : > { %6866 = vmatpush1.bf16.msra.mxu1 %v12516_v34  ;;  %v12576_v34 = vld [vmem:[%s17748_s3 + $0xe80] ss:$16 sps:$4 sm:$0xff]  }
 0x34e   : > { %6867 = vmatprep.subr.bf16.mxu1 %v12524_v58  ;;  %v3491_v58 = vcombine.high %v3468_v52, %v3482_v42 }
 0x34f   : > { %7450 = vmatpush1.bf16.msra.mxu0 %v12519_v11  ;;  %v12579_v11 = vld [vmem:[%s17748_s3 + $0xe88] ss:$16 sps:$4 sm:$0xff]  }
 0x350   : > { %7451 = vmatprep.subr.bf16.mxu0 %v12527_v9  ;;  %v12584_v9 = vld [vmem:[%s17748_s3 + $0xea4] ss:$16 sps:$4 sm:$0xff]  }
 0x351   : > { %6868 = vmatpush1.bf16.msra.mxu1 %v12522_v55  ;;  %v12587_v55 = vld [vmem:[%s17748_s3 + $0xeac] ss:$16 sps:$4 sm:$0xff]  }
 0x352   : > { %6869 = vmatprep.subr.bf16.mxu1 %v12530_v50  ;;  %v12585_v50 = vld [vmem:[%s17748_s3 + $0xea8] ss:$16 sps:$4 sm:$0xff]  }
 0x353   : > { %7452 = vmatpush1.bf16.msra.mxu0 %v12525_v36  ;;  %v12582_v36 = vld [vmem:[%s17748_s3 + $0xea0] ss:$16 sps:$4 sm:$0xff]  }
 0x354   : > { %7453 = vmatprep.subr.bf16.mxu0 %v12533_v23  ;;  %v12590_v23 = vld [vmem:[%s17748_s3 + $0xec4] ss:$16 sps:$4 sm:$0xff]  }
 0x355   : > { %6870 = vmatpush1.bf16.msra.mxu1 %v12528_v18  ;;  %v12593_v18 = vld [vmem:[%s17748_s3 + $0xecc] ss:$16 sps:$4 sm:$0xff]  }
 0x356   : > { %6871 = vmatprep.subr.bf16.mxu1 %v12536_v28  ;;  %v12588_v28 = vld [vmem:[%s17748_s3 + $0xec0] ss:$16 sps:$4 sm:$0xff]  }
 0x357   : > { %7454 = vmatpush1.bf16.msra.mxu0 %v12531_v60  ;;  %v3490_v60 = vcombine.low %v3468_v52, %v3482_v42  ;;  %v12624_v52 = vld [vmem:[%s17750_s5 + $0x80] ss:$16 sps:$4 sm:$0xff]   ;;  %v12627_v42 = vld [vmem:[%s17750_s5 + $0x88] ss:$16 sps:$4 sm:$0xff]  }
 0x358   : > { %7455 = vmatprep.subr.bf16.mxu0 %v12539_v2  ;;  %v12591_v2 = vld [vmem:[%s17748_s3 + $0xec8] ss:$16 sps:$4 sm:$0xff]  }
 0x359   : > { %6872 = vmatpush1.bf16.msra.mxu1 %v12534_v44  ;;  %v12596_v44 = vld [vmem:[%s17748_s3 + $0xee4] ss:$16 sps:$4 sm:$0xff]  }
 0x35a   : > { %6873 = vmatprep.subr.bf16.mxu1 %v12542_v54  ;;  %v13081_v54 = vmov 0  }
 0x35b   : > { %7456 = vmatpush1.bf16.msra.mxu0 %v12537_v45  ;;  %v12599_v45 = vld [vmem:[%s17748_s3 + $0xeec] ss:$16 sps:$4 sm:$0xff]  }
 0x35c   : > { %7457 = vmatprep.subr.bf16.mxu0 %v12545_v47  ;;  %v18083_v47 = vld [vmem:[#allocation10_spill] sm:$0xff] }
 0x35d   : > { %6874 = vmatpush1.bf16.msra.mxu1 %v12540_v59  ;;  %v18084_v59 = vld [vmem:[#allocation29_spill] sm:$0xff] }
 0x35e   : > { %6875 = vmatprep.subr.bf16.mxu1 %v12548_v41  ;;  %v12594_v41 = vld [vmem:[%s17748_s3 + $0xee0] ss:$16 sps:$4 sm:$0xff]  }
 0x35f   : > { %7458 = vmatpush1.bf16.msra.mxu0 %v12543_v51  ;;  %v10646_v51 = vcombine.high %v18084_v59, %v18083_v47  ;;  %v12656_v47 = vld [vmem:[%s17750_s5 + $0x124] ss:$16 sps:$4 sm:$0xff]   ;;  %v12659_v59 = vld [vmem:[%s17750_s5 + $0x12c] ss:$16 sps:$4 sm:$0xff]  }
 0x360   : > { %7459 = vmatprep.subr.bf16.mxu0 %v12551_v33  ;;  %v18085_v33 = vld [vmem:[#allocation22_spill] sm:$0xff] }
 0x361   : > { %6876 = vmatpush1.bf16.msra.mxu1 %v12546_v4  ;;  %v3384_v12 = vrot.slane %v18085_v33, %v17909_v27  ;;  %v12602_v4 = vld [vmem:[%s17750_s5 + $0x4] ss:$16 sps:$4 sm:$0xff]  }
 0x362   : > { %6918 = vmatprep.subr.bf16.mxu1 %v12554_v32  ;;  %v3370_v32 = vrot.slane %v10646_v51, %v17909_v27  ;;  %v12654_v51 = vld [vmem:[%s17750_s5 + $0x120] ss:$16 sps:$4 sm:$0xff]   ;;  %v12662_v33 = vld [vmem:[%s17750_s5 + $0x144] ss:$16 sps:$4 sm:$0xff]  }
 0x363   : > { %7460 = vmatpush1.bf16.msra.mxu0 %v12549_v16  ;;  %v12605_v16 = vld [vmem:[%s17750_s5 + $0xc] ss:$16 sps:$4 sm:$0xff]  }
 0x364   : > { %7502 = vmatprep.subr.bf16.mxu0 %v12557_v40  ;;  %6878 = vmatmul.mubr.bf16.vlgmr.msra.gmra.mrb[48].mxu1 %v3385_v20  ;;  %v3387_v40 = vcombine.low %v3370_v32, %v3384_v12  ;;  %v12665_v12 = vld [vmem:[%s17750_s5 + $0x14c] ss:$16 sps:$4 sm:$0xff]  }
 0x365   : > { %6887 = vmatprep.mubr.bf16.mxu1 %v3421_v15  ;;  %6919 = vmatpush1.bf16.msra.mxu1 %v12552_v39  ;;  %v3405_v39 = vrot.slane %v10648_v19, %v17909_v27  ;;  %v12671_v32 = vld [vmem:[%s17750_s5 + $0x16c] ss:$16 sps:$4 sm:$0xff]   ;;  %v12674_v19 = vld [vmem:[%s17750_s5 + $0x184] ss:$16 sps:$4 sm:$0xff]  }
 0x366   : > { %7462 = vmatmul.mubr.bf16.vlgmr.msra.gmra.mrb[96].mxu0 %v3385_v20  ;;  %6920 = vmatprep.subr.bf16.mxu1 %v12560_v7  ;;  %v12603_v20 = vld [vmem:[%s17750_s5 + $0x8] ss:$16 sps:$4 sm:$0xff]   ;;  %v18088_v7 = vld [vmem:[#allocation12_spill] sm:$0xff] }
 0x367   : > { %7471 = vmatprep.mubr.bf16.mxu0 %v3421_v15  ;;  %7503 = vmatpush1.bf16.msra.mxu0 %v12555_v48  ;;  %v3419_v48 = vrot.slane %v18087_v30, %v17909_v27  ;;  %v10650_v14 = vcombine.high %v18088_v7, %v14563_v57  ;;  %v18091_v57 = vld [vmem:[#allocation17_spill] sm:$0xff]  ;;  %v12680_v30 = vld [vmem:[%s17750_s5 + $0x1a4] ss:$16 sps:$4 sm:$0xff]  }
 0x368   : > { %7504 = vmatprep.subr.bf16.mxu0 %v12563_v6  ;;  %v3454_v6 = vrot.slane %v18089_v38, %v17909_v27  ;;  %v3489_v37 = vrot.slane %v18091_v57, %v17909_v27  ;;  %v12681_v7 = vld [vmem:[%s17750_s5 + $0x1a8] ss:$16 sps:$4 sm:$0xff]   ;;  %v12689_v38 = vld [vmem:[%s17750_s5 + $0x1cc] ss:$16 sps:$4 sm:$0xff]   ;;  %v12698_v57 = vld [vmem:[%s17750_s5 + $0x204] ss:$16 sps:$4 sm:$0xff]  }
 0x369   : > { %6921 = vmatpush1.bf16.msra.mxu1 %v12558_v0  ;;  %v3422_v15 = vcombine.low %v3405_v39, %v3419_v48  ;;  %v3440_v0 = vrot.slane %v10650_v14, %v17909_v27  ;;  %v12675_v39 = vld [vmem:[%s17750_s5 + $0x188] ss:$16 sps:$4 sm:$0xff]   ;;  %v12683_v48 = vld [vmem:[%s17750_s5 + $0x1ac] ss:$16 sps:$4 sm:$0xff]   ;;  %v12686_v14 = vld [vmem:[%s17750_s5 + $0x1c4] ss:$16 sps:$4 sm:$0xff]  }
 0x36a   : > { %6922 = vmatprep.subr.bf16.mxu1 %v12566_v31  ;;  %v18090_v31 = vld [vmem:[#allocation25_spill] sm:$0xff] }
 0x36b   : > { %7505 = vmatpush1.bf16.msra.mxu0 %v12561_v13  ;;  %v3457_v13 = vcombine.low %v3440_v0, %v3454_v6  ;;  %v10652_v17 = vcombine.high %v18090_v31, %v14763_v10  ;;  %v12608_v10 = vld [vmem:[%s17750_s5 + $0x24] ss:$16 sps:$4 sm:$0xff]   ;;  %v12684_v6 = vld [vmem:[%s17750_s5 + $0x1c0] ss:$16 sps:$4 sm:$0xff]   ;;  %v12687_v0 = vld [vmem:[%s17750_s5 + $0x1c8] ss:$16 sps:$4 sm:$0xff]  }
 0x36c   : > { %6888 = vmatmul.mubr.bf16.gmra.mrb[52].mxu1 %v3420_v1  ;;  %7506 = vmatprep.subr.bf16.mxu0 %v12569_v22  ;;  %v12695_v31 = vld [vmem:[%s17750_s5 + $0x1ec] ss:$16 sps:$4 sm:$0xff]  }
 0x36d   : > { %6897 = vmatprep.mubr.bf16.mxu1 %v3456_v25  ;;  %6923 = vmatpush1.bf16.msra.mxu1 %v12564_v5  ;;  %v3475_v62 = vrot.slane %v10652_v17, %v17909_v27  ;;  %v12609_v5 = vld [vmem:[%s17750_s5 + $0x28] ss:$16 sps:$4 sm:$0xff]   ;;  %v12690_v17 = vld [vmem:[%s17750_s5 + $0x1e0] ss:$16 sps:$4 sm:$0xff]  }
 0x36e   : > { %7472 = vmatmul.mubr.bf16.gmra.mrb[100].mxu0 %v3420_v1  ;;  %6924 = vmatprep.subr.bf16.mxu1 %v12572_v8  ;;  %v12606_v1 = vld [vmem:[%s17750_s5 + $0x20] ss:$16 sps:$4 sm:$0xff]   ;;  %v12614_v8 = vld [vmem:[%s17750_s5 + $0x44] ss:$16 sps:$4 sm:$0xff]  }
 0x36f   : > { %7481 = vmatprep.mubr.bf16.mxu0 %v3456_v25  ;;  %7507 = vmatpush1.bf16.msra.mxu0 %v12567_v29  ;;  %v3492_v22 = vcombine.low %v3475_v62, %v3489_v37  ;;  %v12611_v29 = vld [vmem:[%s17750_s5 + $0x2c] ss:$16 sps:$4 sm:$0xff]   ;;  %v12612_v25 = vld [vmem:[%s17750_s5 + $0x40] ss:$16 sps:$4 sm:$0xff]   ;;  %v12693_v62 = vld [vmem:[%s17750_s5 + $0x1e8] ss:$16 sps:$4 sm:$0xff]  }
 0x370   : > { %7508 = vmatprep.subr.bf16.mxu0 %v12575_v26  ;;  %v12620_v26 = vld [vmem:[%s17750_s5 + $0x64] ss:$16 sps:$4 sm:$0xff]   ;;  %v12701_v37 = vld [vmem:[%s17750_s5 + $0x20c] ss:$16 sps:$4 sm:$0xff]  }
 0x371   : > { %6925 = vmatpush1.bf16.msra.mxu1 %v12570_v56  ;;  %v12623_v56 = vld [vmem:[%s17750_s5 + $0x6c] ss:$16 sps:$4 sm:$0xff]  }
 0x372   : > { %6926 = vmatprep.subr.bf16.mxu1 %v12578_v61  ;;  %v12621_v61 = vld [vmem:[%s17750_s5 + $0x68] ss:$16 sps:$4 sm:$0xff]  }
 0x373   : > { %7509 = vmatpush1.bf16.msra.mxu0 %v12573_v35  ;;  %v12618_v35 = vld [vmem:[%s17750_s5 + $0x60] ss:$16 sps:$4 sm:$0xff]  }
 0x374   : > { %6898 = vmatmul.mubr.bf16.gmra.mrb[56].mxu1 %v3455_v46  ;;  %7510 = vmatprep.subr.bf16.mxu0 %v12581_v49  ;;  %v12629_v49 = vld [vmem:[%s17750_s5 + $0x8c] ss:$16 sps:$4 sm:$0xff]  }
 0x375   : > { %6907 = vmatprep.mubr.bf16.mxu1 %v3491_v58  ;;  %6927 = vmatpush1.bf16.msra.mxu1 %v12576_v34  ;;  %v12635_v34 = vld [vmem:[%s17750_s5 + $0xac] ss:$16 sps:$4 sm:$0xff]  }
 0x376   : > { %7482 = vmatmul.mubr.bf16.gmra.mrb[104].mxu0 %v3455_v46  ;;  %6928 = vmatprep.subr.bf16.mxu1 %v12584_v9  ;;  %v12632_v46 = vld [vmem:[%s17750_s5 + $0xa4] ss:$16 sps:$4 sm:$0xff]   ;;  %v12636_v9 = vld [vmem:[%s17750_s5 + $0xc0] ss:$16 sps:$4 sm:$0xff]  }
 0x377   : > { %7491 = vmatprep.mubr.bf16.mxu0 %v3491_v58  ;;  %7511 = vmatpush1.bf16.msra.mxu0 %v12579_v11  ;;  %v12630_v11 = vld [vmem:[%s17750_s5 + $0xa0] ss:$16 sps:$4 sm:$0xff]   ;;  %v12633_v58 = vld [vmem:[%s17750_s5 + $0xa8] ss:$16 sps:$4 sm:$0xff]  }
 0x378   : > { %7512 = vmatprep.subr.bf16.mxu0 %v12587_v55  ;;  %v12638_v55 = vld [vmem:[%s17750_s5 + $0xc4] ss:$16 sps:$4 sm:$0xff]  }
 0x379   : > { %6929 = vmatpush1.bf16.msra.mxu1 %v12582_v36  ;;  %v12639_v36 = vld [vmem:[%s17750_s5 + $0xc8] ss:$16 sps:$4 sm:$0xff]  }
 0x37a   : > { %6930 = vmatprep.subr.bf16.mxu1 %v12590_v23  ;;  %v12644_v23 = vld [vmem:[%s17750_s5 + $0xe4] ss:$16 sps:$4 sm:$0xff]  }
 0x37b   : > { %7513 = vmatpush1.bf16.msra.mxu0 %v12585_v50  ;;  %v12641_v50 = vld [vmem:[%s17750_s5 + $0xcc] ss:$16 sps:$4 sm:$0xff]  }
 0x37c   : > { %6908 = vmatmul.mubr.bf16.gmra.mrb[60].mxu1 %v3490_v60  ;;  %7514 = vmatprep.subr.bf16.mxu0 %v12593_v18  ;;  %v12647_v18 = vld [vmem:[%s17750_s5 + $0xec] ss:$16 sps:$4 sm:$0xff]  }
 0x37d   : > { %6950 = vmatprep.mubr.bf16.mxu1 %v13081_v54  ;;  %6931 = vmatpush1.bf16.msra.mxu1 %v12588_v28  ;;  %v12645_v28 = vld [vmem:[%s17750_s5 + $0xe8] ss:$16 sps:$4 sm:$0xff]  }
 0x37e   : > { %7492 = vmatmul.mubr.bf16.gmra.mrb[108].mxu0 %v3490_v60  ;;  %6932 = vmatprep.subr.bf16.mxu1 %v12596_v44  ;;  %v12642_v60 = vld [vmem:[%s17750_s5 + $0xe0] ss:$16 sps:$4 sm:$0xff]   ;;  %v12650_v44 = vld [vmem:[%s17750_s5 + $0x104] ss:$16 sps:$4 sm:$0xff]  }
 0x37f   : > { %7534 = vmatprep.mubr.bf16.mxu0 %v13081_v54  ;;  %7515 = vmatpush1.bf16.msra.mxu0 %v12591_v2  ;;  %v12648_v2 = vld [vmem:[%s17750_s5 + $0x100] ss:$16 sps:$4 sm:$0xff]  }
 0x380   : > { %7516 = vmatprep.subr.bf16.mxu0 %v12599_v45  ;;  %v12651_v45 = vld [vmem:[%s17750_s5 + $0x108] ss:$16 sps:$4 sm:$0xff]  }
 0x381   : > { %6933 = vmatpush1.bf16.msra.mxu1 %v12594_v41  ;;  %v12657_v41 = vld [vmem:[%s17750_s5 + $0x128] ss:$16 sps:$4 sm:$0xff]  }
 0x382   : > { %9709 = vmatprep.subr.bf16.mxu1 %v12602_v4  ;;  %v12663_v4 = vld [vmem:[%s17750_s5 + $0x148] ss:$16 sps:$4 sm:$0xff]  }
 0x383   : > { %7517 = vmatpush1.bf16.msra.mxu0 %v12597_v53  ;;  %v12660_v53 = vld [vmem:[%s17750_s5 + $0x140] ss:$16 sps:$4 sm:$0xff]  }
 0x384   : > { %9873 = vmatprep.subr.bf16.mxu0 %v12605_v16  ;;  %6951 = vmatmul.mubr.bf16.vlgmr.msra.gmra.mrb[48].mxu1 %v3387_v40  ;;  %v12668_v16 = vld [vmem:[%s17750_s5 + $0x164] ss:$16 sps:$4 sm:$0xff]  }
 0x385   : > { %6960 = vmatprep.mubr.bf16.mxu1 %v13081_v54  ;;  %9710 = vmatpush1.bf16.msra.mxu1 %v12600_v43  ;;  %v12677_v43 = vld [vmem:[%s17750_s5 + $0x18c] ss:$16 sps:$4 sm:$0xff]  }
 0x386   : > { %7535 = vmatmul.mubr.bf16.vlgmr.msra.gmra.mrb[96].mxu0 %v3387_v40  ;;  %9711 = vmatprep.subr.bf16.mxu1 %v12608_v10  ;;  %v12666_v40 = vld [vmem:[%s17750_s5 + $0x160] ss:$16 sps:$4 sm:$0xff]  }
 0x387   : > { %7544 = vmatprep.mubr.bf16.mxu0 %v13081_v54  ;;  %9874 = vmatpush1.bf16.msra.mxu0 %v12603_v20  ;;  %v12672_v20 = vld [vmem:[%s17750_s5 + $0x180] ss:$16 sps:$4 sm:$0xff]  }
 0x388   : > { %9875 = vmatprep.subr.bf16.mxu0 %v12611_v29 }
 0x389   : > { %9712 = vmatpush1.bf16.msra.mxu1 %v12606_v1  ;;  %v18092_v1 = vld [vmem:[#allocation8_spill] sm:$0xff] }
 0x38a   : > { %9713 = vmatprep.subr.bf16.mxu1 %v12614_v8 }
 0x38b   : > { %9876 = vmatpush1.bf16.msra.mxu0 %v12609_v5  ;;  %v18093_v5 = vld [vmem:[#allocation37_spill] sm:$0xff] }
 0x38c   : > { %6961 = vmatmul.mubr.bf16.gmra.mrb[52].mxu1 %v3422_v15  ;;  %9877 = vmatprep.subr.bf16.mxu0 %v12617_v21 }
 0x38d   : > { %6970 = vmatprep.mubr.bf16.mxu1 %v13081_v54  ;;  %9714 = vmatpush1.bf16.msra.mxu1 %v12612_v25  ;;  %v18094_v25 = vld [vmem:[#allocation36_spill] sm:$0xff] }
 0x38e   : > { %7545 = vmatmul.mubr.bf16.gmra.mrb[100].mxu0 %v3422_v15  ;;  %9715 = vmatprep.subr.bf16.mxu1 %v12620_v26  ;;  %v12678_v15 = vld [vmem:[%s17750_s5 + $0x1a0] ss:$16 sps:$4 sm:$0xff]   ;;  %v13082_v26 = vmov 1966171168  }
 0x38f   : > { %7554 = vmatprep.mubr.bf16.mxu0 %v13081_v54  ;;  %9878 = vmatpush1.bf16.msra.mxu0 %v12615_v63  ;;  %v18095_v63 = vld [vmem:[#allocation9_spill] sm:$0xff] }
 0x390   : > { %9879 = vmatprep.subr.bf16.mxu0 %v12623_v56  ;;  %v7672_v56 = vunpack.c.l.s4 %v13082_v26 }
 0x391   : > { %9716 = vmatpush1.bf16.msra.mxu1 %v12618_v35 }
 0x392   : > { %9717 = vmatprep.subr.bf16.mxu1 %v12626_v3 }
 0x393   : > { %9880 = vmatpush1.bf16.msra.mxu0 %v12621_v61 }
 0x394   : > { %6971 = vmatmul.mubr.bf16.gmra.mrb[56].mxu1 %v3457_v13  ;;  %9881 = vmatprep.subr.bf16.mxu0 %v12629_v49 }
 0x395   : > { %6980 = vmatprep.mubr.bf16.mxu1 %v13081_v54  ;;  %9718 = vmatpush1.bf16.msra.mxu1 %v12624_v52 }
 0x396   : > { %7555 = vmatmul.mubr.bf16.gmra.mrb[104].mxu0 %v3457_v13  ;;  %9719 = vmatprep.subr.bf16.mxu1 %v12632_v46  ;;  %v12692_v13 = vld [vmem:[%s17750_s5 + $0x1e4] ss:$16 sps:$4 sm:$0xff]  }
 0x397   : > { %7564 = vmatprep.mubr.bf16.mxu0 %v13081_v54  ;;  %9882 = vmatpush1.bf16.msra.mxu0 %v12627_v42  ;;  %v12653_v54 = vld [vmem:[%s17750_s5 + $0x10c] ss:$16 sps:$4 sm:$0xff]  }
 0x398   : > { %9883 = vmatprep.subr.bf16.mxu0 %v12635_v34 }
 0x399   : > { %9720 = vmatpush1.bf16.msra.mxu1 %v12630_v11  ;;  %v13083_v11 = vmov 1935823168  }
 0x39a   : > { %9721 = vmatprep.subr.bf16.mxu1 %v12638_v55 }
 0x39b   : > { %9884 = vmatpush1.bf16.msra.mxu0 %v12633_v58  ;;  %v7936_v58 = vunpack.c.l.s4 %v13083_v11 }
 0x39c   : > { %6981 = vmatmul.mubr.bf16.gmra.mrb[60].mxu1 %v3492_v22  ;;  %9885 = vmatprep.subr.bf16.mxu0 %v12641_v50 }
 0x39d   : > { %9722 = vmatpush1.bf16.msra.mxu1 %v12636_v9 }
 0x39e   : > { %7565 = vmatmul.mubr.bf16.gmra.mrb[108].mxu0 %v3492_v22  ;;  %9723 = vmatprep.subr.bf16.mxu1 %v12644_v23  ;;  %v3985_v22 = vld [vmem:[%s17749_s4] sm:$0xf] }
 0x39f   : > { %9886 = vmatpush1.bf16.msra.mxu0 %v12639_v36  ;;  %v16896_v10 = vrot.slane %v3985_v22, %v18092_v1  ;;  %v16899_v29 = vrot.slane %v3985_v22, %v18093_v5  ;;  %v16902_v8 = vrot.slane %v3985_v22, %v18094_v25  ;;  %v16905_v21 = vrot.slane %v3985_v22, %v18095_v63 }
 0x3a0   : > { %9887 = vmatprep.subr.bf16.mxu0 %v12647_v18  ;;  %v7673_v36 = vunpack.c.0.s8 %v7672_v56 }
 0x3a1   : > { %9724 = vmatpush1.bf16.msra.mxu1 %v12642_v60 }
 0x3a2   : > { %9725 = vmatprep.subr.bf16.mxu1 %v12650_v44 }
 0x3a3   : > { %9888 = vmatpush1.bf16.msra.mxu0 %v12645_v28 }
 0x3a4   : > { %9889 = vmatprep.subr.bf16.mxu0 %v12653_v54 }
 0x3a5   : > { %9726 = vmatpush1.bf16.msra.mxu1 %v12648_v2 }
 0x3a6   : > { %9727 = vmatprep.subr.bf16.mxu1 %v12656_v47 }
 0x3a7   : > { %9890 = vmatpush1.bf16.msra.mxu0 %v12651_v45 }
 0x3a8   : > { %9891 = vmatprep.subr.bf16.mxu0 %v12659_v59 }
 0x3a9   : > { %9728 = vmatpush1.bf16.msra.mxu1 %v12654_v51 }
 0x3aa   : > { %9729 = vmatprep.subr.bf16.mxu1 %v12662_v33 }
 0x3ab   : > { %9892 = vmatpush1.bf16.msra.mxu0 %v12657_v41 }
 0x3ac   : > { %9893 = vmatprep.subr.bf16.mxu0 %v12665_v12  ;;  %v7937_v12 = vunpack.c.0.s8 %v7936_v58 }
 0x3ad   : > { %9730 = vmatpush1.bf16.msra.mxu1 %v12660_v53 }
 0x3ae   : > { %9731 = vmatprep.subr.bf16.mxu1 %v12668_v16 }
 0x3af   : > { %9894 = vmatpush1.bf16.msra.mxu0 %v12663_v4  ;;  %v18096_v4 = vld [vmem:[#allocation6_spill] sm:$0xff] }
 0x3b0   : > { %9895 = vmatprep.subr.bf16.mxu0 %v12671_v32  ;;  %v16916_v16 = vsub.s32 %v7673_v36, %v18096_v4 }
 0x3b1   : > { %9732 = vmatpush1.bf16.msra.mxu1 %v12666_v40 }
 0x3b2   : > { %9733 = vmatprep.subr.bf16.mxu1 %v12674_v19 }
 0x3b3   : > { %9896 = vmatpush1.bf16.msra.mxu0 %v12669_v24 }
 0x3b4   : > { %9897 = vmatprep.subr.bf16.mxu0 %v12677_v43 }
 0x3b5   : > { %9734 = vmatpush1.bf16.msra.mxu1 %v12672_v20 }
 0x3b6   : > { %9735 = vmatprep.subr.bf16.mxu1 %v12680_v30 }
 0x3b7   : > { %9898 = vmatpush1.bf16.msra.mxu0 %v12675_v39 }
 0x3b8   : > { %9899 = vmatprep.subr.bf16.mxu0 %v12683_v48 }
 0x3b9   : > { %9736 = vmatpush1.bf16.msra.mxu1 %v12678_v15 }
 0x3ba   : > { %9737 = vmatprep.subr.bf16.mxu1 %v12686_v14 }
 0x3bb   : > { %9900 = vmatpush1.bf16.msra.mxu0 %v12681_v7 }
 0x3bc   : > { %9901 = vmatprep.subr.bf16.mxu0 %v12689_v38 }
 0x3bd   : > { %9738 = vmatpush1.bf16.msra.mxu1 %v12684_v6  ;;  %v16922_v6 = vsub.s32 %v7937_v12, %v18096_v4 }
 0x3be   : > { %9739 = vmatprep.subr.bf16.mxu1 %v12692_v13 }
 0x3bf   : > { %9902 = vmatpush1.bf16.msra.mxu0 %v12687_v0 }
 0x3c0   : > { %9903 = vmatprep.subr.bf16.mxu0 %v12695_v31 }
 0x3c1   : > { %9740 = vmatpush1.bf16.msra.mxu1 %v12690_v17 }
 0x3c2   : > { %9750 = vmatprep.subr.bf16.mxu1 %v12698_v57 }
 0x3c3   : > { %9904 = vmatpush1.bf16.msra.mxu0 %v12693_v62 }
 0x3c4   : > { %9914 = vmatprep.subr.bf16.mxu0 %v12701_v37 }
 0x457   : > { %v6952_v35 = vpop.f32.mrb[48].mxu1 }
 0x458   : > { %v11472_v61 = vadd.f32 %v6952_v35, %v16896_v10  ;;  %v6954_v3 = vpop.f32.mrb[49].mxu1 }
 0x459   : > { %v7536_v52 = vpop.f32.mrb[96].mxu0  ;;  %v11473_v49 = vadd.f32 %v6954_v3, %v16902_v8  ;;  %v6956_v34 = vpop.f32.mrb[50].mxu1 }
 0x45a   : > { %v11488_v42 = vadd.f32 %v7536_v52, %v16899_v29  ;;  %v7538_v46 = vpop.f32.mrb[97].mxu0  ;;  %v7575_v9 = vmax.f32 %v11472_v61, 0.0  ;;  %v11474_v50 = vadd.f32 %v6956_v34, %v16896_v10  ;;  %v6958_v18 = vpop.f32.mrb[51].mxu1 }
 0x45b   : > { %v11489_v55 = vadd.f32 %v7538_v46, %v16905_v21  ;;  %v7540_v23 = vpop.f32.mrb[98].mxu0  ;;  %v7576_v28 = vmax.f32 %v11473_v49, 0.0  ;;  %v11475_v44 = vadd.f32 %v6958_v18, %v16902_v8 }
 0x45c   : > { %v7577_v60 = vmax.f32 %v11488_v42, 0.0  ;;  %v11490_v2 = vadd.f32 %v7540_v23, %v16899_v29  ;;  %v7542_v45 = vpop.f32.mrb[99].mxu0  ;;  %v7579_v47 = vmax.f32 %v11474_v50, 0.0 }
 0x45d   : > { %v7578_v54 = vmax.f32 %v11489_v55, 0.0  ;;  %v11491_v59 = vadd.f32 %v7542_v45, %v16905_v21  ;;  %v7580_v33 = vmax.f32 %v11475_v44, 0.0 }
 0x45e   : > { %v7607_v51 = vmax.f32 %v7575_v9, %v7577_v60  ;;  %v7581_v41 = vmax.f32 %v11490_v2, 0.0 }
 0x45f   : > { %v7608_v53 = vmax.f32 %v7576_v28, %v7578_v54  ;;  %v7582_v32 = vmax.f32 %v11491_v59, 0.0  ;;  %v6962_v24 = vpop.f32.mrb[52].mxu1 }
 0x460   : > { %v7609_v40 = vmax.f32 %v7579_v47, %v7581_v41  ;;  %v11476_v39 = vadd.f32 %v6962_v24, %v16896_v10  ;;  %v6964_v48 = vpop.f32.mrb[53].mxu1 }
 0x461   : > { %v7639_v19 = vcombine.low %v7607_v51, %v7608_v53  ;;  %v7640_v43 = vcombine.high %v7607_v51, %v7608_v53  ;;  %v7610_v20 = vmax.f32 %v7580_v33, %v7582_v32  ;;  %v7546_v30 = vpop.f32.mrb[100].mxu0  ;;  %v11477_v7 = vadd.f32 %v6964_v48, %v16902_v8  ;;  %v6966_v38 = vpop.f32.mrb[54].mxu1 }
 0x462   : > { %v11492_v15 = vadd.f32 %v7546_v30, %v16899_v29  ;;  %v7548_v14 = vpop.f32.mrb[101].mxu0  ;;  %v6968_v57 = vpop.f32.mrb[55].mxu1  ;;  %v7583_v37 = vmax.f32 %v11476_v39, 0.0  ;;  %v11478_v34 = vadd.f32 %v6966_v38, %v16896_v10 }
 0x463   : > { %v7677_v0 = vrot.slane %v7639_v19, %v16916_v16  ;;  %v7684_v13 = vrot.slane %v7640_v43, %v16916_v16  ;;  %v7641_v31 = vcombine.low %v7609_v40, %v7610_v20  ;;  %v7642_v17 = vcombine.high %v7609_v40, %v7610_v20  ;;  %v7550_v62 = vpop.f32.mrb[102].mxu0 }
 0x464   : > { %v7585_v22 = vmax.f32 %v11492_v15, 0.0  ;;  %v7584_v26 = vmax.f32 %v11477_v7, 0.0  ;;  %v11493_v56 = vadd.f32 %v7548_v14, %v16905_v21  ;;  %v7552_v35 = vpop.f32.mrb[103].mxu0  ;;  %v11494_v11 = vadd.f32 %v7550_v62, %v16899_v29 }
 0x465   : > { %v7799_v61 = vrot.slane %v7677_v0, 4  ;;  %v7800_v52 = vrot.slane %v7684_v13, 4  ;;  %v7691_v3 = vrot.slane %v7641_v31, %v16916_v16  ;;  %v7698_v42 = vrot.slane %v7642_v17, %v16916_v16 }
 0x466   : > { %v7611_v49 = vmax.f32 %v7583_v37, %v7585_v22  ;;  %v7586_v46 = vmax.f32 %v11493_v56, 0.0  ;;  %v7587_v23 = vmax.f32 %v11478_v34, 0.0  ;;  %v7589_v18 = vmax.f32 %v11494_v11, 0.0 }
 0x467   : > { %v7831_v58 = vmax.f32 %v7677_v0, %v7799_v61  ;;  %v7832_v9 = vmax.f32 %v7684_v13, %v7800_v52  ;;  %v7801_v55 = vrot.slane %v7691_v3, 4  ;;  %v7802_v36 = vrot.slane %v7698_v42, 4  ;;  %v6972_v28 = vpop.f32.mrb[56].mxu1 }
 0x468   : > { %v7612_v50 = vmax.f32 %v7584_v26, %v7586_v46  ;;  %v11479_v60 = vadd.f32 %v6968_v57, %v16902_v8  ;;  %v11495_v54 = vadd.f32 %v7552_v35, %v16905_v21  ;;  %v6974_v59 = vpop.f32.mrb[57].mxu1  ;;  %v7613_v33 = vmax.f32 %v7587_v23, %v7589_v18 }
 0x469   : > { %v7863_v2 = vcombine.low %v7831_v58, %v7832_v9  ;;  %v7833_v44 = vmax.f32 %v7691_v3, %v7801_v55  ;;  %v7834_v45 = vmax.f32 %v7698_v42, %v7802_v36  ;;  %v7556_v47 = vpop.f32.mrb[104].mxu0  ;;  %v6976_v4 = vpop.f32.mrb[58].mxu1  ;;  %v11480_v19 = vadd.f32 %v6972_v28, %v16896_v10 }
 0x46a   : > { %v7643_v51 = vcombine.low %v7611_v49, %v7612_v50  ;;  %v7644_v41 = vcombine.high %v7611_v49, %v7612_v50  ;;  %v7588_v12 = vmax.f32 %v11479_v60, 0.0  ;;  %v7558_v53 = vpop.f32.mrb[105].mxu0  ;;  %v7590_v24 = vmax.f32 %v11495_v54, 0.0  ;;  %v6978_v20 = vpop.f32.mrb[59].mxu1 }
 0x46b   : > { %v16934_v32 = vrot.slane %v7863_v2, %v17909_v27  ;;  %v7871_v40 = vcombine.low %v7833_v44, %v7834_v45  ;;  %v7560_v43 = vpop.f32.mrb[106].mxu0  ;;  %v11496_v48 = vadd.f32 %v7556_v47, %v16899_v29  ;;  %v11481_v15 = vadd.f32 %v6974_v59, %v16902_v8 }
 0x46c   : > { %v7705_v39 = vrot.slane %v7643_v51, %v16916_v16  ;;  %v7712_v30 = vrot.slane %v7644_v41, %v16916_v16  ;;  %v7562_v7 = vpop.f32.mrb[107].mxu0  ;;  %v7614_v38 = vmax.f32 %v7588_v12, %v7590_v24  ;;  %v7591_v0 = vmax.f32 %v11480_v19, 0.0 }
 0x46d   : > { %v16942_v14 = vrot.slane %v7871_v40, %v17909_v27  ;;  %v11497_v13 = vadd.f32 %v7558_v53, %v16905_v21  ;;  %v7593_v62 = vmax.f32 %v11496_v48, 0.0  ;;  %v7592_v57 = vmax.f32 %v11481_v15, 0.0 }
 0x46e   : > { %v7803_v31 = vrot.slane %v7705_v39, 4  ;;  %v7804_v17 = vrot.slane %v7712_v30, 4  ;;  %v7645_v37 = vcombine.low %v7613_v33, %v7614_v38  ;;  %v7646_v22 = vcombine.high %v7613_v33, %v7614_v38 }
 0x46f   : > { %v7594_v26 = vmax.f32 %v11497_v13, 0.0  ;;  %v11482_v56 = vadd.f32 %v6976_v4, %v16896_v10  ;;  %v7615_v52 = vmax.f32 %v7591_v0, %v7593_v62  ;;  %v11498_v3 = vadd.f32 %v7560_v43, %v16899_v29  ;;  %v6982_v42 = vpop.f32.mrb[60].mxu1 }
 0x470   : > { %v7835_v35 = vmax.f32 %v7705_v39, %v7803_v31  ;;  %v7836_v61 = vmax.f32 %v7712_v30, %v7804_v17  ;;  %v7719_v49 = vrot.slane %v7645_v37, %v16916_v16  ;;  %v7726_v46 = vrot.slane %v7646_v22, %v16916_v16  ;;  %v6984_v9 = vpop.f32.mrb[61].mxu1 }
 0x471   : > { %v7616_v34 = vmax.f32 %v7592_v57, %v7594_v26  ;;  %v7595_v11 = vmax.f32 %v11482_v56, 0.0  ;;  %v7566_v58 = vpop.f32.mrb[108].mxu0  ;;  %v7597_v36 = vmax.f32 %v11498_v3, 0.0  ;;  %v11483_v50 = vadd.f32 %v6978_v20, %v16902_v8  ;;  %v6986_v60 = vpop.f32.mrb[62].mxu1 }
 0x472   : > { %v7879_v55 = vcombine.low %v7835_v35, %v7836_v61  ;;  %v11499_v23 = vadd.f32 %v7562_v7, %v16905_v21  ;;  %v7568_v18 = vpop.f32.mrb[109].mxu0  ;;  %v7805_v28 = vrot.slane %v7719_v49, 4  ;;  %v7806_v2 = vrot.slane %v7726_v46, 4  ;;  %v6988_v47 = vpop.f32.mrb[63].mxu1 }
 0x473   : > { %v7647_v44 = vcombine.low %v7615_v52, %v7616_v34  ;;  %v7648_v45 = vcombine.high %v7615_v52, %v7616_v34  ;;  %v7570_v54 = vpop.f32.mrb[110].mxu0  ;;  %v7617_v51 = vmax.f32 %v7595_v11, %v7597_v36  ;;  %v7596_v41 = vmax.f32 %v11483_v50, 0.0 }
 0x474   : > { %v7886_v59 = vrot.slane %v7879_v55, %v17909_v27  ;;  %v7598_v33 = vmax.f32 %v11499_v23, 0.0  ;;  %v7572_v12 = vpop.f32.mrb[111].mxu0  ;;  %v7837_v53 = vmax.f32 %v7719_v49, %v7805_v28  ;;  %v7838_v4 = vmax.f32 %v7726_v46, %v7806_v2 }
 0x475   : > { %v7733_v40 = vrot.slane %v7647_v44, %v16916_v16  ;;  %v7740_v24 = vrot.slane %v7648_v45, %v16916_v16  ;;  %v11484_v43 = vadd.f32 %v6982_v42, %v16896_v10  ;;  %v11500_v20 = vadd.f32 %v7566_v58, %v16899_v29 }
 0x476   : > { %v7618_v19 = vmax.f32 %v7596_v41, %v7598_v33  ;;  %v11485_v39 = vadd.f32 %v6984_v9, %v16902_v8  ;;  %v7887_v30 = vcombine.low %v7837_v53, %v7838_v4  ;;  %v11501_v7 = vadd.f32 %v7568_v18, %v16905_v21 }
 0x477   : > { %v7807_v48 = vrot.slane %v7733_v40, 4  ;;  %v7808_v15 = vrot.slane %v7740_v24, 4  ;;  %v7599_v13 = vmax.f32 %v11484_v43, 0.0  ;;  %v7601_v31 = vmax.f32 %v11500_v20, 0.0 }
 0x478   : > { %v7649_v38 = vcombine.low %v7617_v51, %v7618_v19  ;;  %v7650_v0 = vcombine.high %v7617_v51, %v7618_v19  ;;  %v7894_v17 = vrot.slane %v7887_v30, %v17909_v27  ;;  %v7600_v37 = vmax.f32 %v11485_v39, 0.0 }
 0x479   : > { %v7839_v62 = vmax.f32 %v7733_v40, %v7807_v48  ;;  %v7840_v57 = vmax.f32 %v7740_v24, %v7808_v15  ;;  %v7619_v56 = vmax.f32 %v7599_v13, %v7601_v31  ;;  %v7602_v35 = vmax.f32 %v11501_v7, 0.0 }
 0x47a   : > { %v7747_v22 = vrot.slane %v7649_v38, %v16916_v16  ;;  %v7754_v26 = vrot.slane %v7650_v0, %v16916_v16  ;;  %v11486_v52 = vadd.f32 %v6986_v60, %v16896_v10  ;;  %v11502_v3 = vadd.f32 %v7570_v54, %v16899_v29 }
 0x47b   : > { %v7895_v61 = vcombine.low %v7839_v62, %v7840_v57  ;;  %v11487_v42 = vadd.f32 %v6988_v47, %v16902_v8  ;;  %v7620_v34 = vmax.f32 %v7600_v37, %v7602_v35  ;;  %v11503_v11 = vadd.f32 %v7572_v12, %v16905_v21 }
 0x47c   : > { %v7809_v49 = vrot.slane %v7747_v22, 4  ;;  %v7810_v46 = vrot.slane %v7754_v26, 4  ;;  %v7603_v9 = vmax.f32 %v11486_v52, 0.0  ;;  %v7605_v55 = vmax.f32 %v11502_v3, 0.0 }
 0x47d   : > { %v7902_v58 = vrot.slane %v7895_v61, %v17909_v27  ;;  %v7604_v36 = vmax.f32 %v11487_v42, 0.0  ;;  %v7651_v18 = vcombine.low %v7619_v56, %v7620_v34  ;;  %v7652_v28 = vcombine.high %v7619_v56, %v7620_v34 }
 0x47e   : > { %v7841_v50 = vmax.f32 %v7747_v22, %v7809_v49  ;;  %v7842_v23 = vmax.f32 %v7754_v26, %v7810_v46  ;;  %v7621_v2 = vmax.f32 %v7603_v9, %v7605_v55  ;;  %v7606_v10 = vmax.f32 %v11503_v11, 0.0 }
 0x47f   : > { %v7941_v29 = vrot.slane %v16934_v32, %v16922_v6  ;;  %v7948_v8 = vrot.slane %v16942_v14, %v16922_v6  ;;  %v7761_v21 = vrot.slane %v7651_v18, %v16916_v16  ;;  %v7768_v44 = vrot.slane %v7652_v28, %v16916_v16 }
 0x480   : > { %v7903_v60 = vcombine.low %v7841_v50, %v7842_v23  ;;  %v7955_v45 = vrot.slane %v7886_v59, %v16922_v6  ;;  %v7622_v54 = vmax.f32 %v7604_v36, %v7606_v10  ;;  %v7962_v47 = vrot.slane %v7894_v17, %v16922_v6 }
 0x481   : > { %v7969_v51 = vrot.slane %v7902_v58, %v16922_v6  ;;  %v7999_v41 = vcombine.low %v7941_v29, %v7948_v8  ;;  %v7811_v12 = vrot.slane %v7761_v21, 4  ;;  %v7812_v32 = vrot.slane %v7768_v44, 4 }
 0x482   : > { %v7910_v33 = vrot.slane %v7903_v60, %v17909_v27  ;;  %v8000_v53 = vcombine.high %v7941_v29, %v7948_v8  ;;  %v7653_v4 = vcombine.low %v7621_v2, %v7622_v54  ;;  %v7654_v14 = vcombine.high %v7621_v2, %v7622_v54 }
 0x483   : > { %v8001_v40 = vcombine.low %v7955_v45, %v7962_v47  ;;  %v8013_v24 = vrot.slane %v7999_v41, %v16916_v16  ;;  %v7843_v19 = vmax.f32 %v7761_v21, %v7811_v12  ;;  %v7844_v43 = vmax.f32 %v7768_v44, %v7812_v32  ;;  %v12696_v12 = vld [vmem:[%s17750_s5 + $0x200] ss:$16 sps:$4 sm:$0xff]  }
 0x484   : > { %v7976_v59 = vrot.slane %v7910_v33, %v16922_v6  ;;  %v8002_v20 = vcombine.high %v7955_v45, %v7962_v47  ;;  %v7775_v39 = vrot.slane %v7653_v4, %v16916_v16  ;;  %v7782_v30 = vrot.slane %v7654_v14, %v16916_v16  ;;  %v12707_v4 = vld [vmem:[%s17750_s5 + $0x22c] ss:$16 sps:$4 sm:$0xff]  }
 0x485   : > { %v8027_v48 = vrot.slane %v8001_v40, %v16916_v16  ;;  %v8020_v15 = vrot.slane %v8000_v53, %v16916_v16  ;;  %v7911_v7 = vcombine.low %v7843_v19, %v7844_v43  ;;  %v12704_v53 = vld [vmem:[%s17750_s5 + $0x224] ss:$16 sps:$4 sm:$0xff]   ;;  %v12702_v40 = vld [vmem:[%s17750_s5 + $0x220] ss:$16 sps:$4 sm:$0xff]   ;;  %v12713_v43 = vld [vmem:[%s17750_s5 + $0x24c] ss:$16 sps:$4 sm:$0xff]  }
 0x486   : > { %v8003_v38 = vcombine.low %v7969_v51, %v7976_v59  ;;  %v8004_v0 = vcombine.high %v7969_v51, %v7976_v59  ;;  %v8034_v13 = vrot.slane %v8002_v20, %v16916_v16  ;;  %v7813_v31 = vrot.slane %v7775_v39, 4  ;;  %v12710_v19 = vld [vmem:[%s17750_s5 + $0x244] ss:$16 sps:$4 sm:$0xff]   ;;  %v12708_v59 = vld [vmem:[%s17750_s5 + $0x240] ss:$16 sps:$4 sm:$0xff]  }
 0x487   : > { %v7814_v17 = vrot.slane %v7782_v30, 4  ;;  %v8063_v62 = vcombine.low %v8013_v24, %v8027_v48  ;;  %v8064_v57 = vcombine.high %v8013_v24, %v8027_v48  ;;  %v7918_v52 = vrot.slane %v7911_v7, %v17909_v27  ;;  %v12705_v24 = vld [vmem:[%s17750_s5 + $0x228] ss:$16 sps:$4 sm:$0xff]   ;;  %v12714_v48 = vld [vmem:[%s17750_s5 + $0x260] ss:$16 sps:$4 sm:$0xff]  }
 0x488   : > { %v8048_v37 = vrot.slane %v8004_v0, %v16916_v16  ;;  %v8066_v22 = vcombine.high %v8020_v15, %v8034_v13  ;;  %v7845_v26 = vmax.f32 %v7775_v39, %v7813_v31  ;;  %v8065_v61 = vcombine.low %v8020_v15, %v8034_v13  ;;  %v12711_v20 = vld [vmem:[%s17750_s5 + $0x248] ss:$16 sps:$4 sm:$0xff]   ;;  %v12716_v39 = vld [vmem:[%s17750_s5 + $0x264] ss:$16 sps:$4 sm:$0xff]   ;;  %v12720_v0 = vld [vmem:[%s17750_s5 + $0x280] ss:$16 sps:$4 sm:$0xff]  }
 0x489   : > { %v7846_v56 = vmax.f32 %v7782_v30, %v7814_v17  ;;  %v7983_v46 = vrot.slane %v7918_v52, %v16922_v6  ;;  %v8041_v9 = vrot.slane %v8003_v38, %v16916_v16  ;;  %v8091_v2 = vrot.slane %v8064_v57, %v16916_v16  ;;  %v12719_v30 = vld [vmem:[%s17750_s5 + $0x26c] ss:$16 sps:$4 sm:$0xff]   ;;  %v12717_v15 = vld [vmem:[%s17750_s5 + $0x268] ss:$16 sps:$4 sm:$0xff]   ;;  %v12722_v7 = vld [vmem:[%s17750_s5 + $0x284] ss:$16 sps:$4 sm:$0xff]  }
 0x48a   : > { %v8098_v35 = vrot.slane %v8066_v22, %v16916_v16  ;;  %v8084_v42 = vrot.slane %v8065_v61, %v16916_v16  ;;  %v12725_v38 = vld [vmem:[%s17750_s5 + $0x28c] ss:$16 sps:$4 sm:$0xff]   ;;  %v12723_v13 = vld [vmem:[%s17750_s5 + $0x288] ss:$16 sps:$4 sm:$0xff]   ;;  %v12728_v31 = vld [vmem:[%s17750_s5 + $0x2a4] ss:$16 sps:$4 sm:$0xff]  }
 0x48b   : > { %v7919_v3 = vcombine.low %v7845_v26, %v7846_v56  ;;  %v12731_v17 = vld [vmem:[%s17750_s5 + $0x2ac] ss:$16 sps:$4 sm:$0xff]   ;;  %v12729_v57 = vld [vmem:[%s17750_s5 + $0x2a8] ss:$16 sps:$4 sm:$0xff]   ;;  %v12732_v26 = vld [vmem:[%s17750_s5 + $0x2c0] ss:$16 sps:$4 sm:$0xff]  }
 0x48c   : > { %v12737_v22 = vld [vmem:[%s17750_s5 + $0x2cc] ss:$16 sps:$4 sm:$0xff]   ;;  %v12735_v56 = vld [vmem:[%s17750_s5 + $0x2c8] ss:$16 sps:$4 sm:$0xff]   ;;  %v12738_v52 = vld [vmem:[%s17750_s5 + $0x2e0] ss:$16 sps:$4 sm:$0xff]  }
 0x48d   : > { %v7926_v49 = vrot.slane %v7919_v3, %v17909_v27  ;;  %v8077_v27 = vrot.slane %v8063_v62, %v16916_v16  ;;  %v12726_v62 = vld [vmem:[%s17750_s5 + $0x2a0] ss:$16 sps:$4 sm:$0xff]   ;;  %v12743_v61 = vld [vmem:[%s17750_s5 + $0x2ec] ss:$16 sps:$4 sm:$0xff]   ;;  %v12741_v3 = vld [vmem:[%s17750_s5 + $0x2e8] ss:$16 sps:$4 sm:$0xff]  }
 0x48f   : > { %v7990_v34 = vrot.slane %v7926_v49, %v16922_v6  ;;  %v12749_v49 = vld [vmem:[%s17750_s5 + $0x30c] ss:$16 sps:$4 sm:$0xff]  }
 0x491   : > { %v8005_v11 = vcombine.low %v7983_v46, %v7990_v34  ;;  %v8006_v58 = vcombine.high %v7983_v46, %v7990_v34  ;;  %v12744_v46 = vld [vmem:[%s17750_s5 + $0x300] ss:$16 sps:$4 sm:$0xff]   ;;  %v12747_v34 = vld [vmem:[%s17750_s5 + $0x308] ss:$16 sps:$4 sm:$0xff]  }
 0x493   : > { %v8055_v55 = vrot.slane %v8005_v11, %v16916_v16  ;;  %v8062_v36 = vrot.slane %v8006_v58, %v16916_v16  ;;  %v12752_v11 = vld [vmem:[%s17750_s5 + $0x324] ss:$16 sps:$4 sm:$0xff]   ;;  %v12755_v58 = vld [vmem:[%s17750_s5 + $0x32c] ss:$16 sps:$4 sm:$0xff]  }
 0x495   : > { %v8067_v50 = vcombine.low %v8041_v9, %v8055_v55  ;;  %v8068_v23 = vcombine.high %v8041_v9, %v8055_v55  ;;  %v8070_v18 = vcombine.high %v8048_v37, %v8062_v36  ;;  %v8069_v28 = vcombine.low %v8048_v37, %v8062_v36  ;;  %v12734_v37 = vld [vmem:[%s17750_s5 + $0x2c4] ss:$16 sps:$4 sm:$0xff]   ;;  %v12750_v9 = vld [vmem:[%s17750_s5 + $0x320] ss:$16 sps:$4 sm:$0xff]   ;;  %v12753_v55 = vld [vmem:[%s17750_s5 + $0x328] ss:$16 sps:$4 sm:$0xff]  }
 0x496   : > { %v12758_v36 = vld [vmem:[%s17750_s5 + $0x344] ss:$16 sps:$4 sm:$0xff]  }
 0x497   : > { %v8119_v10 = vrot.slane %v8068_v23, %v16916_v16  ;;  %v8105_v6 = vrot.slane %v8067_v50, %v16916_v16  ;;  %v8126_v29 = vrot.slane %v8070_v18, %v16916_v16  ;;  %v8112_v8 = vrot.slane %v8069_v28, %v16916_v16  ;;  %v12699_v16 = vld [vmem:[%s17750_s5 + $0x208] ss:$16 sps:$4 sm:$0xff]   ;;  %v12761_v50 = vld [vmem:[%s17750_s5 + $0x34c] ss:$16 sps:$4 sm:$0xff]   ;;  %v12756_v23 = vld [vmem:[%s17750_s5 + $0x340] ss:$16 sps:$4 sm:$0xff]  }
 0x498   : > { %v12759_v18 = vld [vmem:[%s17750_s5 + $0x348] ss:$16 sps:$4 sm:$0xff]   ;;  %v12764_v28 = vld [vmem:[%s17750_s5 + $0x364] ss:$16 sps:$4 sm:$0xff]  }
 0x499   : > { %v8131_v60 = vcombine.low %v8091_v2, %v8119_v10  ;;  %v8127_v21 = vcombine.low %v8077_v27, %v8105_v6  ;;  %v8132_v44 = vcombine.high %v8091_v2, %v8119_v10  ;;  %v16999_v45 = vcombine.high %v8077_v27, %v8105_v6  ;;  %v12767_v2 = vld [vmem:[%s17750_s5 + $0x36c] ss:$16 sps:$4 sm:$0xff]   ;;  %v12762_v27 = vld [vmem:[%s17750_s5 + $0x360] ss:$16 sps:$4 sm:$0xff]   ;;  %v12765_v10 = vld [vmem:[%s17750_s5 + $0x368] ss:$16 sps:$4 sm:$0xff]  }
 0x49a   : > { %v17001_v54 = vcombine.low %v8098_v35, %v8126_v29  ;;  %v17003_v47 = vcombine.low %v8084_v42, %v8112_v8  ;;  %v17005_v51 = vcombine.high %v8098_v35, %v8126_v29  ;;  %v17007_v41 = vcombine.high %v8084_v42, %v8112_v8  ;;  %v12740_v35 = vld [vmem:[%s17750_s5 + $0x2e4] ss:$16 sps:$4 sm:$0xff]   ;;  %v12773_v29 = vld [vmem:[%s17750_s5 + $0x38c] ss:$16 sps:$4 sm:$0xff]   ;;  %v12768_v8 = vld [vmem:[%s17750_s5 + $0x380] ss:$16 sps:$4 sm:$0xff]  }
 0x49b   : > { %v8144_v33 = vpack.c.bf16 %v8131_v60, %v8131_v60  ;;  %v8143_v32 = vpack.c.bf16 %v8127_v21, %v8127_v21  ;;  %v8146_v14 = vpack.c.bf16 %v8132_v44, %v8132_v44  ;;  %v12746_v42 = vld [vmem:[%s17750_s5 + $0x304] ss:$16 sps:$4 sm:$0xff]   ;;  %v12771_v60 = vld [vmem:[%s17750_s5 + $0x388] ss:$16 sps:$4 sm:$0xff]   ;;  %v12779_v44 = vld [vmem:[%s17750_s5 + $0x3ac] ss:$16 sps:$4 sm:$0xff]  }
 0x49c   : > { %v12770_v6 = vld [vmem:[%s17750_s5 + $0x384] ss:$16 sps:$4 sm:$0xff]  }
 0x49d   : > { %9741 = vmatprep.mubr.bf16.mxu1 %v8144_v33  ;;  %9905 = vmatprep.mubr.bf16.mxu0 %v8144_v33  ;;  %v12776_v21 = vld [vmem:[%s17750_s5 + $0x3a4] ss:$16 sps:$4 sm:$0xff]   ;;  %v12774_v33 = vld [vmem:[%s17750_s5 + $0x3a0] ss:$16 sps:$4 sm:$0xff]  }
 0x49e   : > { %9742 = vmatmul.mubr.bf16.vlgmr.msra.gmra.mrb[64].mxu1 %v8143_v32  ;;  %9906 = vmatmul.mubr.bf16.vlgmr.msra.gmra.mrb[112].mxu0 %v8143_v32  ;;  %v12785_v32 = vld [vmem:[%s17750_s5 + $0x3cc] ss:$16 sps:$4 sm:$0xff]  }
 0x49f   : > { %9751 = vmatpush1.bf16.msra.mxu1 %v12696_v12  ;;  %9915 = vmatpush1.bf16.msra.mxu0 %v12699_v16  ;;  %v12777_v12 = vld [vmem:[%s17750_s5 + $0x3a8] ss:$16 sps:$4 sm:$0xff]   ;;  %v12782_v16 = vld [vmem:[%s17750_s5 + $0x3c4] ss:$16 sps:$4 sm:$0xff]  }
 0x4a0   : > { %9782 = vmatprep.mubr.bf16.mxu1 %v8146_v14  ;;  %9946 = vmatprep.mubr.bf16.mxu0 %v8146_v14  ;;  %v12788_v14 = vld [vmem:[%s17750_s5 + $0x3e4] ss:$16 sps:$4 sm:$0xff]  }
 0x4a1   : > { %9752 = vmatprep.subr.bf16.mxu1 %v12704_v53  ;;  %9916 = vmatprep.subr.bf16.mxu0 %v12707_v4  ;;  %v12780_v53 = vld [vmem:[%s17750_s5 + $0x3c0] ss:$16 sps:$4 sm:$0xff]   ;;  %v12783_v4 = vld [vmem:[%s17750_s5 + $0x3c8] ss:$16 sps:$4 sm:$0xff]  }
 0x4a3   : > { %9753 = vmatpush1.bf16.msra.mxu1 %v12702_v40  ;;  %9917 = vmatpush1.bf16.msra.mxu0 %v12705_v24  ;;  %v12791_v40 = vld [vmem:[%s17750_s5 + $0x3ec] ss:$16 sps:$4 sm:$0xff]   ;;  %v12786_v24 = vld [vmem:[%s17750_s5 + $0x3e0] ss:$16 sps:$4 sm:$0xff]  }
 0x4a4   : > { %9754 = vmatprep.subr.bf16.mxu1 %v12710_v19  ;;  %9918 = vmatprep.subr.bf16.mxu0 %v12713_v43  ;;  %v12789_v19 = vld [vmem:[%s17750_s5 + $0x3e8] ss:$16 sps:$4 sm:$0xff]   ;;  %v12794_v43 = vld [vmem:[%s17750_s5 + $0x404] ss:$16 sps:$4 sm:$0xff]  }
 0x4a7   : > { %9755 = vmatpush1.bf16.msra.mxu1 %v12708_v59  ;;  %9919 = vmatpush1.bf16.msra.mxu0 %v12711_v20  ;;  %v12797_v59 = vld [vmem:[%s17750_s5 + $0x40c] ss:$16 sps:$4 sm:$0xff]   ;;  %v12792_v20 = vld [vmem:[%s17750_s5 + $0x400] ss:$16 sps:$4 sm:$0xff]  }
 0x4a8   : > { %9756 = vmatprep.subr.bf16.mxu1 %v12716_v39  ;;  %9920 = vmatprep.subr.bf16.mxu0 %v12719_v30  ;;  %v8145_v39 = vpack.c.bf16 %v16999_v45, %v16999_v45  ;;  %v12795_v30 = vld [vmem:[%s17750_s5 + $0x408] ss:$16 sps:$4 sm:$0xff]   ;;  %v12798_v45 = vld [vmem:[%s17750_s5 + $0x420] ss:$16 sps:$4 sm:$0xff]  }
 0x4ab   : > { %9757 = vmatpush1.bf16.msra.mxu1 %v12714_v48  ;;  %9921 = vmatpush1.bf16.msra.mxu0 %v12717_v15  ;;  %v8148_v48 = vpack.c.bf16 %v17001_v54, %v17001_v54  ;;  %v12800_v15 = vld [vmem:[%s17750_s5 + $0x424] ss:$16 sps:$4 sm:$0xff]   ;;  %v12801_v54 = vld [vmem:[%s17750_s5 + $0x428] ss:$16 sps:$4 sm:$0xff]  }
 0x4ac   : > { %9758 = vmatprep.subr.bf16.mxu1 %v12722_v7  ;;  %9922 = vmatprep.subr.bf16.mxu0 %v12725_v38  ;;  %v12803_v7 = vld [vmem:[%s17750_s5 + $0x42c] ss:$16 sps:$4 sm:$0xff]   ;;  %v12806_v38 = vld [vmem:[%s17750_s5 + $0x444] ss:$16 sps:$4 sm:$0xff]  }
 0x4af   : > { %9759 = vmatpush1.bf16.msra.mxu1 %v12720_v0  ;;  %9923 = vmatpush1.bf16.msra.mxu0 %v12723_v13  ;;  %v12809_v0 = vld [vmem:[%s17750_s5 + $0x44c] ss:$16 sps:$4 sm:$0xff]   ;;  %v12804_v13 = vld [vmem:[%s17750_s5 + $0x440] ss:$16 sps:$4 sm:$0xff]  }
 0x4b0   : > { %9760 = vmatprep.subr.bf16.mxu1 %v12728_v31  ;;  %9924 = vmatprep.subr.bf16.mxu0 %v12731_v17  ;;  %v12807_v31 = vld [vmem:[%s17750_s5 + $0x448] ss:$16 sps:$4 sm:$0xff]   ;;  %v12812_v17 = vld [vmem:[%s17750_s5 + $0x464] ss:$16 sps:$4 sm:$0xff]  }
 0x4b3   : > { %9761 = vmatpush1.bf16.msra.mxu1 %v12726_v62  ;;  %9925 = vmatpush1.bf16.msra.mxu0 %v12729_v57  ;;  %v12815_v62 = vld [vmem:[%s17750_s5 + $0x46c] ss:$16 sps:$4 sm:$0xff]   ;;  %v12810_v57 = vld [vmem:[%s17750_s5 + $0x460] ss:$16 sps:$4 sm:$0xff]  }
 0x4b4   : > { %9762 = vmatprep.subr.bf16.mxu1 %v12734_v37  ;;  %9926 = vmatprep.subr.bf16.mxu0 %v12737_v22  ;;  %v12813_v37 = vld [vmem:[%s17750_s5 + $0x468] ss:$16 sps:$4 sm:$0xff]   ;;  %v12818_v22 = vld [vmem:[%s17750_s5 + $0x484] ss:$16 sps:$4 sm:$0xff]  }
 0x4b7   : > { %9763 = vmatpush1.bf16.msra.mxu1 %v12732_v26  ;;  %9927 = vmatpush1.bf16.msra.mxu0 %v12735_v56  ;;  %v12821_v26 = vld [vmem:[%s17750_s5 + $0x48c] ss:$16 sps:$4 sm:$0xff]   ;;  %v12816_v56 = vld [vmem:[%s17750_s5 + $0x480] ss:$16 sps:$4 sm:$0xff]  }
 0x4b8   : > { %9764 = vmatprep.subr.bf16.mxu1 %v12740_v35  ;;  %9928 = vmatprep.subr.bf16.mxu0 %v12743_v61  ;;  %v12819_v35 = vld [vmem:[%s17750_s5 + $0x488] ss:$16 sps:$4 sm:$0xff]   ;;  %v12824_v61 = vld [vmem:[%s17750_s5 + $0x4a4] ss:$16 sps:$4 sm:$0xff]  }
 0x4bb   : > { %9765 = vmatpush1.bf16.msra.mxu1 %v12738_v52  ;;  %9929 = vmatpush1.bf16.msra.mxu0 %v12741_v3  ;;  %v12827_v52 = vld [vmem:[%s17750_s5 + $0x4ac] ss:$16 sps:$4 sm:$0xff]   ;;  %v12822_v3 = vld [vmem:[%s17750_s5 + $0x4a0] ss:$16 sps:$4 sm:$0xff]  }
 0x4bc   : > { %9766 = vmatprep.subr.bf16.mxu1 %v12746_v42  ;;  %9930 = vmatprep.subr.bf16.mxu0 %v12749_v49  ;;  %v12825_v42 = vld [vmem:[%s17750_s5 + $0x4a8] ss:$16 sps:$4 sm:$0xff]   ;;  %v12830_v49 = vld [vmem:[%s17750_s5 + $0x4c4] ss:$16 sps:$4 sm:$0xff]  }
 0x4bf   : > { %9767 = vmatpush1.bf16.msra.mxu1 %v12744_v46  ;;  %9931 = vmatpush1.bf16.msra.mxu0 %v12747_v34  ;;  %v12833_v46 = vld [vmem:[%s17750_s5 + $0x4cc] ss:$16 sps:$4 sm:$0xff]   ;;  %v12828_v34 = vld [vmem:[%s17750_s5 + $0x4c0] ss:$16 sps:$4 sm:$0xff]  }
 0x4c0   : > { %9768 = vmatprep.subr.bf16.mxu1 %v12752_v11  ;;  %9932 = vmatprep.subr.bf16.mxu0 %v12755_v58  ;;  %v12831_v11 = vld [vmem:[%s17750_s5 + $0x4c8] ss:$16 sps:$4 sm:$0xff]   ;;  %v12836_v58 = vld [vmem:[%s17750_s5 + $0x4e4] ss:$16 sps:$4 sm:$0xff]  }
 0x4c3   : > { %9769 = vmatpush1.bf16.msra.mxu1 %v12750_v9  ;;  %9933 = vmatpush1.bf16.msra.mxu0 %v12753_v55  ;;  %v12839_v9 = vld [vmem:[%s17750_s5 + $0x4ec] ss:$16 sps:$4 sm:$0xff]   ;;  %v12834_v55 = vld [vmem:[%s17750_s5 + $0x4e0] ss:$16 sps:$4 sm:$0xff]  }
 0x4c4   : > { %9770 = vmatprep.subr.bf16.mxu1 %v12758_v36  ;;  %9934 = vmatprep.subr.bf16.mxu0 %v12761_v50  ;;  %v12837_v36 = vld [vmem:[%s17750_s5 + $0x4e8] ss:$16 sps:$4 sm:$0xff]   ;;  %v12842_v50 = vld [vmem:[%s17750_s5 + $0x504] ss:$16 sps:$4 sm:$0xff]  }
 0x4c7   : > { %9771 = vmatpush1.bf16.msra.mxu1 %v12756_v23  ;;  %9935 = vmatpush1.bf16.msra.mxu0 %v12759_v18  ;;  %v12845_v23 = vld [vmem:[%s17750_s5 + $0x50c] ss:$16 sps:$4 sm:$0xff]   ;;  %v12840_v18 = vld [vmem:[%s17750_s5 + $0x500] ss:$16 sps:$4 sm:$0xff]  }
 0x4c8   : > { %9772 = vmatprep.subr.bf16.mxu1 %v12764_v28  ;;  %9936 = vmatprep.subr.bf16.mxu0 %v12767_v2  ;;  %v12843_v28 = vld [vmem:[%s17750_s5 + $0x508] ss:$16 sps:$4 sm:$0xff]   ;;  %v12848_v2 = vld [vmem:[%s17750_s5 + $0x524] ss:$16 sps:$4 sm:$0xff]  }
 0x4cb   : > { %9773 = vmatpush1.bf16.msra.mxu1 %v12762_v27  ;;  %9937 = vmatpush1.bf16.msra.mxu0 %v12765_v10  ;;  %v12851_v27 = vld [vmem:[%s17750_s5 + $0x52c] ss:$16 sps:$4 sm:$0xff]   ;;  %v12846_v10 = vld [vmem:[%s17750_s5 + $0x520] ss:$16 sps:$4 sm:$0xff]  }
 0x4cc   : > { %9774 = vmatprep.subr.bf16.mxu1 %v12770_v6  ;;  %9938 = vmatprep.subr.bf16.mxu0 %v12773_v29  ;;  %v12849_v6 = vld [vmem:[%s17750_s5 + $0x528] ss:$16 sps:$4 sm:$0xff]   ;;  %v12854_v29 = vld [vmem:[%s17750_s5 + $0x544] ss:$16 sps:$4 sm:$0xff]  }
 0x4cf   : > { %9775 = vmatpush1.bf16.msra.mxu1 %v12768_v8  ;;  %9939 = vmatpush1.bf16.msra.mxu0 %v12771_v60  ;;  %v12857_v8 = vld [vmem:[%s17750_s5 + $0x54c] ss:$16 sps:$4 sm:$0xff]   ;;  %v12852_v60 = vld [vmem:[%s17750_s5 + $0x540] ss:$16 sps:$4 sm:$0xff]  }
 0x4d0   : > { %9776 = vmatprep.subr.bf16.mxu1 %v12776_v21  ;;  %9940 = vmatprep.subr.bf16.mxu0 %v12779_v44  ;;  %v12855_v21 = vld [vmem:[%s17750_s5 + $0x548] ss:$16 sps:$4 sm:$0xff]   ;;  %v12860_v44 = vld [vmem:[%s17750_s5 + $0x564] ss:$16 sps:$4 sm:$0xff]  }
 0x4d3   : > { %9777 = vmatpush1.bf16.msra.mxu1 %v12774_v33  ;;  %9941 = vmatpush1.bf16.msra.mxu0 %v12777_v12  ;;  %v12863_v33 = vld [vmem:[%s17750_s5 + $0x56c] ss:$16 sps:$4 sm:$0xff]   ;;  %v12858_v12 = vld [vmem:[%s17750_s5 + $0x560] ss:$16 sps:$4 sm:$0xff]  }
 0x4d4   : > { %9778 = vmatprep.subr.bf16.mxu1 %v12782_v16  ;;  %9942 = vmatprep.subr.bf16.mxu0 %v12785_v32  ;;  %v12861_v16 = vld [vmem:[%s17750_s5 + $0x568] ss:$16 sps:$4 sm:$0xff]   ;;  %v12866_v32 = vld [vmem:[%s17750_s5 + $0x584] ss:$16 sps:$4 sm:$0xff]  }
 0x4d7   : > { %9779 = vmatpush1.bf16.msra.mxu1 %v12780_v53  ;;  %9943 = vmatpush1.bf16.msra.mxu0 %v12783_v4  ;;  %v12869_v53 = vld [vmem:[%s17750_s5 + $0x58c] ss:$16 sps:$4 sm:$0xff]   ;;  %v12864_v4 = vld [vmem:[%s17750_s5 + $0x580] ss:$16 sps:$4 sm:$0xff]  }
 0x4d8   : > { %9780 = vmatprep.subr.bf16.mxu1 %v12788_v14  ;;  %9944 = vmatprep.subr.bf16.mxu0 %v12791_v40  ;;  %v12867_v14 = vld [vmem:[%s17750_s5 + $0x588] ss:$16 sps:$4 sm:$0xff]   ;;  %v12872_v40 = vld [vmem:[%s17750_s5 + $0x5a4] ss:$16 sps:$4 sm:$0xff]  }
 0x4db   : > { %9781 = vmatpush1.bf16.msra.mxu1 %v12786_v24  ;;  %9945 = vmatpush1.bf16.msra.mxu0 %v12789_v19  ;;  %v12875_v24 = vld [vmem:[%s17750_s5 + $0x5ac] ss:$16 sps:$4 sm:$0xff]   ;;  %v12870_v19 = vld [vmem:[%s17750_s5 + $0x5a0] ss:$16 sps:$4 sm:$0xff]  }
 0x4dc   : > { %9791 = vmatprep.subr.bf16.mxu1 %v12794_v43  ;;  %9955 = vmatprep.subr.bf16.mxu0 %v12797_v59  ;;  %v12873_v43 = vld [vmem:[%s17750_s5 + $0x5a8] ss:$16 sps:$4 sm:$0xff]   ;;  %v12878_v59 = vld [vmem:[%s17750_s5 + $0x5c4] ss:$16 sps:$4 sm:$0xff]  }
 0x4de   : > { %9783 = vmatmul.mubr.bf16.vlgmr.msra.gmra.mrb[64].mxu1 %v8145_v39  ;;  %9947 = vmatmul.mubr.bf16.vlgmr.msra.gmra.mrb[112].mxu0 %v8145_v39  ;;  %v12876_v39 = vld [vmem:[%s17750_s5 + $0x5c0] ss:$16 sps:$4 sm:$0xff]  }
 0x4df   : > { %9792 = vmatpush1.bf16.msra.mxu1 %v12792_v20  ;;  %9823 = vmatprep.mubr.bf16.mxu1 %v8148_v48  ;;  %v12881_v20 = vld [vmem:[%s17750_s5 + $0x5cc] ss:$16 sps:$4 sm:$0xff]  }
 0x4e0   : > { %9956 = vmatpush1.bf16.msra.mxu0 %v12795_v30  ;;  %9987 = vmatprep.mubr.bf16.mxu0 %v8148_v48  ;;  %v12879_v30 = vld [vmem:[%s17750_s5 + $0x5c8] ss:$16 sps:$4 sm:$0xff]   ;;  %v12884_v48 = vld [vmem:[%s17750_s5 + $0x5e4] ss:$16 sps:$4 sm:$0xff]  }
 0x4e1   : > { %9793 = vmatprep.subr.bf16.mxu1 %v12800_v15  ;;  %9957 = vmatprep.subr.bf16.mxu0 %v12803_v7  ;;  %v12887_v15 = vld [vmem:[%s17750_s5 + $0x5ec] ss:$16 sps:$4 sm:$0xff]   ;;  %v12882_v7 = vld [vmem:[%s17750_s5 + $0x5e0] ss:$16 sps:$4 sm:$0xff]  }
 0x4e3   : > { %9794 = vmatpush1.bf16.msra.mxu1 %v12798_v45  ;;  %v12885_v45 = vld [vmem:[%s17750_s5 + $0x5e8] ss:$16 sps:$4 sm:$0xff]  }
 0x4e4   : > { %9958 = vmatpush1.bf16.msra.mxu0 %v12801_v54  ;;  %9795 = vmatprep.subr.bf16.mxu1 %v12806_v38  ;;  %v12890_v54 = vld [vmem:[%s17750_s5 + $0x604] ss:$16 sps:$4 sm:$0xff]   ;;  %v12893_v38 = vld [vmem:[%s17750_s5 + $0x60c] ss:$16 sps:$4 sm:$0xff]  }
 0x4e5   : > { %9959 = vmatprep.subr.bf16.mxu0 %v12809_v0  ;;  %v12888_v0 = vld [vmem:[%s17750_s5 + $0x600] ss:$16 sps:$4 sm:$0xff]  }
 0x4e7   : > { %9796 = vmatpush1.bf16.msra.mxu1 %v12804_v13  ;;  %v8147_v13 = vpack.c.bf16 %v17003_v47, %v17003_v47  ;;  %v12894_v47 = vld [vmem:[%s17750_s5 + $0x620] ss:$16 sps:$4 sm:$0xff]  }
 0x4e8   : > { %9960 = vmatpush1.bf16.msra.mxu0 %v12807_v31  ;;  %9797 = vmatprep.subr.bf16.mxu1 %v12812_v17  ;;  %v12891_v31 = vld [vmem:[%s17750_s5 + $0x608] ss:$16 sps:$4 sm:$0xff]   ;;  %v12896_v17 = vld [vmem:[%s17750_s5 + $0x624] ss:$16 sps:$4 sm:$0xff]  }
 0x4e9   : > { %9961 = vmatprep.subr.bf16.mxu0 %v12815_v62  ;;  %v8150_v62 = vpack.c.bf16 %v17005_v51, %v17005_v51  ;;  %v12902_v51 = vld [vmem:[%s17750_s5 + $0x644] ss:$16 sps:$4 sm:$0xff]  }
 0x4eb   : > { %9798 = vmatpush1.bf16.msra.mxu1 %v12810_v57  ;;  %v12899_v57 = vld [vmem:[%s17750_s5 + $0x62c] ss:$16 sps:$4 sm:$0xff]  }
 0x4ec   : > { %9962 = vmatpush1.bf16.msra.mxu0 %v12813_v37  ;;  %9799 = vmatprep.subr.bf16.mxu1 %v12818_v22  ;;  %v12897_v37 = vld [vmem:[%s17750_s5 + $0x628] ss:$16 sps:$4 sm:$0xff]   ;;  %v12905_v22 = vld [vmem:[%s17750_s5 + $0x64c] ss:$16 sps:$4 sm:$0xff]  }
 0x4ed   : > { %9963 = vmatprep.subr.bf16.mxu0 %v12821_v26  ;;  %v12900_v26 = vld [vmem:[%s17750_s5 + $0x640] ss:$16 sps:$4 sm:$0xff]  }
 0x4ef   : > { %9800 = vmatpush1.bf16.msra.mxu1 %v12816_v56  ;;  %v12903_v56 = vld [vmem:[%s17750_s5 + $0x648] ss:$16 sps:$4 sm:$0xff]  }
 0x4f0   : > { %9964 = vmatpush1.bf16.msra.mxu0 %v12819_v35  ;;  %9801 = vmatprep.subr.bf16.mxu1 %v12824_v61  ;;  %v12908_v35 = vld [vmem:[%s17750_s5 + $0x664] ss:$16 sps:$4 sm:$0xff]   ;;  %v12911_v61 = vld [vmem:[%s17750_s5 + $0x66c] ss:$16 sps:$4 sm:$0xff]  }
 0x4f1   : > { %9965 = vmatprep.subr.bf16.mxu0 %v12827_v52  ;;  %v12906_v52 = vld [vmem:[%s17750_s5 + $0x660] ss:$16 sps:$4 sm:$0xff]  }
 0x4f3   : > { %9802 = vmatpush1.bf16.msra.mxu1 %v12822_v3  ;;  %v12909_v3 = vld [vmem:[%s17750_s5 + $0x668] ss:$16 sps:$4 sm:$0xff]  }
 0x4f4   : > { %9966 = vmatpush1.bf16.msra.mxu0 %v12825_v42  ;;  %9803 = vmatprep.subr.bf16.mxu1 %v12830_v49  ;;  %v12914_v42 = vld [vmem:[%s17750_s5 + $0x684] ss:$16 sps:$4 sm:$0xff]   ;;  %v12917_v49 = vld [vmem:[%s17750_s5 + $0x68c] ss:$16 sps:$4 sm:$0xff]  }
 0x4f5   : > { %9967 = vmatprep.subr.bf16.mxu0 %v12833_v46  ;;  %v12912_v46 = vld [vmem:[%s17750_s5 + $0x680] ss:$16 sps:$4 sm:$0xff]  }
 0x4f7   : > { %9804 = vmatpush1.bf16.msra.mxu1 %v12828_v34  ;;  %v12915_v34 = vld [vmem:[%s17750_s5 + $0x688] ss:$16 sps:$4 sm:$0xff]  }
 0x4f8   : > { %9968 = vmatpush1.bf16.msra.mxu0 %v12831_v11  ;;  %9805 = vmatprep.subr.bf16.mxu1 %v12836_v58  ;;  %v12920_v11 = vld [vmem:[%s17750_s5 + $0x6a4] ss:$16 sps:$4 sm:$0xff]   ;;  %v12923_v58 = vld [vmem:[%s17750_s5 + $0x6ac] ss:$16 sps:$4 sm:$0xff]  }
 0x4f9   : > { %9969 = vmatprep.subr.bf16.mxu0 %v12839_v9  ;;  %v12918_v9 = vld [vmem:[%s17750_s5 + $0x6a0] ss:$16 sps:$4 sm:$0xff]  }
 0x4fb   : > { %9806 = vmatpush1.bf16.msra.mxu1 %v12834_v55  ;;  %v12921_v55 = vld [vmem:[%s17750_s5 + $0x6a8] ss:$16 sps:$4 sm:$0xff]  }
 0x4fc   : > { %9970 = vmatpush1.bf16.msra.mxu0 %v12837_v36  ;;  %9807 = vmatprep.subr.bf16.mxu1 %v12842_v50  ;;  %v12926_v36 = vld [vmem:[%s17750_s5 + $0x6c4] ss:$16 sps:$4 sm:$0xff]   ;;  %v12929_v50 = vld [vmem:[%s17750_s5 + $0x6cc] ss:$16 sps:$4 sm:$0xff]  }
 0x4fd   : > { %9971 = vmatprep.subr.bf16.mxu0 %v12845_v23  ;;  %v12924_v23 = vld [vmem:[%s17750_s5 + $0x6c0] ss:$16 sps:$4 sm:$0xff]  }
 0x4ff   : > { %9808 = vmatpush1.bf16.msra.mxu1 %v12840_v18  ;;  %v12927_v18 = vld [vmem:[%s17750_s5 + $0x6c8] ss:$16 sps:$4 sm:$0xff]  }
 0x500   : > { %9972 = vmatpush1.bf16.msra.mxu0 %v12843_v28  ;;  %9809 = vmatprep.subr.bf16.mxu1 %v12848_v2  ;;  %v12932_v28 = vld [vmem:[%s17750_s5 + $0x6e4] ss:$16 sps:$4 sm:$0xff]   ;;  %v12935_v2 = vld [vmem:[%s17750_s5 + $0x6ec] ss:$16 sps:$4 sm:$0xff]  }
 0x501   : > { %9973 = vmatprep.subr.bf16.mxu0 %v12851_v27  ;;  %v12930_v27 = vld [vmem:[%s17750_s5 + $0x6e0] ss:$16 sps:$4 sm:$0xff]  }
 0x503   : > { %9810 = vmatpush1.bf16.msra.mxu1 %v12846_v10  ;;  %v12933_v10 = vld [vmem:[%s17750_s5 + $0x6e8] ss:$16 sps:$4 sm:$0xff]  }
 0x504   : > { %9974 = vmatpush1.bf16.msra.mxu0 %v12849_v6  ;;  %9811 = vmatprep.subr.bf16.mxu1 %v12854_v29  ;;  %v12938_v6 = vld [vmem:[%s17750_s5 + $0x704] ss:$16 sps:$4 sm:$0xff]   ;;  %v12941_v29 = vld [vmem:[%s17750_s5 + $0x70c] ss:$16 sps:$4 sm:$0xff]  }
 0x505   : > { %9975 = vmatprep.subr.bf16.mxu0 %v12857_v8  ;;  %v12936_v8 = vld [vmem:[%s17750_s5 + $0x700] ss:$16 sps:$4 sm:$0xff]  }
 0x507   : > { %9812 = vmatpush1.bf16.msra.mxu1 %v12852_v60  ;;  %v12939_v60 = vld [vmem:[%s17750_s5 + $0x708] ss:$16 sps:$4 sm:$0xff]  }
 0x508   : > { %9976 = vmatpush1.bf16.msra.mxu0 %v12855_v21  ;;  %9813 = vmatprep.subr.bf16.mxu1 %v12860_v44  ;;  %v12944_v21 = vld [vmem:[%s17750_s5 + $0x724] ss:$16 sps:$4 sm:$0xff]   ;;  %v12947_v44 = vld [vmem:[%s17750_s5 + $0x72c] ss:$16 sps:$4 sm:$0xff]  }
 0x509   : > { %9977 = vmatprep.subr.bf16.mxu0 %v12863_v33  ;;  %v12942_v33 = vld [vmem:[%s17750_s5 + $0x720] ss:$16 sps:$4 sm:$0xff]  }
 0x50b   : > { %9814 = vmatpush1.bf16.msra.mxu1 %v12858_v12  ;;  %v12945_v12 = vld [vmem:[%s17750_s5 + $0x728] ss:$16 sps:$4 sm:$0xff]  }
 0x50c   : > { %9978 = vmatpush1.bf16.msra.mxu0 %v12861_v16  ;;  %9815 = vmatprep.subr.bf16.mxu1 %v12866_v32  ;;  %v12950_v16 = vld [vmem:[%s17750_s5 + $0x744] ss:$16 sps:$4 sm:$0xff]   ;;  %v12953_v32 = vld [vmem:[%s17750_s5 + $0x74c] ss:$16 sps:$4 sm:$0xff]  }
 0x50d   : > { %9979 = vmatprep.subr.bf16.mxu0 %v12869_v53  ;;  %v12948_v53 = vld [vmem:[%s17750_s5 + $0x740] ss:$16 sps:$4 sm:$0xff]  }
 0x50f   : > { %9816 = vmatpush1.bf16.msra.mxu1 %v12864_v4  ;;  %v12951_v4 = vld [vmem:[%s17750_s5 + $0x748] ss:$16 sps:$4 sm:$0xff]  }
 0x510   : > { %9980 = vmatpush1.bf16.msra.mxu0 %v12867_v14  ;;  %9817 = vmatprep.subr.bf16.mxu1 %v12872_v40  ;;  %v12956_v14 = vld [vmem:[%s17750_s5 + $0x764] ss:$16 sps:$4 sm:$0xff]   ;;  %v12959_v40 = vld [vmem:[%s17750_s5 + $0x76c] ss:$16 sps:$4 sm:$0xff]  }
 0x511   : > { %9981 = vmatprep.subr.bf16.mxu0 %v12875_v24  ;;  %v12954_v24 = vld [vmem:[%s17750_s5 + $0x760] ss:$16 sps:$4 sm:$0xff]  }
 0x513   : > { %9818 = vmatpush1.bf16.msra.mxu1 %v12870_v19  ;;  %v12957_v19 = vld [vmem:[%s17750_s5 + $0x768] ss:$16 sps:$4 sm:$0xff]  }
 0x514   : > { %9982 = vmatpush1.bf16.msra.mxu0 %v12873_v43  ;;  %9819 = vmatprep.subr.bf16.mxu1 %v12878_v59  ;;  %v12962_v43 = vld [vmem:[%s17750_s5 + $0x784] ss:$16 sps:$4 sm:$0xff]   ;;  %v12965_v59 = vld [vmem:[%s17750_s5 + $0x78c] ss:$16 sps:$4 sm:$0xff]  }
 0x515   : > { %9983 = vmatprep.subr.bf16.mxu0 %v12881_v20  ;;  %v12960_v20 = vld [vmem:[%s17750_s5 + $0x780] ss:$16 sps:$4 sm:$0xff]  }
 0x517   : > { %9820 = vmatpush1.bf16.msra.mxu1 %v12876_v39  ;;  %v12963_v39 = vld [vmem:[%s17750_s5 + $0x788] ss:$16 sps:$4 sm:$0xff]  }
 0x518   : > { %9984 = vmatpush1.bf16.msra.mxu0 %v12879_v30  ;;  %9821 = vmatprep.subr.bf16.mxu1 %v12884_v48  ;;  %v12968_v30 = vld [vmem:[%s17750_s5 + $0x7a4] ss:$16 sps:$4 sm:$0xff]   ;;  %v12971_v48 = vld [vmem:[%s17750_s5 + $0x7ac] ss:$16 sps:$4 sm:$0xff]  }
 0x519   : > { %9985 = vmatprep.subr.bf16.mxu0 %v12887_v15  ;;  %v12966_v15 = vld [vmem:[%s17750_s5 + $0x7a0] ss:$16 sps:$4 sm:$0xff]  }
 0x51b   : > { %9822 = vmatpush1.bf16.msra.mxu1 %v12882_v7  ;;  %v12969_v7 = vld [vmem:[%s17750_s5 + $0x7a8] ss:$16 sps:$4 sm:$0xff]  }
 0x51c   : > { %9986 = vmatpush1.bf16.msra.mxu0 %v12885_v45  ;;  %9832 = vmatprep.subr.bf16.mxu1 %v12890_v54  ;;  %v12974_v45 = vld [vmem:[%s17750_s5 + $0x7c4] ss:$16 sps:$4 sm:$0xff]   ;;  %v12977_v54 = vld [vmem:[%s17750_s5 + $0x7cc] ss:$16 sps:$4 sm:$0xff]  }
 0x51d   : > { %9996 = vmatprep.subr.bf16.mxu0 %v12893_v38  ;;  %v12972_v38 = vld [vmem:[%s17750_s5 + $0x7c0] ss:$16 sps:$4 sm:$0xff]  }
 0x51e   : > { %9824 = vmatmul.mubr.bf16.vlgmr.msra.gmra.mrb[64].mxu1 %v8147_v13 }
 0x51f   : > { %9988 = vmatmul.mubr.bf16.vlgmr.msra.gmra.mrb[112].mxu0 %v8147_v13  ;;  %9833 = vmatpush1.bf16.msra.mxu1 %v12888_v0  ;;  %v12975_v0 = vld [vmem:[%s17750_s5 + $0x7c8] ss:$16 sps:$4 sm:$0xff]   ;;  %v12980_v13 = vld [vmem:[%s17750_s5 + $0x7e4] ss:$16 sps:$4 sm:$0xff]  }
 0x520   : > { %9864 = vmatprep.mubr.bf16.mxu1 %v8150_v62  ;;  %9997 = vmatpush1.bf16.msra.mxu0 %v12891_v31  ;;  %v12983_v31 = vld [vmem:[%s17750_s5 + $0x7ec] ss:$16 sps:$4 sm:$0xff]  }
 0x521   : > { %10028 = vmatprep.mubr.bf16.mxu0 %v8150_v62  ;;  %9834 = vmatprep.subr.bf16.mxu1 %v12896_v17  ;;  %v12978_v17 = vld [vmem:[%s17750_s5 + $0x7e0] ss:$16 sps:$4 sm:$0xff]   ;;  %v12981_v62 = vld [vmem:[%s17750_s5 + $0x7e8] ss:$16 sps:$4 sm:$0xff]  }
 0x522   : > { %9998 = vmatprep.subr.bf16.mxu0 %v12899_v57  ;;  %v12984_v57 = vld [vmem:[%s17752_s7 + $0x40] sm:$0xff]  }
 0x523   : > { %9835 = vmatpush1.bf16.msra.mxu1 %v12894_v47  ;;  %v12985_v47 = vld [vmem:[%s17752_s7] sm:$0xff]  }
 0x524   : > { %9999 = vmatpush1.bf16.msra.mxu0 %v12897_v37  ;;  %9836 = vmatprep.subr.bf16.mxu1 %v12902_v51  ;;  %v8149_v37 = vpack.c.bf16 %v17007_v41, %v17007_v41  ;;  %v12986_v51 = vld [vmem:[%s17752_s7 + $0x48] sm:$0xff]   ;;  %v12989_v41 = vld [vmem:[%s17752_s7 + $0x10] sm:$0xff]  }
 0x525   : > { %10000 = vmatprep.subr.bf16.mxu0 %v12905_v22  ;;  %v12987_v22 = vld [vmem:[%s17752_s7 + $0x8] sm:$0xff]  }
 0x527   : > { %9837 = vmatpush1.bf16.msra.mxu1 %v12900_v26  ;;  %v12988_v26 = vld [vmem:[%s17752_s7 + $0x50] sm:$0xff]  }
 0x528   : > { %10001 = vmatpush1.bf16.msra.mxu0 %v12903_v56  ;;  %9838 = vmatprep.subr.bf16.mxu1 %v12908_v35  ;;  %v12990_v56 = vld [vmem:[%s17752_s7 + $0x58] sm:$0xff]  }
 0x529   : > { %10002 = vmatprep.subr.bf16.mxu0 %v12911_v61  ;;  %v12991_v35 = vld [vmem:[%s17752_s7 + $0x18] sm:$0xff]   ;;  %v12992_v61 = vld [vmem:[%s17752_s7 + $0x60] sm:$0xff]  }
 0x52b   : > { %9839 = vmatpush1.bf16.msra.mxu1 %v12906_v52  ;;  %v12993_v52 = vld [vmem:[%s17752_s7 + $0x20] sm:$0xff]  }
 0x52c   : > { %10003 = vmatpush1.bf16.msra.mxu0 %v12909_v3  ;;  %9840 = vmatprep.subr.bf16.mxu1 %v12914_v42  ;;  %v12994_v3 = vld [vmem:[%s17752_s7 + $0x68] sm:$0xff]  }
 0x52d   : > { %10004 = vmatprep.subr.bf16.mxu0 %v12917_v49  ;;  %v12995_v42 = vld [vmem:[%s17752_s7 + $0x28] sm:$0xff]   ;;  %v12996_v49 = vld [vmem:[%s17752_s7 + $0x70] sm:$0xff]  }
 0x52f   : > { %9841 = vmatpush1.bf16.msra.mxu1 %v12912_v46  ;;  %v12997_v46 = vld [vmem:[%s17752_s7 + $0x30] sm:$0xff]  }
 0x530   : > { %10005 = vmatpush1.bf16.msra.mxu0 %v12915_v34  ;;  %9842 = vmatprep.subr.bf16.mxu1 %v12920_v11  ;;  %v12998_v34 = vld [vmem:[%s17752_s7 + $0x78] sm:$0xff]  }
 0x531   : > { %10006 = vmatprep.subr.bf16.mxu0 %v12923_v58  ;;  %v12999_v11 = vld [vmem:[%s17752_s7 + $0x38] sm:$0xff]   ;;  %v13000_v58 = vld [vmem:[%s17752_s7 + $0xc0] sm:$0xff]  }
 0x533   : > { %9843 = vmatpush1.bf16.msra.mxu1 %v12918_v9  ;;  %v8407_v9 = vld [vmem:[%s17751_s6] sm:$0xf] }
 0x534   : > { %10007 = vmatpush1.bf16.msra.mxu0 %v12921_v55  ;;  %9844 = vmatprep.subr.bf16.mxu1 %v12926_v36  ;;  %v8412_v55 = vrot.slane %v8407_v9, %v18092_v1  ;;  %v8416_v36 = vrot.slane %v8407_v9, %v18094_v25  ;;  %v13001_v1 = vld [vmem:[%s17752_s7 + $0x80] sm:$0xff]  }
 0x535   : > { %10008 = vmatprep.subr.bf16.mxu0 %v12929_v50  ;;  %v8424_v50 = vrot.slane %v8407_v9, %v18095_v63  ;;  %v13002_v63 = vld [vmem:[%s17752_s7 + $0xc8] sm:$0xff]  }
 0x537   : > { %9845 = vmatpush1.bf16.msra.mxu1 %v12924_v23 }
 0x538   : > { %10009 = vmatpush1.bf16.msra.mxu0 %v12927_v18  ;;  %9846 = vmatprep.subr.bf16.mxu1 %v12932_v28 }
 0x539   : > { %10010 = vmatprep.subr.bf16.mxu0 %v12935_v2 }
 0x53b   : > { %9847 = vmatpush1.bf16.msra.mxu1 %v12930_v27 }
 0x53c   : > { %10011 = vmatpush1.bf16.msra.mxu0 %v12933_v10  ;;  %9848 = vmatprep.subr.bf16.mxu1 %v12938_v6 }
 0x53d   : > { %10012 = vmatprep.subr.bf16.mxu0 %v12941_v29 }
 0x53f   : > { %9849 = vmatpush1.bf16.msra.mxu1 %v12936_v8 }
 0x540   : > { %10013 = vmatpush1.bf16.msra.mxu0 %v12939_v60  ;;  %9850 = vmatprep.subr.bf16.mxu1 %v12944_v21 }
 0x541   : > { %10014 = vmatprep.subr.bf16.mxu0 %v12947_v44 }
 0x543   : > { %9851 = vmatpush1.bf16.msra.mxu1 %v12942_v33 }
 0x544   : > { %10015 = vmatpush1.bf16.msra.mxu0 %v12945_v12  ;;  %9852 = vmatprep.subr.bf16.mxu1 %v12950_v16 }
 0x545   : > { %10016 = vmatprep.subr.bf16.mxu0 %v12953_v32 }
 0x547   : > { %9853 = vmatpush1.bf16.msra.mxu1 %v12948_v53  ;;  %v13003_v53 = vld [vmem:[%s17752_s7 + $0x88] sm:$0xff]  }
 0x548   : > { %10017 = vmatpush1.bf16.msra.mxu0 %v12951_v4  ;;  %9854 = vmatprep.subr.bf16.mxu1 %v12956_v14  ;;  %v13004_v4 = vld [vmem:[%s17752_s7 + $0xd0] sm:$0xff]  }
 0x549   : > { %10018 = vmatprep.subr.bf16.mxu0 %v12959_v40  ;;  %v13005_v14 = vld [vmem:[%s17752_s7 + $0x90] sm:$0xff]   ;;  %v13006_v40 = vld [vmem:[%s17752_s7 + $0xd8] sm:$0xff]  }
 0x54b   : > { %9855 = vmatpush1.bf16.msra.mxu1 %v12954_v24  ;;  %v13007_v24 = vld [vmem:[%s17752_s7 + $0x98] sm:$0xff]  }
 0x54c   : > { %10019 = vmatpush1.bf16.msra.mxu0 %v12957_v19  ;;  %9856 = vmatprep.subr.bf16.mxu1 %v12962_v43  ;;  %v13008_v19 = vld [vmem:[%s17752_s7 + $0xe0] sm:$0xff]  }
 0x54d   : > { %10020 = vmatprep.subr.bf16.mxu0 %v12965_v59  ;;  %v13009_v43 = vld [vmem:[%s17752_s7 + $0xa0] sm:$0xff]   ;;  %v13010_v59 = vld [vmem:[%s17752_s7 + $0xe8] sm:$0xff]  }
 0x54f   : > { %9857 = vmatpush1.bf16.msra.mxu1 %v12960_v20  ;;  %v13011_v20 = vld [vmem:[%s17752_s7 + $0xa8] sm:$0xff]  }
 0x550   : > { %10021 = vmatpush1.bf16.msra.mxu0 %v12963_v39  ;;  %9858 = vmatprep.subr.bf16.mxu1 %v12968_v30  ;;  %v8420_v39 = vrot.slane %v8407_v9, %v18093_v5  ;;  %v13012_v30 = vld [vmem:[%s17752_s7 + $0xf0] sm:$0xff]   ;;  %v13015_v5 = vld [vmem:[%s17752_s7 + $0xb8] sm:$0xff]  }
 0x551   : > { %10022 = vmatprep.subr.bf16.mxu0 %v12971_v48  ;;  %v13013_v48 = vld [vmem:[%s17752_s7 + $0xb0] sm:$0xff]  }
 0x553   : > { %9859 = vmatpush1.bf16.msra.mxu1 %v12966_v15 }
 0x554   : > { %10023 = vmatpush1.bf16.msra.mxu0 %v12969_v7  ;;  %9860 = vmatprep.subr.bf16.mxu1 %v12974_v45  ;;  %v13014_v7 = vld [vmem:[%s17752_s7 + $0xf8] sm:$0xff]  }
 0x555   : > { %10024 = vmatprep.subr.bf16.mxu0 %v12977_v54 }
 0x557   : > { %9861 = vmatpush1.bf16.msra.mxu1 %v12972_v38 }
 0x558   : > { %10025 = vmatpush1.bf16.msra.mxu0 %v12975_v0  ;;  %9862 = vmatprep.subr.bf16.mxu1 %v12980_v13 }
 0x559   : > { %10026 = vmatprep.subr.bf16.mxu0 %v12983_v31 }
 0x55b   : > { %9863 = vmatpush1.bf16.msra.mxu1 %v12978_v17 }
 0x55c   : > { %10027 = vmatpush1.bf16.msra.mxu0 %v12981_v62  ;;  %11428 = vmatprep.subr.bf16.mxu1 %v12984_v57  ;;  %v11389_v62 = vld [vmem:[%s17753_s8] ss:$0 sm:$0xff] }
 0x55e   : > { %9865 = vmatmul.mubr.bf16.vlgmr.msra.gmra.mrb[64].mxu1 %v8149_v37 }
 0x55f   : > { %10029 = vmatmul.mubr.bf16.vlgmr.msra.gmra.mrb[112].mxu0 %v8149_v37  ;;  %11429 = vmatpush3.bf16.msra.mxu1 %v12985_v47 }
 0x560   : > { %11430 = vmatprep.subr.bf16.mxu1 %v12986_v51 }
 0x563   : > { %11431 = vmatpush3.bf16.msra.mxu1 %v12987_v22 }
 0x564   : > { %11432 = vmatprep.subr.bf16.mxu1 %v12988_v26 }
 0x567   : > { %11433 = vmatpush3.bf16.msra.mxu1 %v12989_v41 }
 0x568   : > { %11434 = vmatprep.subr.bf16.mxu1 %v12990_v56 }
 0x56b   : > { %11435 = vmatpush3.bf16.msra.mxu1 %v12991_v35 }
 0x56c   : > { %11436 = vmatprep.subr.bf16.mxu1 %v12992_v61 }
 0x56f   : > { %11437 = vmatpush3.bf16.msra.mxu1 %v12993_v52 }
 0x570   : > { %11438 = vmatprep.subr.bf16.mxu1 %v12994_v3 }
 0x573   : > { %11439 = vmatpush3.bf16.msra.mxu1 %v12995_v42 }
 0x574   : > { %11440 = vmatprep.subr.bf16.mxu1 %v12996_v49 }
 0x577   : > { %11441 = vmatpush3.bf16.msra.mxu1 %v12997_v46 }
 0x578   : > { %11442 = vmatprep.subr.bf16.mxu1 %v12998_v34 }
 0x57b   : > { %11443 = vmatpush3.bf16.msra.mxu1 %v12999_v11 }
 0x57c   : > { %11450 = vmatprep.subr.bf16.mxu1 %v13000_v58 }
 0x631   : > { %v9866_v23 = vpop.f32.mrb[64].mxu1 }
 0x632   : > { %v11504_v18 = vadd.f32 %v9866_v23, %v8412_v55  ;;  %v10030_v28 = vpop.f32.mrb[112].mxu0  ;;  %v9868_v2 = vpop.f32.mrb[65].mxu1 }
 0x633   : > { %v11505_v27 = vadd.f32 %v9868_v2, %v8416_v36  ;;  %v10032_v10 = vpop.f32.mrb[113].mxu0  ;;  %v9870_v6 = vpop.f32.mrb[66].mxu1  ;;  %v11506_v15 = vadd.f32 %v10030_v28, %v8420_v39 }
 0x634   : > { %v10037_v29 = vmax.f32 %v11504_v18, 0.0  ;;  %v11507_v8 = vadd.f32 %v10032_v10, %v8424_v50  ;;  %v10034_v60 = vpop.f32.mrb[114].mxu0  ;;  %v9871_v21 = vpop.f32.mrb[67].mxu1 }
 0x635   : > { %v10038_v44 = vmax.f32 %v11505_v27, 0.0  ;;  %v10035_v33 = vpop.f32.mrb[115].mxu0  ;;  %v10039_v45 = vmax.f32 %v11506_v15, 0.0 }
 0x636   : > { %v10040_v12 = vmax.f32 %v11507_v8, 0.0  ;;  %v10041_v25 = vpack.c.bf16 %v10037_v29, %v10037_v29 }
 0x637   : > { %v10042_v16 = vpack.c.bf16 %v10038_v44, %v10038_v44  ;;  %v10043_v54 = vpack.c.bf16 %v10039_v45, %v10039_v45 }
 0x638   : > { %v10044_v32 = vpack.c.bf16 %v10040_v12, %v10040_v12 }
 0x639   : > { %10340 = vmatprep.mubr.bf16.mxu1 %v10042_v16 }
 0x63a   : > { %10341 = vmatmul.mubr.bf16.vlgmr.msra.gmra.mrb[68].mxu1 %v10041_v25 }
 0x63b   : > { %11451 = vmatpush3.bf16.msra.mxu1 %v13001_v1  ;;  %10380 = vmatprep.mubr.bf16.mxu1 %v10044_v32 }
 0x63c   : > { %11452 = vmatprep.subr.bf16.mxu1 %v13002_v63 }
 0x63f   : > { %11453 = vmatpush3.bf16.msra.mxu1 %v13003_v53 }
 0x640   : > { %11454 = vmatprep.subr.bf16.mxu1 %v13004_v4 }
 0x643   : > { %11455 = vmatpush3.bf16.msra.mxu1 %v13005_v14 }
 0x644   : > { %11456 = vmatprep.subr.bf16.mxu1 %v13006_v40 }
 0x647   : > { %11457 = vmatpush3.bf16.msra.mxu1 %v13007_v24 }
 0x648   : > { %11458 = vmatprep.subr.bf16.mxu1 %v13008_v19 }
 0x64b   : > { %11459 = vmatpush3.bf16.msra.mxu1 %v13009_v43 }
 0x64c   : > { %11460 = vmatprep.subr.bf16.mxu1 %v13010_v59 }
 0x64f   : > { %11461 = vmatpush3.bf16.msra.mxu1 %v13011_v20 }
 0x650   : > { %11462 = vmatprep.subr.bf16.mxu1 %v13012_v30 }
 0x653   : > { %11463 = vmatpush3.bf16.msra.mxu1 %v13013_v48 }
 0x654   : > { %11464 = vmatprep.subr.bf16.mxu1 %v13014_v7 }
 0x657   : > { %11465 = vmatpush3.bf16.msra.mxu1 %v13015_v5 }
 0x65a   : > { %10381 = vmatmul.mubr.bf16.vlgmr.msra.gmra.mrb[72].mxu1 %v10043_v54 }
 0x70d   : > { %v11444_v38 = vpop.f32.mrb[68].mxu1 }
 0x70e   : > { %v11445_v0 = vpop.f32.mrb[69].mxu1 }
 0x70f   : > { %v11446_v13 = vadd.f32 %v11445_v0, %v11444_v38  ;;  %v11447_v31 = vpop.f32.mrb[70].mxu1 }
 0x710   : > { %v11448_v17 = vpop.f32.mrb[71].mxu1 }
 0x711   : > { %v10343_v37 = vadd.f32 %v11446_v13, %v11389_v62 }
 0x72d   : > { %v11466_v57 = vpop.f32.mrb[72].mxu1 }
 0x72e   : > { %v11467_v47 = vpop.f32.mrb[73].mxu1 }
 0x72f   : > { %v11468_v51 = vadd.f32 %v11467_v47, %v11466_v57  ;;  %v11469_v22 = vpop.f32.mrb[74].mxu1 }
 0x730   : > { %v11470_v26 = vpop.f32.mrb[75].mxu1 }
 0x731   : > { %v10383_v41 = vadd.f32 %v11468_v51, %v10343_v37 }
 0x733   : > { %10388 = vst [vmem:[%s490_s24] sm:$0xff] %v10383_v41 }
 0x734   : > { %13029 = shalt.err (!%p13026_p5)
}
 0x735   : > { %s13030_s28 = scalar_lea.hbm %s17701_s14, 128  ;;  %s13034_s24 = scalar_lea.hbm %s17754_s9, 256 }
 0x736   : > { %p13031_p7 = scmp.ne.s32.totalorder %s17701_s14, %s13030_s28  ;;  %p13035_p12 = scmp.lt.u32.totalorder %s17701_s14, %s17754_s9 }
 0x737   : > { %p13036_p13 = scmp.lt.u32.totalorder %s13034_s24, %s13030_s28  ;;  %p13038_p1 = scmp.lt.u32.totalorder %s13030_s28, %s17701_s14 }
 0x738   : > { %p13032_p10 = pnand %p13031_p7, %p13173_p6 }
 0x739   : > { %p13037_p0 = por %p13036_p13, %p13035_p12 }
 0x73a   : > { %p13033_p11 = pneg %p13032_p10 }
 0x73b   : > { %p13039_p2 = por %p13038_p1, %p13037_p0 }
 0x73d   : > { %p13040_p3 = pnand %p13039_p2, %p13033_p11 }
 0x73f   : > { %13043 = shalt.err (!%p13040_p3)
}
 0x740   : > { %11756 = dma.vmem_to_hbm [thread:$0]  (%p13173_p6), %s17703_s26, 128, %s17701_s14, %s10390_s21  }
 0x741 PF: > { %s10415_s13 = sand.u32 1, %s13066_s30   ;;  %p11759_p4 = pnand %p10470_p9, %p13177_p8 }
 0x742   : > { %s10416_s16 = scalar_lea.sflag [#allocation4], %s10415_s13 }
 0x743   : > { %13061 = dma.done.wait (!%p11759_p4), %s10416_s16, 128  }
 0x744   : > { %13063 = vsyncadd (!%p11759_p4), %s10416_s16, 4294967168  ;;  %p19_p5 = scmp.ge.s32.totalorder %s13158_s15, 4   ;;  %s18097_s30 = smov %s13070_s10 }
 0x745   : > { %s18098_s10 = smov %s13074_s11  ;;  %s18099_s11 = smov %s13171_s18 }
 0x746   : > { %s18100_s12 = smov %s13158_s15  ;;  %21 = sbr.rel (!%p19_p5) target bundleno = 3 (0x3), region = 134 }
 0x74d   :  { %10421 = vsyncpa [#allocation4], 1 }
 0x74e   :  { %10423 = vsyncpa [#allocation4 + $0x1], 1 }

</bundles_post_ra>
